<compile_context>
chip_gen: v7x
topology: tpu7x:2x2x1
jax: 0.10.0
libtpu: 0.0.40
codegen_flags: <defaults>
</compile_context>

<pallas_src>
import jax
import jax.numpy as jnp
from jax.experimental import pallas as pl
from jax.experimental.pallas import tpu as pltpu

INPUT_DIM = 50 * 50 * 2    # 5000
OUTPUT_DIM = 60 * 2        # 120
N_NODES = INPUT_DIM // 2   # 2500
N_PAD = 128                # lane-dense padded output width


def _round_up(n, m):
    return -(-n // m) * m


def _chip_config():
    """Generation-aware tile / VMEM-budget defaults (v5e/v6e vs v7x)."""
    vmem_phys = None
    try:
        info = pltpu.get_tpu_info()
        vmem_phys = getattr(info, "vmem_capacity_bytes", None)
    except Exception:
        vmem_phys = None
    if vmem_phys is None:
        vmem_phys = 64 * 1024 * 1024        # conservative: assume v7x-sized VMEM
    if vmem_phys > 96 * 1024 * 1024:
        # v5e / v6e: 128 MiB physical VMEM, single TensorCore.
        return {"tb": 512, "vmem_limit": 96 * 1024 * 1024, "min_blocks": 1}
    # v7x-class: 64 MiB per TC, 2 TensorCores -> want >= 2 batch blocks.
    return {"tb": 256, "vmem_limit": 48 * 1024 * 1024, "min_blocks": 2}


def _linear_kernel(x_ref, w_ref, b_ref, o_ref):
    # x_ref: (TB, K) VMEM (streamed); w_ref: (K, 128) VMEM-resident (single
    # buffer); b_ref: (1, 128) f32 VMEM-resident.
    # Hot path: one MXU matmul with f32 accumulation + broadcast bias add,
    # lane-dense (128-wide) unmasked store.
    acc = jnp.dot(x_ref[...], w_ref[...], preferred_element_type=jnp.float32)
    o_ref[...] = (acc + b_ref[...]).astype(o_ref.dtype)


def _make_specs(TB, K, Np, single_buffer_resident):
    resident_kw = {}
    if single_buffer_resident:
        # Constant index_maps -> double-buffering buys nothing; single buffer
        # frees ~5 MiB of VMEM for the streamed x tiles.
        resident_kw = {"pipeline_mode": pl.Buffered(1)}
    in_specs = [
        pl.BlockSpec((TB, K), lambda i: (i, 0)),                   # streamed x
        pl.BlockSpec((K, Np), lambda i: (0, 0), **resident_kw),    # weight
        pl.BlockSpec((1, Np), lambda i: (0, 0), **resident_kw),    # bias
    ]
    out_specs = pl.BlockSpec((TB, Np), lambda i: (i, 0))
    return in_specs, out_specs


def linear_pallas(x2d, w_kn, b_1n, *, tb=None, vmem_limit=None):
    """x2d: (B, K), w_kn: (K, 128), b_1n: (1, 128) -> (B, 128) float32."""
    B, K = x2d.shape
    Kw, Np = w_kn.shape
    assert Kw == K and b_1n.shape == (1, Np)

    cfg = _chip_config()
    tb = cfg["tb"] if tb is None else tb
    vmem_limit = cfg["vmem_limit"] if vmem_limit is None else vmem_limit

    # Full-sublane tile (multiple of 8) even for tiny batches; no batch
    # padding copy -- the last grid block may be partial, and masked edge rows
    # never contaminate (or get written to) valid output rows.
    TB = min(tb, _round_up(B, 8))
    if cfg["min_blocks"] > 1 and pl.cdiv(B, TB) < cfg["min_blocks"] and B >= 16:
        # Give both v7x TensorCores a batch block to work on.
        TB = max(8, _round_up(pl.cdiv(B, cfg["min_blocks"]), 8))
    n_blocks = pl.cdiv(B, TB)

    def run(single_buffer_resident):
        in_specs, out_specs = _make_specs(TB, K, Np, single_buffer_resident)
        return pl.pallas_call(
            _linear_kernel,
            # f32 output regardless of compute dtype -> no extra cast pass.
            out_shape=jax.ShapeDtypeStruct((B, Np), jnp.float32),
            grid_spec=pltpu.PrefetchScalarGridSpec(
                num_scalar_prefetch=0,
                grid=(n_blocks,),
                in_specs=in_specs,
                out_specs=out_specs,
            ),
            compiler_params=pltpu.CompilerParams(
                # Independent batch tiles -> shard across v7x's 2 TensorCores.
                dimension_semantics=("parallel",),
                # Never claim all of physical VMEM (leave Mosaic scratch room).
                vmem_limit_bytes=vmem_limit,
            ),
        )(x2d, w_kn, b_1n)

    try:
        return run(single_buffer_resident=True)
    except Exception:
        # Fallback if pipeline_mode=pl.Buffered(1) is rejected by this
        # jax/Mosaic build; default double-buffering is still correct.
        return run(single_buffer_resident=False)


def prepare_params(weight_out_in, bias_out, feat_dim, compute_dtype=jnp.float32):
    """One-time parameter prep (hoisted out of the per-call forward path).

    weight_out_in: (120, 5000) PyTorch nn.Linear layout; bias_out: (120,).
    feat_dim == 2 -> plain (5000, 128) weight (safe explicit-slice path).
    feat_dim  > 2 -> (2500*feat_dim, 128) zero-row-expanded weight that fuses
                     the [..., :2] slice into the matmul (requires the dropped
                     feature columns to be finite).
    """
    assert feat_dim >= 2
    w_kn = jnp.transpose(weight_out_in)                        # (5000, 120)
    w_kn = jnp.pad(w_kn, ((0, 0), (0, N_PAD - OUTPUT_DIM)))    # (5000, 128)
    if feat_dim > 2:
        w_exp = jnp.zeros((N_NODES, feat_dim, N_PAD), w_kn.dtype)
        w_exp = w_exp.at[:, :2, :].set(w_kn.reshape(N_NODES, 2, N_PAD))
        w_kn = w_exp.reshape(N_NODES * feat_dim, N_PAD)
    b_pad = jnp.pad(bias_out, (0, N_PAD - OUTPUT_DIM)).reshape(1, N_PAD)
    return w_kn.astype(compute_dtype), b_pad.astype(jnp.float32)


def linear_regression_forward(data_x, w_kn, b_pad, compute_dtype=jnp.float32):
    """Forward matching the PyTorch module. Returns (B, 60, 2) float32.

    data_x: (..., F) with F >= 2 and 2500*F total elements per output row.
    Use compute_dtype=jnp.bfloat16 (for x and w via prepare_params) on
    v5e/v6e/v7x when the 1e-4 accuracy budget can be relaxed -- the kernel is
    HBM-bound and x dominates bytes, so bf16 is ~2x wall clock.
    """
    feat_dim = data_x.shape[-1]
    if w_kn.shape[0] == N_NODES * feat_dim and feat_dim > 2:
        # Fused path: zero weight rows drop the unused features inside the
        # matmul -> single HBM read of the raw data (no slice-copy).
        x = data_x.reshape(-1, N_NODES * feat_dim)
    else:
        # Safe path (weight prepared with feat_dim=2): explicit [..., :2].
        assert w_kn.shape[0] == INPUT_DIM
        x = data_x[..., :2].reshape(-1, INPUT_DIM)
    x = x.astype(compute_dtype)
    y = linear_pallas(x, w_kn, b_pad)            # (B, 128) f32
    return y[:, :OUTPUT_DIM].reshape(-1, 60, 2)  # drop lane padding


if __name__ == "__main__":
    key = jax.random.PRNGKey(0)
    k_x, k_w, k_b = jax.random.split(key, 3)

    # Small example: 2 "graphs" x 2500 nodes x 4 features; slicing [..., :2]
    # + reshape gives batch B = 2 rows of 5000 features.
    data_x = jax.random.normal(k_x, (2, 2500, 4), dtype=jnp.float32)

    # Deterministic parameter init (uniform like nn.Linear default bounds).
    bound = 1.0 / (INPUT_DIM ** 0.5)
    weight = jax.random.uniform(
        k_w, (OUTPUT_DIM, INPUT_DIM), jnp.float32, minval=-bound, maxval=bound)
    bias = jax.random.uniform(
        k_b, (OUTPUT_DIM,), jnp.float32, minval=-bound, maxval=bound)

    # One-time prep (transpose + pad + slice-fusion), hoisted out of forward.
    w_kn, b_pad = prepare_params(weight, bias, feat_dim=data_x.shape[-1])

    out = linear_regression_forward(data_x, w_kn, b_pad)
    out = jax.block_until_ready(out)
    assert out.shape == (2, 60, 2), out.shape

    # Reference check in plain JAX (mirrors the PyTorch forward exactly).
    x_ref = data_x[..., :2].reshape(-1, INPUT_DIM)
    ref = (x_ref @ weight.T + bias).reshape(-1, 60, 2)
    assert jnp.allclose(out, ref, atol=1e-4, rtol=1e-4), \
        float(jnp.max(jnp.abs(out - ref)))

    print("KERNEL_OK")
</pallas_src>

<mosaic_0001>
module attributes {stable_mosaic.version = 11 : i64} {
  func.func @_linear_kernel(%arg0: i32, %arg1: memref<8x10000xf32, #tpu.memory_space<vmem>>, %arg2: memref<10000x128xf32, #tpu.memory_space<vmem>>, %arg3: memref<1x128xf32, #tpu.memory_space<vmem>>, %arg4: memref<8x128xf32, #tpu.memory_space<vmem>>) attributes {dimension_semantics = [#tpu.dimension_semantics<parallel>], iteration_bounds = array<i64: 1>, scalar_prefetch = 0 : i64, scratch_operands = 0 : i64, tpu.core_type = #tpu.core_type<tc>, window_params = [{transform_indices = @transform_0, window_bounds = array<i64: 8, 10000>}, {pipeline_mode = #tpu.pipeline_mode<synchronous>, transform_indices = @transform_1, window_bounds = array<i64: 10000, 128>}, {pipeline_mode = #tpu.pipeline_mode<synchronous>, transform_indices = @transform_2, window_bounds = array<i64: 1, 128>}, {transform_indices = @transform_3, window_bounds = array<i64: 8, 128>}]} {
    %c0 = arith.constant 0 : index
    %c0_0 = arith.constant 0 : index
    %0 = vector.load %arg1[%c0, %c0_0] : memref<8x10000xf32, #tpu.memory_space<vmem>>, vector<8x10000xf32>
    %c0_1 = arith.constant 0 : index
    %c0_2 = arith.constant 0 : index
    %1 = vector.load %arg2[%c0_1, %c0_2] : memref<10000x128xf32, #tpu.memory_space<vmem>>, vector<10000x128xf32>
    %cst = arith.constant dense<0.000000e+00> : vector<8x128xf32>
    %2 = tpu.matmul %0, %1, %cst {dimension_numbers = #tpu.dot_dimension_numbers<[1], [0], [0], [1], [0, 0, 1, 1], [], []>} : vector<8x10000xf32>, vector<10000x128xf32>, vector<8x128xf32> -> vector<8x128xf32>
    %c0_3 = arith.constant 0 : index
    %c0_4 = arith.constant 0 : index
    %3 = vector.load %arg3[%c0_3, %c0_4] : memref<1x128xf32, #tpu.memory_space<vmem>>, vector<1x128xf32>
    %4 = vector.broadcast %3 : vector<1x128xf32> to vector<8x128xf32>
    %5 = arith.addf %2, %4 : vector<8x128xf32>
    %c0_5 = arith.constant 0 : index
    %c0_6 = arith.constant 0 : index
    %6 = vector.load %arg4[%c0_5, %c0_6] : memref<8x128xf32, #tpu.memory_space<vmem>>, vector<8x128xf32>
    tpu.vector_store %arg4[%c0_5, %c0_6], %5 {strides = array<i32>} : memref<8x128xf32, #tpu.memory_space<vmem>>, vector<8x128xf32>,
    return
  }
  func.func @transform_0(%arg0: i32) -> (i32, i32) {
    %c0_i32 = arith.constant 0 : i32
    %c0_i32_0 = arith.constant 0 : i32
    return %arg0, %c0_i32 : i32, i32
  }
  func.func @transform_1(%arg0: i32) -> (i32, i32) {
    %c0_i32 = arith.constant 0 : i32
    %c0_i32_0 = arith.constant 0 : i32
    %c0_i32_1 = arith.constant 0 : i32
    return %c0_i32, %c0_i32_0 : i32, i32
  }
  func.func @transform_2(%arg0: i32) -> (i32, i32) {
    %c0_i32 = arith.constant 0 : i32
    %c0_i32_0 = arith.constant 0 : i32
    %c0_i32_1 = arith.constant 0 : i32
    return %c0_i32, %c0_i32_0 : i32, i32
  }
  func.func @transform_3(%arg0: i32) -> (i32, i32) {
    %c0_i32 = arith.constant 0 : i32
    %c0_i32_0 = arith.constant 0 : i32
    return %arg0, %c0_i32 : i32, i32
  }
}

module attributes {stable_mosaic.version = 11 : i64} {
  func.func @_linear_kernel(%arg0: i32, %arg1: memref<8x10000xf32, #tpu.memory_space<vmem>>, %arg2: memref<10000x128xf32, #tpu.memory_space<vmem>>, %arg3: memref<1x128xf32, #tpu.memory_space<vmem>>, %arg4: memref<8x128xf32, #tpu.memory_space<vmem>>) attributes {dimension_semantics = [#tpu.dimension_semantics<parallel>], iteration_bounds = array<i64: 1>, scalar_prefetch = 0 : i64, scratch_operands = 0 : i64, tpu.core_type = #tpu.core_type<tc>, window_params = [{transform_indices = @transform_0, window_bounds = array<i64: 8, 10000>}, {pipeline_mode = #tpu.pipeline_mode<synchronous>, transform_indices = @transform_1, window_bounds = array<i64: 10000, 128>}, {pipeline_mode = #tpu.pipeline_mode<synchronous>, transform_indices = @transform_2, window_bounds = array<i64: 1, 128>}, {transform_indices = @transform_3, window_bounds = array<i64: 8, 128>}]} {
    %c0 = arith.constant 0 : index
    %c0_0 = arith.constant 0 : index
    %0 = vector.load %arg1[%c0, %c0_0] : memref<8x10000xf32, #tpu.memory_space<vmem>>, vector<8x10000xf32>
    %c0_1 = arith.constant 0 : index
    %c0_2 = arith.constant 0 : index
    %1 = vector.load %arg2[%c0_1, %c0_2] : memref<10000x128xf32, #tpu.memory_space<vmem>>, vector<10000x128xf32>
    %cst = arith.constant dense<0.000000e+00> : vector<8x128xf32>
    %2 = tpu.matmul %0, %1, %cst {dimension_numbers = #tpu.dot_dimension_numbers<[1], [0], [0], [1], [0, 0, 1, 1], [], []>} : vector<8x10000xf32>, vector<10000x128xf32>, vector<8x128xf32> -> vector<8x128xf32>
    %c0_3 = arith.constant 0 : index
    %c0_4 = arith.constant 0 : index
    %3 = vector.load %arg3[%c0_3, %c0_4] : memref<1x128xf32, #tpu.memory_space<vmem>>, vector<1x128xf32>
    %4 = vector.broadcast %3 : vector<1x128xf32> to vector<8x128xf32>
    %5 = arith.addf %2, %4 : vector<8x128xf32>
    %c0_5 = arith.constant 0 : index
    %c0_6 = arith.constant 0 : index
    %6 = vector.load %arg4[%c0_5, %c0_6] : memref<8x128xf32, #tpu.memory_space<vmem>>, vector<8x128xf32>
    tpu.vector_store %arg4[%c0_5, %c0_6], %5 {strides = array<i32>} : memref<8x128xf32, #tpu.memory_space<vmem>>, vector<8x128xf32>,
    return
  }
  func.func @transform_0(%arg0: i32) -> (i32, i32) {
    %c0_i32 = arith.constant 0 : i32
    %c0_i32_0 = arith.constant 0 : i32
    return %arg0, %c0_i32 : i32, i32
  }
  func.func @transform_1(%arg0: i32) -> (i32, i32) {
    %c0_i32 = arith.constant 0 : i32
    %c0_i32_0 = arith.constant 0 : i32
    %c0_i32_1 = arith.constant 0 : i32
    return %c0_i32, %c0_i32_0 : i32, i32
  }
  func.func @transform_2(%arg0: i32) -> (i32, i32) {
    %c0_i32 = arith.constant 0 : i32
    %c0_i32_0 = arith.constant 0 : i32
    %c0_i32_1 = arith.constant 0 : i32
    return %c0_i32, %c0_i32_0 : i32, i32
  }
  func.func @transform_3(%arg0: i32) -> (i32, i32) {
    %c0_i32 = arith.constant 0 : i32
    %c0_i32_0 = arith.constant 0 : i32
    return %arg0, %c0_i32 : i32, i32
  }
}

</mosaic_0001>

<bundles_post_ra>
// kernel: tpu_custom_call.1
= control target key start
LH: loop header
LB: loop body
LE: loop exit
PB: predicated region body
PF: predicated region fallthrough
CT: control target
= control target key end

     0   :  { %8 = vsyncpa [#allocation3], 0  ;;  %s8322_s0 = inlined_call_operand.hbm [shape: f32[2,10000], index: 0, kind: input, shape index: {}]   ;;  %s8323_s1 = inlined_call_operand.hbm [shape: f32[10000,128], index: 1, kind: input, shape index: {}]   ;;  %s8324_s2 = inlined_call_operand.hbm [shape: f32[1,128], index: 2, kind: input, shape index: {}]   ;;  %s8325_s3 = inlined_call_operand.hbm [shape: f32[2,128], index: 3, kind: output, shape index: {}]  }
   0x1   :  { %9 = vsyncpa [#allocation6], 0 }
   0x2   :  { %10 = vsyncpa [#allocation4], 0 }
   0x3   :  { %15 = vsyncadd [#allocation3], 7584  ;;  %s7826_s12 = smov [#allocation5]   ;;  %s7732_s16 = scalar_lea.hbm %s8323_s1, 160000 }
   0x4   :  { %s28_s13 = sshll.u32 %s7826_s12, 4  ;;  %p7733_p0 = scmp.ne.s32.totalorder %s8323_s1, %s7732_s16  ;;  %s29_s13 = int_to_ptr.vmem [resolvable:$true] %s28_s13 }
   0x5   :  { %p7736_p1 = scmp.lt.u32.totalorder %s7732_s16, %s8323_s1 }
   0x7   :  { %p7738_p2 = pnand %p7736_p1, %p7733_p0 }
   0x9   :  { %7741 = shalt.err (!%p7738_p2)
}
   0xa   :  { %s7742_s21 = scalar_lea.vmem %s29_s13, 160000  ;;  %p7747_p4 = scmp.lt.s32.totalorder %s29_s13, %s29_s13 }
   0xb   :  { %p7743_p3 = scmp.ne.s32.totalorder %s29_s13, %s7742_s21  ;;  %p7748_p5 = scmp.lt.s32.totalorder %s7742_s21, %s7742_s21 }
   0xd   :  { %p7749_p6 = por %p7748_p5, %p7747_p4 }
   0xf   :  { %p7750_p7 = pnand %p7749_p6, %p7743_p3 }
  0x11   :  { %7753 = shalt.err (!%p7750_p7)
}
  0x12   :  { %s7827_s22 = smov 128   ;;  %s7828_s23 = smov 8  }
  0x13   :  { %34 = dma.hbm_to_vmem [thread:$0]  %s8323_s1, 160000, %s29_s13, [#allocation6], %s7827_s22, %s7827_s22, %s7828_s23  }
  0x14   :  { %s7829_s26 = smov [#allocation2]   ;;  %s7754_s30 = scalar_lea.hbm %s8322_s0, 2528 }
  0x15   :  { %s16_s27 = sshll.u32 %s7829_s26, 4  ;;  %p7755_p8 = scmp.ne.s32.totalorder %s8322_s0, %s7754_s30  ;;  %s17_s27 = int_to_ptr.vmem [resolvable:$true] %s16_s27 }
  0x16   :  { %p7758_p9 = scmp.lt.u32.totalorder %s7754_s30, %s8322_s0 }
  0x18   :  { %p7760_p10 = pnand %p7758_p9, %p7755_p8 }
  0x1a   :  { %7763 = shalt.err (!%p7760_p10)
}
  0x1b   :  { %s7764_s8 = scalar_lea.vmem %s17_s27, 2528  ;;  %s7768_s1 = scalar_lea.vmem %s17_s27, 10112 }
  0x1c   :  { %p7765_p11 = scmp.ne.s32.totalorder %s17_s27, %s7764_s8  ;;  %p7769_p12 = scmp.lt.s32.totalorder %s17_s27, %s17_s27 }
  0x1d   :  { %p7770_p13 = scmp.lt.s32.totalorder %s7768_s1, %s7764_s8 }
  0x1f   :  { %p7771_p0 = por %p7770_p13, %p7769_p12 }
  0x21   :  { %p7772_p1 = pnand %p7771_p0, %p7765_p11 }
  0x23   :  { %7775 = shalt.err (!%p7772_p1)
}
  0x24   :  { %s7830_s9 = smov 2528   ;;  %s7831_s10 = smov 158  }
  0x25   :  { %22 = dma.hbm_to_vmem [thread:$0]  %s8322_s0, 2528, %s17_s27, [#allocation3], %s7830_s9, %s7830_s9, %s7831_s10  }
  0x26   :  { %s7832_s13 = smov [#allocation7]   ;;  %s7776_s17 = scalar_lea.hbm %s8324_s2, 16 }
  0x27   :  { %s41_s14 = sshll.u32 %s7832_s13, 4  ;;  %p7777_p2 = scmp.ne.s32.totalorder %s8324_s2, %s7776_s17  ;;  %s42_s14 = int_to_ptr.vmem [resolvable:$true] %s41_s14 }
  0x28   :  { %p7780_p3 = scmp.lt.u32.totalorder %s7776_s17, %s8324_s2 }
  0x2a   :  { %p7782_p4 = pnand %p7780_p3, %p7777_p2 }
  0x2c   :  { %7785 = shalt.err (!%p7782_p4)
}
  0x2d   :  { %s7786_s22 = scalar_lea.vmem %s42_s14, 16  ;;  %s7790_s0 = scalar_lea.vmem %s42_s14, 32 }
  0x2e   :  { %p7787_p5 = scmp.ne.s32.totalorder %s42_s14, %s7786_s22  ;;  %p7791_p6 = scmp.lt.s32.totalorder %s42_s14, %s42_s14 }
  0x2f   :  { %p7792_p7 = scmp.lt.s32.totalorder %s7790_s0, %s7786_s22 }
  0x31   :  { %p7793_p8 = por %p7792_p7, %p7791_p6 }
  0x33   :  { %p7794_p9 = pnand %p7793_p8, %p7787_p5 }
  0x35   :  { %7797 = shalt.err (!%p7794_p9)
}
  0x36   :  { %44 = dma.hbm_to_vmem [thread:$0]  %s8324_s2, 16, %s42_s14, [#allocation6]  }
  0x37   :  { %7820 = dma.done.wait [#allocation3], 10112  }
  0x38   :  { %7821 = vsyncadd [#allocation3], 4294957184 }
  0x39   :  { %7822 = dma.done.wait [#allocation6], 160016  }
  0x3a   :  { %7823 = vsyncadd [#allocation6], 4294807280  ;;  %v150_v0 = vld [vmem:[#allocation5 + $0x80] sm:$0xff]  ;;  %v151_v1 = vld [vmem:[#allocation5 + $0x88] sm:$0xff]  ;;  %v7833_v51 = vmov 1983009808   ;;  %v1478_v53 = vlaneseq }
  0x3b   :  { %v134_v2 = vld [vmem:[#allocation5] sm:$0xff]  ;;  %v6467_v3 = vpack.c.bf16 %v151_v1, %v150_v0  ;;  %v135_v4 = vld [vmem:[#allocation5 + $0x8] sm:$0xff]  ;;  %v152_v11 = vld [vmem:[#allocation5 + $0x90] sm:$0xff]  ;;  %v1476_v52 = vunpack.c.l.s4 %v7833_v51  ;;  %vm7835_vm0 = vmmov 0   ;;  %vm2268_vm1 = vcmask 130048  }
  0x3c   :  { %v182_v5 = vld [vmem:[#allocation5 + $0x180] sm:$0xff]  ;;  %v183_v6 = vld [vmem:[#allocation5 + $0x188] sm:$0xff]  ;;  %v6469_v7 = vpack.c.bf16 %v135_v4, %v134_v2  ;;  %v153_v13 = vld [vmem:[#allocation5 + $0x98] sm:$0xff] }
  0x3d   :  { %v6499_v8 = vpack.c.bf16 %v183_v6, %v182_v5  ;;  %v166_v9 = vld [vmem:[#allocation5 + $0x100] sm:$0xff]  ;;  %v167_v10 = vld [vmem:[#allocation5 + $0x108] sm:$0xff]  ;;  %6468 = vmatprep.subr.bf16.mxu0 %v6467_v3  ;;  %v136_v14 = vld [vmem:[#allocation5 + $0x10] sm:$0xff]  ;;  %v6471_v16 = vpack.c.bf16 %v153_v13, %v152_v11  ;;  %v1477_v4 = vunpack.c.0.s8 %v1476_v52  ;;  %v1479_v5 = vshrl.u32 %v1478_v53, 7 }
  0x3e   :  { %v6501_v12 = vpack.c.bf16 %v167_v10, %v166_v9  ;;  %v137_v15 = vld [vmem:[#allocation5 + $0x18] sm:$0xff]  ;;  %6470 = vmatpush3.bf16.msra.mxu0 %v6469_v7  ;;  %v184_v18 = vld [vmem:[#allocation5 + $0x190] sm:$0xff]  ;;  %v154_v23 = vld [vmem:[#allocation5 + $0xa0] sm:$0xff] }
  0x3f   :  { %6500 = vmatprep.subr.bf16.mxu1 %v6499_v8  ;;  %v6473_v17 = vpack.c.bf16 %v137_v15, %v136_v14  ;;  %v185_v19 = vld [vmem:[#allocation5 + $0x198] sm:$0xff]  ;;  %v168_v20 = vld [vmem:[#allocation5 + $0x110] sm:$0xff]  ;;  %v155_v24 = vld [vmem:[#allocation5 + $0xa8] sm:$0xff]  ;;  %6472 = vmatprep.subr.bf16.mxu0 %v6471_v16 }
  0x40   :  { %6502 = vmatpush3.bf16.msra.mxu1 %v6501_v12  ;;  %v6503_v21 = vpack.c.bf16 %v185_v19, %v184_v18  ;;  %v169_v22 = vld [vmem:[#allocation5 + $0x118] sm:$0xff]  ;;  %v6475_v26 = vpack.c.bf16 %v155_v24, %v154_v23  ;;  %v138_v27 = vld [vmem:[#allocation5 + $0x20] sm:$0xff]  ;;  %v139_v28 = vld [vmem:[#allocation5 + $0x28] sm:$0xff] }
  0x41   :  { %v6505_v25 = vpack.c.bf16 %v169_v22, %v168_v20  ;;  %v186_v29 = vld [vmem:[#allocation5 + $0x1a0] sm:$0xff]  ;;  %v187_v30 = vld [vmem:[#allocation5 + $0x1a8] sm:$0xff]  ;;  %v6477_v33 = vpack.c.bf16 %v139_v28, %v138_v27  ;;  %v156_v35 = vld [vmem:[#allocation5 + $0xb0] sm:$0xff]  ;;  %v7896_v20 = vsub.s32 %v1477_v4, %v1479_v5 }
  0x42   :  { %6504 = vmatprep.subr.bf16.mxu1 %v6503_v21  ;;  %v170_v31 = vld [vmem:[#allocation5 + $0x120] sm:$0xff]  ;;  %v171_v32 = vld [vmem:[#allocation5 + $0x128] sm:$0xff]  ;;  %6474 = vmatpush3.bf16.msra.mxu0 %v6473_v17  ;;  %v6507_v34 = vpack.c.bf16 %v187_v30, %v186_v29  ;;  %v157_v36 = vld [vmem:[#allocation5 + $0xb8] sm:$0xff] }
  0x43   :  { %v140_v37 = vld [vmem:[#allocation5 + $0x30] sm:$0xff]  ;;  %6476 = vmatprep.subr.bf16.mxu0 %v6475_v26  ;;  %v6509_v38 = vpack.c.bf16 %v171_v32, %v170_v31  ;;  %v6479_v39 = vpack.c.bf16 %v157_v36, %v156_v35  ;;  %v141_v40 = vld [vmem:[#allocation5 + $0x38] sm:$0xff]  ;;  %v158_v46 = vld [vmem:[#allocation5 + $0xc0] sm:$0xff] }
  0x44   :  { %6506 = vmatpush3.bf16.msra.mxu1 %v6505_v25  ;;  %v188_v41 = vld [vmem:[#allocation5 + $0x1b0] sm:$0xff]  ;;  %v189_v42 = vld [vmem:[#allocation5 + $0x1b8] sm:$0xff]  ;;  %v159_v47 = vld [vmem:[#allocation5 + $0xc8] sm:$0xff]  ;;  %v6481_v48 = vpack.c.bf16 %v141_v40, %v140_v37 }
  0x45   :  { %6508 = vmatprep.subr.bf16.mxu1 %v6507_v34  ;;  %v6511_v43 = vpack.c.bf16 %v189_v42, %v188_v41  ;;  %v172_v44 = vld [vmem:[#allocation5 + $0x130] sm:$0xff]  ;;  %v173_v45 = vld [vmem:[#allocation5 + $0x138] sm:$0xff]  ;;  %v190_v49 = vld [vmem:[#allocation5 + $0x1c0] sm:$0xff]  ;;  %v6483_v55 = vpack.c.bf16 %v159_v47, %v158_v46 }
  0x46   :  { %6478 = vmatpush3.bf16.msra.mxu0 %v6477_v33  ;;  %v191_v50 = vld [vmem:[#allocation5 + $0x1c8] sm:$0xff]  ;;  %v6513_v54 = vpack.c.bf16 %v173_v45, %v172_v44  ;;  %v142_v56 = vld [vmem:[#allocation5 + $0x40] sm:$0xff]  ;;  %v160_v61 = vld [vmem:[#allocation5 + $0xd0] sm:$0xff] }
  0x47   :  { %6480 = vmatprep.subr.bf16.mxu0 %v6479_v39  ;;  %v143_v57 = vld [vmem:[#allocation5 + $0x48] sm:$0xff]  ;;  %v174_v58 = vld [vmem:[#allocation5 + $0x140] sm:$0xff]  ;;  %v6515_v59 = vpack.c.bf16 %v191_v50, %v190_v49  ;;  %v161_v62 = vld [vmem:[#allocation5 + $0xd8] sm:$0xff] }
  0x48   :  { %6510 = vmatpush3.bf16.msra.mxu1 %v6509_v38  ;;  %v175_v60 = vld [vmem:[#allocation5 + $0x148] sm:$0xff]  ;;  %v192_v63 = vld [vmem:[#allocation5 + $0x1d0] sm:$0xff]  ;;  %v193_v0 = vld [vmem:[#allocation5 + $0x1d8] sm:$0xff]  ;;  %v6485_v1 = vpack.c.bf16 %v143_v57, %v142_v56  ;;  %v6487_v7 = vpack.c.bf16 %v161_v62, %v160_v61 }
  0x49   :  { %6512 = vmatprep.subr.bf16.mxu1 %v6511_v43  ;;  %v144_v2 = vld [vmem:[#allocation5 + $0x50] sm:$0xff]  ;;  %v145_v3 = vld [vmem:[#allocation5 + $0x58] sm:$0xff]  ;;  %v6517_v6 = vpack.c.bf16 %v175_v60, %v174_v58  ;;  %v162_v10 = vld [vmem:[#allocation5 + $0xe0] sm:$0xff]  ;;  %v6519_v11 = vpack.c.bf16 %v193_v0, %v192_v63 }
  0x4a   :  { %6482 = vmatpush3.bf16.msra.mxu0 %v6481_v48  ;;  %v176_v8 = vld [vmem:[#allocation5 + $0x150] sm:$0xff]  ;;  %v177_v9 = vld [vmem:[#allocation5 + $0x158] sm:$0xff]  ;;  %v163_v12 = vld [vmem:[#allocation5 + $0xe8] sm:$0xff]  ;;  %v6489_v16 = vpack.c.bf16 %v145_v3, %v144_v2 }
  0x4b   :  { %6484 = vmatprep.subr.bf16.mxu0 %v6483_v55  ;;  %v194_v13 = vld [vmem:[#allocation5 + $0x1e0] sm:$0xff]  ;;  %v195_v14 = vld [vmem:[#allocation5 + $0x1e8] sm:$0xff]  ;;  %v6521_v21 = vpack.c.bf16 %v177_v9, %v176_v8  ;;  %v6491_v22 = vpack.c.bf16 %v163_v12, %v162_v10  ;;  %v164_v28 = vld [vmem:[#allocation5 + $0xf0] sm:$0xff] }
  0x4c   :  { %6514 = vmatpush3.bf16.msra.mxu1 %v6513_v54  ;;  %v146_v15 = vld [vmem:[#allocation5 + $0x60] sm:$0xff]  ;;  %v147_v17 = vld [vmem:[#allocation5 + $0x68] sm:$0xff]  ;;  %v6523_v23 = vpack.c.bf16 %v195_v14, %v194_v13  ;;  %v165_v29 = vld [vmem:[#allocation5 + $0xf8] sm:$0xff] }
  0x4d   :  { %6516 = vmatprep.subr.bf16.mxu1 %v6515_v59  ;;  %v178_v18 = vld [vmem:[#allocation5 + $0x160] sm:$0xff]  ;;  %v54_v19 = vld [vmem:[#allocation2] sm:$0xff]  ;;  %v196_v34 = vld [vmem:[#allocation5 + $0x1f0] sm:$0xff]  ;;  %v6493_v36 = vpack.c.bf16 %v147_v17, %v146_v15  ;;  %v6495_v41 = vpack.c.bf16 %v165_v29, %v164_v28 }
  0x4e   :  { %6486 = vmatpush3.bf16.msra.mxu0 %v6485_v1  ;;  %v74_v24 = vld [vmem:[#allocation2 + $0x9e] sm:$0xff]  ;;  %v197_v35 = vld [vmem:[#allocation5 + $0x1f8] sm:$0xff]  ;;  %v148_v42 = vld [vmem:[#allocation5 + $0x70] sm:$0xff] }
  0x4f   :  { %6488 = vmatprep.subr.bf16.mxu0 %v6487_v7  ;;  %v94_v25 = vld [vmem:[#allocation2 + $0x13c] sm:$0xff]  ;;  %v1471_v30 = vcombine.low %v54_v19, %v74_v24  ;;  %v1472_v32 = vcombine.high %v54_v19, %v74_v24  ;;  %v149_v43 = vld [vmem:[#allocation5 + $0x78] sm:$0xff]  ;;  %v180_v44 = vld [vmem:[#allocation5 + $0x170] sm:$0xff]  ;;  %v6527_v46 = vpack.c.bf16 %v197_v35, %v196_v34 }
  0x50   :  { %6518 = vmatpush3.bf16.msra.mxu1 %v6517_v6  ;;  %v114_v26 = vld [vmem:[#allocation2 + $0x1da] sm:$0xff]  ;;  %v181_v48 = vld [vmem:[#allocation5 + $0x178] sm:$0xff]  ;;  %v6497_v54 = vpack.c.bf16 %v149_v43, %v148_v42  ;;  %v216_v62 = vld [vmem:[#allocation5 + $0x290] sm:$0xff] }
  0x51   :  { %6520 = vmatprep.subr.bf16.mxu1 %v6519_v11  ;;  %v179_v27 = vld [vmem:[#allocation5 + $0x168] sm:$0xff]  ;;  %v1473_v31 = vcombine.low %v94_v25, %v114_v26  ;;  %v1474_v33 = vcombine.high %v94_v25, %v114_v26  ;;  %v1481_v37 = vrot.slane %v1471_v30, %v7896_v20  ;;  %v1488_v39 = vrot.slane %v1472_v32, %v7896_v20  ;;  %v214_v49 = vld [vmem:[#allocation5 + $0x280] sm:$0xff]  ;;  %v217_v63 = vld [vmem:[#allocation5 + $0x298] sm:$0xff] }
  0x52   :  { %6490 = vmatpush3.bf16.msra.mxu0 %v6489_v16  ;;  %v6525_v40 = vpack.c.bf16 %v179_v27, %v178_v18  ;;  %v215_v50 = vld [vmem:[#allocation5 + $0x288] sm:$0xff]  ;;  %v246_v52 = vld [vmem:[#allocation5 + $0x380] sm:$0xff]  ;;  %v6529_v55 = vpack.c.bf16 %v181_v48, %v180_v44  ;;  %v248_v1 = vld [vmem:[#allocation5 + $0x390] sm:$0xff]  ;;  %v6535_v6 = vpack.c.bf16 %v217_v63, %v216_v62 }
  0x53   :  { %v1495_v38 = vrot.slane %v1473_v31, %v7896_v20  ;;  %6492 = vmatprep.subr.bf16.mxu0 %v6491_v22  ;;  %v1502_v45 = vrot.slane %v1474_v33, %v7896_v20  ;;  %v247_v53 = vld [vmem:[#allocation5 + $0x388] sm:$0xff]  ;;  %v6531_v56 = vpack.c.bf16 %v215_v50, %v214_v49  ;;  %v198_v57 = vld [vmem:[#allocation5 + $0x200] sm:$0xff]  ;;  %v249_v2 = vld [vmem:[#allocation5 + $0x398] sm:$0xff] }
  0x54   :  { %6522 = vmatpush3.bf16.msra.mxu1 %v6521_v21  ;;  %v199_v58 = vld [vmem:[#allocation5 + $0x208] sm:$0xff]  ;;  %v230_v59 = vld [vmem:[#allocation5 + $0x300] sm:$0xff]  ;;  %v6563_v60 = vpack.c.bf16 %v247_v53, %v246_v52  ;;  %v200_v7 = vld [vmem:[#allocation5 + $0x210] sm:$0xff]  ;;  %v6567_v10 = vpack.c.bf16 %v249_v2, %v248_v1 }
  0x55   :  { %6524 = vmatprep.subr.bf16.mxu1 %v6523_v23  ;;  %v1504_v47 = vcombine.high %v1481_v37, %v1495_v38  ;;  %v1506_v51 = vcombine.high %v1488_v39, %v1502_v45  ;;  %v231_v61 = vld [vmem:[#allocation5 + $0x308] sm:$0xff]  ;;  %v1503_v0 = vcombine.low %v1481_v37, %v1495_v38  ;;  %v6533_v3 = vpack.c.bf16 %v199_v58, %v198_v57  ;;  %v201_v8 = vld [vmem:[#allocation5 + $0x218] sm:$0xff]  ;;  %v232_v9 = vld [vmem:[#allocation5 + $0x310] sm:$0xff] }
  0x56   :  { %6494 = vmatpush3.bf16.msra.mxu0 %v6493_v36  ;;  %v1505_v4 = vcombine.low %v1488_v39, %v1502_v45  ;;  %v6565_v5 = vpack.c.bf16 %v231_v61, %v230_v59  ;;  %v233_v11 = vld [vmem:[#allocation5 + $0x318] sm:$0xff]  ;;  %v218_v12 = vld [vmem:[#allocation5 + $0x2a0] sm:$0xff]  ;;  %v219_v13 = vld [vmem:[#allocation5 + $0x2a8] sm:$0xff]  ;;  %v6537_v16 = vpack.c.bf16 %v201_v8, %v200_v7 }
  0x57   :  { %2335 = vmatprep.mubr.f32.mxu0 %v1504_v47  ;;  %6496 = vmatprep.subr.bf16.mxu0 %v6495_v41  ;;  %v250_v14 = vld [vmem:[#allocation5 + $0x3a0] sm:$0xff]  ;;  %v251_v15 = vld [vmem:[#allocation5 + $0x3a8] sm:$0xff]  ;;  %v6569_v17 = vpack.c.bf16 %v233_v11, %v232_v9  ;;  %v6539_v18 = vpack.c.bf16 %v219_v13, %v218_v12  ;;  %v220_v25 = vld [vmem:[#allocation5 + $0x2b0] sm:$0xff] }
  0x58   :  { %6526 = vmatpush3.bf16.msra.mxu1 %v6525_v40  ;;  %2405 = vmatprep.mubr.f32.mxu1 %v1506_v51  ;;  %v202_v19 = vld [vmem:[#allocation5 + $0x220] sm:$0xff]  ;;  %v203_v21 = vld [vmem:[#allocation5 + $0x228] sm:$0xff]  ;;  %v6571_v23 = vpack.c.bf16 %v251_v15, %v250_v14  ;;  %v221_v26 = vld [vmem:[#allocation5 + $0x2b8] sm:$0xff] }
  0x59   :  { %6528 = vmatprep.subr.bf16.mxu1 %v6527_v46  ;;  %v234_v22 = vld [vmem:[#allocation5 + $0x320] sm:$0xff]  ;;  %v235_v24 = vld [vmem:[#allocation5 + $0x328] sm:$0xff]  ;;  %v252_v27 = vld [vmem:[#allocation5 + $0x3b0] sm:$0xff]  ;;  %v6541_v29 = vpack.c.bf16 %v203_v21, %v202_v19  ;;  %v6543_v32 = vpack.c.bf16 %v221_v26, %v220_v25 }
  0x5a   :  { %6498 = vmatpush3.bf16.msra.mxu0 %v6497_v54  ;;  %v253_v28 = vld [vmem:[#allocation5 + $0x3b8] sm:$0xff]  ;;  %v204_v30 = vld [vmem:[#allocation5 + $0x230] sm:$0xff]  ;;  %v6573_v31 = vpack.c.bf16 %v235_v24, %v234_v22  ;;  %v222_v37 = vld [vmem:[#allocation5 + $0x2c0] sm:$0xff] }
  0x5b   :  { %6532 = vmatprep.subr.bf16.mxu0 %v6531_v56  ;;  %v205_v33 = vld [vmem:[#allocation5 + $0x238] sm:$0xff]  ;;  %v236_v34 = vld [vmem:[#allocation5 + $0x330] sm:$0xff]  ;;  %v6575_v36 = vpack.c.bf16 %v253_v28, %v252_v27  ;;  %v223_v38 = vld [vmem:[#allocation5 + $0x2c8] sm:$0xff] }
  0x5c   :  { %6530 = vmatpush3.bf16.msra.mxu1 %v6529_v55  ;;  %v237_v35 = vld [vmem:[#allocation5 + $0x338] sm:$0xff]  ;;  %v254_v39 = vld [vmem:[#allocation5 + $0x3c0] sm:$0xff]  ;;  %v255_v40 = vld [vmem:[#allocation5 + $0x3c8] sm:$0xff]  ;;  %v6545_v43 = vpack.c.bf16 %v205_v33, %v204_v30  ;;  %v6547_v50 = vpack.c.bf16 %v223_v38, %v222_v37 }
  0x5d   :  { %6564 = vmatprep.subr.bf16.mxu1 %v6563_v60  ;;  %2336 = vmatmul.mubr.f32.vlgmr.msra.gmra.mrb[0].mxu0 %v1503_v0  ;;  %v55_v41 = vld [vmem:[#allocation2 + $0x8] sm:$0xff]  ;;  %v6577_v44 = vpack.c.bf16 %v237_v35, %v236_v34  ;;  %v206_v45 = vld [vmem:[#allocation5 + $0x240] sm:$0xff]  ;;  %v207_v51 = vld [vmem:[#allocation5 + $0x248] sm:$0xff]  ;;  %v6579_v56 = vpack.c.bf16 %v255_v40, %v254_v39 }
  0x5e   :  { %6534 = vmatpush3.bf16.msra.mxu0 %v6533_v3  ;;  %v75_v42 = vld [vmem:[#allocation2 + $0xa6] sm:$0xff]  ;;  %v238_v52 = vld [vmem:[#allocation5 + $0x340] sm:$0xff]  ;;  %v225_v58 = vld [vmem:[#allocation5 + $0x2d8] sm:$0xff]  ;;  %v6549_v1 = vpack.c.bf16 %v207_v51, %v206_v45 }
  0x5f   :  { %2406 = vmatmul.mubr.f32.vlgmr.msra.gmra.mrb[0].mxu1 %v1505_v4  ;;  %6536 = vmatprep.subr.bf16.mxu0 %v6535_v6  ;;  %v95_v46 = vld [vmem:[#allocation2 + $0x144] sm:$0xff]  ;;  %v1507_v48 = vcombine.low %v55_v41, %v75_v42  ;;  %v1508_v49 = vcombine.high %v55_v41, %v75_v42  ;;  %v257_v62 = vld [vmem:[#allocation5 + $0x3d8] sm:$0xff]  ;;  %v226_v11 = vld [vmem:[#allocation5 + $0x2e0] sm:$0xff] }
  0x60   :  { %6566 = vmatpush3.bf16.msra.mxu1 %v6565_v5  ;;  %v115_v47 = vld [vmem:[#allocation2 + $0x1e2] sm:$0xff]  ;;  %v209_v5 = vld [vmem:[#allocation5 + $0x258] sm:$0xff]  ;;  %v258_v13 = vld [vmem:[#allocation5 + $0x3e0] sm:$0xff] }
  0x61   :  { %6568 = vmatprep.subr.bf16.mxu1 %v6567_v10  ;;  %v239_v53 = vld [vmem:[#allocation5 + $0x348] sm:$0xff]  ;;  %v1509_v54 = vcombine.low %v95_v46, %v115_v47  ;;  %v1510_v55 = vcombine.high %v95_v46, %v115_v47  ;;  %v224_v57 = vld [vmem:[#allocation5 + $0x2d0] sm:$0xff]  ;;  %v7903_v59 = vrot.slane %v1507_v48, %v7896_v20  ;;  %v7906_v60 = vrot.slane %v1508_v49, %v7896_v20  ;;  %v241_v10 = vld [vmem:[#allocation5 + $0x358] sm:$0xff] }
  0x62   :  { %6538 = vmatpush3.bf16.msra.mxu0 %v6537_v16  ;;  %v256_v61 = vld [vmem:[#allocation5 + $0x3d0] sm:$0xff]  ;;  %v6581_v2 = vpack.c.bf16 %v239_v53, %v238_v52  ;;  %v6551_v3 = vpack.c.bf16 %v225_v58, %v224_v57  ;;  %v227_v12 = vld [vmem:[#allocation5 + $0x2e8] sm:$0xff]  ;;  %v242_v21 = vld [vmem:[#allocation5 + $0x360] sm:$0xff] }
  0x63   :  { %6540 = vmatprep.subr.bf16.mxu0 %v6539_v18  ;;  %v7909_v63 = vrot.slane %v1509_v54, %v7896_v20  ;;  %v7912_v0 = vrot.slane %v1510_v55, %v7896_v20  ;;  %v208_v4 = vld [vmem:[#allocation5 + $0x250] sm:$0xff]  ;;  %v6583_v9 = vpack.c.bf16 %v257_v62, %v256_v61  ;;  %v259_v14 = vld [vmem:[#allocation5 + $0x3e8] sm:$0xff]  ;;  %v210_v18 = vld [vmem:[#allocation5 + $0x260] sm:$0xff] }
  0x64   :  { %6570 = vmatpush3.bf16.msra.mxu1 %v6569_v17  ;;  %v240_v6 = vld [vmem:[#allocation5 + $0x350] sm:$0xff]  ;;  %v6553_v15 = vpack.c.bf16 %v209_v5, %v208_v4  ;;  %v6555_v17 = vpack.c.bf16 %v227_v12, %v226_v11  ;;  %v211_v19 = vld [vmem:[#allocation5 + $0x268] sm:$0xff]  ;;  %v6587_v22 = vpack.c.bf16 %v259_v14, %v258_v13  ;;  %v229_v25 = vld [vmem:[#allocation5 + $0x2f8] sm:$0xff] }
  0x65   :  { %6572 = vmatprep.subr.bf16.mxu1 %v6571_v23  ;;  %v1540_v7 = vcombine.high %v7903_v59, %v7909_v63  ;;  %v1542_v8 = vcombine.high %v7906_v60, %v7912_v0  ;;  %v6585_v16 = vpack.c.bf16 %v241_v10, %v240_v6  ;;  %v243_v23 = vld [vmem:[#allocation5 + $0x368] sm:$0xff]  ;;  %v228_v24 = vld [vmem:[#allocation5 + $0x2f0] sm:$0xff]  ;;  %v261_v27 = vld [vmem:[#allocation5 + $0x3f8] sm:$0xff]  ;;  %v6557_v28 = vpack.c.bf16 %v211_v19, %v210_v18 }
  0x66   :  { %6542 = vmatpush3.bf16.msra.mxu0 %v6541_v29  ;;  %v260_v26 = vld [vmem:[#allocation5 + $0x3f0] sm:$0xff]  ;;  %v6589_v29 = vpack.c.bf16 %v243_v23, %v242_v21  ;;  %v6559_v30 = vpack.c.bf16 %v229_v25, %v228_v24  ;;  %v245_v35 = vld [vmem:[#allocation5 + $0x378] sm:$0xff]  ;;  %v279_v37 = vld [vmem:[#allocation5 + $0x488] sm:$0xff]  ;;  %v1541_v54 = vcombine.low %v7906_v60, %v7912_v0 }
  0x67   :  { %6544 = vmatprep.subr.bf16.mxu0 %v6543_v32  ;;  %2475 = vmatprep.mubr.f32.mxu0 %v1540_v7  ;;  %v213_v32 = vld [vmem:[#allocation5 + $0x278] sm:$0xff]  ;;  %v244_v33 = vld [vmem:[#allocation5 + $0x370] sm:$0xff]  ;;  %v6591_v34 = vpack.c.bf16 %v261_v27, %v260_v26  ;;  %v310_v38 = vld [vmem:[#allocation5 + $0x580] sm:$0xff] }
  0x68   :  { %6574 = vmatpush3.bf16.msra.mxu1 %v6573_v31  ;;  %2545 = vmatprep.mubr.f32.mxu1 %v1542_v8  ;;  %v212_v31 = vld [vmem:[#allocation5 + $0x270] sm:$0xff]  ;;  %v311_v39 = vld [vmem:[#allocation5 + $0x588] sm:$0xff]  ;;  %v6593_v41 = vpack.c.bf16 %v245_v35, %v244_v33  ;;  %v294_v45 = vld [vmem:[#allocation5 + $0x500] sm:$0xff] }
  0x69   :  { %6576 = vmatprep.subr.bf16.mxu1 %v6575_v36  ;;  %v278_v36 = vld [vmem:[#allocation5 + $0x480] sm:$0xff]  ;;  %v6561_v40 = vpack.c.bf16 %v213_v32, %v212_v31  ;;  %v6627_v46 = vpack.c.bf16 %v311_v39, %v310_v38  ;;  %v295_v47 = vld [vmem:[#allocation5 + $0x508] sm:$0xff]  ;;  %v280_v48 = vld [vmem:[#allocation5 + $0x490] sm:$0xff] }
  0x6a   :  { %6546 = vmatpush3.bf16.msra.mxu0 %v6545_v43  ;;  %v6595_v42 = vpack.c.bf16 %v279_v37, %v278_v36  ;;  %v262_v43 = vld [vmem:[#allocation5 + $0x400] sm:$0xff]  ;;  %v281_v49 = vld [vmem:[#allocation5 + $0x498] sm:$0xff]  ;;  %v312_v51 = vld [vmem:[#allocation5 + $0x590] sm:$0xff]  ;;  %v6629_v58 = vpack.c.bf16 %v295_v47, %v294_v45 }
  0x6b   :  { %6548 = vmatprep.subr.bf16.mxu0 %v6547_v50  ;;  %v1539_v50 = vcombine.low %v7903_v59, %v7909_v63  ;;  %v313_v52 = vld [vmem:[#allocation5 + $0x598] sm:$0xff]  ;;  %v264_v55 = vld [vmem:[#allocation5 + $0x410] sm:$0xff]  ;;  %v6599_v61 = vpack.c.bf16 %v281_v49, %v280_v48  ;;  %v314_v6 = vld [vmem:[#allocation5 + $0x5a0] sm:$0xff] }
  0x6c   :  { %6578 = vmatpush3.bf16.msra.mxu1 %v6577_v44  ;;  %v263_v44 = vld [vmem:[#allocation5 + $0x408] sm:$0xff]  ;;  %v296_v57 = vld [vmem:[#allocation5 + $0x510] sm:$0xff]  ;;  %v297_v62 = vld [vmem:[#allocation5 + $0x518] sm:$0xff] }
  0x6d   :  { %6580 = vmatprep.subr.bf16.mxu1 %v6579_v56  ;;  %v6597_v53 = vpack.c.bf16 %v263_v44, %v262_v43  ;;  %v265_v56 = vld [vmem:[#allocation5 + $0x418] sm:$0xff]  ;;  %v315_v7 = vld [vmem:[#allocation5 + $0x5a8] sm:$0xff]  ;;  %v266_v13 = vld [vmem:[#allocation5 + $0x420] sm:$0xff] }
  0x6e   :  { %6550 = vmatpush3.bf16.msra.mxu0 %v6549_v1  ;;  %v282_v1 = vld [vmem:[#allocation5 + $0x4a0] sm:$0xff]  ;;  %v56_v59 = vld [vmem:[#allocation2 + $0x10] sm:$0xff]  ;;  %v6601_v5 = vpack.c.bf16 %v265_v56, %v264_v55  ;;  %v267_v14 = vld [vmem:[#allocation5 + $0x428] sm:$0xff]  ;;  %v6635_v18 = vpack.c.bf16 %v315_v7, %v314_v6 }
  0x6f   :  { %6552 = vmatprep.subr.bf16.mxu0 %v6551_v3  ;;  %v6631_v3 = vpack.c.bf16 %v313_v52, %v312_v51  ;;  %v76_v63 = vld [vmem:[#allocation2 + $0xae] sm:$0xff]  ;;  %v299_v19 = vld [vmem:[#allocation5 + $0x528] sm:$0xff]  ;;  %v6605_v27 = vpack.c.bf16 %v267_v14, %v266_v13  ;;  %v286_v37 = vld [vmem:[#allocation5 + $0x4c0] sm:$0xff] }
  0x70   :  { %6582 = vmatpush3.bf16.msra.mxu1 %v6581_v2  ;;  %v283_v2 = vld [vmem:[#allocation5 + $0x4a8] sm:$0xff]  ;;  %v96_v4 = vld [vmem:[#allocation2 + $0x14c] sm:$0xff]  ;;  %v1543_v0 = vcombine.low %v56_v59, %v76_v63  ;;  %v1544_v8 = vcombine.high %v56_v59, %v76_v63  ;;  %v318_v39 = vld [vmem:[#allocation5 + $0x5c0] sm:$0xff] }
  0x71   :  { %6584 = vmatprep.subr.bf16.mxu1 %v6583_v9  ;;  %v116_v60 = vld [vmem:[#allocation2 + $0x1ea] sm:$0xff]  ;;  %v6633_v9 = vpack.c.bf16 %v297_v62, %v296_v57  ;;  %v6603_v12 = vpack.c.bf16 %v283_v2, %v282_v1  ;;  %v287_v38 = vld [vmem:[#allocation5 + $0x4c8] sm:$0xff]  ;;  %v270_v44 = vld [vmem:[#allocation5 + $0x440] sm:$0xff] }
  0x72   :  { %6554 = vmatpush3.bf16.msra.mxu0 %v6553_v15  ;;  %v1545_v10 = vcombine.low %v96_v4, %v116_v60  ;;  %v1546_v11 = vcombine.high %v96_v4, %v116_v60  ;;  %v298_v15 = vld [vmem:[#allocation5 + $0x520] sm:$0xff]  ;;  %v284_v21 = vld [vmem:[#allocation5 + $0x4b0] sm:$0xff]  ;;  %v317_v26 = vld [vmem:[#allocation5 + $0x5b8] sm:$0xff]  ;;  %v6611_v43 = vpack.c.bf16 %v287_v38, %v286_v37 }
  0x73   :  { %6556 = vmatprep.subr.bf16.mxu0 %v6555_v17  ;;  %v7926_v17 = vrot.slane %v1544_v8, %v7896_v20  ;;  %v316_v25 = vld [vmem:[#allocation5 + $0x5b0] sm:$0xff]  ;;  %v269_v33 = vld [vmem:[#allocation5 + $0x438] sm:$0xff]  ;;  %v271_v45 = vld [vmem:[#allocation5 + $0x448] sm:$0xff] }
  0x74   :  { %6586 = vmatpush3.bf16.msra.mxu1 %v6585_v16  ;;  %v7923_v16 = vrot.slane %v1543_v0, %v7896_v20  ;;  %v7929_v23 = vrot.slane %v1545_v10, %v7896_v20  ;;  %v7932_v24 = vrot.slane %v1546_v11, %v7896_v20  ;;  %v268_v32 = vld [vmem:[#allocation5 + $0x430] sm:$0xff]  ;;  %v6639_v35 = vpack.c.bf16 %v317_v26, %v316_v25  ;;  %v301_v36 = vld [vmem:[#allocation5 + $0x538] sm:$0xff]  ;;  %v303_v48 = vld [vmem:[#allocation5 + $0x548] sm:$0xff] }
  0x75   :  { %6588 = vmatprep.subr.bf16.mxu1 %v6587_v22  ;;  %v285_v22 = vld [vmem:[#allocation5 + $0x4b8] sm:$0xff]  ;;  %v288_v49 = vld [vmem:[#allocation5 + $0x4d0] sm:$0xff]  ;;  %v290_v1 = vld [vmem:[#allocation5 + $0x4e0] sm:$0xff] }
  0x76   :  { %6558 = vmatpush3.bf16.msra.mxu0 %v6557_v28  ;;  %v1576_v28 = vcombine.high %v7923_v16, %v7929_v23  ;;  %v6607_v31 = vpack.c.bf16 %v285_v22, %v284_v21  ;;  %v320_v51 = vld [vmem:[#allocation5 + $0x5d0] sm:$0xff]  ;;  %v321_v52 = vld [vmem:[#allocation5 + $0x5d8] sm:$0xff]  ;;  %v291_v2 = vld [vmem:[#allocation5 + $0x4e8] sm:$0xff] }
  0x77   :  { %6560 = vmatprep.subr.bf16.mxu0 %v6559_v30  ;;  %v6637_v30 = vpack.c.bf16 %v299_v19, %v298_v15  ;;  %v272_v56 = vld [vmem:[#allocation5 + $0x450] sm:$0xff]  ;;  %v273_v57 = vld [vmem:[#allocation5 + $0x458] sm:$0xff]  ;;  %v323_v59 = vld [vmem:[#allocation5 + $0x5e8] sm:$0xff] }
  0x78   :  { %6590 = vmatpush3.bf16.msra.mxu1 %v6589_v29  ;;  %v1578_v29 = vcombine.high %v7926_v17, %v7932_v24  ;;  %v305_v62 = vld [vmem:[#allocation5 + $0x558] sm:$0xff]  ;;  %v6617_v63 = vpack.c.bf16 %v273_v57, %v272_v56  ;;  %v274_v6 = vld [vmem:[#allocation5 + $0x460] sm:$0xff]  ;;  %v275_v7 = vld [vmem:[#allocation5 + $0x468] sm:$0xff]  ;;  %v1577_v56 = vcombine.low %v7926_v17, %v7932_v24 }
  0x79   :  { %6592 = vmatprep.subr.bf16.mxu1 %v6591_v34  ;;  %v300_v34 = vld [vmem:[#allocation5 + $0x530] sm:$0xff]  ;;  %v306_v60 = vld [vmem:[#allocation5 + $0x560] sm:$0xff]  ;;  %v307_v8 = vld [vmem:[#allocation5 + $0x568] sm:$0xff]  ;;  %v6621_v14 = vpack.c.bf16 %v275_v7, %v274_v6 }
  0x7a   :  { %6562 = vmatpush3.bf16.msra.mxu0 %v6561_v40  ;;  %v319_v40 = vld [vmem:[#allocation5 + $0x5c8] sm:$0xff]  ;;  %v293_v10 = vld [vmem:[#allocation5 + $0x4f8] sm:$0xff]  ;;  %v276_v11 = vld [vmem:[#allocation5 + $0x470] sm:$0xff]  ;;  %v6653_v21 = vpack.c.bf16 %v307_v8, %v306_v60 }
  0x7b   :  { %6596 = vmatprep.subr.bf16.mxu0 %v6595_v42  ;;  %v6641_v42 = vpack.c.bf16 %v301_v36, %v300_v34  ;;  %v6643_v47 = vpack.c.bf16 %v319_v40, %v318_v39  ;;  %v325_v13 = vld [vmem:[#allocation5 + $0x5f8] sm:$0xff]  ;;  %v57_v19 = vld [vmem:[#allocation2 + $0x18] sm:$0xff]  ;;  %v331_v60 = vld [vmem:[#allocation5 + $0x628] sm:$0xff] }
  0x7c   :  { %6594 = vmatpush3.bf16.msra.mxu1 %v6593_v41  ;;  %v6609_v41 = vpack.c.bf16 %v269_v33, %v268_v32  ;;  %v277_v15 = vld [vmem:[#allocation5 + $0x478] sm:$0xff]  ;;  %v374_v34 = vld [vmem:[#allocation5 + $0x780] sm:$0xff] }
  0x7d   :  { %6628 = vmatprep.subr.bf16.mxu1 %v6627_v46  ;;  %2476 = vmatmul.mubr.f32.vlgmr.msra.gmra.mrb[2].mxu0 %v1539_v50  ;;  %v302_v46 = vld [vmem:[#allocation5 + $0x540] sm:$0xff]  ;;  %v289_v50 = vld [vmem:[#allocation5 + $0x4d8] sm:$0xff]  ;;  %v6625_v38 = vpack.c.bf16 %v277_v15, %v276_v11 }
  0x7e   :  { %6598 = vmatpush3.bf16.msra.mxu0 %v6597_v53  ;;  %2615 = vmatprep.mubr.f32.mxu0 %v1576_v28  ;;  %v6613_v53 = vpack.c.bf16 %v271_v45, %v270_v44  ;;  %v6615_v55 = vpack.c.bf16 %v289_v50, %v288_v49  ;;  %v77_v25 = vld [vmem:[#allocation2 + $0xb6] sm:$0xff]  ;;  %v359_v45 = vld [vmem:[#allocation5 + $0x708] sm:$0xff]  ;;  %v1575_v50 = vcombine.low %v7923_v16, %v7929_v23  ;;  %v360_v16 = vld [vmem:[#allocation5 + $0x710] sm:$0xff] }
  0x7f   :  { %2546 = vmatmul.mubr.f32.vlgmr.msra.gmra.mrb[2].mxu1 %v1541_v54  ;;  %6600 = vmatprep.subr.bf16.mxu0 %v6599_v61  ;;  %v6645_v54 = vpack.c.bf16 %v303_v48, %v302_v46  ;;  %v6647_v61 = vpack.c.bf16 %v321_v52, %v320_v51  ;;  %v97_v26 = vld [vmem:[#allocation2 + $0x154] sm:$0xff]  ;;  %v1579_v32 = vcombine.low %v57_v19, %v77_v25  ;;  %v344_v46 = vld [vmem:[#allocation5 + $0x690] sm:$0xff] }
  0x80   :  { %6630 = vmatpush3.bf16.msra.mxu1 %v6629_v58  ;;  %2685 = vmatprep.mubr.f32.mxu1 %v1578_v29  ;;  %v304_v58 = vld [vmem:[#allocation5 + $0x550] sm:$0xff]  ;;  %v309_v29 = vld [vmem:[#allocation5 + $0x578] sm:$0xff]  ;;  %v1580_v36 = vcombine.high %v57_v19, %v77_v25  ;;  %v330_v7 = vld [vmem:[#allocation5 + $0x620] sm:$0xff] }
  0x81   :  { %6632 = vmatprep.subr.bf16.mxu1 %v6631_v3  ;;  %v322_v3 = vld [vmem:[#allocation5 + $0x5e0] sm:$0xff]  ;;  %v6649_v4 = vpack.c.bf16 %v305_v62, %v304_v58  ;;  %v7939_v48 = vrot.slane %v1579_v32, %v7896_v20  ;;  %v376_v51 = vld [vmem:[#allocation5 + $0x790] sm:$0xff]  ;;  %v377_v52 = vld [vmem:[#allocation5 + $0x798] sm:$0xff] }
  0x82   :  { %6602 = vmatpush3.bf16.msra.mxu0 %v6601_v5  ;;  %v6619_v5 = vpack.c.bf16 %v291_v2, %v290_v1  ;;  %v6651_v0 = vpack.c.bf16 %v323_v59, %v322_v3  ;;  %v329_v62 = vld [vmem:[#allocation5 + $0x618] sm:$0xff]  ;;  %v6695_v23 = vpack.c.bf16 %v377_v52, %v376_v51  ;;  %v346_v2 = vld [vmem:[#allocation5 + $0x6a0] sm:$0xff]  ;;  %v347_v3 = vld [vmem:[#allocation5 + $0x6a8] sm:$0xff] }
  0x83   :  { %6604 = vmatprep.subr.bf16.mxu0 %v6603_v12  ;;  %v324_v12 = vld [vmem:[#allocation5 + $0x5f0] sm:$0xff]  ;;  %v361_v1 = vld [vmem:[#allocation5 + $0x718] sm:$0xff]  ;;  %v6667_v6 = vpack.c.bf16 %v347_v3, %v346_v2  ;;  %v371_v3 = vld [vmem:[#allocation5 + $0x768] sm:$0xff] }
  0x84   :  { %6634 = vmatpush3.bf16.msra.mxu1 %v6633_v9  ;;  %v292_v9 = vld [vmem:[#allocation5 + $0x4f0] sm:$0xff]  ;;  %v6655_v28 = vpack.c.bf16 %v325_v13, %v324_v12  ;;  %v349_v11 = vld [vmem:[#allocation5 + $0x6b8] sm:$0xff] }
  0x85   :  { %6636 = vmatprep.subr.bf16.mxu1 %v6635_v18  ;;  %v308_v18 = vld [vmem:[#allocation5 + $0x570] sm:$0xff]  ;;  %v6623_v22 = vpack.c.bf16 %v293_v10, %v292_v9  ;;  %v363_v9 = vld [vmem:[#allocation5 + $0x728] sm:$0xff]  ;;  %v381_v13 = vld [vmem:[#allocation5 + $0x7b8] sm:$0xff] }
  0x86   :  { %6606 = vmatpush3.bf16.msra.mxu0 %v6605_v27  ;;  %v117_v27 = vld [vmem:[#allocation2 + $0x1f2] sm:$0xff]  ;;  %v6657_v39 = vpack.c.bf16 %v309_v29, %v308_v18  ;;  %v348_v10 = vld [vmem:[#allocation5 + $0x6b0] sm:$0xff] }
  0x87   :  { %6608 = vmatprep.subr.bf16.mxu0 %v6607_v31  ;;  %v343_v31 = vld [vmem:[#allocation5 + $0x688] sm:$0xff]  ;;  %v1581_v33 = vcombine.low %v97_v26, %v117_v27  ;;  %v1582_v37 = vcombine.high %v97_v26, %v117_v27  ;;  %v380_v12 = vld [vmem:[#allocation5 + $0x7b0] sm:$0xff]  ;;  %v6671_v18 = vpack.c.bf16 %v349_v11, %v348_v10  ;;  %v365_v26 = vld [vmem:[#allocation5 + $0x738] sm:$0xff] }
  0x88   :  { %6638 = vmatpush3.bf16.msra.mxu1 %v6637_v30  ;;  %v342_v30 = vld [vmem:[#allocation5 + $0x680] sm:$0xff]  ;;  %v332_v19 = vld [vmem:[#allocation5 + $0x630] sm:$0xff]  ;;  %v6703_v25 = vpack.c.bf16 %v381_v13, %v380_v12  ;;  %v369_v52 = vld [vmem:[#allocation5 + $0x758] sm:$0xff] }
  0x89   :  { %6640 = vmatprep.subr.bf16.mxu1 %v6639_v35  ;;  %v375_v35 = vld [vmem:[#allocation5 + $0x788] sm:$0xff]  ;;  %v6659_v40 = vpack.c.bf16 %v343_v31, %v342_v30  ;;  %v7942_v49 = vrot.slane %v1581_v33, %v7896_v20  ;;  %v350_v27 = vld [vmem:[#allocation5 + $0x6c0] sm:$0xff]  ;;  %v340_v10 = vld [vmem:[#allocation5 + $0x670] sm:$0xff] }
  0x8a   :  { %6610 = vmatpush3.bf16.msra.mxu0 %v6609_v41  ;;  %v326_v41 = vld [vmem:[#allocation5 + $0x600] sm:$0xff]  ;;  %v6691_v44 = vpack.c.bf16 %v375_v35, %v374_v34  ;;  %v383_v30 = vld [vmem:[#allocation5 + $0x7c8] sm:$0xff]  ;;  %v341_v11 = vld [vmem:[#allocation5 + $0x678] sm:$0xff] }
  0x8b   :  { %6612 = vmatprep.subr.bf16.mxu0 %v6611_v43  ;;  %v358_v43 = vld [vmem:[#allocation5 + $0x700] sm:$0xff]  ;;  %v1612_v59 = vcombine.high %v7939_v48, %v7942_v49  ;;  %v335_v35 = vld [vmem:[#allocation5 + $0x648] sm:$0xff]  ;;  %v372_v12 = vld [vmem:[#allocation5 + $0x770] sm:$0xff] }
  0x8c   :  { %6642 = vmatpush3.bf16.msra.mxu1 %v6641_v42  ;;  %v327_v42 = vld [vmem:[#allocation5 + $0x608] sm:$0xff]  ;;  %v6693_v57 = vpack.c.bf16 %v359_v45, %v358_v43  ;;  %v382_v29 = vld [vmem:[#allocation5 + $0x7c0] sm:$0xff] }
  0x8d   :  { %6644 = vmatprep.subr.bf16.mxu1 %v6643_v47  ;;  %v345_v47 = vld [vmem:[#allocation5 + $0x698] sm:$0xff]  ;;  %v334_v34 = vld [vmem:[#allocation5 + $0x640] sm:$0xff] }
  0x8e   :  { %6614 = vmatpush3.bf16.msra.mxu0 %v6613_v53  ;;  %v7947_v53 = vrot.slane %v1580_v36, %v7896_v20  ;;  %v6663_v58 = vpack.c.bf16 %v345_v47, %v344_v46  ;;  %v366_v36 = vld [vmem:[#allocation5 + $0x740] sm:$0xff]  ;;  %v6677_v43 = vpack.c.bf16 %v335_v35, %v334_v34  ;;  %v336_v46 = vld [vmem:[#allocation5 + $0x650] sm:$0xff]  ;;  %v337_v47 = vld [vmem:[#allocation5 + $0x658] sm:$0xff] }
  0x8f   :  { %6616 = vmatprep.subr.bf16.mxu0 %v6615_v55  ;;  %v6661_v55 = vpack.c.bf16 %v327_v42, %v326_v41  ;;  %v384_v41 = vld [vmem:[#allocation5 + $0x7d0] sm:$0xff]  ;;  %v385_v42 = vld [vmem:[#allocation5 + $0x7d8] sm:$0xff]  ;;  %v423_v35 = vld [vmem:[#allocation5 + $0x908] sm:$0xff] }
  0x90   :  { %6646 = vmatpush3.bf16.msra.mxu1 %v6645_v54  ;;  %v7950_v54 = vrot.slane %v1582_v37, %v7896_v20  ;;  %v6707_v37 = vpack.c.bf16 %v383_v30, %v382_v29  ;;  %v6711_v51 = vpack.c.bf16 %v385_v42, %v384_v41  ;;  %v440_v41 = vld [vmem:[#allocation5 + $0x990] sm:$0xff]  ;;  %v441_v42 = vld [vmem:[#allocation5 + $0x998] sm:$0xff] }
  0x91   :  { %6648 = vmatprep.subr.bf16.mxu1 %v6647_v61  ;;  %v328_v61 = vld [vmem:[#allocation5 + $0x610] sm:$0xff] }
  0x92   :  { %6618 = vmatpush3.bf16.msra.mxu0 %v6617_v63  ;;  %v378_v63 = vld [vmem:[#allocation5 + $0x7a0] sm:$0xff]  ;;  %v1614_v17 = vcombine.high %v7947_v53, %v7950_v54  ;;  %v6665_v24 = vpack.c.bf16 %v329_v62, %v328_v61  ;;  %v6681_v61 = vpack.c.bf16 %v337_v47, %v336_v46  ;;  %v1613_v46 = vcombine.low %v7947_v53, %v7950_v54 }
  0x93   :  { %6620 = vmatprep.subr.bf16.mxu0 %v6619_v5  ;;  %v6697_v5 = vpack.c.bf16 %v361_v1, %v360_v16  ;;  %v338_v62 = vld [vmem:[#allocation5 + $0x660] sm:$0xff]  ;;  %v339_v16 = vld [vmem:[#allocation5 + $0x668] sm:$0xff] }
  0x94   :  { %6650 = vmatpush3.bf16.msra.mxu1 %v6649_v4  ;;  %v379_v4 = vld [vmem:[#allocation5 + $0x7a8] sm:$0xff] }
  0x95   :  { %6652 = vmatprep.subr.bf16.mxu1 %v6651_v0  ;;  %v362_v0 = vld [vmem:[#allocation5 + $0x720] sm:$0xff]  ;;  %v6699_v8 = vpack.c.bf16 %v379_v4, %v378_v63  ;;  %v357_v63 = vld [vmem:[#allocation5 + $0x6f8] sm:$0xff] }
  0x96   :  { %6622 = vmatpush3.bf16.msra.mxu0 %v6621_v14  ;;  %v6669_v14 = vpack.c.bf16 %v331_v60, %v330_v7  ;;  %v6701_v15 = vpack.c.bf16 %v363_v9, %v362_v0  ;;  %v98_v7 = vld [vmem:[#allocation2 + $0x15c] sm:$0xff]  ;;  %v6685_v0 = vpack.c.bf16 %v339_v16, %v338_v62 }
  0x97   :  { %6624 = vmatprep.subr.bf16.mxu0 %v6623_v22  ;;  %v364_v22 = vld [vmem:[#allocation5 + $0x730] sm:$0xff]  ;;  %v118_v60 = vld [vmem:[#allocation2 + $0x1fa] sm:$0xff] }
  0x98   :  { %6654 = vmatpush3.bf16.msra.mxu1 %v6653_v21  ;;  %v333_v21 = vld [vmem:[#allocation5 + $0x638] sm:$0xff]  ;;  %v6705_v32 = vpack.c.bf16 %v365_v26, %v364_v22  ;;  %v438_v22 = vld [vmem:[#allocation5 + $0x980] sm:$0xff]  ;;  %v443_v62 = vld [vmem:[#allocation5 + $0x9a8] sm:$0xff] }
  0x99   :  { %6656 = vmatprep.subr.bf16.mxu1 %v6655_v28  ;;  %v351_v28 = vld [vmem:[#allocation5 + $0x6c8] sm:$0xff]  ;;  %v6673_v31 = vpack.c.bf16 %v333_v21, %v332_v19  ;;  %v1617_v21 = vcombine.low %v98_v7, %v118_v60 }
  0x9a   :  { %6626 = vmatpush3.bf16.msra.mxu0 %v6625_v38  ;;  %v6675_v33 = vpack.c.bf16 %v351_v28, %v350_v27  ;;  %v367_v38 = vld [vmem:[#allocation5 + $0x748] sm:$0xff]  ;;  %v1618_v27 = vcombine.high %v98_v7, %v118_v60  ;;  %v6689_v28 = vpack.c.bf16 %v341_v11, %v340_v10  ;;  %v429_v11 = vld [vmem:[#allocation5 + $0x938] sm:$0xff] }
  0x9b   :  { %6660 = vmatprep.subr.bf16.mxu0 %v6659_v40  ;;  %v353_v40 = vld [vmem:[#allocation5 + $0x6d8] sm:$0xff] }
  0x9c   :  { %6658 = vmatpush3.bf16.msra.mxu1 %v6657_v39  ;;  %v352_v39 = vld [vmem:[#allocation5 + $0x6d0] sm:$0xff] }
  0x9d   :  { %6692 = vmatprep.subr.bf16.mxu1 %v6691_v44  ;;  %2616 = vmatmul.mubr.f32.vlgmr.msra.gmra.mrb[4].mxu0 %v1575_v50  ;;  %v6709_v44 = vpack.c.bf16 %v367_v38, %v366_v36  ;;  %v6679_v45 = vpack.c.bf16 %v353_v40, %v352_v39  ;;  %v368_v50 = vld [vmem:[#allocation5 + $0x750] sm:$0xff]  ;;  %v7962_v39 = vrot.slane %v1617_v21, %v7896_v20 }
  0x9e   :  { %6662 = vmatpush3.bf16.msra.mxu0 %v6661_v55  ;;  %2755 = vmatprep.mubr.f32.mxu0 %v1612_v59  ;;  %v354_v55 = vld [vmem:[#allocation5 + $0x6e0] sm:$0xff]  ;;  %v6713_v1 = vpack.c.bf16 %v369_v52, %v368_v50  ;;  %v356_v59 = vld [vmem:[#allocation5 + $0x6f0] sm:$0xff]  ;;  %v1611_v40 = vcombine.low %v7939_v48, %v7942_v49  ;;  %v393_v52 = vld [vmem:[#allocation5 + $0x818] sm:$0xff]  ;;  %v6759_v49 = vpack.c.bf16 %v441_v42, %v440_v41 }
  0x9f   :  { %2686 = vmatmul.mubr.f32.vlgmr.msra.gmra.mrb[4].mxu1 %v1577_v56  ;;  %6664 = vmatprep.subr.bf16.mxu0 %v6663_v58  ;;  %v355_v56 = vld [vmem:[#allocation5 + $0x6e8] sm:$0xff]  ;;  %v6687_v9 = vpack.c.bf16 %v357_v63, %v356_v59  ;;  %v408_v36 = vld [vmem:[#allocation5 + $0x890] sm:$0xff]  ;;  %v433_v42 = vld [vmem:[#allocation5 + $0x958] sm:$0xff] }
  0xa0   :  { %6694 = vmatpush3.bf16.msra.mxu1 %v6693_v57  ;;  %2825 = vmatprep.mubr.f32.mxu1 %v1614_v17  ;;  %v386_v57 = vld [vmem:[#allocation5 + $0x7e0] sm:$0xff]  ;;  %v387_v58 = vld [vmem:[#allocation5 + $0x7e8] sm:$0xff]  ;;  %v6683_v2 = vpack.c.bf16 %v355_v56, %v354_v55  ;;  %v388_v17 = vld [vmem:[#allocation5 + $0x7f0] sm:$0xff] }
  0xa1   :  { %6696 = vmatprep.subr.bf16.mxu1 %v6695_v23  ;;  %v370_v23 = vld [vmem:[#allocation5 + $0x760] sm:$0xff]  ;;  %v6715_v4 = vpack.c.bf16 %v387_v58, %v386_v57  ;;  %v424_v48 = vld [vmem:[#allocation5 + $0x910] sm:$0xff]  ;;  %v425_v55 = vld [vmem:[#allocation5 + $0x918] sm:$0xff] }
  0xa2   :  { %6666 = vmatpush3.bf16.msra.mxu0 %v6665_v24  ;;  %v389_v24 = vld [vmem:[#allocation5 + $0x7f8] sm:$0xff]  ;;  %v410_v56 = vld [vmem:[#allocation5 + $0x8a0] sm:$0xff]  ;;  %v411_v57 = vld [vmem:[#allocation5 + $0x8a8] sm:$0xff]  ;;  %v6761_v16 = vpack.c.bf16 %v425_v55, %v424_v48 }
  0xa3   :  { %6668 = vmatprep.subr.bf16.mxu0 %v6667_v6  ;;  %v78_v6 = vld [vmem:[#allocation2 + $0xbe] sm:$0xff]  ;;  %v6719_v13 = vpack.c.bf16 %v389_v24, %v388_v17  ;;  %v413_v17 = vld [vmem:[#allocation5 + $0x8b8] sm:$0xff]  ;;  %v444_v24 = vld [vmem:[#allocation5 + $0x9b0] sm:$0xff] }
  0xa4   :  { %6698 = vmatpush3.bf16.msra.mxu1 %v6697_v5  ;;  %v58_v5 = vld [vmem:[#allocation2 + $0x20] sm:$0xff] }
  0xa5   :  { %6700 = vmatprep.subr.bf16.mxu1 %v6699_v8  ;;  %v6717_v8 = vpack.c.bf16 %v371_v3, %v370_v23  ;;  %v1615_v19 = vcombine.low %v58_v5, %v78_v6  ;;  %v1616_v26 = vcombine.high %v58_v5, %v78_v6  ;;  %v6731_v23 = vpack.c.bf16 %v411_v57, %v410_v56  ;;  %v426_v3 = vld [vmem:[#allocation5 + $0x920] sm:$0xff]  ;;  %v427_v63 = vld [vmem:[#allocation5 + $0x928] sm:$0xff]  ;;  %v445_v5 = vld [vmem:[#allocation5 + $0x9b8] sm:$0xff] }
  0xa6   :  { %6670 = vmatpush3.bf16.msra.mxu0 %v6669_v14  ;;  %v373_v14 = vld [vmem:[#allocation5 + $0x778] sm:$0xff]  ;;  %v6765_v7 = vpack.c.bf16 %v427_v63, %v426_v3  ;;  %v6767_v10 = vpack.c.bf16 %v445_v5, %v444_v24  ;;  %v403_v48 = vld [vmem:[#allocation5 + $0x868] sm:$0xff]  ;;  %v436_v24 = vld [vmem:[#allocation5 + $0x970] sm:$0xff] }
  0xa7   :  { %6672 = vmatprep.subr.bf16.mxu0 %v6671_v18  ;;  %v407_v18 = vld [vmem:[#allocation5 + $0x888] sm:$0xff]  ;;  %v6721_v29 = vpack.c.bf16 %v373_v14, %v372_v12  ;;  %v7959_v38 = vrot.slane %v1615_v19, %v7896_v20  ;;  %v414_v12 = vld [vmem:[#allocation5 + $0x8c0] sm:$0xff] }
  0xa8   :  { %6702 = vmatpush3.bf16.msra.mxu1 %v6701_v15  ;;  %v406_v15 = vld [vmem:[#allocation5 + $0x880] sm:$0xff]  ;;  %v435_v57 = vld [vmem:[#allocation5 + $0x968] sm:$0xff] }
  0xa9   :  { %6704 = vmatprep.subr.bf16.mxu1 %v6703_v25  ;;  %v439_v25 = vld [vmem:[#allocation5 + $0x988] sm:$0xff]  ;;  %v6723_v30 = vpack.c.bf16 %v407_v18, %v406_v15  ;;  %v1648_v58 = vcombine.high %v7959_v38, %v7962_v39  ;;  %v446_v14 = vld [vmem:[#allocation5 + $0x9c0] sm:$0xff] }
  0xaa   :  { %6674 = vmatpush3.bf16.msra.mxu0 %v6673_v31  ;;  %v390_v31 = vld [vmem:[#allocation5 + $0x800] sm:$0xff]  ;;  %v6755_v34 = vpack.c.bf16 %v439_v25, %v438_v22  ;;  %v447_v15 = vld [vmem:[#allocation5 + $0x9c8] sm:$0xff] }
  0xab   :  { %6676 = vmatprep.subr.bf16.mxu0 %v6675_v33  ;;  %v422_v33 = vld [vmem:[#allocation5 + $0x900] sm:$0xff]  ;;  %v399_v25 = vld [vmem:[#allocation5 + $0x848] sm:$0xff] }
  0xac   :  { %6706 = vmatpush3.bf16.msra.mxu1 %v6705_v32  ;;  %v391_v32 = vld [vmem:[#allocation5 + $0x808] sm:$0xff]  ;;  %v6757_v47 = vpack.c.bf16 %v423_v35, %v422_v33  ;;  %v398_v22 = vld [vmem:[#allocation5 + $0x840] sm:$0xff] }
  0xad   :  { %6708 = vmatprep.subr.bf16.mxu1 %v6707_v37  ;;  %v409_v37 = vld [vmem:[#allocation5 + $0x898] sm:$0xff]  ;;  %v6741_v33 = vpack.c.bf16 %v399_v25, %v398_v22  ;;  %v487_v25 = vld [vmem:[#allocation5 + $0xb08] sm:$0xff] }
  0xae   :  { %6678 = vmatpush3.bf16.msra.mxu0 %v6677_v43  ;;  %v7967_v43 = vrot.slane %v1616_v26, %v7896_v20  ;;  %v6727_v50 = vpack.c.bf16 %v409_v37, %v408_v36  ;;  %v430_v26 = vld [vmem:[#allocation5 + $0x940] sm:$0xff]  ;;  %v400_v36 = vld [vmem:[#allocation5 + $0x850] sm:$0xff]  ;;  %v401_v37 = vld [vmem:[#allocation5 + $0x858] sm:$0xff] }
  0xaf   :  { %6680 = vmatprep.subr.bf16.mxu0 %v6679_v45  ;;  %v6725_v45 = vpack.c.bf16 %v391_v32, %v390_v31  ;;  %v448_v31 = vld [vmem:[#allocation5 + $0x9d0] sm:$0xff]  ;;  %v449_v32 = vld [vmem:[#allocation5 + $0x9d8] sm:$0xff] }
  0xb0   :  { %6710 = vmatpush3.bf16.msra.mxu1 %v6709_v44  ;;  %v7970_v44 = vrot.slane %v1618_v27, %v7896_v20  ;;  %v6771_v27 = vpack.c.bf16 %v447_v15, %v446_v14  ;;  %v6775_v41 = vpack.c.bf16 %v449_v32, %v448_v31  ;;  %v504_v31 = vld [vmem:[#allocation5 + $0xb90] sm:$0xff]  ;;  %v505_v32 = vld [vmem:[#allocation5 + $0xb98] sm:$0xff] }
  0xb1   :  { %6712 = vmatprep.subr.bf16.mxu1 %v6711_v51  ;;  %v392_v51 = vld [vmem:[#allocation5 + $0x810] sm:$0xff] }
  0xb2   :  { %6682 = vmatpush3.bf16.msra.mxu0 %v6681_v61  ;;  %v442_v61 = vld [vmem:[#allocation5 + $0x9a0] sm:$0xff]  ;;  %v1650_v53 = vcombine.high %v7967_v43, %v7970_v44  ;;  %v6729_v54 = vpack.c.bf16 %v393_v52, %v392_v51  ;;  %v6745_v51 = vpack.c.bf16 %v401_v37, %v400_v36  ;;  %v1649_v36 = vcombine.low %v7967_v43, %v7970_v44 }
  0xb3   :  { %6684 = vmatprep.subr.bf16.mxu0 %v6683_v2  ;;  %v395_v2 = vld [vmem:[#allocation5 + $0x828] sm:$0xff]  ;;  %v6763_v59 = vpack.c.bf16 %v443_v62, %v442_v61  ;;  %v402_v52 = vld [vmem:[#allocation5 + $0x860] sm:$0xff]  ;;  %v421_v61 = vld [vmem:[#allocation5 + $0x8f8] sm:$0xff] }
  0xb4   :  { %6714 = vmatpush3.bf16.msra.mxu1 %v6713_v1  ;;  %v394_v1 = vld [vmem:[#allocation5 + $0x820] sm:$0xff]  ;;  %v6749_v3 = vpack.c.bf16 %v403_v48, %v402_v52  ;;  %v507_v52 = vld [vmem:[#allocation5 + $0xba8] sm:$0xff] }
  0xb5   :  { %6716 = vmatprep.subr.bf16.mxu1 %v6715_v4  ;;  %v412_v4 = vld [vmem:[#allocation5 + $0x8b0] sm:$0xff]  ;;  %v6733_v6 = vpack.c.bf16 %v395_v2, %v394_v1 }
  0xb6   :  { %6686 = vmatpush3.bf16.msra.mxu0 %v6685_v0  ;;  %v6735_v60 = vpack.c.bf16 %v413_v17, %v412_v4  ;;  %v396_v0 = vld [vmem:[#allocation5 + $0x830] sm:$0xff]  ;;  %v405_v17 = vld [vmem:[#allocation5 + $0x878] sm:$0xff] }
  0xb7   :  { %6688 = vmatprep.subr.bf16.mxu0 %v6687_v9  ;;  %v428_v9 = vld [vmem:[#allocation5 + $0x930] sm:$0xff] }
  0xb8   :  { %6718 = vmatpush3.bf16.msra.mxu1 %v6717_v8  ;;  %v397_v8 = vld [vmem:[#allocation5 + $0x838] sm:$0xff]  ;;  %v6769_v19 = vpack.c.bf16 %v429_v11, %v428_v9  ;;  %v99_v1 = vld [vmem:[#allocation2 + $0x164] sm:$0xff]  ;;  %v502_v9 = vld [vmem:[#allocation5 + $0xb80] sm:$0xff] }
  0xb9   :  { %6720 = vmatprep.subr.bf16.mxu1 %v6719_v13  ;;  %v415_v13 = vld [vmem:[#allocation5 + $0x8c8] sm:$0xff]  ;;  %v6737_v18 = vpack.c.bf16 %v397_v8, %v396_v0  ;;  %v404_v4 = vld [vmem:[#allocation5 + $0x870] sm:$0xff] }
  0xba   :  { %6690 = vmatpush3.bf16.msra.mxu0 %v6689_v28  ;;  %v6739_v21 = vpack.c.bf16 %v415_v13, %v414_v12  ;;  %v431_v28 = vld [vmem:[#allocation5 + $0x948] sm:$0xff]  ;;  %v6753_v13 = vpack.c.bf16 %v405_v17, %v404_v4  ;;  %v493_v17 = vld [vmem:[#allocation5 + $0xb38] sm:$0xff] }
  0xbb   :  { %6724 = vmatprep.subr.bf16.mxu0 %v6723_v30  ;;  %v417_v30 = vld [vmem:[#allocation5 + $0x8d8] sm:$0xff]  ;;  %v119_v2 = vld [vmem:[#allocation2 + $0x202] sm:$0xff] }
  0xbc   :  { %6722 = vmatpush3.bf16.msra.mxu1 %v6721_v29  ;;  %v416_v29 = vld [vmem:[#allocation5 + $0x8d0] sm:$0xff]  ;;  %v1653_v8 = vcombine.low %v99_v1, %v119_v2  ;;  %v1654_v12 = vcombine.high %v99_v1, %v119_v2 }
  0xbd   :  { %6756 = vmatprep.subr.bf16.mxu1 %v6755_v34  ;;  %2756 = vmatmul.mubr.f32.vlgmr.msra.gmra.mrb[6].mxu0 %v1611_v40  ;;  %v6773_v34 = vpack.c.bf16 %v431_v28, %v430_v26  ;;  %v6743_v35 = vpack.c.bf16 %v417_v30, %v416_v29  ;;  %v432_v40 = vld [vmem:[#allocation5 + $0x950] sm:$0xff]  ;;  %v1647_v30 = vcombine.low %v7959_v38, %v7962_v39 }
  0xbe   :  { %6726 = vmatpush3.bf16.msra.mxu0 %v6725_v45  ;;  %2895 = vmatprep.mubr.f32.mxu0 %v1648_v58  ;;  %v418_v45 = vld [vmem:[#allocation5 + $0x8e0] sm:$0xff]  ;;  %v6777_v55 = vpack.c.bf16 %v433_v42, %v432_v40  ;;  %v420_v58 = vld [vmem:[#allocation5 + $0x8f0] sm:$0xff]  ;;  %v7982_v29 = vrot.slane %v1653_v8, %v7896_v20  ;;  %v457_v42 = vld [vmem:[#allocation5 + $0xa18] sm:$0xff]  ;;  %v6823_v39 = vpack.c.bf16 %v505_v32, %v504_v31 }
  0xbf   :  { %2826 = vmatmul.mubr.f32.vlgmr.msra.gmra.mrb[6].mxu1 %v1613_v46  ;;  %6728 = vmatprep.subr.bf16.mxu0 %v6727_v50  ;;  %v419_v46 = vld [vmem:[#allocation5 + $0x8e8] sm:$0xff]  ;;  %v6751_v63 = vpack.c.bf16 %v421_v61, %v420_v58  ;;  %v472_v26 = vld [vmem:[#allocation5 + $0xa90] sm:$0xff]  ;;  %v497_v32 = vld [vmem:[#allocation5 + $0xb58] sm:$0xff] }
  0xc0   :  { %6758 = vmatpush3.bf16.msra.mxu1 %v6757_v47  ;;  %2965 = vmatprep.mubr.f32.mxu1 %v1650_v53  ;;  %v450_v47 = vld [vmem:[#allocation5 + $0x9e0] sm:$0xff]  ;;  %v451_v50 = vld [vmem:[#allocation5 + $0x9e8] sm:$0xff]  ;;  %v6747_v56 = vpack.c.bf16 %v419_v46, %v418_v45  ;;  %v452_v53 = vld [vmem:[#allocation5 + $0x9f0] sm:$0xff] }
  0xc1   :  { %6760 = vmatprep.subr.bf16.mxu1 %v6759_v49  ;;  %v434_v49 = vld [vmem:[#allocation5 + $0x960] sm:$0xff]  ;;  %v6779_v62 = vpack.c.bf16 %v451_v50, %v450_v47  ;;  %v488_v38 = vld [vmem:[#allocation5 + $0xb10] sm:$0xff]  ;;  %v489_v45 = vld [vmem:[#allocation5 + $0xb18] sm:$0xff] }
  0xc2   :  { %6730 = vmatpush3.bf16.msra.mxu0 %v6729_v54  ;;  %v453_v54 = vld [vmem:[#allocation5 + $0x9f8] sm:$0xff]  ;;  %v474_v46 = vld [vmem:[#allocation5 + $0xaa0] sm:$0xff]  ;;  %v475_v47 = vld [vmem:[#allocation5 + $0xaa8] sm:$0xff]  ;;  %v6825_v48 = vpack.c.bf16 %v489_v45, %v488_v38 }
  0xc3   :  { %6732 = vmatprep.subr.bf16.mxu0 %v6731_v23  ;;  %v79_v23 = vld [vmem:[#allocation2 + $0xc6] sm:$0xff]  ;;  %v6783_v5 = vpack.c.bf16 %v453_v54, %v452_v53  ;;  %v477_v53 = vld [vmem:[#allocation5 + $0xab8] sm:$0xff] }
  0xc4   :  { %6762 = vmatpush3.bf16.msra.mxu1 %v6761_v16  ;;  %v59_v16 = vld [vmem:[#allocation2 + $0x28] sm:$0xff]  ;;  %v491_v61 = vld [vmem:[#allocation5 + $0xb28] sm:$0xff] }
  0xc5   :  { %6764 = vmatprep.subr.bf16.mxu1 %v6763_v59  ;;  %v6781_v59 = vpack.c.bf16 %v435_v57, %v434_v49  ;;  %v1651_v0 = vcombine.low %v59_v16, %v79_v23  ;;  %v1652_v11 = vcombine.high %v59_v16, %v79_v23  ;;  %v6795_v49 = vpack.c.bf16 %v475_v47, %v474_v46  ;;  %v490_v57 = vld [vmem:[#allocation5 + $0xb20] sm:$0xff]  ;;  %v508_v54 = vld [vmem:[#allocation5 + $0xbb0] sm:$0xff]  ;;  %v509_v16 = vld [vmem:[#allocation5 + $0xbb8] sm:$0xff] }
  0xc6   :  { %6734 = vmatpush3.bf16.msra.mxu0 %v6733_v6  ;;  %v437_v6 = vld [vmem:[#allocation5 + $0x978] sm:$0xff]  ;;  %v6829_v1 = vpack.c.bf16 %v491_v61, %v490_v57  ;;  %v6831_v4 = vpack.c.bf16 %v509_v16, %v508_v54  ;;  %v467_v38 = vld [vmem:[#allocation5 + $0xa68] sm:$0xff]  ;;  %v500_v54 = vld [vmem:[#allocation5 + $0xb70] sm:$0xff] }
  0xc7   :  { %6736 = vmatprep.subr.bf16.mxu0 %v6735_v60  ;;  %v471_v60 = vld [vmem:[#allocation5 + $0xa88] sm:$0xff]  ;;  %v6785_v14 = vpack.c.bf16 %v437_v6, %v436_v24  ;;  %v7979_v28 = vrot.slane %v1651_v0, %v7896_v20  ;;  %v478_v24 = vld [vmem:[#allocation5 + $0xac0] sm:$0xff] }
  0xc8   :  { %6766 = vmatpush3.bf16.msra.mxu1 %v6765_v7  ;;  %v470_v7 = vld [vmem:[#allocation5 + $0xa80] sm:$0xff]  ;;  %v499_v47 = vld [vmem:[#allocation5 + $0xb68] sm:$0xff] }
  0xc9   :  { %6768 = vmatprep.subr.bf16.mxu1 %v6767_v10  ;;  %v503_v10 = vld [vmem:[#allocation5 + $0xb88] sm:$0xff]  ;;  %v6787_v15 = vpack.c.bf16 %v471_v60, %v470_v7  ;;  %v1684_v50 = vcombine.high %v7979_v28, %v7982_v29  ;;  %v510_v6 = vld [vmem:[#allocation5 + $0xbc0] sm:$0xff] }
  0xca   :  { %6738 = vmatpush3.bf16.msra.mxu0 %v6737_v18  ;;  %v454_v18 = vld [vmem:[#allocation5 + $0xa00] sm:$0xff]  ;;  %v6819_v22 = vpack.c.bf16 %v503_v10, %v502_v9  ;;  %v511_v7 = vld [vmem:[#allocation5 + $0xbc8] sm:$0xff] }
  0xcb   :  { %6740 = vmatprep.subr.bf16.mxu0 %v6739_v21  ;;  %v486_v21 = vld [vmem:[#allocation5 + $0xb00] sm:$0xff]  ;;  %v463_v10 = vld [vmem:[#allocation5 + $0xa48] sm:$0xff] }
  0xcc   :  { %6770 = vmatpush3.bf16.msra.mxu1 %v6769_v19  ;;  %v455_v19 = vld [vmem:[#allocation5 + $0xa08] sm:$0xff]  ;;  %v6821_v37 = vpack.c.bf16 %v487_v25, %v486_v21  ;;  %v462_v9 = vld [vmem:[#allocation5 + $0xa40] sm:$0xff] }
  0xcd   :  { %6772 = vmatprep.subr.bf16.mxu1 %v6771_v27  ;;  %v473_v27 = vld [vmem:[#allocation5 + $0xa98] sm:$0xff]  ;;  %v6805_v21 = vpack.c.bf16 %v463_v10, %v462_v9  ;;  %v551_v10 = vld [vmem:[#allocation5 + $0xd08] sm:$0xff] }
  0xce   :  { %6742 = vmatpush3.bf16.msra.mxu0 %v6741_v33  ;;  %v7987_v33 = vrot.slane %v1652_v11, %v7896_v20  ;;  %v6791_v40 = vpack.c.bf16 %v473_v27, %v472_v26  ;;  %v494_v11 = vld [vmem:[#allocation5 + $0xb40] sm:$0xff]  ;;  %v464_v26 = vld [vmem:[#allocation5 + $0xa50] sm:$0xff]  ;;  %v465_v27 = vld [vmem:[#allocation5 + $0xa58] sm:$0xff] }
  0xcf   :  { %6744 = vmatprep.subr.bf16.mxu0 %v6743_v35  ;;  %v6789_v35 = vpack.c.bf16 %v455_v19, %v454_v18  ;;  %v512_v18 = vld [vmem:[#allocation5 + $0xbd0] sm:$0xff]  ;;  %v513_v19 = vld [vmem:[#allocation5 + $0xbd8] sm:$0xff] }
  0xd0   :  { %6774 = vmatpush3.bf16.msra.mxu1 %v6773_v34  ;;  %v7990_v34 = vrot.slane %v1654_v12, %v7896_v20  ;;  %v6835_v12 = vpack.c.bf16 %v511_v7, %v510_v6  ;;  %v6839_v31 = vpack.c.bf16 %v513_v19, %v512_v18  ;;  %v568_v18 = vld [vmem:[#allocation5 + $0xd90] sm:$0xff]  ;;  %v569_v19 = vld [vmem:[#allocation5 + $0xd98] sm:$0xff] }
  0xd1   :  { %6776 = vmatprep.subr.bf16.mxu1 %v6775_v41  ;;  %v456_v41 = vld [vmem:[#allocation5 + $0xa10] sm:$0xff] }
  0xd2   :  { %6746 = vmatpush3.bf16.msra.mxu0 %v6745_v51  ;;  %v506_v51 = vld [vmem:[#allocation5 + $0xba0] sm:$0xff]  ;;  %v1686_v43 = vcombine.high %v7987_v33, %v7990_v34  ;;  %v6793_v44 = vpack.c.bf16 %v457_v42, %v456_v41  ;;  %v6809_v41 = vpack.c.bf16 %v465_v27, %v464_v26  ;;  %v1685_v26 = vcombine.low %v7987_v33, %v7990_v34 }
  0xd3   :  { %6748 = vmatprep.subr.bf16.mxu0 %v6747_v56  ;;  %v459_v56 = vld [vmem:[#allocation5 + $0xa28] sm:$0xff]  ;;  %v6827_v58 = vpack.c.bf16 %v507_v52, %v506_v51  ;;  %v466_v42 = vld [vmem:[#allocation5 + $0xa60] sm:$0xff]  ;;  %v485_v51 = vld [vmem:[#allocation5 + $0xaf8] sm:$0xff] }
  0xd4   :  { %6778 = vmatpush3.bf16.msra.mxu1 %v6777_v55  ;;  %v458_v55 = vld [vmem:[#allocation5 + $0xa20] sm:$0xff]  ;;  %v6813_v57 = vpack.c.bf16 %v467_v38, %v466_v42  ;;  %v571_v42 = vld [vmem:[#allocation5 + $0xda8] sm:$0xff] }
  0xd5   :  { %6780 = vmatprep.subr.bf16.mxu1 %v6779_v62  ;;  %v476_v62 = vld [vmem:[#allocation5 + $0xab0] sm:$0xff]  ;;  %v6797_v23 = vpack.c.bf16 %v459_v56, %v458_v55 }
  0xd6   :  { %6750 = vmatpush3.bf16.msra.mxu0 %v6749_v3  ;;  %v6799_v2 = vpack.c.bf16 %v477_v53, %v476_v62  ;;  %v460_v3 = vld [vmem:[#allocation5 + $0xa30] sm:$0xff]  ;;  %v469_v53 = vld [vmem:[#allocation5 + $0xa78] sm:$0xff] }
  0xd7   :  { %6752 = vmatprep.subr.bf16.mxu0 %v6751_v63  ;;  %v492_v63 = vld [vmem:[#allocation5 + $0xb30] sm:$0xff] }
  0xd8   :  { %6782 = vmatpush3.bf16.msra.mxu1 %v6781_v59  ;;  %v461_v59 = vld [vmem:[#allocation5 + $0xa38] sm:$0xff]  ;;  %v6833_v0 = vpack.c.bf16 %v493_v17, %v492_v63  ;;  %v468_v62 = vld [vmem:[#allocation5 + $0xa70] sm:$0xff]  ;;  %v566_v63 = vld [vmem:[#allocation5 + $0xd80] sm:$0xff] }
  0xd9   :  { %6784 = vmatprep.subr.bf16.mxu1 %v6783_v5  ;;  %v479_v5 = vld [vmem:[#allocation5 + $0xac8] sm:$0xff]  ;;  %v6801_v60 = vpack.c.bf16 %v461_v59, %v460_v3  ;;  %v100_v55 = vld [vmem:[#allocation2 + $0x16c] sm:$0xff] }
  0xda   :  { %6754 = vmatpush3.bf16.msra.mxu0 %v6753_v13  ;;  %v6803_v8 = vpack.c.bf16 %v479_v5, %v478_v24  ;;  %v495_v13 = vld [vmem:[#allocation5 + $0xb48] sm:$0xff]  ;;  %v120_v56 = vld [vmem:[#allocation2 + $0x20a] sm:$0xff]  ;;  %v6817_v5 = vpack.c.bf16 %v469_v53, %v468_v62 }
  0xdb   :  { %6788 = vmatprep.subr.bf16.mxu0 %v6787_v15  ;;  %v481_v15 = vld [vmem:[#allocation5 + $0xad8] sm:$0xff]  ;;  %v1689_v59 = vcombine.low %v100_v55, %v120_v56  ;;  %v1690_v24 = vcombine.high %v100_v55, %v120_v56 }
  0xdc   :  { %6786 = vmatpush3.bf16.msra.mxu1 %v6785_v14  ;;  %v480_v14 = vld [vmem:[#allocation5 + $0xad0] sm:$0xff]  ;;  %v557_v53 = vld [vmem:[#allocation5 + $0xd38] sm:$0xff] }
  0xdd   :  { %6820 = vmatprep.subr.bf16.mxu1 %v6819_v22  ;;  %2896 = vmatmul.mubr.f32.vlgmr.msra.gmra.mrb[8].mxu0 %v1647_v30  ;;  %v6837_v22 = vpack.c.bf16 %v495_v13, %v494_v11  ;;  %v6807_v25 = vpack.c.bf16 %v481_v15, %v480_v14  ;;  %v496_v30 = vld [vmem:[#allocation5 + $0xb50] sm:$0xff]  ;;  %v8002_v14 = vrot.slane %v1689_v59, %v7896_v20 }
  0xde   :  { %6790 = vmatpush3.bf16.msra.mxu0 %v6789_v35  ;;  %3035 = vmatprep.mubr.f32.mxu0 %v1684_v50  ;;  %v482_v35 = vld [vmem:[#allocation5 + $0xae0] sm:$0xff]  ;;  %v6841_v45 = vpack.c.bf16 %v497_v32, %v496_v30  ;;  %v484_v50 = vld [vmem:[#allocation5 + $0xaf0] sm:$0xff]  ;;  %v1683_v15 = vcombine.low %v7979_v28, %v7982_v29  ;;  %v521_v32 = vld [vmem:[#allocation5 + $0xc18] sm:$0xff]  ;;  %v6887_v29 = vpack.c.bf16 %v569_v19, %v568_v18 }
  0xdf   :  { %2966 = vmatmul.mubr.f32.vlgmr.msra.gmra.mrb[8].mxu1 %v1649_v36  ;;  %6792 = vmatprep.subr.bf16.mxu0 %v6791_v40  ;;  %v483_v36 = vld [vmem:[#allocation5 + $0xae8] sm:$0xff]  ;;  %v6815_v61 = vpack.c.bf16 %v485_v51, %v484_v50  ;;  %v536_v11 = vld [vmem:[#allocation5 + $0xc90] sm:$0xff]  ;;  %v561_v19 = vld [vmem:[#allocation5 + $0xd58] sm:$0xff] }
  0xe0   :  { %6822 = vmatpush3.bf16.msra.mxu1 %v6821_v37  ;;  %3105 = vmatprep.mubr.f32.mxu1 %v1686_v43  ;;  %v514_v37 = vld [vmem:[#allocation5 + $0xbe0] sm:$0xff]  ;;  %v515_v40 = vld [vmem:[#allocation5 + $0xbe8] sm:$0xff]  ;;  %v6811_v46 = vpack.c.bf16 %v483_v36, %v482_v35  ;;  %v516_v43 = vld [vmem:[#allocation5 + $0xbf0] sm:$0xff] }
  0xe1   :  { %6824 = vmatprep.subr.bf16.mxu1 %v6823_v39  ;;  %v498_v39 = vld [vmem:[#allocation5 + $0xb60] sm:$0xff]  ;;  %v6843_v52 = vpack.c.bf16 %v515_v40, %v514_v37  ;;  %v552_v28 = vld [vmem:[#allocation5 + $0xd10] sm:$0xff]  ;;  %v553_v35 = vld [vmem:[#allocation5 + $0xd18] sm:$0xff] }
  0xe2   :  { %6794 = vmatpush3.bf16.msra.mxu0 %v6793_v44  ;;  %v517_v44 = vld [vmem:[#allocation5 + $0xbf8] sm:$0xff]  ;;  %v538_v36 = vld [vmem:[#allocation5 + $0xca0] sm:$0xff]  ;;  %v539_v37 = vld [vmem:[#allocation5 + $0xca8] sm:$0xff]  ;;  %v6889_v38 = vpack.c.bf16 %v553_v35, %v552_v28 }
  0xe3   :  { %6796 = vmatprep.subr.bf16.mxu0 %v6795_v49  ;;  %v80_v49 = vld [vmem:[#allocation2 + $0xce] sm:$0xff]  ;;  %v6847_v16 = vpack.c.bf16 %v517_v44, %v516_v43  ;;  %v555_v51 = vld [vmem:[#allocation5 + $0xd28] sm:$0xff] }
  0xe4   :  { %6826 = vmatpush3.bf16.msra.mxu1 %v6825_v48  ;;  %v60_v48 = vld [vmem:[#allocation2 + $0x30] sm:$0xff]  ;;  %v572_v44 = vld [vmem:[#allocation5 + $0xdb0] sm:$0xff]  ;;  %v531_v28 = vld [vmem:[#allocation5 + $0xc68] sm:$0xff] }
  0xe5   :  { %6828 = vmatprep.subr.bf16.mxu1 %v6827_v58  ;;  %v6845_v58 = vpack.c.bf16 %v499_v47, %v498_v39  ;;  %v1687_v3 = vcombine.low %v60_v48, %v80_v49  ;;  %v1688_v17 = vcombine.high %v60_v48, %v80_v49  ;;  %v6859_v39 = vpack.c.bf16 %v539_v37, %v538_v36  ;;  %v554_v47 = vld [vmem:[#allocation5 + $0xd20] sm:$0xff]  ;;  %v541_v43 = vld [vmem:[#allocation5 + $0xcb8] sm:$0xff]  ;;  %v563_v37 = vld [vmem:[#allocation5 + $0xd68] sm:$0xff] }
  0xe6   :  { %6798 = vmatpush3.bf16.msra.mxu0 %v6797_v23  ;;  %v501_v23 = vld [vmem:[#allocation5 + $0xb78] sm:$0xff]  ;;  %v6893_v55 = vpack.c.bf16 %v555_v51, %v554_v47 }
  0xe7   :  { %6800 = vmatprep.subr.bf16.mxu0 %v6799_v2  ;;  %v535_v2 = vld [vmem:[#allocation5 + $0xc88] sm:$0xff]  ;;  %v6849_v6 = vpack.c.bf16 %v501_v23, %v500_v54  ;;  %v7999_v13 = vrot.slane %v1687_v3, %v7896_v20  ;;  %v573_v48 = vld [vmem:[#allocation5 + $0xdb8] sm:$0xff]  ;;  %v542_v54 = vld [vmem:[#allocation5 + $0xcc0] sm:$0xff] }
  0xe8   :  { %6830 = vmatpush3.bf16.msra.mxu1 %v6829_v1  ;;  %v534_v1 = vld [vmem:[#allocation5 + $0xc80] sm:$0xff]  ;;  %v6895_v62 = vpack.c.bf16 %v573_v48, %v572_v44  ;;  %v564_v44 = vld [vmem:[#allocation5 + $0xd70] sm:$0xff] }
  0xe9   :  { %6832 = vmatprep.subr.bf16.mxu1 %v6831_v4  ;;  %v567_v4 = vld [vmem:[#allocation5 + $0xd88] sm:$0xff]  ;;  %v6851_v7 = vpack.c.bf16 %v535_v2, %v534_v1  ;;  %v1720_v40 = vcombine.high %v7999_v13, %v8002_v14  ;;  %v574_v23 = vld [vmem:[#allocation5 + $0xdc0] sm:$0xff] }
  0xea   :  { %6802 = vmatpush3.bf16.msra.mxu0 %v6801_v60  ;;  %v518_v60 = vld [vmem:[#allocation5 + $0xc00] sm:$0xff]  ;;  %v6883_v9 = vpack.c.bf16 %v567_v4, %v566_v63  ;;  %v575_v1 = vld [vmem:[#allocation5 + $0xdc8] sm:$0xff] }
  0xeb   :  { %6804 = vmatprep.subr.bf16.mxu0 %v6803_v8  ;;  %v550_v8 = vld [vmem:[#allocation5 + $0xd00] sm:$0xff]  ;;  %v527_v4 = vld [vmem:[#allocation5 + $0xc48] sm:$0xff] }
  0xec   :  { %6834 = vmatpush3.bf16.msra.mxu1 %v6833_v0  ;;  %v519_v0 = vld [vmem:[#allocation5 + $0xc08] sm:$0xff]  ;;  %v6885_v27 = vpack.c.bf16 %v551_v10, %v550_v8  ;;  %v526_v63 = vld [vmem:[#allocation5 + $0xc40] sm:$0xff] }
  0xed   :  { %6836 = vmatprep.subr.bf16.mxu1 %v6835_v12  ;;  %v537_v12 = vld [vmem:[#allocation5 + $0xc98] sm:$0xff]  ;;  %v6869_v8 = vpack.c.bf16 %v527_v4, %v526_v63  ;;  %v615_v4 = vld [vmem:[#allocation5 + $0xf08] sm:$0xff] }
  0xee   :  { %6806 = vmatpush3.bf16.msra.mxu0 %v6805_v21  ;;  %v8007_v21 = vrot.slane %v1688_v17, %v7896_v20  ;;  %v6855_v30 = vpack.c.bf16 %v537_v12, %v536_v11  ;;  %v558_v17 = vld [vmem:[#allocation5 + $0xd40] sm:$0xff]  ;;  %v528_v11 = vld [vmem:[#allocation5 + $0xc50] sm:$0xff]  ;;  %v529_v12 = vld [vmem:[#allocation5 + $0xc58] sm:$0xff] }
  0xef   :  { %6808 = vmatprep.subr.bf16.mxu0 %v6807_v25  ;;  %v6853_v25 = vpack.c.bf16 %v519_v0, %v518_v60  ;;  %v576_v60 = vld [vmem:[#allocation5 + $0xdd0] sm:$0xff]  ;;  %v577_v0 = vld [vmem:[#allocation5 + $0xdd8] sm:$0xff] }
  0xf0   :  { %6838 = vmatpush3.bf16.msra.mxu1 %v6837_v22  ;;  %v8010_v22 = vrot.slane %v1690_v24, %v7896_v20  ;;  %v6899_v24 = vpack.c.bf16 %v575_v1, %v574_v23  ;;  %v6903_v18 = vpack.c.bf16 %v577_v0, %v576_v60  ;;  %v632_v60 = vld [vmem:[#allocation5 + $0xf90] sm:$0xff]  ;;  %v633_v0 = vld [vmem:[#allocation5 + $0xf98] sm:$0xff] }
  0xf1   :  { %6840 = vmatprep.subr.bf16.mxu1 %v6839_v31  ;;  %v520_v31 = vld [vmem:[#allocation5 + $0xc10] sm:$0xff] }
  0xf2   :  { %6810 = vmatpush3.bf16.msra.mxu0 %v6809_v41  ;;  %v570_v41 = vld [vmem:[#allocation5 + $0xda0] sm:$0xff]  ;;  %v1722_v33 = vcombine.high %v8007_v21, %v8010_v22  ;;  %v6857_v34 = vpack.c.bf16 %v521_v32, %v520_v31  ;;  %v6873_v31 = vpack.c.bf16 %v529_v12, %v528_v11  ;;  %v1721_v11 = vcombine.low %v8007_v21, %v8010_v22 }
  0xf3   :  { %6812 = vmatprep.subr.bf16.mxu0 %v6811_v46  ;;  %v523_v46 = vld [vmem:[#allocation5 + $0xc28] sm:$0xff]  ;;  %v6891_v50 = vpack.c.bf16 %v571_v42, %v570_v41  ;;  %v530_v32 = vld [vmem:[#allocation5 + $0xc60] sm:$0xff]  ;;  %v549_v41 = vld [vmem:[#allocation5 + $0xcf8] sm:$0xff] }
  0xf4   :  { %6842 = vmatpush3.bf16.msra.mxu1 %v6841_v45  ;;  %v522_v45 = vld [vmem:[#allocation5 + $0xc20] sm:$0xff]  ;;  %v6877_v47 = vpack.c.bf16 %v531_v28, %v530_v32  ;;  %v635_v32 = vld [vmem:[#allocation5 + $0xfa8] sm:$0xff] }
  0xf5   :  { %6844 = vmatprep.subr.bf16.mxu1 %v6843_v52  ;;  %v540_v52 = vld [vmem:[#allocation5 + $0xcb0] sm:$0xff]  ;;  %v6861_v49 = vpack.c.bf16 %v523_v46, %v522_v45  ;;  %v101_v45 = vld [vmem:[#allocation2 + $0x174] sm:$0xff] }
  0xf6   :  { %6814 = vmatpush3.bf16.msra.mxu0 %v6813_v57  ;;  %v6863_v56 = vpack.c.bf16 %v541_v43, %v540_v52  ;;  %v524_v57 = vld [vmem:[#allocation5 + $0xc30] sm:$0xff]  ;;  %v121_v46 = vld [vmem:[#allocation2 + $0x212] sm:$0xff] }
  0xf7   :  { %6816 = vmatprep.subr.bf16.mxu0 %v6815_v61  ;;  %v556_v61 = vld [vmem:[#allocation5 + $0xd30] sm:$0xff]  ;;  %v533_v43 = vld [vmem:[#allocation5 + $0xc78] sm:$0xff] }
  0xf8   :  { %6846 = vmatpush3.bf16.msra.mxu1 %v6845_v58  ;;  %v525_v58 = vld [vmem:[#allocation5 + $0xc38] sm:$0xff]  ;;  %v6897_v3 = vpack.c.bf16 %v557_v53, %v556_v61  ;;  %v532_v52 = vld [vmem:[#allocation5 + $0xc70] sm:$0xff]  ;;  %v630_v61 = vld [vmem:[#allocation5 + $0xf80] sm:$0xff] }
  0xf9   :  { %6848 = vmatprep.subr.bf16.mxu1 %v6847_v16  ;;  %v543_v16 = vld [vmem:[#allocation5 + $0xcc8] sm:$0xff]  ;;  %v6865_v2 = vpack.c.bf16 %v525_v58, %v524_v57  ;;  %v1725_v58 = vcombine.low %v101_v45, %v121_v46 }
  0xfa   :  { %6818 = vmatpush3.bf16.msra.mxu0 %v6817_v5  ;;  %v6867_v59 = vpack.c.bf16 %v543_v16, %v542_v54  ;;  %v559_v5 = vld [vmem:[#allocation5 + $0xd48] sm:$0xff]  ;;  %v1726_v54 = vcombine.high %v101_v45, %v121_v46  ;;  %v6881_v16 = vpack.c.bf16 %v533_v43, %v532_v52  ;;  %v621_v43 = vld [vmem:[#allocation5 + $0xf38] sm:$0xff] }
  0xfb   :  { %6852 = vmatprep.subr.bf16.mxu0 %v6851_v7  ;;  %v545_v7 = vld [vmem:[#allocation5 + $0xcd8] sm:$0xff] }
  0xfc   :  { %6850 = vmatpush3.bf16.msra.mxu1 %v6849_v6  ;;  %v544_v6 = vld [vmem:[#allocation5 + $0xcd0] sm:$0xff] }
  0xfd   :  { %6884 = vmatprep.subr.bf16.mxu1 %v6883_v9  ;;  %3036 = vmatmul.mubr.f32.vlgmr.msra.gmra.mrb[10].mxu0 %v1683_v15  ;;  %v6901_v9 = vpack.c.bf16 %v559_v5, %v558_v17  ;;  %v6871_v10 = vpack.c.bf16 %v545_v7, %v544_v6  ;;  %v560_v15 = vld [vmem:[#allocation5 + $0xd50] sm:$0xff]  ;;  %v8022_v6 = vrot.slane %v1725_v58, %v7896_v20 }
  0xfe   :  { %6854 = vmatpush3.bf16.msra.mxu0 %v6853_v25  ;;  %3175 = vmatprep.mubr.f32.mxu0 %v1720_v40  ;;  %v546_v25 = vld [vmem:[#allocation5 + $0xce0] sm:$0xff]  ;;  %v6905_v35 = vpack.c.bf16 %v561_v19, %v560_v15  ;;  %v548_v40 = vld [vmem:[#allocation5 + $0xcf0] sm:$0xff]  ;;  %v1719_v7 = vcombine.low %v7999_v13, %v8002_v14  ;;  %v585_v19 = vld [vmem:[#allocation5 + $0xe18] sm:$0xff]  ;;  %v6951_v14 = vpack.c.bf16 %v633_v0, %v632_v60 }
  0xff   :  { %3106 = vmatmul.mubr.f32.vlgmr.msra.gmra.mrb[10].mxu1 %v1685_v26  ;;  %6856 = vmatprep.subr.bf16.mxu0 %v6855_v30  ;;  %v547_v26 = vld [vmem:[#allocation5 + $0xce8] sm:$0xff]  ;;  %v6879_v51 = vpack.c.bf16 %v549_v41, %v548_v40  ;;  %v600_v17 = vld [vmem:[#allocation5 + $0xe90] sm:$0xff]  ;;  %v625_v0 = vld [vmem:[#allocation5 + $0xf58] sm:$0xff] }
 0x100   :  { %6886 = vmatpush3.bf16.msra.mxu1 %v6885_v27  ;;  %3245 = vmatprep.mubr.f32.mxu1 %v1722_v33  ;;  %v578_v27 = vld [vmem:[#allocation5 + $0xde0] sm:$0xff]  ;;  %v579_v30 = vld [vmem:[#allocation5 + $0xde8] sm:$0xff]  ;;  %v6875_v36 = vpack.c.bf16 %v547_v26, %v546_v25  ;;  %v580_v33 = vld [vmem:[#allocation5 + $0xdf0] sm:$0xff] }
 0x101   :  { %6888 = vmatprep.subr.bf16.mxu1 %v6887_v29  ;;  %v562_v29 = vld [vmem:[#allocation5 + $0xd60] sm:$0xff]  ;;  %v6907_v42 = vpack.c.bf16 %v579_v30, %v578_v27  ;;  %v616_v13 = vld [vmem:[#allocation5 + $0xf10] sm:$0xff]  ;;  %v617_v25 = vld [vmem:[#allocation5 + $0xf18] sm:$0xff] }
 0x102   :  { %6858 = vmatpush3.bf16.msra.mxu0 %v6857_v34  ;;  %v581_v34 = vld [vmem:[#allocation5 + $0xdf8] sm:$0xff]  ;;  %v602_v26 = vld [vmem:[#allocation5 + $0xea0] sm:$0xff]  ;;  %v603_v27 = vld [vmem:[#allocation5 + $0xea8] sm:$0xff]  ;;  %v6953_v28 = vpack.c.bf16 %v617_v25, %v616_v13 }
 0x103   :  { %6860 = vmatprep.subr.bf16.mxu0 %v6859_v39  ;;  %v81_v39 = vld [vmem:[#allocation2 + $0xd6] sm:$0xff]  ;;  %v6911_v48 = vpack.c.bf16 %v581_v34, %v580_v33  ;;  %v619_v41 = vld [vmem:[#allocation5 + $0xf28] sm:$0xff]  ;;  %v636_v34 = vld [vmem:[#allocation5 + $0xfb0] sm:$0xff] }
 0x104   :  { %6890 = vmatpush3.bf16.msra.mxu1 %v6889_v38  ;;  %v61_v38 = vld [vmem:[#allocation2 + $0x38] sm:$0xff]  ;;  %v605_v33 = vld [vmem:[#allocation5 + $0xeb8] sm:$0xff]  ;;  %v595_v13 = vld [vmem:[#allocation5 + $0xe68] sm:$0xff] }
 0x105   :  { %6892 = vmatprep.subr.bf16.mxu1 %v6891_v50  ;;  %v6909_v50 = vpack.c.bf16 %v563_v37, %v562_v29  ;;  %v1723_v57 = vcombine.low %v61_v38, %v81_v39  ;;  %v1724_v53 = vcombine.high %v61_v38, %v81_v39  ;;  %v6923_v29 = vpack.c.bf16 %v603_v27, %v602_v26  ;;  %v618_v37 = vld [vmem:[#allocation5 + $0xf20] sm:$0xff]  ;;  %v637_v38 = vld [vmem:[#allocation5 + $0xfb8] sm:$0xff]  ;;  %v5090_v25 = vld [vmem:[#allocation7] ss:$0 sm:$0xff] }
 0x106   :  { %6862 = vmatpush3.bf16.msra.mxu0 %v6861_v49  ;;  %v565_v49 = vld [vmem:[#allocation5 + $0xd78] sm:$0xff]  ;;  %v6957_v45 = vpack.c.bf16 %v619_v41, %v618_v37  ;;  %v6959_v52 = vpack.c.bf16 %v637_v38, %v636_v34  ;;  %v102_v41 = vld [vmem:[#allocation2 + $0x17c] sm:$0xff] }
 0x107   :  { %6864 = vmatprep.subr.bf16.mxu0 %v6863_v56  ;;  %v599_v56 = vld [vmem:[#allocation5 + $0xe88] sm:$0xff]  ;;  %v6913_v23 = vpack.c.bf16 %v565_v49, %v564_v44  ;;  %v8019_v5 = vrot.slane %v1723_v57, %v7896_v20  ;;  %v606_v44 = vld [vmem:[#allocation5 + $0xec0] sm:$0xff] }
 0x108   :  { %6894 = vmatpush3.bf16.msra.mxu1 %v6893_v55  ;;  %v598_v55 = vld [vmem:[#allocation5 + $0xe80] sm:$0xff] }
 0x109   :  { %6896 = vmatprep.subr.bf16.mxu1 %v6895_v62  ;;  %v631_v62 = vld [vmem:[#allocation5 + $0xf88] sm:$0xff]  ;;  %v6915_v1 = vpack.c.bf16 %v599_v56, %v598_v55  ;;  %v1756_v30 = vcombine.high %v8019_v5, %v8022_v6  ;;  %v638_v49 = vld [vmem:[#allocation5 + $0xfc0] sm:$0xff] }
 0x10a   :  { %6866 = vmatpush3.bf16.msra.mxu0 %v6865_v2  ;;  %v582_v2 = vld [vmem:[#allocation5 + $0xe00] sm:$0xff]  ;;  %v6947_v63 = vpack.c.bf16 %v631_v62, %v630_v61  ;;  %v639_v55 = vld [vmem:[#allocation5 + $0xfc8] sm:$0xff] }
 0x10b   :  { %6868 = vmatprep.subr.bf16.mxu0 %v6867_v59  ;;  %v614_v59 = vld [vmem:[#allocation5 + $0xf00] sm:$0xff]  ;;  %v591_v62 = vld [vmem:[#allocation5 + $0xe48] sm:$0xff] }
 0x10c   :  { %6898 = vmatpush3.bf16.msra.mxu1 %v6897_v3  ;;  %v583_v3 = vld [vmem:[#allocation5 + $0xe08] sm:$0xff]  ;;  %v6949_v12 = vpack.c.bf16 %v615_v4, %v614_v59  ;;  %v590_v61 = vld [vmem:[#allocation5 + $0xe40] sm:$0xff] }
 0x10d   :  { %6900 = vmatprep.subr.bf16.mxu1 %v6899_v24  ;;  %v601_v24 = vld [vmem:[#allocation5 + $0xe98] sm:$0xff]  ;;  %v6933_v59 = vpack.c.bf16 %v591_v62, %v590_v61 }
 0x10e   :  { %6870 = vmatpush3.bf16.msra.mxu0 %v6869_v8  ;;  %v8027_v8 = vrot.slane %v1724_v53, %v7896_v20  ;;  %v6919_v15 = vpack.c.bf16 %v601_v24, %v600_v17  ;;  %v622_v53 = vld [vmem:[#allocation5 + $0xf40] sm:$0xff]  ;;  %v592_v17 = vld [vmem:[#allocation5 + $0xe50] sm:$0xff]  ;;  %v593_v24 = vld [vmem:[#allocation5 + $0xe58] sm:$0xff] }
 0x10f   :  { %6872 = vmatprep.subr.bf16.mxu0 %v6871_v10  ;;  %v6917_v10 = vpack.c.bf16 %v583_v3, %v582_v2  ;;  %v640_v2 = vld [vmem:[#allocation5 + $0xfd0] sm:$0xff]  ;;  %v641_v3 = vld [vmem:[#allocation5 + $0xfd8] sm:$0xff] }
 0x110   :  { %6902 = vmatpush3.bf16.msra.mxu1 %v6901_v9  ;;  %v8030_v9 = vrot.slane %v1726_v54, %v7896_v20  ;;  %v6963_v54 = vpack.c.bf16 %v639_v55, %v638_v49  ;;  %v6967_v60 = vpack.c.bf16 %v641_v3, %v640_v2  ;;  %v663_v49 = vld [vmem:[#allocation5 + $0x1088] sm:$0xff]  ;;  %v678_v3 = vld [vmem:[#allocation5 + $0x1100] sm:$0xff] }
 0x111   :  { %6904 = vmatprep.subr.bf16.mxu1 %v6903_v18  ;;  %v584_v18 = vld [vmem:[#allocation5 + $0xe10] sm:$0xff]  ;;  %v647_v2 = vld [vmem:[#allocation5 + $0x1008] sm:$0xff] }
 0x112   :  { %6874 = vmatpush3.bf16.msra.mxu0 %v6873_v31  ;;  %v634_v31 = vld [vmem:[#allocation5 + $0xfa0] sm:$0xff]  ;;  %v1758_v21 = vcombine.high %v8027_v8, %v8030_v9  ;;  %v6921_v22 = vpack.c.bf16 %v585_v19, %v584_v18  ;;  %v6937_v18 = vpack.c.bf16 %v593_v24, %v592_v17  ;;  %v665_v17 = vld [vmem:[#allocation5 + $0x1098] sm:$0xff] }
 0x113   :  { %6876 = vmatprep.subr.bf16.mxu0 %v6875_v36  ;;  %v587_v36 = vld [vmem:[#allocation5 + $0xe28] sm:$0xff]  ;;  %v6955_v40 = vpack.c.bf16 %v635_v32, %v634_v31  ;;  %v594_v19 = vld [vmem:[#allocation5 + $0xe60] sm:$0xff]  ;;  %v612_v31 = vld [vmem:[#allocation5 + $0xef0] sm:$0xff] }
 0x114   :  { %6906 = vmatpush3.bf16.msra.mxu1 %v6905_v35  ;;  %v586_v35 = vld [vmem:[#allocation5 + $0xe20] sm:$0xff]  ;;  %v613_v32 = vld [vmem:[#allocation5 + $0xef8] sm:$0xff]  ;;  %v6941_v38 = vpack.c.bf16 %v595_v13, %v594_v19 }
 0x115   :  { %6908 = vmatprep.subr.bf16.mxu1 %v6907_v42  ;;  %v604_v42 = vld [vmem:[#allocation5 + $0xeb0] sm:$0xff]  ;;  %v6925_v39 = vpack.c.bf16 %v587_v36, %v586_v35  ;;  %v62_v35 = vld [vmem:[#allocation2 + $0x40] sm:$0xff] }
 0x116   :  { %6878 = vmatpush3.bf16.msra.mxu0 %v6877_v47  ;;  %v6927_v46 = vpack.c.bf16 %v605_v33, %v604_v42  ;;  %v588_v47 = vld [vmem:[#allocation5 + $0xe30] sm:$0xff]  ;;  %v122_v42 = vld [vmem:[#allocation2 + $0x21a] sm:$0xff] }
 0x117   :  { %6880 = vmatprep.subr.bf16.mxu0 %v6879_v51  ;;  %v620_v51 = vld [vmem:[#allocation5 + $0xf30] sm:$0xff]  ;;  %v1762_v62 = vcombine.high %v102_v41, %v122_v42 }
 0x118   :  { %6910 = vmatpush3.bf16.msra.mxu1 %v6909_v50  ;;  %v589_v50 = vld [vmem:[#allocation5 + $0xe38] sm:$0xff]  ;;  %v6961_v57 = vpack.c.bf16 %v621_v43, %v620_v51  ;;  %v628_v51 = vld [vmem:[#allocation5 + $0xf70] sm:$0xff] }
 0x119   :  { %6912 = vmatprep.subr.bf16.mxu1 %v6911_v48  ;;  %v607_v48 = vld [vmem:[#allocation5 + $0xec8] sm:$0xff]  ;;  %v6929_v56 = vpack.c.bf16 %v589_v50, %v588_v47  ;;  %v596_v47 = vld [vmem:[#allocation5 + $0xe70] sm:$0xff]  ;;  %v597_v50 = vld [vmem:[#allocation5 + $0xe78] sm:$0xff] }
 0x11a   :  { %6882 = vmatpush3.bf16.msra.mxu0 %v6881_v16  ;;  %v6931_v58 = vpack.c.bf16 %v607_v48, %v606_v44  ;;  %v623_v16 = vld [vmem:[#allocation5 + $0xf48] sm:$0xff]  ;;  %v629_v44 = vld [vmem:[#allocation5 + $0xf78] sm:$0xff]  ;;  %v662_v48 = vld [vmem:[#allocation5 + $0x1080] sm:$0xff] }
 0x11b   :  { %6916 = vmatprep.subr.bf16.mxu0 %v6915_v1  ;;  %v609_v1 = vld [vmem:[#allocation5 + $0xed8] sm:$0xff] }
 0x11c   :  { %6914 = vmatpush3.bf16.msra.mxu1 %v6913_v23  ;;  %v608_v23 = vld [vmem:[#allocation5 + $0xed0] sm:$0xff] }
 0x11d   :  { %6948 = vmatprep.subr.bf16.mxu1 %v6947_v63  ;;  %3176 = vmatmul.mubr.f32.vlgmr.msra.gmra.mrb[12].mxu0 %v1719_v7  ;;  %v6965_v63 = vpack.c.bf16 %v623_v16, %v622_v53  ;;  %v6935_v4 = vpack.c.bf16 %v609_v1, %v608_v23  ;;  %v624_v7 = vld [vmem:[#allocation5 + $0xf50] sm:$0xff]  ;;  %v6977_v16 = vpack.c.bf16 %v629_v44, %v628_v51  ;;  %v646_v1 = vld [vmem:[#allocation5 + $0x1000] sm:$0xff]  ;;  %v671_v44 = vld [vmem:[#allocation5 + $0x10c8] sm:$0xff] }
 0x11e   :  { %6918 = vmatpush3.bf16.msra.mxu0 %v6917_v10  ;;  %3315 = vmatprep.mubr.f32.mxu0 %v1756_v30  ;;  %v610_v10 = vld [vmem:[#allocation5 + $0xee0] sm:$0xff]  ;;  %v6969_v26 = vpack.c.bf16 %v625_v0, %v624_v7  ;;  %v627_v30 = vld [vmem:[#allocation5 + $0xf68] sm:$0xff]  ;;  %v6979_v23 = vpack.c.bf16 %v663_v49, %v662_v48  ;;  %v696_v0 = vld [vmem:[#allocation5 + $0x1190] sm:$0xff] }
 0x11f   :  { %3246 = vmatmul.mubr.f32.vlgmr.msra.gmra.mrb[12].mxu1 %v1721_v11  ;;  %6920 = vmatprep.subr.bf16.mxu0 %v6919_v15  ;;  %v611_v11 = vld [vmem:[#allocation5 + $0xee8] sm:$0xff]  ;;  %v702_v48 = vld [vmem:[#allocation5 + $0x11c0] sm:$0xff] }
 0x120   :  { %6950 = vmatpush3.bf16.msra.mxu1 %v6949_v12  ;;  %3385 = vmatprep.mubr.f32.mxu1 %v1758_v21  ;;  %v642_v12 = vld [vmem:[#allocation5 + $0xfe0] sm:$0xff]  ;;  %v643_v15 = vld [vmem:[#allocation5 + $0xfe8] sm:$0xff]  ;;  %v6939_v27 = vpack.c.bf16 %v611_v11, %v610_v10  ;;  %v697_v10 = vld [vmem:[#allocation5 + $0x1198] sm:$0xff] }
 0x121   :  { %6952 = vmatprep.subr.bf16.mxu1 %v6951_v14  ;;  %v626_v14 = vld [vmem:[#allocation5 + $0xf60] sm:$0xff]  ;;  %v703_v49 = vld [vmem:[#allocation5 + $0x11c8] sm:$0xff] }
 0x122   :  { %6922 = vmatpush3.bf16.msra.mxu0 %v6921_v22  ;;  %v6971_v22 = vpack.c.bf16 %v643_v15, %v642_v12  ;;  %v8052_v12 = vrot.slane %v1762_v62, %v7896_v20  ;;  %v6981_v15 = vpack.c.bf16 %v647_v2, %v646_v1  ;;  %v686_v62 = vld [vmem:[#allocation5 + $0x1140] sm:$0xff]  ;;  %v673_v1 = vld [vmem:[#allocation5 + $0x10d8] sm:$0xff]  ;;  %v704_v2 = vld [vmem:[#allocation5 + $0x11d0] sm:$0xff] }
 0x123   :  { %6924 = vmatprep.subr.bf16.mxu0 %v6923_v29  ;;  %v645_v29 = vld [vmem:[#allocation5 + $0xff8] sm:$0xff] }
 0x124   :  { %6954 = vmatpush3.bf16.msra.mxu1 %v6953_v28  ;;  %v644_v28 = vld [vmem:[#allocation5 + $0xff0] sm:$0xff] }
 0x125   :  { %6956 = vmatprep.subr.bf16.mxu1 %v6955_v40  ;;  %v82_v40 = vld [vmem:[#allocation2 + $0xde] sm:$0xff]  ;;  %v6975_v43 = vpack.c.bf16 %v645_v29, %v644_v28 }
 0x126   :  { %6926 = vmatpush3.bf16.msra.mxu0 %v6925_v39  ;;  %v1759_v55 = vcombine.low %v62_v35, %v82_v40  ;;  %v1760_v61 = vcombine.high %v62_v35, %v82_v40  ;;  %v650_v29 = vld [vmem:[#allocation5 + $0x1020] sm:$0xff]  ;;  %v651_v35 = vld [vmem:[#allocation5 + $0x1028] sm:$0xff] }
 0x127   :  { %6928 = vmatprep.subr.bf16.mxu0 %v6927_v46  ;;  %v6943_v46 = vpack.c.bf16 %v613_v32, %v612_v31  ;;  %v698_v32 = vld [vmem:[#allocation5 + $0x11a0] sm:$0xff]  ;;  %v683_v40 = vld [vmem:[#allocation5 + $0x1128] sm:$0xff] }
 0x128   :  { %6958 = vmatpush3.bf16.msra.mxu1 %v6957_v45  ;;  %v6973_v45 = vpack.c.bf16 %v627_v30, %v626_v14  ;;  %v8041_v24 = vrot.slane %v1759_v55, %v7896_v20  ;;  %v8049_v11 = vrot.slane %v1760_v61, %v7896_v20  ;;  %v648_v14 = vld [vmem:[#allocation5 + $0x1010] sm:$0xff]  ;;  %v667_v30 = vld [vmem:[#allocation5 + $0x10a8] sm:$0xff] }
 0x129   :  { %6960 = vmatprep.subr.bf16.mxu1 %v6959_v52  ;;  %v655_v61 = vld [vmem:[#allocation5 + $0x1048] sm:$0xff] }
 0x12a   :  { %6930 = vmatpush3.bf16.msra.mxu0 %v6929_v56  ;;  %v1761_v56 = vcombine.low %v102_v41, %v122_v42  ;;  %v668_v41 = vld [vmem:[#allocation5 + $0x10b0] sm:$0xff]  ;;  %v669_v42 = vld [vmem:[#allocation5 + $0x10b8] sm:$0xff] }
 0x12b   :  { %6932 = vmatprep.subr.bf16.mxu0 %v6931_v58  ;;  %v695_v58 = vld [vmem:[#allocation5 + $0x1188] sm:$0xff] }
 0x12c   :  { %6962 = vmatpush3.bf16.msra.mxu1 %v6961_v57  ;;  %v694_v57 = vld [vmem:[#allocation5 + $0x1180] sm:$0xff]  ;;  %v8044_v7 = vrot.slane %v1761_v56, %v7896_v20 }
 0x12d   :  { %6964 = vmatprep.subr.bf16.mxu1 %v6963_v54  ;;  %v6945_v54 = vpack.c.bf16 %v597_v50, %v596_v47  ;;  %v653_v47 = vld [vmem:[#allocation5 + $0x1038] sm:$0xff]  ;;  %v684_v50 = vld [vmem:[#allocation5 + $0x1130] sm:$0xff] }
 0x12e   :  { %6934 = vmatpush3.bf16.msra.mxu0 %v6933_v59  ;;  %v7011_v59 = vpack.c.bf16 %v695_v58, %v694_v57  ;;  %v1792_v31 = vcombine.high %v8041_v24, %v8044_v7  ;;  %v654_v58 = vld [vmem:[#allocation5 + $0x1040] sm:$0xff] }
 0x12f   :  { %6936 = vmatprep.subr.bf16.mxu0 %v6935_v4  ;;  %v664_v4 = vld [vmem:[#allocation5 + $0x1090] sm:$0xff] }
 0x130   :  { %6966 = vmatpush3.bf16.msra.mxu1 %v6965_v63  ;;  %v5124_v21 = vpop.f32.mrb[0].mxu0  ;;  %v679_v63 = vld [vmem:[#allocation5 + $0x1108] sm:$0xff]  ;;  %v6983_v13 = vpack.c.bf16 %v665_v17, %v664_v4  ;;  %v656_v17 = vld [vmem:[#allocation5 + $0x1050] sm:$0xff] }
 0x131   :  { %6968 = vmatprep.subr.bf16.mxu1 %v6967_v60  ;;  %v5125_v36 = vpop.f32.mrb[1].mxu0  ;;  %v1755_v60 = vcombine.low %v8019_v5, %v8022_v6  ;;  %v7013_v19 = vpack.c.bf16 %v679_v63, %v678_v3  ;;  %v680_v5 = vld [vmem:[#allocation5 + $0x1110] sm:$0xff]  ;;  %v7015_v6 = vpack.c.bf16 %v697_v10, %v696_v0  ;;  %v705_v3 = vld [vmem:[#allocation5 + $0x11d8] sm:$0xff] }
 0x132   :  { %v5159_v37 = vpop.f32.mrb[0].mxu1  ;;  %v5126_v33 = vadd.f32 %v5125_v36, %v5124_v21  ;;  %6938 = vmatpush3.bf16.msra.mxu0 %v6937_v18  ;;  %v1757_v18 = vcombine.low %v8027_v8, %v8030_v9  ;;  %v699_v21 = vld [vmem:[#allocation5 + $0x11a8] sm:$0xff]  ;;  %v1794_v8 = vcombine.high %v8049_v11, %v8052_v12  ;;  %v682_v36 = vld [vmem:[#allocation5 + $0x1120] sm:$0xff]  ;;  %v688_v0 = vld [vmem:[#allocation5 + $0x1150] sm:$0xff]  ;;  %v7031_v10 = vpack.c.bf16 %v705_v3, %v704_v2 }
 0x133   :  { %v5160_v34 = vpop.f32.mrb[1].mxu1  ;;  %6940 = vmatprep.subr.bf16.mxu0 %v6939_v27  ;;  %v666_v27 = vld [vmem:[#allocation5 + $0x10a0] sm:$0xff] }
 0x134   :  { %v5161_v39 = vadd.f32 %v5160_v34, %v5159_v37  ;;  %6970 = vmatpush3.bf16.msra.mxu1 %v6969_v26  ;;  %v2338_v52 = vadd.f32 %v5126_v33, %v5090_v25  ;;  %v649_v25 = vld [vmem:[#allocation5 + $0x1018] sm:$0xff]  ;;  %v6987_v28 = vpack.c.bf16 %v667_v30, %v666_v27  ;;  %v7019_v37 = vpack.c.bf16 %v699_v21, %v698_v32  ;;  %v700_v33 = vld [vmem:[#allocation5 + $0x11b0] sm:$0xff]  ;;  %v742_v2 = vld [vmem:[#allocation5 + $0x1300] sm:$0xff] }
 0x135   :  { %6972 = vmatprep.subr.bf16.mxu1 %v6971_v22  ;;  %v681_v26 = vld [vmem:[#allocation5 + $0x1118] sm:$0xff]  ;;  %v6985_v9 = vpack.c.bf16 %v649_v25, %v648_v14  ;;  %v707_v14 = vld [vmem:[#allocation5 + $0x11e8] sm:$0xff]  ;;  %v676_v32 = vld [vmem:[#allocation5 + $0x10f0] sm:$0xff] }
 0x136   :  { %v8038_v53 = vadd.f32 %v5161_v39, %v2338_v52  ;;  %6942 = vmatpush3.bf16.msra.mxu0 %v6941_v38  ;;  %v7017_v22 = vpack.c.bf16 %v681_v26, %v680_v5  ;;  %v701_v34 = vld [vmem:[#allocation5 + $0x11b8] sm:$0xff]  ;;  %v6989_v38 = vpack.c.bf16 %v651_v35, %v650_v29  ;;  %v7021_v39 = vpack.c.bf16 %v683_v40, %v682_v36  ;;  %v658_v5 = vld [vmem:[#allocation5 + $0x1060] sm:$0xff]  ;;  %v63_v29 = vld [vmem:[#allocation2 + $0x48] sm:$0xff] }
 0x137   :  { %6944 = vmatprep.subr.bf16.mxu0 %v6943_v46  ;;  %v652_v46 = vld [vmem:[#allocation5 + $0x1030] sm:$0xff]  ;;  %v7023_v51 = vpack.c.bf16 %v701_v34, %v700_v33  ;;  %v685_v52 = vld [vmem:[#allocation5 + $0x1138] sm:$0xff]  ;;  %v690_v26 = vld [vmem:[#allocation5 + $0x1160] sm:$0xff] }
 0x138   :  { %6974 = vmatpush3.bf16.msra.mxu1 %v6973_v45  ;;  %v6991_v45 = vpack.c.bf16 %v669_v42, %v668_v41  ;;  %v6993_v55 = vpack.c.bf16 %v653_v47, %v652_v46  ;;  %v7025_v56 = vpack.c.bf16 %v685_v52, %v684_v50  ;;  %v677_v21 = vld [vmem:[#allocation5 + $0x10f8] sm:$0xff]  ;;  %v103_v40 = vld [vmem:[#allocation2 + $0x184] sm:$0xff] }
 0x139   :  { %6976 = vmatprep.subr.bf16.mxu1 %v6975_v43  ;;  %v670_v43 = vld [vmem:[#allocation5 + $0x10c0] sm:$0xff]  ;;  %v123_v41 = vld [vmem:[#allocation2 + $0x222] sm:$0xff]  ;;  %v661_v47 = vld [vmem:[#allocation5 + $0x1078] sm:$0xff] }
 0x13a   :  { %6946 = vmatpush3.bf16.msra.mxu0 %v6945_v54  ;;  %v6995_v57 = vpack.c.bf16 %v671_v44, %v670_v43  ;;  %v7027_v54 = vpack.c.bf16 %v703_v49, %v702_v48  ;;  %v660_v46 = vld [vmem:[#allocation5 + $0x1070] sm:$0xff]  ;;  %v693_v43 = vld [vmem:[#allocation5 + $0x1178] sm:$0xff]  ;;  %v726_v44 = vld [vmem:[#allocation5 + $0x1280] sm:$0xff] }
 0x13b   :  { %6980 = vmatprep.subr.bf16.mxu0 %v6979_v23  ;;  %v672_v23 = vld [vmem:[#allocation5 + $0x10d0] sm:$0xff]  ;;  %v727_v48 = vld [vmem:[#allocation5 + $0x1288] sm:$0xff] }
 0x13c   :  { %6978 = vmatpush3.bf16.msra.mxu1 %v6977_v16  ;;  %v687_v16 = vld [vmem:[#allocation5 + $0x1148] sm:$0xff]  ;;  %v6999_v4 = vpack.c.bf16 %v673_v1, %v672_v23  ;;  %v692_v50 = vld [vmem:[#allocation5 + $0x1170] sm:$0xff]  ;;  %v7043_v23 = vpack.c.bf16 %v727_v48, %v726_v44  ;;  %v766_v44 = vld [vmem:[#allocation5 + $0x13c0] sm:$0xff] }
 0x13d   :  { %7012 = vmatprep.subr.bf16.mxu1 %v7011_v59  ;;  %3316 = vmatmul.mubr.f32.vlgmr.msra.gmra.mrb[14].mxu0 %v1755_v60  ;;  %v6997_v59 = vpack.c.bf16 %v655_v61, %v654_v58  ;;  %v7029_v63 = vpack.c.bf16 %v687_v16, %v686_v62  ;;  %v657_v60 = vld [vmem:[#allocation5 + $0x1058] sm:$0xff]  ;;  %v1798_v61 = vcombine.high %v103_v40, %v123_v41  ;;  %v711_v1 = vld [vmem:[#allocation5 + $0x1208] sm:$0xff] }
 0x13e   :  { %6982 = vmatpush3.bf16.msra.mxu0 %v6981_v15  ;;  %3455 = vmatprep.mubr.f32.mxu0 %v1792_v31  ;;  %v689_v15 = vld [vmem:[#allocation5 + $0x1158] sm:$0xff]  ;;  %v7001_v25 = vpack.c.bf16 %v657_v60, %v656_v17  ;;  %v691_v31 = vld [vmem:[#allocation5 + $0x1168] sm:$0xff]  ;;  %v7041_v16 = vpack.c.bf16 %v693_v43, %v692_v50 }
 0x13f   :  { %3386 = vmatmul.mubr.f32.vlgmr.msra.gmra.mrb[14].mxu1 %v1757_v18  ;;  %6984 = vmatprep.subr.bf16.mxu0 %v6983_v13  ;;  %v674_v18 = vld [vmem:[#allocation5 + $0x10e0] sm:$0xff]  ;;  %v7033_v27 = vpack.c.bf16 %v689_v15, %v688_v0  ;;  %v1791_v0 = vcombine.low %v8041_v24, %v8044_v7  ;;  %v761_v15 = vld [vmem:[#allocation5 + $0x1398] sm:$0xff]  ;;  %v744_v24 = vld [vmem:[#allocation5 + $0x1310] sm:$0xff] }
 0x140   :  { %7014 = vmatpush3.bf16.msra.mxu1 %v7013_v19  ;;  %3525 = vmatprep.mubr.f32.mxu1 %v1794_v8  ;;  %v675_v19 = vld [vmem:[#allocation5 + $0x10e8] sm:$0xff]  ;;  %v706_v13 = vld [vmem:[#allocation5 + $0x11e0] sm:$0xff] }
 0x141   :  { %7016 = vmatprep.subr.bf16.mxu1 %v7015_v6  ;;  %v659_v6 = vld [vmem:[#allocation5 + $0x1068] sm:$0xff]  ;;  %v7003_v30 = vpack.c.bf16 %v675_v19, %v674_v18  ;;  %v8075_v19 = vrot.slane %v1798_v61, %v7896_v20  ;;  %v750_v61 = vld [vmem:[#allocation5 + $0x1340] sm:$0xff] }
 0x142   :  { %6986 = vmatpush3.bf16.msra.mxu0 %v6985_v9  ;;  %v7035_v9 = vpack.c.bf16 %v707_v14, %v706_v13  ;;  %v7005_v34 = vpack.c.bf16 %v659_v6, %v658_v5  ;;  %v1793_v14 = vcombine.low %v8049_v11, %v8052_v12  ;;  %v712_v6 = vld [vmem:[#allocation5 + $0x1210] sm:$0xff]  ;;  %v735_v43 = vld [vmem:[#allocation5 + $0x12c8] sm:$0xff] }
 0x143   :  { %6988 = vmatprep.subr.bf16.mxu0 %v6987_v28  ;;  %v709_v28 = vld [vmem:[#allocation5 + $0x11f8] sm:$0xff]  ;;  %v767_v48 = vld [vmem:[#allocation5 + $0x13c8] sm:$0xff] }
 0x144   :  { %7018 = vmatpush3.bf16.msra.mxu1 %v7017_v22  ;;  %v708_v22 = vld [vmem:[#allocation5 + $0x11f0] sm:$0xff] }
 0x145   :  { %7020 = vmatprep.subr.bf16.mxu1 %v7019_v37  ;;  %v83_v37 = vld [vmem:[#allocation2 + $0xe6] sm:$0xff]  ;;  %v7039_v52 = vpack.c.bf16 %v709_v28, %v708_v22  ;;  %v714_v28 = vld [vmem:[#allocation5 + $0x1220] sm:$0xff] }
 0x146   :  { %6990 = vmatpush3.bf16.msra.mxu0 %v6989_v38  ;;  %v1795_v49 = vcombine.low %v63_v29, %v83_v37  ;;  %v1796_v58 = vcombine.high %v63_v29, %v83_v37  ;;  %v715_v29 = vld [vmem:[#allocation5 + $0x1228] sm:$0xff] }
 0x147   :  { %6992 = vmatprep.subr.bf16.mxu0 %v6991_v45  ;;  %v7007_v45 = vpack.c.bf16 %v677_v21, %v676_v32  ;;  %v762_v21 = vld [vmem:[#allocation5 + $0x13a0] sm:$0xff]  ;;  %v747_v37 = vld [vmem:[#allocation5 + $0x1328] sm:$0xff] }
 0x148   :  { %7022 = vmatpush3.bf16.msra.mxu1 %v7021_v39  ;;  %v7037_v39 = vpack.c.bf16 %v691_v31, %v690_v26  ;;  %v8064_v17 = vrot.slane %v1795_v49, %v7896_v20  ;;  %v8072_v18 = vrot.slane %v1796_v58, %v7896_v20  ;;  %v713_v26 = vld [vmem:[#allocation5 + $0x1218] sm:$0xff]  ;;  %v731_v31 = vld [vmem:[#allocation5 + $0x12a8] sm:$0xff] }
 0x149   :  { %7024 = vmatprep.subr.bf16.mxu1 %v7023_v51  ;;  %v7049_v12 = vpack.c.bf16 %v713_v26, %v712_v6  ;;  %v719_v58 = vld [vmem:[#allocation5 + $0x1248] sm:$0xff] }
 0x14a   :  { %6994 = vmatpush3.bf16.msra.mxu0 %v6993_v55  ;;  %v1797_v55 = vcombine.low %v103_v40, %v123_v41  ;;  %v1830_v11 = vcombine.high %v8072_v18, %v8075_v19  ;;  %v732_v40 = vld [vmem:[#allocation5 + $0x12b0] sm:$0xff]  ;;  %v733_v41 = vld [vmem:[#allocation5 + $0x12b8] sm:$0xff]  ;;  %v771_v6 = vld [vmem:[#allocation5 + $0x13e8] sm:$0xff] }
 0x14b   :  { %6996 = vmatprep.subr.bf16.mxu0 %v6995_v57  ;;  %v759_v57 = vld [vmem:[#allocation5 + $0x1388] sm:$0xff] }
 0x14c   :  { %7026 = vmatpush3.bf16.msra.mxu1 %v7025_v56  ;;  %v758_v56 = vld [vmem:[#allocation5 + $0x1380] sm:$0xff]  ;;  %v8067_v60 = vrot.slane %v1797_v55, %v7896_v20 }
 0x14d   :  { %7028 = vmatprep.subr.bf16.mxu1 %v7027_v54  ;;  %v7009_v54 = vpack.c.bf16 %v661_v47, %v660_v46  ;;  %v7075_v3 = vpack.c.bf16 %v759_v57, %v758_v56  ;;  %v717_v46 = vld [vmem:[#allocation5 + $0x1238] sm:$0xff]  ;;  %v748_v47 = vld [vmem:[#allocation5 + $0x1330] sm:$0xff]  ;;  %v718_v57 = vld [vmem:[#allocation5 + $0x1240] sm:$0xff] }
 0x14e   :  { %6998 = vmatpush3.bf16.msra.mxu0 %v6997_v59  ;;  %v743_v59 = vld [vmem:[#allocation5 + $0x1308] sm:$0xff]  ;;  %v1828_v32 = vcombine.high %v8064_v17, %v8067_v60 }
 0x14f   :  { %7000 = vmatprep.subr.bf16.mxu0 %v6999_v4  ;;  %v729_v4 = vld [vmem:[#allocation5 + $0x1298] sm:$0xff] }
 0x150   :  { %7030 = vmatpush3.bf16.msra.mxu1 %v7029_v63  ;;  %v5194_v8 = vpop.f32.mrb[2].mxu0  ;;  %v728_v63 = vld [vmem:[#allocation5 + $0x1290] sm:$0xff] }
 0x151   :  { %7032 = vmatprep.subr.bf16.mxu1 %v7031_v10  ;;  %v5195_v35 = vpop.f32.mrb[3].mxu0  ;;  %v760_v10 = vld [vmem:[#allocation5 + $0x1390] sm:$0xff]  ;;  %v7047_v5 = vpack.c.bf16 %v729_v4, %v728_v63 }
 0x152   :  { %v5229_v36 = vpop.f32.mrb[2].mxu1  ;;  %v5196_v42 = vadd.f32 %v5195_v35, %v5194_v8  ;;  %7002 = vmatpush3.bf16.msra.mxu0 %v7001_v25  ;;  %v7077_v25 = vpack.c.bf16 %v743_v59, %v742_v2  ;;  %v7079_v7 = vpack.c.bf16 %v761_v15, %v760_v10  ;;  %v763_v8 = vld [vmem:[#allocation5 + $0x13a8] sm:$0xff]  ;;  %v746_v35 = vld [vmem:[#allocation5 + $0x1320] sm:$0xff]  ;;  %v769_v2 = vld [vmem:[#allocation5 + $0x13d8] sm:$0xff] }
 0x153   :  { %v5230_v33 = vpop.f32.mrb[3].mxu1  ;;  %7004 = vmatprep.subr.bf16.mxu0 %v7003_v30  ;;  %v730_v30 = vld [vmem:[#allocation5 + $0x12a0] sm:$0xff]  ;;  %v720_v4 = vld [vmem:[#allocation5 + $0x1250] sm:$0xff] }
 0x154   :  { %v5231_v38 = vadd.f32 %v5230_v33, %v5229_v36  ;;  %7034 = vmatpush3.bf16.msra.mxu1 %v7033_v27  ;;  %v2478_v51 = vadd.f32 %v5196_v42, %v8038_v53  ;;  %v710_v53 = vld [vmem:[#allocation5 + $0x1200] sm:$0xff]  ;;  %v745_v27 = vld [vmem:[#allocation5 + $0x1318] sm:$0xff]  ;;  %v7051_v22 = vpack.c.bf16 %v731_v31, %v730_v30  ;;  %v7083_v36 = vpack.c.bf16 %v763_v8, %v762_v21  ;;  %v764_v42 = vld [vmem:[#allocation5 + $0x13b0] sm:$0xff] }
 0x155   :  { %7036 = vmatprep.subr.bf16.mxu1 %v7035_v9  ;;  %v7045_v13 = vpack.c.bf16 %v711_v1, %v710_v53  ;;  %v7081_v9 = vpack.c.bf16 %v745_v27, %v744_v24  ;;  %v765_v33 = vld [vmem:[#allocation5 + $0x13b8] sm:$0xff]  ;;  %v768_v1 = vld [vmem:[#allocation5 + $0x13d0] sm:$0xff]  ;;  %v722_v24 = vld [vmem:[#allocation5 + $0x1260] sm:$0xff] }
 0x156   :  { %v8061_v62 = vadd.f32 %v5231_v38, %v2478_v51  ;;  %7006 = vmatpush3.bf16.msra.mxu0 %v7005_v34  ;;  %v7053_v34 = vpack.c.bf16 %v715_v29, %v714_v28  ;;  %v7085_v38 = vpack.c.bf16 %v747_v37, %v746_v35  ;;  %v7087_v50 = vpack.c.bf16 %v765_v33, %v764_v42  ;;  %v749_v51 = vld [vmem:[#allocation5 + $0x1338] sm:$0xff]  ;;  %v752_v10 = vld [vmem:[#allocation5 + $0x1350] sm:$0xff]  ;;  %v754_v27 = vld [vmem:[#allocation5 + $0x1360] sm:$0xff] }
 0x157   :  { %7008 = vmatprep.subr.bf16.mxu0 %v7007_v45  ;;  %v716_v45 = vld [vmem:[#allocation5 + $0x1230] sm:$0xff]  ;;  %v7089_v55 = vpack.c.bf16 %v749_v51, %v748_v47  ;;  %v737_v53 = vld [vmem:[#allocation5 + $0x12d8] sm:$0xff]  ;;  %v7095_v15 = vpack.c.bf16 %v769_v2, %v768_v1  ;;  %v806_v1 = vld [vmem:[#allocation5 + $0x1500] sm:$0xff] }
 0x158   :  { %7038 = vmatpush3.bf16.msra.mxu1 %v7037_v39  ;;  %v7055_v39 = vpack.c.bf16 %v733_v41, %v732_v40  ;;  %v7057_v49 = vpack.c.bf16 %v717_v46, %v716_v45  ;;  %v740_v21 = vld [vmem:[#allocation5 + $0x12f0] sm:$0xff]  ;;  %v741_v8 = vld [vmem:[#allocation5 + $0x12f8] sm:$0xff] }
 0x159   :  { %7040 = vmatprep.subr.bf16.mxu1 %v7039_v52  ;;  %v734_v52 = vld [vmem:[#allocation5 + $0x12c0] sm:$0xff]  ;;  %v64_v28 = vld [vmem:[#allocation2 + $0x50] sm:$0xff]  ;;  %v724_v45 = vld [vmem:[#allocation5 + $0x1270] sm:$0xff] }
 0x15a   :  { %7010 = vmatpush3.bf16.msra.mxu0 %v7009_v54  ;;  %v7059_v56 = vpack.c.bf16 %v735_v43, %v734_v52  ;;  %v7091_v54 = vpack.c.bf16 %v767_v48, %v766_v44  ;;  %v104_v37 = vld [vmem:[#allocation2 + $0x18c] sm:$0xff]  ;;  %v790_v43 = vld [vmem:[#allocation5 + $0x1480] sm:$0xff]  ;;  %v791_v44 = vld [vmem:[#allocation5 + $0x1488] sm:$0xff] }
 0x15b   :  { %7044 = vmatprep.subr.bf16.mxu0 %v7043_v23  ;;  %v736_v23 = vld [vmem:[#allocation5 + $0x12d0] sm:$0xff]  ;;  %v725_v46 = vld [vmem:[#allocation5 + $0x1278] sm:$0xff] }
 0x15c   :  { %7042 = vmatpush3.bf16.msra.mxu1 %v7041_v16  ;;  %v751_v16 = vld [vmem:[#allocation5 + $0x1348] sm:$0xff]  ;;  %v7063_v63 = vpack.c.bf16 %v737_v53, %v736_v23  ;;  %v124_v40 = vld [vmem:[#allocation2 + $0x22a] sm:$0xff]  ;;  %v7107_v23 = vpack.c.bf16 %v791_v44, %v790_v43  ;;  %v830_v43 = vld [vmem:[#allocation5 + $0x15c0] sm:$0xff] }
 0x15d   :  { %7076 = vmatprep.subr.bf16.mxu1 %v7075_v3  ;;  %3456 = vmatmul.mubr.f32.vlgmr.msra.gmra.mrb[16].mxu0 %v1791_v0  ;;  %v7061_v3 = vpack.c.bf16 %v719_v58, %v718_v57  ;;  %v7093_v59 = vpack.c.bf16 %v751_v16, %v750_v61  ;;  %v721_v0 = vld [vmem:[#allocation5 + $0x1258] sm:$0xff]  ;;  %v756_v47 = vld [vmem:[#allocation5 + $0x1370] sm:$0xff]  ;;  %v1834_v58 = vcombine.high %v104_v37, %v124_v40  ;;  %v775_v53 = vld [vmem:[#allocation5 + $0x1408] sm:$0xff] }
 0x15e   :  { %7046 = vmatpush3.bf16.msra.mxu0 %v7045_v13  ;;  %3595 = vmatprep.mubr.f32.mxu0 %v1828_v32  ;;  %v753_v13 = vld [vmem:[#allocation5 + $0x1358] sm:$0xff]  ;;  %v7065_v26 = vpack.c.bf16 %v721_v0, %v720_v4  ;;  %v755_v32 = vld [vmem:[#allocation5 + $0x1368] sm:$0xff] }
 0x15f   :  { %3526 = vmatmul.mubr.f32.vlgmr.msra.gmra.mrb[16].mxu1 %v1793_v14  ;;  %7048 = vmatprep.subr.bf16.mxu0 %v7047_v5  ;;  %v738_v14 = vld [vmem:[#allocation5 + $0x12e0] sm:$0xff]  ;;  %v7097_v30 = vpack.c.bf16 %v753_v13, %v752_v10  ;;  %v757_v52 = vld [vmem:[#allocation5 + $0x1378] sm:$0xff]  ;;  %v1827_v10 = vcombine.low %v8064_v17, %v8067_v60  ;;  %v808_v17 = vld [vmem:[#allocation5 + $0x1510] sm:$0xff] }
 0x160   :  { %7078 = vmatpush3.bf16.msra.mxu1 %v7077_v25  ;;  %3665 = vmatprep.mubr.f32.mxu1 %v1830_v11  ;;  %v739_v25 = vld [vmem:[#allocation5 + $0x12e8] sm:$0xff]  ;;  %v770_v5 = vld [vmem:[#allocation5 + $0x13e0] sm:$0xff]  ;;  %v7105_v16 = vpack.c.bf16 %v757_v52, %v756_v47  ;;  %v825_v13 = vld [vmem:[#allocation5 + $0x1598] sm:$0xff] }
 0x161   :  { %7080 = vmatprep.subr.bf16.mxu1 %v7079_v7  ;;  %v723_v7 = vld [vmem:[#allocation5 + $0x1268] sm:$0xff]  ;;  %v7067_v31 = vpack.c.bf16 %v739_v25, %v738_v14  ;;  %v8098_v25 = vrot.slane %v1834_v58, %v7896_v20  ;;  %v814_v58 = vld [vmem:[#allocation5 + $0x1540] sm:$0xff] }
 0x162   :  { %7050 = vmatpush3.bf16.msra.mxu0 %v7049_v12  ;;  %v7099_v12 = vpack.c.bf16 %v771_v6, %v770_v5  ;;  %v7069_v33 = vpack.c.bf16 %v723_v7, %v722_v24  ;;  %v1829_v6 = vcombine.low %v8072_v18, %v8075_v19  ;;  %v776_v7 = vld [vmem:[#allocation5 + $0x1410] sm:$0xff]  ;;  %v799_v52 = vld [vmem:[#allocation5 + $0x14c8] sm:$0xff] }
 0x163   :  { %7052 = vmatprep.subr.bf16.mxu0 %v7051_v22  ;;  %v773_v22 = vld [vmem:[#allocation5 + $0x13f8] sm:$0xff]  ;;  %v831_v44 = vld [vmem:[#allocation5 + $0x15c8] sm:$0xff] }
 0x164   :  { %7082 = vmatpush3.bf16.msra.mxu1 %v7081_v9  ;;  %v772_v9 = vld [vmem:[#allocation5 + $0x13f0] sm:$0xff] }
 0x165   :  { %7084 = vmatprep.subr.bf16.mxu1 %v7083_v36  ;;  %v84_v36 = vld [vmem:[#allocation2 + $0xee] sm:$0xff]  ;;  %v7103_v51 = vpack.c.bf16 %v773_v22, %v772_v9  ;;  %v778_v22 = vld [vmem:[#allocation5 + $0x1420] sm:$0xff] }
 0x166   :  { %7054 = vmatpush3.bf16.msra.mxu0 %v7053_v34  ;;  %v1831_v48 = vcombine.low %v64_v28, %v84_v36  ;;  %v1832_v57 = vcombine.high %v64_v28, %v84_v36  ;;  %v779_v28 = vld [vmem:[#allocation5 + $0x1428] sm:$0xff] }
 0x167   :  { %7056 = vmatprep.subr.bf16.mxu0 %v7055_v39  ;;  %v7071_v39 = vpack.c.bf16 %v741_v8, %v740_v21  ;;  %v826_v8 = vld [vmem:[#allocation5 + $0x15a0] sm:$0xff]  ;;  %v811_v36 = vld [vmem:[#allocation5 + $0x1528] sm:$0xff] }
 0x168   :  { %7086 = vmatpush3.bf16.msra.mxu1 %v7085_v38  ;;  %v7101_v38 = vpack.c.bf16 %v755_v32, %v754_v27  ;;  %v8087_v4 = vrot.slane %v1831_v48, %v7896_v20  ;;  %v8095_v14 = vrot.slane %v1832_v57, %v7896_v20  ;;  %v777_v27 = vld [vmem:[#allocation5 + $0x1418] sm:$0xff]  ;;  %v795_v32 = vld [vmem:[#allocation5 + $0x14a8] sm:$0xff] }
 0x169   :  { %7088 = vmatprep.subr.bf16.mxu1 %v7087_v50  ;;  %v7113_v19 = vpack.c.bf16 %v777_v27, %v776_v7  ;;  %v783_v57 = vld [vmem:[#allocation5 + $0x1448] sm:$0xff] }
 0x16a   :  { %7058 = vmatpush3.bf16.msra.mxu0 %v7057_v49  ;;  %v1833_v49 = vcombine.low %v104_v37, %v124_v40  ;;  %v1866_v18 = vcombine.high %v8095_v14, %v8098_v25  ;;  %v796_v37 = vld [vmem:[#allocation5 + $0x14b0] sm:$0xff]  ;;  %v797_v40 = vld [vmem:[#allocation5 + $0x14b8] sm:$0xff]  ;;  %v835_v7 = vld [vmem:[#allocation5 + $0x15e8] sm:$0xff] }
 0x16b   :  { %7060 = vmatprep.subr.bf16.mxu0 %v7059_v56  ;;  %v823_v56 = vld [vmem:[#allocation5 + $0x1588] sm:$0xff] }
 0x16c   :  { %7090 = vmatpush3.bf16.msra.mxu1 %v7089_v55  ;;  %v822_v55 = vld [vmem:[#allocation5 + $0x1580] sm:$0xff]  ;;  %v8090_v0 = vrot.slane %v1833_v49, %v7896_v20 }
 0x16d   :  { %7092 = vmatprep.subr.bf16.mxu1 %v7091_v54  ;;  %v7073_v54 = vpack.c.bf16 %v725_v46, %v724_v45  ;;  %v7139_v2 = vpack.c.bf16 %v823_v56, %v822_v55  ;;  %v781_v45 = vld [vmem:[#allocation5 + $0x1438] sm:$0xff]  ;;  %v812_v46 = vld [vmem:[#allocation5 + $0x1530] sm:$0xff]  ;;  %v782_v56 = vld [vmem:[#allocation5 + $0x1440] sm:$0xff] }
 0x16e   :  { %7062 = vmatpush3.bf16.msra.mxu0 %v7061_v3  ;;  %v807_v3 = vld [vmem:[#allocation5 + $0x1508] sm:$0xff]  ;;  %v1864_v21 = vcombine.high %v8087_v4, %v8090_v0 }
 0x16f   :  { %7064 = vmatprep.subr.bf16.mxu0 %v7063_v63  ;;  %v793_v63 = vld [vmem:[#allocation5 + $0x1498] sm:$0xff] }
 0x170   :  { %7094 = vmatpush3.bf16.msra.mxu1 %v7093_v59  ;;  %v5264_v11 = vpop.f32.mrb[4].mxu0  ;;  %v792_v59 = vld [vmem:[#allocation5 + $0x1490] sm:$0xff] }
 0x171   :  { %7096 = vmatprep.subr.bf16.mxu1 %v7095_v15  ;;  %v5265_v29 = vpop.f32.mrb[5].mxu0  ;;  %v824_v15 = vld [vmem:[#allocation5 + $0x1590] sm:$0xff]  ;;  %v7111_v24 = vpack.c.bf16 %v793_v63, %v792_v59 }
 0x172   :  { %v5299_v35 = vpop.f32.mrb[4].mxu1  ;;  %v5266_v41 = vadd.f32 %v5265_v29, %v5264_v11  ;;  %7066 = vmatpush3.bf16.msra.mxu0 %v7065_v26  ;;  %v7141_v26 = vpack.c.bf16 %v807_v3, %v806_v1  ;;  %v7143_v60 = vpack.c.bf16 %v825_v13, %v824_v15  ;;  %v827_v11 = vld [vmem:[#allocation5 + $0x15a8] sm:$0xff]  ;;  %v810_v29 = vld [vmem:[#allocation5 + $0x1520] sm:$0xff]  ;;  %v833_v1 = vld [vmem:[#allocation5 + $0x15d8] sm:$0xff] }
 0x173   :  { %v5300_v42 = vpop.f32.mrb[5].mxu1  ;;  %7068 = vmatprep.subr.bf16.mxu0 %v7067_v31  ;;  %v794_v31 = vld [vmem:[#allocation5 + $0x14a0] sm:$0xff]  ;;  %v784_v63 = vld [vmem:[#allocation5 + $0x1450] sm:$0xff] }
 0x174   :  { %v5301_v34 = vadd.f32 %v5300_v42, %v5299_v35  ;;  %7098 = vmatpush3.bf16.msra.mxu1 %v7097_v30  ;;  %v2618_v50 = vadd.f32 %v5266_v41, %v8061_v62  ;;  %v774_v62 = vld [vmem:[#allocation5 + $0x1400] sm:$0xff]  ;;  %v809_v30 = vld [vmem:[#allocation5 + $0x1518] sm:$0xff]  ;;  %v7115_v9 = vpack.c.bf16 %v795_v32, %v794_v31  ;;  %v7147_v35 = vpack.c.bf16 %v827_v11, %v826_v8  ;;  %v828_v41 = vld [vmem:[#allocation5 + $0x15b0] sm:$0xff] }
 0x175   :  { %7100 = vmatprep.subr.bf16.mxu1 %v7099_v12  ;;  %v7109_v5 = vpack.c.bf16 %v775_v53, %v774_v62  ;;  %v7145_v12 = vpack.c.bf16 %v809_v30, %v808_v17  ;;  %v829_v42 = vld [vmem:[#allocation5 + $0x15b8] sm:$0xff]  ;;  %v832_v53 = vld [vmem:[#allocation5 + $0x15d0] sm:$0xff]  ;;  %v786_v17 = vld [vmem:[#allocation5 + $0x1460] sm:$0xff] }
 0x176   :  { %v8084_v61 = vadd.f32 %v5301_v34, %v2618_v50  ;;  %7070 = vmatpush3.bf16.msra.mxu0 %v7069_v33  ;;  %v7117_v33 = vpack.c.bf16 %v779_v28, %v778_v22  ;;  %v7149_v34 = vpack.c.bf16 %v811_v36, %v810_v29  ;;  %v7151_v47 = vpack.c.bf16 %v829_v42, %v828_v41  ;;  %v813_v50 = vld [vmem:[#allocation5 + $0x1538] sm:$0xff]  ;;  %v816_v15 = vld [vmem:[#allocation5 + $0x1550] sm:$0xff]  ;;  %v818_v30 = vld [vmem:[#allocation5 + $0x1560] sm:$0xff] }
 0x177   :  { %7072 = vmatprep.subr.bf16.mxu0 %v7071_v39  ;;  %v780_v39 = vld [vmem:[#allocation5 + $0x1430] sm:$0xff]  ;;  %v7153_v49 = vpack.c.bf16 %v813_v50, %v812_v46  ;;  %v801_v62 = vld [vmem:[#allocation5 + $0x14d8] sm:$0xff]  ;;  %v7159_v13 = vpack.c.bf16 %v833_v1, %v832_v53  ;;  %v65_v22 = vld [vmem:[#allocation2 + $0x58] sm:$0xff] }
 0x178   :  { %7102 = vmatpush3.bf16.msra.mxu1 %v7101_v38  ;;  %v7119_v38 = vpack.c.bf16 %v797_v40, %v796_v37  ;;  %v7121_v48 = vpack.c.bf16 %v781_v45, %v780_v39  ;;  %v804_v8 = vld [vmem:[#allocation5 + $0x14f0] sm:$0xff]  ;;  %v805_v11 = vld [vmem:[#allocation5 + $0x14f8] sm:$0xff]  ;;  %v870_v53 = vld [vmem:[#allocation5 + $0x1700] sm:$0xff] }
 0x179   :  { %7104 = vmatprep.subr.bf16.mxu1 %v7103_v51  ;;  %v798_v51 = vld [vmem:[#allocation5 + $0x14c0] sm:$0xff]  ;;  %v788_v39 = vld [vmem:[#allocation5 + $0x1470] sm:$0xff]  ;;  %v789_v45 = vld [vmem:[#allocation5 + $0x1478] sm:$0xff] }
 0x17a   :  { %7074 = vmatpush3.bf16.msra.mxu0 %v7073_v54  ;;  %v7123_v55 = vpack.c.bf16 %v799_v52, %v798_v51  ;;  %v7155_v54 = vpack.c.bf16 %v831_v44, %v830_v43  ;;  %v105_v36 = vld [vmem:[#allocation2 + $0x194] sm:$0xff]  ;;  %v820_v46 = vld [vmem:[#allocation5 + $0x1570] sm:$0xff]  ;;  %v855_v43 = vld [vmem:[#allocation5 + $0x1688] sm:$0xff] }
 0x17b   :  { %7108 = vmatprep.subr.bf16.mxu0 %v7107_v23  ;;  %v800_v23 = vld [vmem:[#allocation5 + $0x14d0] sm:$0xff]  ;;  %v125_v37 = vld [vmem:[#allocation2 + $0x232] sm:$0xff] }
 0x17c   :  { %7106 = vmatpush3.bf16.msra.mxu1 %v7105_v16  ;;  %v815_v16 = vld [vmem:[#allocation5 + $0x1548] sm:$0xff]  ;;  %v7127_v59 = vpack.c.bf16 %v801_v62, %v800_v23  ;;  %v821_v51 = vld [vmem:[#allocation5 + $0x1578] sm:$0xff]  ;;  %v854_v52 = vld [vmem:[#allocation5 + $0x1680] sm:$0xff] }
 0x17d   :  { %7140 = vmatprep.subr.bf16.mxu1 %v7139_v2  ;;  %3596 = vmatmul.mubr.f32.vlgmr.msra.gmra.mrb[18].mxu0 %v1827_v10  ;;  %v7125_v2 = vpack.c.bf16 %v783_v57, %v782_v56  ;;  %v7157_v3 = vpack.c.bf16 %v815_v16, %v814_v58  ;;  %v785_v10 = vld [vmem:[#allocation5 + $0x1458] sm:$0xff]  ;;  %v1870_v57 = vcombine.high %v105_v36, %v125_v37  ;;  %v839_v62 = vld [vmem:[#allocation5 + $0x1608] sm:$0xff] }
 0x17e   :  { %7110 = vmatpush3.bf16.msra.mxu0 %v7109_v5  ;;  %3735 = vmatprep.mubr.f32.mxu0 %v1864_v21  ;;  %v817_v5 = vld [vmem:[#allocation5 + $0x1558] sm:$0xff]  ;;  %v7129_v27 = vpack.c.bf16 %v785_v10, %v784_v63  ;;  %v819_v21 = vld [vmem:[#allocation5 + $0x1568] sm:$0xff]  ;;  %v7169_v16 = vpack.c.bf16 %v821_v51, %v820_v46  ;;  %v7171_v23 = vpack.c.bf16 %v855_v43, %v854_v52  ;;  %v894_v52 = vld [vmem:[#allocation5 + $0x17c0] sm:$0xff] }
 0x17f   :  { %3666 = vmatmul.mubr.f32.vlgmr.msra.gmra.mrb[18].mxu1 %v1829_v6  ;;  %7112 = vmatprep.subr.bf16.mxu0 %v7111_v24  ;;  %v802_v6 = vld [vmem:[#allocation5 + $0x14e0] sm:$0xff]  ;;  %v7161_v31 = vpack.c.bf16 %v817_v5, %v816_v15  ;;  %v1863_v15 = vcombine.low %v8087_v4, %v8090_v0  ;;  %v889_v5 = vld [vmem:[#allocation5 + $0x1798] sm:$0xff]  ;;  %v872_v4 = vld [vmem:[#allocation5 + $0x1710] sm:$0xff] }
 0x180   :  { %7142 = vmatpush3.bf16.msra.mxu1 %v7141_v26  ;;  %3805 = vmatprep.mubr.f32.mxu1 %v1866_v18  ;;  %v803_v26 = vld [vmem:[#allocation5 + $0x14e8] sm:$0xff]  ;;  %v834_v24 = vld [vmem:[#allocation5 + $0x15e0] sm:$0xff] }
 0x181   :  { %7144 = vmatprep.subr.bf16.mxu1 %v7143_v60  ;;  %v787_v60 = vld [vmem:[#allocation5 + $0x1468] sm:$0xff]  ;;  %v7131_v32 = vpack.c.bf16 %v803_v26, %v802_v6  ;;  %v8121_v26 = vrot.slane %v1870_v57, %v7896_v20  ;;  %v878_v57 = vld [vmem:[#allocation5 + $0x1740] sm:$0xff] }
 0x182   :  { %7114 = vmatpush3.bf16.msra.mxu0 %v7113_v19  ;;  %v7163_v19 = vpack.c.bf16 %v835_v7, %v834_v24  ;;  %v7133_v42 = vpack.c.bf16 %v787_v60, %v786_v17  ;;  %v1865_v7 = vcombine.low %v8095_v14, %v8098_v25  ;;  %v840_v60 = vld [vmem:[#allocation5 + $0x1610] sm:$0xff]  ;;  %v863_v51 = vld [vmem:[#allocation5 + $0x16c8] sm:$0xff] }
 0x183   :  { %7116 = vmatprep.subr.bf16.mxu0 %v7115_v9  ;;  %v837_v9 = vld [vmem:[#allocation5 + $0x15f8] sm:$0xff]  ;;  %v895_v43 = vld [vmem:[#allocation5 + $0x17c8] sm:$0xff] }
 0x184   :  { %7146 = vmatpush3.bf16.msra.mxu1 %v7145_v12  ;;  %v836_v12 = vld [vmem:[#allocation5 + $0x15f0] sm:$0xff] }
 0x185   :  { %7148 = vmatprep.subr.bf16.mxu1 %v7147_v35  ;;  %v85_v35 = vld [vmem:[#allocation2 + $0xf6] sm:$0xff]  ;;  %v7167_v50 = vpack.c.bf16 %v837_v9, %v836_v12 }
 0x186   :  { %7118 = vmatpush3.bf16.msra.mxu0 %v7117_v33  ;;  %v1867_v44 = vcombine.low %v65_v22, %v85_v35  ;;  %v1868_v56 = vcombine.high %v65_v22, %v85_v35  ;;  %v842_v9 = vld [vmem:[#allocation5 + $0x1620] sm:$0xff]  ;;  %v843_v22 = vld [vmem:[#allocation5 + $0x1628] sm:$0xff] }
 0x187   :  { %7120 = vmatprep.subr.bf16.mxu0 %v7119_v38  ;;  %v7135_v38 = vpack.c.bf16 %v805_v11, %v804_v8  ;;  %v890_v11 = vld [vmem:[#allocation5 + $0x17a0] sm:$0xff]  ;;  %v875_v35 = vld [vmem:[#allocation5 + $0x1728] sm:$0xff] }
 0x188   :  { %7150 = vmatpush3.bf16.msra.mxu1 %v7149_v34  ;;  %v7165_v34 = vpack.c.bf16 %v819_v21, %v818_v30  ;;  %v8110_v63 = vrot.slane %v1867_v44, %v7896_v20  ;;  %v8118_v6 = vrot.slane %v1868_v56, %v7896_v20  ;;  %v841_v30 = vld [vmem:[#allocation5 + $0x1618] sm:$0xff]  ;;  %v859_v21 = vld [vmem:[#allocation5 + $0x16a8] sm:$0xff] }
 0x189   :  { %7152 = vmatprep.subr.bf16.mxu1 %v7151_v47  ;;  %v7177_v25 = vpack.c.bf16 %v841_v30, %v840_v60  ;;  %v847_v56 = vld [vmem:[#allocation5 + $0x1648] sm:$0xff] }
 0x18a   :  { %7122 = vmatpush3.bf16.msra.mxu0 %v7121_v48  ;;  %v1869_v48 = vcombine.low %v105_v36, %v125_v37  ;;  %v1902_v14 = vcombine.high %v8118_v6, %v8121_v26  ;;  %v860_v36 = vld [vmem:[#allocation5 + $0x16b0] sm:$0xff]  ;;  %v861_v37 = vld [vmem:[#allocation5 + $0x16b8] sm:$0xff]  ;;  %v899_v60 = vld [vmem:[#allocation5 + $0x17e8] sm:$0xff] }
 0x18b   :  { %7124 = vmatprep.subr.bf16.mxu0 %v7123_v55  ;;  %v887_v55 = vld [vmem:[#allocation5 + $0x1788] sm:$0xff] }
 0x18c   :  { %7154 = vmatpush3.bf16.msra.mxu1 %v7153_v49  ;;  %v886_v49 = vld [vmem:[#allocation5 + $0x1780] sm:$0xff]  ;;  %v8113_v10 = vrot.slane %v1869_v48, %v7896_v20 }
 0x18d   :  { %7156 = vmatprep.subr.bf16.mxu1 %v7155_v54  ;;  %v7137_v54 = vpack.c.bf16 %v789_v45, %v788_v39  ;;  %v7203_v1 = vpack.c.bf16 %v887_v55, %v886_v49  ;;  %v845_v39 = vld [vmem:[#allocation5 + $0x1638] sm:$0xff]  ;;  %v876_v45 = vld [vmem:[#allocation5 + $0x1730] sm:$0xff]  ;;  %v846_v55 = vld [vmem:[#allocation5 + $0x1640] sm:$0xff] }
 0x18e   :  { %7126 = vmatpush3.bf16.msra.mxu0 %v7125_v2  ;;  %v871_v2 = vld [vmem:[#allocation5 + $0x1708] sm:$0xff]  ;;  %v1900_v8 = vcombine.high %v8110_v63, %v8113_v10 }
 0x18f   :  { %7128 = vmatprep.subr.bf16.mxu0 %v7127_v59  ;;  %v857_v59 = vld [vmem:[#allocation5 + $0x1698] sm:$0xff] }
 0x190   :  { %7158 = vmatpush3.bf16.msra.mxu1 %v7157_v3  ;;  %v5334_v18 = vpop.f32.mrb[6].mxu0  ;;  %v856_v3 = vld [vmem:[#allocation5 + $0x1690] sm:$0xff] }
 0x191   :  { %7160 = vmatprep.subr.bf16.mxu1 %v7159_v13  ;;  %v5335_v28 = vpop.f32.mrb[7].mxu0  ;;  %v888_v13 = vld [vmem:[#allocation5 + $0x1790] sm:$0xff]  ;;  %v7175_v17 = vpack.c.bf16 %v857_v59, %v856_v3 }
 0x192   :  { %v5369_v29 = vpop.f32.mrb[6].mxu1  ;;  %v5336_v40 = vadd.f32 %v5335_v28, %v5334_v18  ;;  %7130 = vmatpush3.bf16.msra.mxu0 %v7129_v27  ;;  %v7205_v27 = vpack.c.bf16 %v871_v2, %v870_v53  ;;  %v7207_v0 = vpack.c.bf16 %v889_v5, %v888_v13  ;;  %v891_v18 = vld [vmem:[#allocation5 + $0x17a8] sm:$0xff]  ;;  %v874_v28 = vld [vmem:[#allocation5 + $0x1720] sm:$0xff]  ;;  %v897_v53 = vld [vmem:[#allocation5 + $0x17d8] sm:$0xff] }
 0x193   :  { %v5370_v41 = vpop.f32.mrb[7].mxu1  ;;  %7132 = vmatprep.subr.bf16.mxu0 %v7131_v32  ;;  %v858_v32 = vld [vmem:[#allocation5 + $0x16a0] sm:$0xff]  ;;  %v848_v59 = vld [vmem:[#allocation5 + $0x1650] sm:$0xff] }
 0x194   :  { %v5371_v33 = vadd.f32 %v5370_v41, %v5369_v29  ;;  %7162 = vmatpush3.bf16.msra.mxu1 %v7161_v31  ;;  %v2758_v47 = vadd.f32 %v5336_v40, %v8084_v61  ;;  %v838_v61 = vld [vmem:[#allocation5 + $0x1600] sm:$0xff]  ;;  %v873_v31 = vld [vmem:[#allocation5 + $0x1718] sm:$0xff]  ;;  %v7179_v12 = vpack.c.bf16 %v859_v21, %v858_v32  ;;  %v7211_v29 = vpack.c.bf16 %v891_v18, %v890_v11  ;;  %v892_v40 = vld [vmem:[#allocation5 + $0x17b0] sm:$0xff] }
 0x195   :  { %7164 = vmatprep.subr.bf16.mxu1 %v7163_v19  ;;  %v7173_v24 = vpack.c.bf16 %v839_v62, %v838_v61  ;;  %v7209_v19 = vpack.c.bf16 %v873_v31, %v872_v4  ;;  %v893_v41 = vld [vmem:[#allocation5 + $0x17b8] sm:$0xff]  ;;  %v896_v62 = vld [vmem:[#allocation5 + $0x17d0] sm:$0xff]  ;;  %v850_v4 = vld [vmem:[#allocation5 + $0x1660] sm:$0xff] }
 0x196   :  { %v8107_v58 = vadd.f32 %v5371_v33, %v2758_v47  ;;  %7134 = vmatpush3.bf16.msra.mxu0 %v7133_v42  ;;  %v7181_v42 = vpack.c.bf16 %v843_v22, %v842_v9  ;;  %v7213_v33 = vpack.c.bf16 %v875_v35, %v874_v28  ;;  %v7215_v46 = vpack.c.bf16 %v893_v41, %v892_v40  ;;  %v877_v47 = vld [vmem:[#allocation5 + $0x1738] sm:$0xff]  ;;  %v880_v13 = vld [vmem:[#allocation5 + $0x1750] sm:$0xff]  ;;  %v882_v31 = vld [vmem:[#allocation5 + $0x1760] sm:$0xff] }
 0x197   :  { %7136 = vmatprep.subr.bf16.mxu0 %v7135_v38  ;;  %v844_v38 = vld [vmem:[#allocation5 + $0x1630] sm:$0xff]  ;;  %v7217_v48 = vpack.c.bf16 %v877_v47, %v876_v45  ;;  %v865_v61 = vld [vmem:[#allocation5 + $0x16d8] sm:$0xff]  ;;  %v7223_v5 = vpack.c.bf16 %v897_v53, %v896_v62  ;;  %v66_v9 = vld [vmem:[#allocation2 + $0x60] sm:$0xff] }
 0x198   :  { %7166 = vmatpush3.bf16.msra.mxu1 %v7165_v34  ;;  %v7183_v34 = vpack.c.bf16 %v861_v37, %v860_v36  ;;  %v7185_v44 = vpack.c.bf16 %v845_v39, %v844_v38  ;;  %v868_v11 = vld [vmem:[#allocation5 + $0x16f0] sm:$0xff]  ;;  %v869_v18 = vld [vmem:[#allocation5 + $0x16f8] sm:$0xff]  ;;  %v106_v35 = vld [vmem:[#allocation2 + $0x19c] sm:$0xff] }
 0x199   :  { %7168 = vmatprep.subr.bf16.mxu1 %v7167_v50  ;;  %v862_v50 = vld [vmem:[#allocation5 + $0x16c0] sm:$0xff]  ;;  %v852_v38 = vld [vmem:[#allocation5 + $0x1670] sm:$0xff]  ;;  %v853_v39 = vld [vmem:[#allocation5 + $0x1678] sm:$0xff] }
 0x19a   :  { %7138 = vmatpush3.bf16.msra.mxu0 %v7137_v54  ;;  %v7187_v49 = vpack.c.bf16 %v863_v51, %v862_v50  ;;  %v7219_v54 = vpack.c.bf16 %v895_v43, %v894_v52  ;;  %v126_v36 = vld [vmem:[#allocation2 + $0x23a] sm:$0xff]  ;;  %v884_v45 = vld [vmem:[#allocation5 + $0x1770] sm:$0xff]  ;;  %v885_v50 = vld [vmem:[#allocation5 + $0x1778] sm:$0xff] }
 0x19b   :  { %7172 = vmatprep.subr.bf16.mxu0 %v7171_v23  ;;  %v864_v23 = vld [vmem:[#allocation5 + $0x16d0] sm:$0xff]  ;;  %v918_v51 = vld [vmem:[#allocation5 + $0x1880] sm:$0xff]  ;;  %v919_v52 = vld [vmem:[#allocation5 + $0x1888] sm:$0xff] }
 0x19c   :  { %7170 = vmatpush3.bf16.msra.mxu1 %v7169_v16  ;;  %v879_v16 = vld [vmem:[#allocation5 + $0x1748] sm:$0xff]  ;;  %v7191_v3 = vpack.c.bf16 %v865_v61, %v864_v23  ;;  %v7235_v23 = vpack.c.bf16 %v919_v52, %v918_v51  ;;  %v934_v62 = vld [vmem:[#allocation5 + $0x1900] sm:$0xff] }
 0x19d   :  { %7204 = vmatprep.subr.bf16.mxu1 %v7203_v1  ;;  %3736 = vmatmul.mubr.f32.vlgmr.msra.gmra.mrb[20].mxu0 %v1863_v15  ;;  %v7189_v1 = vpack.c.bf16 %v847_v56, %v846_v55  ;;  %v7221_v2 = vpack.c.bf16 %v879_v16, %v878_v57  ;;  %v849_v15 = vld [vmem:[#allocation5 + $0x1658] sm:$0xff]  ;;  %v1906_v56 = vcombine.high %v106_v35, %v126_v36  ;;  %v903_v61 = vld [vmem:[#allocation5 + $0x1808] sm:$0xff]  ;;  %v958_v51 = vld [vmem:[#allocation5 + $0x19c0] sm:$0xff] }
 0x19e   :  { %7174 = vmatpush3.bf16.msra.mxu0 %v7173_v24  ;;  %3875 = vmatprep.mubr.f32.mxu0 %v1900_v8  ;;  %v881_v24 = vld [vmem:[#allocation5 + $0x1758] sm:$0xff]  ;;  %v7193_v30 = vpack.c.bf16 %v849_v15, %v848_v59  ;;  %v883_v8 = vld [vmem:[#allocation5 + $0x1768] sm:$0xff]  ;;  %v7233_v16 = vpack.c.bf16 %v885_v50, %v884_v45 }
 0x19f   :  { %3806 = vmatmul.mubr.f32.vlgmr.msra.gmra.mrb[20].mxu1 %v1865_v7  ;;  %7176 = vmatprep.subr.bf16.mxu0 %v7175_v17  ;;  %v866_v7 = vld [vmem:[#allocation5 + $0x16e0] sm:$0xff]  ;;  %v7225_v32 = vpack.c.bf16 %v881_v24, %v880_v13  ;;  %v1899_v13 = vcombine.low %v8110_v63, %v8113_v10  ;;  %v953_v24 = vld [vmem:[#allocation5 + $0x1998] sm:$0xff]  ;;  %v936_v63 = vld [vmem:[#allocation5 + $0x1910] sm:$0xff] }
 0x1a0   :  { %7206 = vmatpush3.bf16.msra.mxu1 %v7205_v27  ;;  %3945 = vmatprep.mubr.f32.mxu1 %v1902_v14  ;;  %v867_v27 = vld [vmem:[#allocation5 + $0x16e8] sm:$0xff]  ;;  %v898_v17 = vld [vmem:[#allocation5 + $0x17e0] sm:$0xff] }
 0x1a1   :  { %7208 = vmatprep.subr.bf16.mxu1 %v7207_v0  ;;  %v851_v0 = vld [vmem:[#allocation5 + $0x1668] sm:$0xff]  ;;  %v7195_v21 = vpack.c.bf16 %v867_v27, %v866_v7  ;;  %v8144_v27 = vrot.slane %v1906_v56, %v7896_v20  ;;  %v942_v56 = vld [vmem:[#allocation5 + $0x1940] sm:$0xff] }
 0x1a2   :  { %7178 = vmatpush3.bf16.msra.mxu0 %v7177_v25  ;;  %v7227_v25 = vpack.c.bf16 %v899_v60, %v898_v17  ;;  %v7197_v41 = vpack.c.bf16 %v851_v0, %v850_v4  ;;  %v1901_v60 = vcombine.low %v8118_v6, %v8121_v26  ;;  %v904_v0 = vld [vmem:[#allocation5 + $0x1810] sm:$0xff]  ;;  %v927_v50 = vld [vmem:[#allocation5 + $0x18c8] sm:$0xff] }
 0x1a3   :  { %7180 = vmatprep.subr.bf16.mxu0 %v7179_v12  ;;  %v901_v12 = vld [vmem:[#allocation5 + $0x17f8] sm:$0xff]  ;;  %v959_v52 = vld [vmem:[#allocation5 + $0x19c8] sm:$0xff] }
 0x1a4   :  { %7210 = vmatpush3.bf16.msra.mxu1 %v7209_v19  ;;  %v900_v19 = vld [vmem:[#allocation5 + $0x17f0] sm:$0xff] }
 0x1a5   :  { %7212 = vmatprep.subr.bf16.mxu1 %v7211_v29  ;;  %v86_v29 = vld [vmem:[#allocation2 + $0xfe] sm:$0xff]  ;;  %v7231_v47 = vpack.c.bf16 %v901_v12, %v900_v19 }
 0x1a6   :  { %7182 = vmatpush3.bf16.msra.mxu0 %v7181_v42  ;;  %v1903_v43 = vcombine.low %v66_v9, %v86_v29  ;;  %v1904_v55 = vcombine.high %v66_v9, %v86_v29  ;;  %v906_v12 = vld [vmem:[#allocation5 + $0x1820] sm:$0xff]  ;;  %v907_v9 = vld [vmem:[#allocation5 + $0x1828] sm:$0xff] }
 0x1a7   :  { %7184 = vmatprep.subr.bf16.mxu0 %v7183_v34  ;;  %v7199_v34 = vpack.c.bf16 %v869_v18, %v868_v11  ;;  %v954_v18 = vld [vmem:[#allocation5 + $0x19a0] sm:$0xff]  ;;  %v939_v29 = vld [vmem:[#allocation5 + $0x1928] sm:$0xff] }
 0x1a8   :  { %7214 = vmatpush3.bf16.msra.mxu1 %v7213_v33  ;;  %v7229_v33 = vpack.c.bf16 %v883_v8, %v882_v31  ;;  %v8133_v59 = vrot.slane %v1903_v43, %v7896_v20  ;;  %v8141_v7 = vrot.slane %v1904_v55, %v7896_v20  ;;  %v905_v31 = vld [vmem:[#allocation5 + $0x1818] sm:$0xff]  ;;  %v923_v8 = vld [vmem:[#allocation5 + $0x18a8] sm:$0xff] }
 0x1a9   :  { %7216 = vmatprep.subr.bf16.mxu1 %v7215_v46  ;;  %v7241_v26 = vpack.c.bf16 %v905_v31, %v904_v0  ;;  %v911_v55 = vld [vmem:[#allocation5 + $0x1848] sm:$0xff] }
 0x1aa   :  { %7186 = vmatpush3.bf16.msra.mxu0 %v7185_v44  ;;  %v1905_v44 = vcombine.low %v106_v35, %v126_v36  ;;  %v1938_v6 = vcombine.high %v8141_v7, %v8144_v27  ;;  %v924_v35 = vld [vmem:[#allocation5 + $0x18b0] sm:$0xff]  ;;  %v925_v36 = vld [vmem:[#allocation5 + $0x18b8] sm:$0xff]  ;;  %v963_v0 = vld [vmem:[#allocation5 + $0x19e8] sm:$0xff] }
 0x1ab   :  { %7188 = vmatprep.subr.bf16.mxu0 %v7187_v49  ;;  %v951_v49 = vld [vmem:[#allocation5 + $0x1988] sm:$0xff] }
 0x1ac   :  { %7218 = vmatpush3.bf16.msra.mxu1 %v7217_v48  ;;  %v950_v48 = vld [vmem:[#allocation5 + $0x1980] sm:$0xff]  ;;  %v8136_v15 = vrot.slane %v1905_v44, %v7896_v20 }
 0x1ad   :  { %7220 = vmatprep.subr.bf16.mxu1 %v7219_v54  ;;  %v7201_v54 = vpack.c.bf16 %v853_v39, %v852_v38  ;;  %v7267_v53 = vpack.c.bf16 %v951_v49, %v950_v48  ;;  %v909_v38 = vld [vmem:[#allocation5 + $0x1838] sm:$0xff]  ;;  %v940_v39 = vld [vmem:[#allocation5 + $0x1930] sm:$0xff]  ;;  %v910_v49 = vld [vmem:[#allocation5 + $0x1840] sm:$0xff] }
 0x1ae   :  { %7190 = vmatpush3.bf16.msra.mxu0 %v7189_v1  ;;  %v935_v1 = vld [vmem:[#allocation5 + $0x1908] sm:$0xff]  ;;  %v1936_v11 = vcombine.high %v8133_v59, %v8136_v15 }
 0x1af   :  { %7192 = vmatprep.subr.bf16.mxu0 %v7191_v3  ;;  %v921_v3 = vld [vmem:[#allocation5 + $0x1898] sm:$0xff] }
 0x1b0   :  { %7222 = vmatpush3.bf16.msra.mxu1 %v7221_v2  ;;  %v5404_v14 = vpop.f32.mrb[8].mxu0  ;;  %v920_v2 = vld [vmem:[#allocation5 + $0x1890] sm:$0xff] }
 0x1b1   :  { %7224 = vmatprep.subr.bf16.mxu1 %v7223_v5  ;;  %v5405_v22 = vpop.f32.mrb[9].mxu0  ;;  %v952_v5 = vld [vmem:[#allocation5 + $0x1990] sm:$0xff]  ;;  %v7239_v4 = vpack.c.bf16 %v921_v3, %v920_v2 }
 0x1b2   :  { %v5439_v28 = vpop.f32.mrb[8].mxu1  ;;  %v5406_v37 = vadd.f32 %v5405_v22, %v5404_v14  ;;  %7194 = vmatpush3.bf16.msra.mxu0 %v7193_v30  ;;  %v7269_v30 = vpack.c.bf16 %v935_v1, %v934_v62  ;;  %v7271_v10 = vpack.c.bf16 %v953_v24, %v952_v5  ;;  %v955_v14 = vld [vmem:[#allocation5 + $0x19a8] sm:$0xff]  ;;  %v938_v22 = vld [vmem:[#allocation5 + $0x1920] sm:$0xff]  ;;  %v961_v62 = vld [vmem:[#allocation5 + $0x19d8] sm:$0xff] }
 0x1b3   :  { %v5440_v40 = vpop.f32.mrb[9].mxu1  ;;  %7196 = vmatprep.subr.bf16.mxu0 %v7195_v21  ;;  %v922_v21 = vld [vmem:[#allocation5 + $0x18a0] sm:$0xff]  ;;  %v912_v3 = vld [vmem:[#allocation5 + $0x1850] sm:$0xff] }
 0x1b4   :  { %v5441_v42 = vadd.f32 %v5440_v40, %v5439_v28  ;;  %7226 = vmatpush3.bf16.msra.mxu1 %v7225_v32  ;;  %v2898_v46 = vadd.f32 %v5406_v37, %v8107_v58  ;;  %v902_v58 = vld [vmem:[#allocation5 + $0x1800] sm:$0xff]  ;;  %v937_v32 = vld [vmem:[#allocation5 + $0x1918] sm:$0xff]  ;;  %v7243_v19 = vpack.c.bf16 %v923_v8, %v922_v21  ;;  %v7275_v28 = vpack.c.bf16 %v955_v14, %v954_v18  ;;  %v956_v37 = vld [vmem:[#allocation5 + $0x19b0] sm:$0xff] }
 0x1b5   :  { %7228 = vmatprep.subr.bf16.mxu1 %v7227_v25  ;;  %v7237_v17 = vpack.c.bf16 %v903_v61, %v902_v58  ;;  %v7273_v25 = vpack.c.bf16 %v937_v32, %v936_v63  ;;  %v957_v40 = vld [vmem:[#allocation5 + $0x19b8] sm:$0xff]  ;;  %v960_v61 = vld [vmem:[#allocation5 + $0x19d0] sm:$0xff]  ;;  %v914_v63 = vld [vmem:[#allocation5 + $0x1860] sm:$0xff] }
 0x1b6   :  { %v8130_v57 = vadd.f32 %v5441_v42, %v2898_v46  ;;  %7198 = vmatpush3.bf16.msra.mxu0 %v7197_v41  ;;  %v7245_v41 = vpack.c.bf16 %v907_v9, %v906_v12  ;;  %v7277_v42 = vpack.c.bf16 %v939_v29, %v938_v22  ;;  %v7279_v45 = vpack.c.bf16 %v957_v40, %v956_v37  ;;  %v941_v46 = vld [vmem:[#allocation5 + $0x1938] sm:$0xff]  ;;  %v944_v5 = vld [vmem:[#allocation5 + $0x1950] sm:$0xff]  ;;  %v946_v32 = vld [vmem:[#allocation5 + $0x1960] sm:$0xff] }
 0x1b7   :  { %7200 = vmatprep.subr.bf16.mxu0 %v7199_v34  ;;  %v908_v34 = vld [vmem:[#allocation5 + $0x1830] sm:$0xff]  ;;  %v7281_v44 = vpack.c.bf16 %v941_v46, %v940_v39  ;;  %v929_v58 = vld [vmem:[#allocation5 + $0x18d8] sm:$0xff]  ;;  %v7287_v24 = vpack.c.bf16 %v961_v62, %v960_v61  ;;  %v998_v61 = vld [vmem:[#allocation5 + $0x1b00] sm:$0xff] }
 0x1b8   :  { %7230 = vmatpush3.bf16.msra.mxu1 %v7229_v33  ;;  %v7247_v33 = vpack.c.bf16 %v925_v36, %v924_v35  ;;  %v7249_v43 = vpack.c.bf16 %v909_v38, %v908_v34  ;;  %v932_v18 = vld [vmem:[#allocation5 + $0x18f0] sm:$0xff]  ;;  %v933_v14 = vld [vmem:[#allocation5 + $0x18f8] sm:$0xff] }
 0x1b9   :  { %7232 = vmatprep.subr.bf16.mxu1 %v7231_v47  ;;  %v926_v47 = vld [vmem:[#allocation5 + $0x18c0] sm:$0xff]  ;;  %v67_v12 = vld [vmem:[#allocation2 + $0x68] sm:$0xff]  ;;  %v917_v38 = vld [vmem:[#allocation5 + $0x1878] sm:$0xff] }
 0x1ba   :  { %7202 = vmatpush3.bf16.msra.mxu0 %v7201_v54  ;;  %v7251_v48 = vpack.c.bf16 %v927_v50, %v926_v47  ;;  %v7283_v54 = vpack.c.bf16 %v959_v52, %v958_v51  ;;  %v107_v29 = vld [vmem:[#allocation2 + $0x1a4] sm:$0xff]  ;;  %v949_v47 = vld [vmem:[#allocation5 + $0x1978] sm:$0xff]  ;;  %v982_v50 = vld [vmem:[#allocation5 + $0x1a80] sm:$0xff] }
 0x1bb   :  { %7236 = vmatprep.subr.bf16.mxu0 %v7235_v23  ;;  %v928_v23 = vld [vmem:[#allocation5 + $0x18d0] sm:$0xff]  ;;  %v983_v51 = vld [vmem:[#allocation5 + $0x1a88] sm:$0xff] }
 0x1bc   :  { %7234 = vmatpush3.bf16.msra.mxu1 %v7233_v16  ;;  %v943_v16 = vld [vmem:[#allocation5 + $0x1948] sm:$0xff]  ;;  %v7255_v2 = vpack.c.bf16 %v929_v58, %v928_v23  ;;  %v916_v34 = vld [vmem:[#allocation5 + $0x1870] sm:$0xff]  ;;  %v7299_v23 = vpack.c.bf16 %v983_v51, %v982_v50  ;;  %v1022_v50 = vld [vmem:[#allocation5 + $0x1bc0] sm:$0xff] }
 0x1bd   :  { %7268 = vmatprep.subr.bf16.mxu1 %v7267_v53  ;;  %3876 = vmatmul.mubr.f32.vlgmr.msra.gmra.mrb[22].mxu0 %v1899_v13  ;;  %v7253_v53 = vpack.c.bf16 %v911_v55, %v910_v49  ;;  %v7285_v1 = vpack.c.bf16 %v943_v16, %v942_v56  ;;  %v913_v13 = vld [vmem:[#allocation5 + $0x1858] sm:$0xff]  ;;  %v127_v35 = vld [vmem:[#allocation2 + $0x242] sm:$0xff] }
 0x1be   :  { %7238 = vmatpush3.bf16.msra.mxu0 %v7237_v17  ;;  %4015 = vmatprep.mubr.f32.mxu0 %v1936_v11  ;;  %v945_v17 = vld [vmem:[#allocation5 + $0x1958] sm:$0xff]  ;;  %v7257_v31 = vpack.c.bf16 %v913_v13, %v912_v3  ;;  %v947_v11 = vld [vmem:[#allocation5 + $0x1968] sm:$0xff]  ;;  %v948_v39 = vld [vmem:[#allocation5 + $0x1970] sm:$0xff]  ;;  %v1942_v55 = vcombine.high %v107_v29, %v127_v35 }
 0x1bf   :  { %3946 = vmatmul.mubr.f32.vlgmr.msra.gmra.mrb[22].mxu1 %v1901_v60  ;;  %7240 = vmatprep.subr.bf16.mxu0 %v7239_v4  ;;  %v930_v60 = vld [vmem:[#allocation5 + $0x18e0] sm:$0xff]  ;;  %v7289_v21 = vpack.c.bf16 %v945_v17, %v944_v5  ;;  %v7297_v16 = vpack.c.bf16 %v949_v47, %v948_v39  ;;  %v967_v58 = vld [vmem:[#allocation5 + $0x1a08] sm:$0xff]  ;;  %v1935_v5 = vcombine.low %v8133_v59, %v8136_v15  ;;  %v1017_v17 = vld [vmem:[#allocation5 + $0x1b98] sm:$0xff] }
 0x1c0   :  { %7270 = vmatpush3.bf16.msra.mxu1 %v7269_v30  ;;  %4085 = vmatprep.mubr.f32.mxu1 %v1938_v6  ;;  %v931_v30 = vld [vmem:[#allocation5 + $0x18e8] sm:$0xff]  ;;  %v962_v4 = vld [vmem:[#allocation5 + $0x19e0] sm:$0xff]  ;;  %v1000_v59 = vld [vmem:[#allocation5 + $0x1b10] sm:$0xff] }
 0x1c1   :  { %7272 = vmatprep.subr.bf16.mxu1 %v7271_v10  ;;  %v915_v10 = vld [vmem:[#allocation5 + $0x1868] sm:$0xff]  ;;  %v7259_v8 = vpack.c.bf16 %v931_v30, %v930_v60  ;;  %v8167_v30 = vrot.slane %v1942_v55, %v7896_v20  ;;  %v1006_v55 = vld [vmem:[#allocation5 + $0x1b40] sm:$0xff] }
 0x1c2   :  { %7242 = vmatpush3.bf16.msra.mxu0 %v7241_v26  ;;  %v7291_v26 = vpack.c.bf16 %v963_v0, %v962_v4  ;;  %v7261_v40 = vpack.c.bf16 %v915_v10, %v914_v63  ;;  %v1937_v0 = vcombine.low %v8141_v7, %v8144_v27  ;;  %v968_v10 = vld [vmem:[#allocation5 + $0x1a10] sm:$0xff]  ;;  %v991_v47 = vld [vmem:[#allocation5 + $0x1ac8] sm:$0xff] }
 0x1c3   :  { %7244 = vmatprep.subr.bf16.mxu0 %v7243_v19  ;;  %v965_v19 = vld [vmem:[#allocation5 + $0x19f8] sm:$0xff]  ;;  %v1023_v51 = vld [vmem:[#allocation5 + $0x1bc8] sm:$0xff] }
 0x1c4   :  { %7274 = vmatpush3.bf16.msra.mxu1 %v7273_v25  ;;  %v964_v25 = vld [vmem:[#allocation5 + $0x19f0] sm:$0xff] }
 0x1c5   :  { %7276 = vmatprep.subr.bf16.mxu1 %v7275_v28  ;;  %v87_v28 = vld [vmem:[#allocation2 + $0x106] sm:$0xff]  ;;  %v7295_v46 = vpack.c.bf16 %v965_v19, %v964_v25  ;;  %v970_v19 = vld [vmem:[#allocation5 + $0x1a20] sm:$0xff] }
 0x1c6   :  { %7246 = vmatpush3.bf16.msra.mxu0 %v7245_v41  ;;  %v1939_v52 = vcombine.low %v67_v12, %v87_v28  ;;  %v1940_v49 = vcombine.high %v67_v12, %v87_v28  ;;  %v971_v12 = vld [vmem:[#allocation5 + $0x1a28] sm:$0xff] }
 0x1c7   :  { %7248 = vmatprep.subr.bf16.mxu0 %v7247_v33  ;;  %v7263_v33 = vpack.c.bf16 %v933_v14, %v932_v18  ;;  %v1018_v14 = vld [vmem:[#allocation5 + $0x1ba0] sm:$0xff]  ;;  %v1003_v28 = vld [vmem:[#allocation5 + $0x1b28] sm:$0xff] }
 0x1c8   :  { %7278 = vmatpush3.bf16.msra.mxu1 %v7277_v42  ;;  %v7293_v42 = vpack.c.bf16 %v947_v11, %v946_v32  ;;  %v8156_v3 = vrot.slane %v1939_v52, %v7896_v20  ;;  %v8164_v60 = vrot.slane %v1940_v49, %v7896_v20  ;;  %v969_v32 = vld [vmem:[#allocation5 + $0x1a18] sm:$0xff]  ;;  %v987_v11 = vld [vmem:[#allocation5 + $0x1aa8] sm:$0xff] }
 0x1c9   :  { %7280 = vmatprep.subr.bf16.mxu1 %v7279_v45  ;;  %v7305_v27 = vpack.c.bf16 %v969_v32, %v968_v10  ;;  %v975_v49 = vld [vmem:[#allocation5 + $0x1a48] sm:$0xff] }
 0x1ca   :  { %7250 = vmatpush3.bf16.msra.mxu0 %v7249_v43  ;;  %v1941_v43 = vcombine.low %v107_v29, %v127_v35  ;;  %v1974_v7 = vcombine.high %v8164_v60, %v8167_v30  ;;  %v988_v29 = vld [vmem:[#allocation5 + $0x1ab0] sm:$0xff]  ;;  %v989_v35 = vld [vmem:[#allocation5 + $0x1ab8] sm:$0xff]  ;;  %v1027_v10 = vld [vmem:[#allocation5 + $0x1be8] sm:$0xff] }
 0x1cb   :  { %7252 = vmatprep.subr.bf16.mxu0 %v7251_v48  ;;  %v1015_v48 = vld [vmem:[#allocation5 + $0x1b88] sm:$0xff] }
 0x1cc   :  { %7282 = vmatpush3.bf16.msra.mxu1 %v7281_v44  ;;  %v1014_v44 = vld [vmem:[#allocation5 + $0x1b80] sm:$0xff]  ;;  %v8159_v13 = vrot.slane %v1941_v43, %v7896_v20 }
 0x1cd   :  { %7284 = vmatprep.subr.bf16.mxu1 %v7283_v54  ;;  %v7265_v54 = vpack.c.bf16 %v917_v38, %v916_v34  ;;  %v7331_v62 = vpack.c.bf16 %v1015_v48, %v1014_v44  ;;  %v973_v34 = vld [vmem:[#allocation5 + $0x1a38] sm:$0xff]  ;;  %v1004_v38 = vld [vmem:[#allocation5 + $0x1b30] sm:$0xff]  ;;  %v974_v48 = vld [vmem:[#allocation5 + $0x1a40] sm:$0xff] }
 0x1ce   :  { %7254 = vmatpush3.bf16.msra.mxu0 %v7253_v53  ;;  %v999_v53 = vld [vmem:[#allocation5 + $0x1b08] sm:$0xff]  ;;  %v1972_v18 = vcombine.high %v8156_v3, %v8159_v13 }
 0x1cf   :  { %7256 = vmatprep.subr.bf16.mxu0 %v7255_v2  ;;  %v985_v2 = vld [vmem:[#allocation5 + $0x1a98] sm:$0xff] }
 0x1d0   :  { %7286 = vmatpush3.bf16.msra.mxu1 %v7285_v1  ;;  %v5474_v6 = vpop.f32.mrb[10].mxu0  ;;  %v984_v1 = vld [vmem:[#allocation5 + $0x1a90] sm:$0xff] }
 0x1d1   :  { %7288 = vmatprep.subr.bf16.mxu1 %v7287_v24  ;;  %v5475_v9 = vpop.f32.mrb[11].mxu0  ;;  %v1016_v24 = vld [vmem:[#allocation5 + $0x1b90] sm:$0xff]  ;;  %v7303_v63 = vpack.c.bf16 %v985_v2, %v984_v1 }
 0x1d2   :  { %v5509_v22 = vpop.f32.mrb[10].mxu1  ;;  %v5476_v36 = vadd.f32 %v5475_v9, %v5474_v6  ;;  %7258 = vmatpush3.bf16.msra.mxu0 %v7257_v31  ;;  %v7333_v31 = vpack.c.bf16 %v999_v53, %v998_v61  ;;  %v7335_v15 = vpack.c.bf16 %v1017_v17, %v1016_v24  ;;  %v1019_v6 = vld [vmem:[#allocation5 + $0x1ba8] sm:$0xff]  ;;  %v1002_v9 = vld [vmem:[#allocation5 + $0x1b20] sm:$0xff]  ;;  %v1025_v61 = vld [vmem:[#allocation5 + $0x1bd8] sm:$0xff] }
 0x1d3   :  { %v5510_v37 = vpop.f32.mrb[11].mxu1  ;;  %7260 = vmatprep.subr.bf16.mxu0 %v7259_v8  ;;  %v986_v8 = vld [vmem:[#allocation5 + $0x1aa0] sm:$0xff]  ;;  %v976_v2 = vld [vmem:[#allocation5 + $0x1a50] sm:$0xff] }
 0x1d4   :  { %v5511_v41 = vadd.f32 %v5510_v37, %v5509_v22  ;;  %7290 = vmatpush3.bf16.msra.mxu1 %v7289_v21  ;;  %v3038_v45 = vadd.f32 %v5476_v36, %v8130_v57  ;;  %v966_v57 = vld [vmem:[#allocation5 + $0x1a00] sm:$0xff]  ;;  %v1001_v21 = vld [vmem:[#allocation5 + $0x1b18] sm:$0xff]  ;;  %v7307_v25 = vpack.c.bf16 %v987_v11, %v986_v8  ;;  %v7339_v22 = vpack.c.bf16 %v1019_v6, %v1018_v14  ;;  %v1020_v36 = vld [vmem:[#allocation5 + $0x1bb0] sm:$0xff] }
 0x1d5   :  { %7292 = vmatprep.subr.bf16.mxu1 %v7291_v26  ;;  %v7301_v4 = vpack.c.bf16 %v967_v58, %v966_v57  ;;  %v7337_v26 = vpack.c.bf16 %v1001_v21, %v1000_v59  ;;  %v1021_v37 = vld [vmem:[#allocation5 + $0x1bb8] sm:$0xff]  ;;  %v1024_v58 = vld [vmem:[#allocation5 + $0x1bd0] sm:$0xff]  ;;  %v978_v59 = vld [vmem:[#allocation5 + $0x1a60] sm:$0xff] }
 0x1d6   :  { %v8153_v56 = vadd.f32 %v5511_v41, %v3038_v45  ;;  %7262 = vmatpush3.bf16.msra.mxu0 %v7261_v40  ;;  %v7309_v40 = vpack.c.bf16 %v971_v12, %v970_v19  ;;  %v7341_v41 = vpack.c.bf16 %v1003_v28, %v1002_v9  ;;  %v7343_v39 = vpack.c.bf16 %v1021_v37, %v1020_v36  ;;  %v1005_v45 = vld [vmem:[#allocation5 + $0x1b38] sm:$0xff]  ;;  %v1008_v24 = vld [vmem:[#allocation5 + $0x1b50] sm:$0xff]  ;;  %v1010_v21 = vld [vmem:[#allocation5 + $0x1b60] sm:$0xff] }
 0x1d7   :  { %7264 = vmatprep.subr.bf16.mxu0 %v7263_v33  ;;  %v972_v33 = vld [vmem:[#allocation5 + $0x1a30] sm:$0xff]  ;;  %v7345_v43 = vpack.c.bf16 %v1005_v45, %v1004_v38  ;;  %v993_v57 = vld [vmem:[#allocation5 + $0x1ad8] sm:$0xff]  ;;  %v7351_v17 = vpack.c.bf16 %v1025_v61, %v1024_v58  ;;  %v1062_v58 = vld [vmem:[#allocation5 + $0x1d00] sm:$0xff] }
 0x1d8   :  { %7294 = vmatpush3.bf16.msra.mxu1 %v7293_v42  ;;  %v7311_v42 = vpack.c.bf16 %v989_v35, %v988_v29  ;;  %v7313_v52 = vpack.c.bf16 %v973_v34, %v972_v33  ;;  %v996_v14 = vld [vmem:[#allocation5 + $0x1af0] sm:$0xff]  ;;  %v997_v6 = vld [vmem:[#allocation5 + $0x1af8] sm:$0xff] }
 0x1d9   :  { %7296 = vmatprep.subr.bf16.mxu1 %v7295_v46  ;;  %v990_v46 = vld [vmem:[#allocation5 + $0x1ac0] sm:$0xff]  ;;  %v68_v19 = vld [vmem:[#allocation2 + $0x70] sm:$0xff]  ;;  %v980_v33 = vld [vmem:[#allocation5 + $0x1a70] sm:$0xff] }
 0x1da   :  { %7266 = vmatpush3.bf16.msra.mxu0 %v7265_v54  ;;  %v7315_v44 = vpack.c.bf16 %v991_v47, %v990_v46  ;;  %v7347_v54 = vpack.c.bf16 %v1023_v51, %v1022_v50  ;;  %v108_v28 = vld [vmem:[#allocation2 + $0x1ac] sm:$0xff]  ;;  %v1046_v47 = vld [vmem:[#allocation5 + $0x1c80] sm:$0xff]  ;;  %v1047_v50 = vld [vmem:[#allocation5 + $0x1c88] sm:$0xff] }
 0x1db   :  { %7300 = vmatprep.subr.bf16.mxu0 %v7299_v23  ;;  %v992_v23 = vld [vmem:[#allocation5 + $0x1ad0] sm:$0xff]  ;;  %v981_v34 = vld [vmem:[#allocation5 + $0x1a78] sm:$0xff] }
 0x1dc   :  { %7298 = vmatpush3.bf16.msra.mxu1 %v7297_v16  ;;  %v1007_v16 = vld [vmem:[#allocation5 + $0x1b48] sm:$0xff]  ;;  %v7319_v1 = vpack.c.bf16 %v993_v57, %v992_v23  ;;  %v128_v29 = vld [vmem:[#allocation2 + $0x24a] sm:$0xff]  ;;  %v7363_v23 = vpack.c.bf16 %v1047_v50, %v1046_v47  ;;  %v1086_v47 = vld [vmem:[#allocation5 + $0x1dc0] sm:$0xff] }
 0x1dd   :  { %7332 = vmatprep.subr.bf16.mxu1 %v7331_v62  ;;  %4016 = vmatmul.mubr.f32.vlgmr.msra.gmra.mrb[24].mxu0 %v1935_v5  ;;  %v7317_v62 = vpack.c.bf16 %v975_v49, %v974_v48  ;;  %v7349_v53 = vpack.c.bf16 %v1007_v16, %v1006_v55  ;;  %v977_v5 = vld [vmem:[#allocation5 + $0x1a58] sm:$0xff]  ;;  %v1012_v38 = vld [vmem:[#allocation5 + $0x1b70] sm:$0xff]  ;;  %v1978_v49 = vcombine.high %v108_v28, %v128_v29  ;;  %v1031_v57 = vld [vmem:[#allocation5 + $0x1c08] sm:$0xff] }
 0x1de   :  { %7302 = vmatpush3.bf16.msra.mxu0 %v7301_v4  ;;  %4155 = vmatprep.mubr.f32.mxu0 %v1972_v18  ;;  %v1009_v4 = vld [vmem:[#allocation5 + $0x1b58] sm:$0xff]  ;;  %v7321_v32 = vpack.c.bf16 %v977_v5, %v976_v2  ;;  %v1011_v18 = vld [vmem:[#allocation5 + $0x1b68] sm:$0xff] }
 0x1df   :  { %4086 = vmatmul.mubr.f32.vlgmr.msra.gmra.mrb[24].mxu1 %v1937_v0  ;;  %7304 = vmatprep.subr.bf16.mxu0 %v7303_v63  ;;  %v994_v0 = vld [vmem:[#allocation5 + $0x1ae0] sm:$0xff]  ;;  %v7353_v8 = vpack.c.bf16 %v1009_v4, %v1008_v24  ;;  %v1013_v46 = vld [vmem:[#allocation5 + $0x1b78] sm:$0xff]  ;;  %v1971_v24 = vcombine.low %v8156_v3, %v8159_v13  ;;  %v1064_v3 = vld [vmem:[#allocation5 + $0x1d10] sm:$0xff] }
 0x1e0   :  { %7334 = vmatpush3.bf16.msra.mxu1 %v7333_v31  ;;  %4225 = vmatprep.mubr.f32.mxu1 %v1974_v7  ;;  %v995_v31 = vld [vmem:[#allocation5 + $0x1ae8] sm:$0xff]  ;;  %v1026_v63 = vld [vmem:[#allocation5 + $0x1be0] sm:$0xff]  ;;  %v7361_v16 = vpack.c.bf16 %v1013_v46, %v1012_v38  ;;  %v1081_v4 = vld [vmem:[#allocation5 + $0x1d98] sm:$0xff] }
 0x1e1   :  { %7336 = vmatprep.subr.bf16.mxu1 %v7335_v15  ;;  %v979_v15 = vld [vmem:[#allocation5 + $0x1a68] sm:$0xff]  ;;  %v7323_v11 = vpack.c.bf16 %v995_v31, %v994_v0  ;;  %v8190_v31 = vrot.slane %v1978_v49, %v7896_v20  ;;  %v1070_v49 = vld [vmem:[#allocation5 + $0x1d40] sm:$0xff] }
 0x1e2   :  { %7306 = vmatpush3.bf16.msra.mxu0 %v7305_v27  ;;  %v7355_v27 = vpack.c.bf16 %v1027_v10, %v1026_v63  ;;  %v7325_v37 = vpack.c.bf16 %v979_v15, %v978_v59  ;;  %v1973_v10 = vcombine.low %v8164_v60, %v8167_v30  ;;  %v1032_v15 = vld [vmem:[#allocation5 + $0x1c10] sm:$0xff]  ;;  %v1055_v46 = vld [vmem:[#allocation5 + $0x1cc8] sm:$0xff] }
 0x1e3   :  { %7308 = vmatprep.subr.bf16.mxu0 %v7307_v25  ;;  %v1029_v25 = vld [vmem:[#allocation5 + $0x1bf8] sm:$0xff]  ;;  %v1087_v50 = vld [vmem:[#allocation5 + $0x1dc8] sm:$0xff] }
 0x1e4   :  { %7338 = vmatpush3.bf16.msra.mxu1 %v7337_v26  ;;  %v1028_v26 = vld [vmem:[#allocation5 + $0x1bf0] sm:$0xff] }
 0x1e5   :  { %7340 = vmatprep.subr.bf16.mxu1 %v7339_v22  ;;  %v88_v22 = vld [vmem:[#allocation2 + $0x10e] sm:$0xff]  ;;  %v7359_v45 = vpack.c.bf16 %v1029_v25, %v1028_v26  ;;  %v1034_v25 = vld [vmem:[#allocation5 + $0x1c20] sm:$0xff] }
 0x1e6   :  { %7310 = vmatpush3.bf16.msra.mxu0 %v7309_v40  ;;  %v1975_v51 = vcombine.low %v68_v19, %v88_v22  ;;  %v1976_v48 = vcombine.high %v68_v19, %v88_v22  ;;  %v1035_v19 = vld [vmem:[#allocation5 + $0x1c28] sm:$0xff] }
 0x1e7   :  { %7312 = vmatprep.subr.bf16.mxu0 %v7311_v42  ;;  %v7327_v42 = vpack.c.bf16 %v997_v6, %v996_v14  ;;  %v1082_v6 = vld [vmem:[#allocation5 + $0x1da0] sm:$0xff]  ;;  %v1067_v22 = vld [vmem:[#allocation5 + $0x1d28] sm:$0xff] }
 0x1e8   :  { %7342 = vmatpush3.bf16.msra.mxu1 %v7341_v41  ;;  %v7357_v41 = vpack.c.bf16 %v1011_v18, %v1010_v21  ;;  %v8179_v2 = vrot.slane %v1975_v51, %v7896_v20  ;;  %v8187_v0 = vrot.slane %v1976_v48, %v7896_v20  ;;  %v1033_v21 = vld [vmem:[#allocation5 + $0x1c18] sm:$0xff]  ;;  %v1051_v18 = vld [vmem:[#allocation5 + $0x1ca8] sm:$0xff] }
 0x1e9   :  { %7344 = vmatprep.subr.bf16.mxu1 %v7343_v39  ;;  %v7369_v30 = vpack.c.bf16 %v1033_v21, %v1032_v15  ;;  %v1039_v48 = vld [vmem:[#allocation5 + $0x1c48] sm:$0xff] }
 0x1ea   :  { %7314 = vmatpush3.bf16.msra.mxu0 %v7313_v52  ;;  %v1977_v52 = vcombine.low %v108_v28, %v128_v29  ;;  %v2010_v60 = vcombine.high %v8187_v0, %v8190_v31  ;;  %v1052_v28 = vld [vmem:[#allocation5 + $0x1cb0] sm:$0xff]  ;;  %v1053_v29 = vld [vmem:[#allocation5 + $0x1cb8] sm:$0xff]  ;;  %v1091_v15 = vld [vmem:[#allocation5 + $0x1de8] sm:$0xff] }
 0x1eb   :  { %7316 = vmatprep.subr.bf16.mxu0 %v7315_v44  ;;  %v1079_v44 = vld [vmem:[#allocation5 + $0x1d88] sm:$0xff] }
 0x1ec   :  { %7346 = vmatpush3.bf16.msra.mxu1 %v7345_v43  ;;  %v1078_v43 = vld [vmem:[#allocation5 + $0x1d80] sm:$0xff]  ;;  %v8182_v5 = vrot.slane %v1977_v52, %v7896_v20 }
 0x1ed   :  { %7348 = vmatprep.subr.bf16.mxu1 %v7347_v54  ;;  %v7329_v54 = vpack.c.bf16 %v981_v34, %v980_v33  ;;  %v7395_v61 = vpack.c.bf16 %v1079_v44, %v1078_v43  ;;  %v1037_v33 = vld [vmem:[#allocation5 + $0x1c38] sm:$0xff]  ;;  %v1068_v34 = vld [vmem:[#allocation5 + $0x1d30] sm:$0xff]  ;;  %v1038_v44 = vld [vmem:[#allocation5 + $0x1c40] sm:$0xff] }
 0x1ee   :  { %7318 = vmatpush3.bf16.msra.mxu0 %v7317_v62  ;;  %v1063_v62 = vld [vmem:[#allocation5 + $0x1d08] sm:$0xff]  ;;  %v2008_v14 = vcombine.high %v8179_v2, %v8182_v5 }
 0x1ef   :  { %7320 = vmatprep.subr.bf16.mxu0 %v7319_v1  ;;  %v1049_v1 = vld [vmem:[#allocation5 + $0x1c98] sm:$0xff] }
 0x1f0   :  { %7350 = vmatpush3.bf16.msra.mxu1 %v7349_v53  ;;  %v5544_v7 = vpop.f32.mrb[12].mxu0  ;;  %v1048_v53 = vld [vmem:[#allocation5 + $0x1c90] sm:$0xff] }
 0x1f1   :  { %7352 = vmatprep.subr.bf16.mxu1 %v7351_v17  ;;  %v5545_v12 = vpop.f32.mrb[13].mxu0  ;;  %v1080_v17 = vld [vmem:[#allocation5 + $0x1d90] sm:$0xff]  ;;  %v7367_v59 = vpack.c.bf16 %v1049_v1, %v1048_v53 }
 0x1f2   :  { %v5579_v9 = vpop.f32.mrb[12].mxu1  ;;  %v5546_v35 = vadd.f32 %v5545_v12, %v5544_v7  ;;  %7322 = vmatpush3.bf16.msra.mxu0 %v7321_v32  ;;  %v7397_v32 = vpack.c.bf16 %v1063_v62, %v1062_v58  ;;  %v7399_v13 = vpack.c.bf16 %v1081_v4, %v1080_v17  ;;  %v1083_v7 = vld [vmem:[#allocation5 + $0x1da8] sm:$0xff]  ;;  %v1066_v12 = vld [vmem:[#allocation5 + $0x1d20] sm:$0xff]  ;;  %v1089_v58 = vld [vmem:[#allocation5 + $0x1dd8] sm:$0xff] }
 0x1f3   :  { %v5580_v36 = vpop.f32.mrb[13].mxu1  ;;  %7324 = vmatprep.subr.bf16.mxu0 %v7323_v11  ;;  %v1050_v11 = vld [vmem:[#allocation5 + $0x1ca0] sm:$0xff]  ;;  %v1040_v1 = vld [vmem:[#allocation5 + $0x1c50] sm:$0xff] }
 0x1f4   :  { %v5581_v40 = vadd.f32 %v5580_v36, %v5579_v9  ;;  %7354 = vmatpush3.bf16.msra.mxu1 %v7353_v8  ;;  %v3178_v39 = vadd.f32 %v5546_v35, %v8153_v56  ;;  %v1030_v56 = vld [vmem:[#allocation5 + $0x1c00] sm:$0xff]  ;;  %v1065_v8 = vld [vmem:[#allocation5 + $0x1d18] sm:$0xff]  ;;  %v7371_v26 = vpack.c.bf16 %v1051_v18, %v1050_v11  ;;  %v7403_v9 = vpack.c.bf16 %v1083_v7, %v1082_v6  ;;  %v1084_v35 = vld [vmem:[#allocation5 + $0x1db0] sm:$0xff] }
 0x1f5   :  { %7356 = vmatprep.subr.bf16.mxu1 %v7355_v27  ;;  %v7365_v63 = vpack.c.bf16 %v1031_v57, %v1030_v56  ;;  %v7401_v27 = vpack.c.bf16 %v1065_v8, %v1064_v3  ;;  %v1085_v36 = vld [vmem:[#allocation5 + $0x1db8] sm:$0xff]  ;;  %v1088_v57 = vld [vmem:[#allocation5 + $0x1dd0] sm:$0xff]  ;;  %v1042_v3 = vld [vmem:[#allocation5 + $0x1c60] sm:$0xff] }
 0x1f6   :  { %v8176_v55 = vadd.f32 %v5581_v40, %v3178_v39  ;;  %7326 = vmatpush3.bf16.msra.mxu0 %v7325_v37  ;;  %v7373_v37 = vpack.c.bf16 %v1035_v19, %v1034_v25  ;;  %v7405_v40 = vpack.c.bf16 %v1067_v22, %v1066_v12  ;;  %v7407_v38 = vpack.c.bf16 %v1085_v36, %v1084_v35  ;;  %v1069_v39 = vld [vmem:[#allocation5 + $0x1d38] sm:$0xff]  ;;  %v1072_v17 = vld [vmem:[#allocation5 + $0x1d50] sm:$0xff]  ;;  %v1074_v8 = vld [vmem:[#allocation5 + $0x1d60] sm:$0xff] }
 0x1f7   :  { %7328 = vmatprep.subr.bf16.mxu0 %v7327_v42  ;;  %v1036_v42 = vld [vmem:[#allocation5 + $0x1c30] sm:$0xff]  ;;  %v7409_v52 = vpack.c.bf16 %v1069_v39, %v1068_v34  ;;  %v1057_v56 = vld [vmem:[#allocation5 + $0x1cd8] sm:$0xff]  ;;  %v7415_v4 = vpack.c.bf16 %v1089_v58, %v1088_v57  ;;  %v69_v25 = vld [vmem:[#allocation2 + $0x78] sm:$0xff] }
 0x1f8   :  { %7358 = vmatpush3.bf16.msra.mxu1 %v7357_v41  ;;  %v7375_v41 = vpack.c.bf16 %v1053_v29, %v1052_v28  ;;  %v7377_v51 = vpack.c.bf16 %v1037_v33, %v1036_v42  ;;  %v1060_v6 = vld [vmem:[#allocation5 + $0x1cf0] sm:$0xff]  ;;  %v1061_v7 = vld [vmem:[#allocation5 + $0x1cf8] sm:$0xff]  ;;  %v1126_v57 = vld [vmem:[#allocation5 + $0x1f00] sm:$0xff] }
 0x1f9   :  { %7360 = vmatprep.subr.bf16.mxu1 %v7359_v45  ;;  %v1054_v45 = vld [vmem:[#allocation5 + $0x1cc0] sm:$0xff]  ;;  %v1044_v42 = vld [vmem:[#allocation5 + $0x1c70] sm:$0xff]  ;;  %v1045_v33 = vld [vmem:[#allocation5 + $0x1c78] sm:$0xff] }
 0x1fa   :  { %7330 = vmatpush3.bf16.msra.mxu0 %v7329_v54  ;;  %v7379_v43 = vpack.c.bf16 %v1055_v46, %v1054_v45  ;;  %v7411_v54 = vpack.c.bf16 %v1087_v50, %v1086_v47  ;;  %v109_v22 = vld [vmem:[#allocation2 + $0x1b4] sm:$0xff]  ;;  %v1076_v34 = vld [vmem:[#allocation5 + $0x1d70] sm:$0xff]  ;;  %v1111_v47 = vld [vmem:[#allocation5 + $0x1e88] sm:$0xff] }
 0x1fb   :  { %7364 = vmatprep.subr.bf16.mxu0 %v7363_v23  ;;  %v1056_v23 = vld [vmem:[#allocation5 + $0x1cd0] sm:$0xff]  ;;  %v129_v28 = vld [vmem:[#allocation2 + $0x252] sm:$0xff] }
 0x1fc   :  { %7362 = vmatpush3.bf16.msra.mxu1 %v7361_v16  ;;  %v1071_v16 = vld [vmem:[#allocation5 + $0x1d48] sm:$0xff]  ;;  %v7383_v53 = vpack.c.bf16 %v1057_v56, %v1056_v23  ;;  %v1077_v45 = vld [vmem:[#allocation5 + $0x1d78] sm:$0xff]  ;;  %v1110_v46 = vld [vmem:[#allocation5 + $0x1e80] sm:$0xff] }
 0x1fd   :  { %7396 = vmatprep.subr.bf16.mxu1 %v7395_v61  ;;  %4156 = vmatmul.mubr.f32.vlgmr.msra.gmra.mrb[26].mxu0 %v1971_v24  ;;  %v7381_v61 = vpack.c.bf16 %v1039_v48, %v1038_v44  ;;  %v7413_v62 = vpack.c.bf16 %v1071_v16, %v1070_v49  ;;  %v1041_v24 = vld [vmem:[#allocation5 + $0x1c58] sm:$0xff]  ;;  %v2014_v48 = vcombine.high %v109_v22, %v129_v28  ;;  %v1095_v56 = vld [vmem:[#allocation5 + $0x1e08] sm:$0xff] }
 0x1fe   :  { %7366 = vmatpush3.bf16.msra.mxu0 %v7365_v63  ;;  %4295 = vmatprep.mubr.f32.mxu0 %v2008_v14  ;;  %v1073_v63 = vld [vmem:[#allocation5 + $0x1d58] sm:$0xff]  ;;  %v7385_v21 = vpack.c.bf16 %v1041_v24, %v1040_v1  ;;  %v1075_v14 = vld [vmem:[#allocation5 + $0x1d68] sm:$0xff]  ;;  %v7425_v16 = vpack.c.bf16 %v1077_v45, %v1076_v34  ;;  %v7427_v23 = vpack.c.bf16 %v1111_v47, %v1110_v46  ;;  %v1150_v46 = vld [vmem:[#allocation5 + $0x1fc0] sm:$0xff] }
 0x1ff   :  { %4226 = vmatmul.mubr.f32.vlgmr.msra.gmra.mrb[26].mxu1 %v1973_v10  ;;  %7368 = vmatprep.subr.bf16.mxu0 %v7367_v59  ;;  %v1058_v10 = vld [vmem:[#allocation5 + $0x1ce0] sm:$0xff]  ;;  %v7417_v11 = vpack.c.bf16 %v1073_v63, %v1072_v17  ;;  %v2007_v17 = vcombine.low %v8179_v2, %v8182_v5  ;;  %v1145_v63 = vld [vmem:[#allocation5 + $0x1f98] sm:$0xff]  ;;  %v1128_v2 = vld [vmem:[#allocation5 + $0x1f10] sm:$0xff] }
 0x200   :  { %7398 = vmatpush3.bf16.msra.mxu1 %v7397_v32  ;;  %4365 = vmatprep.mubr.f32.mxu1 %v2010_v60  ;;  %v1059_v32 = vld [vmem:[#allocation5 + $0x1ce8] sm:$0xff]  ;;  %v1090_v59 = vld [vmem:[#allocation5 + $0x1de0] sm:$0xff] }
 0x201   :  { %7400 = vmatprep.subr.bf16.mxu1 %v7399_v13  ;;  %v1043_v13 = vld [vmem:[#allocation5 + $0x1c68] sm:$0xff]  ;;  %v7387_v18 = vpack.c.bf16 %v1059_v32, %v1058_v10  ;;  %v8213_v32 = vrot.slane %v2014_v48, %v7896_v20  ;;  %v1134_v48 = vld [vmem:[#allocation5 + $0x1f40] sm:$0xff] }
 0x202   :  { %7370 = vmatpush3.bf16.msra.mxu0 %v7369_v30  ;;  %v7419_v30 = vpack.c.bf16 %v1091_v15, %v1090_v59  ;;  %v7389_v36 = vpack.c.bf16 %v1043_v13, %v1042_v3  ;;  %v2009_v15 = vcombine.low %v8187_v0, %v8190_v31  ;;  %v1096_v13 = vld [vmem:[#allocation5 + $0x1e10] sm:$0xff]  ;;  %v1119_v45 = vld [vmem:[#allocation5 + $0x1ec8] sm:$0xff] }
 0x203   :  { %7372 = vmatprep.subr.bf16.mxu0 %v7371_v26  ;;  %v1093_v26 = vld [vmem:[#allocation5 + $0x1df8] sm:$0xff]  ;;  %v1151_v47 = vld [vmem:[#allocation5 + $0x1fc8] sm:$0xff] }
 0x204   :  { %7402 = vmatpush3.bf16.msra.mxu1 %v7401_v27  ;;  %v1092_v27 = vld [vmem:[#allocation5 + $0x1df0] sm:$0xff] }
 0x205   :  { %7404 = vmatprep.subr.bf16.mxu1 %v7403_v9  ;;  %v89_v9 = vld [vmem:[#allocation2 + $0x116] sm:$0xff]  ;;  %v7423_v39 = vpack.c.bf16 %v1093_v26, %v1092_v27 }
 0x206   :  { %7374 = vmatpush3.bf16.msra.mxu0 %v7373_v37  ;;  %v2011_v50 = vcombine.low %v69_v25, %v89_v9  ;;  %v2012_v44 = vcombine.high %v69_v25, %v89_v9  ;;  %v1098_v26 = vld [vmem:[#allocation5 + $0x1e20] sm:$0xff]  ;;  %v1099_v25 = vld [vmem:[#allocation5 + $0x1e28] sm:$0xff] }
 0x207   :  { %7376 = vmatprep.subr.bf16.mxu0 %v7375_v41  ;;  %v7391_v41 = vpack.c.bf16 %v1061_v7, %v1060_v6  ;;  %v1146_v7 = vld [vmem:[#allocation5 + $0x1fa0] sm:$0xff]  ;;  %v1131_v9 = vld [vmem:[#allocation5 + $0x1f28] sm:$0xff] }
 0x208   :  { %7406 = vmatpush3.bf16.msra.mxu1 %v7405_v40  ;;  %v7421_v40 = vpack.c.bf16 %v1075_v14, %v1074_v8  ;;  %v8202_v1 = vrot.slane %v2011_v50, %v7896_v20  ;;  %v8210_v10 = vrot.slane %v2012_v44, %v7896_v20  ;;  %v1097_v8 = vld [vmem:[#allocation5 + $0x1e18] sm:$0xff]  ;;  %v1115_v14 = vld [vmem:[#allocation5 + $0x1ea8] sm:$0xff] }
 0x209   :  { %7408 = vmatprep.subr.bf16.mxu1 %v7407_v38  ;;  %v7433_v31 = vpack.c.bf16 %v1097_v8, %v1096_v13  ;;  %v1103_v44 = vld [vmem:[#allocation5 + $0x1e48] sm:$0xff] }
 0x20a   :  { %7378 = vmatpush3.bf16.msra.mxu0 %v7377_v51  ;;  %v2013_v51 = vcombine.low %v109_v22, %v129_v28  ;;  %v2046_v0 = vcombine.high %v8210_v10, %v8213_v32  ;;  %v1116_v22 = vld [vmem:[#allocation5 + $0x1eb0] sm:$0xff]  ;;  %v1117_v28 = vld [vmem:[#allocation5 + $0x1eb8] sm:$0xff]  ;;  %v1155_v13 = vld [vmem:[#allocation5 + $0x1fe8] sm:$0xff] }
 0x20b   :  { %7380 = vmatprep.subr.bf16.mxu0 %v7379_v43  ;;  %v1143_v43 = vld [vmem:[#allocation5 + $0x1f88] sm:$0xff] }
 0x20c   :  { %7410 = vmatpush3.bf16.msra.mxu1 %v7409_v52  ;;  %v1142_v52 = vld [vmem:[#allocation5 + $0x1f80] sm:$0xff]  ;;  %v8205_v24 = vrot.slane %v2013_v51, %v7896_v20 }
 0x20d   :  { %7412 = vmatprep.subr.bf16.mxu1 %v7411_v54  ;;  %v7393_v54 = vpack.c.bf16 %v1045_v33, %v1044_v42  ;;  %v7459_v58 = vpack.c.bf16 %v1143_v43, %v1142_v52  ;;  %v1101_v42 = vld [vmem:[#allocation5 + $0x1e38] sm:$0xff]  ;;  %v1132_v33 = vld [vmem:[#allocation5 + $0x1f30] sm:$0xff]  ;;  %v1102_v43 = vld [vmem:[#allocation5 + $0x1e40] sm:$0xff] }
 0x20e   :  { %7382 = vmatpush3.bf16.msra.mxu0 %v7381_v61  ;;  %v1127_v61 = vld [vmem:[#allocation5 + $0x1f08] sm:$0xff]  ;;  %v2044_v6 = vcombine.high %v8202_v1, %v8205_v24 }
 0x20f   :  { %7384 = vmatprep.subr.bf16.mxu0 %v7383_v53  ;;  %v1113_v53 = vld [vmem:[#allocation5 + $0x1e98] sm:$0xff] }
 0x210   :  { %7414 = vmatpush3.bf16.msra.mxu1 %v7413_v62  ;;  %v5614_v60 = vpop.f32.mrb[14].mxu0  ;;  %v1112_v62 = vld [vmem:[#allocation5 + $0x1e90] sm:$0xff] }
 0x211   :  { %7416 = vmatprep.subr.bf16.mxu1 %v7415_v4  ;;  %v5615_v19 = vpop.f32.mrb[15].mxu0  ;;  %v1144_v4 = vld [vmem:[#allocation5 + $0x1f90] sm:$0xff]  ;;  %v7431_v3 = vpack.c.bf16 %v1113_v53, %v1112_v62 }
 0x212   :  { %v5649_v12 = vpop.f32.mrb[14].mxu1  ;;  %v5616_v29 = vadd.f32 %v5615_v19, %v5614_v60  ;;  %7386 = vmatpush3.bf16.msra.mxu0 %v7385_v21  ;;  %v7461_v21 = vpack.c.bf16 %v1127_v61, %v1126_v57  ;;  %v7463_v5 = vpack.c.bf16 %v1145_v63, %v1144_v4  ;;  %v1147_v60 = vld [vmem:[#allocation5 + $0x1fa8] sm:$0xff]  ;;  %v1130_v19 = vld [vmem:[#allocation5 + $0x1f20] sm:$0xff]  ;;  %v1153_v57 = vld [vmem:[#allocation5 + $0x1fd8] sm:$0xff] }
 0x213   :  { %v5650_v35 = vpop.f32.mrb[15].mxu1  ;;  %7388 = vmatprep.subr.bf16.mxu0 %v7387_v18  ;;  %v1114_v18 = vld [vmem:[#allocation5 + $0x1ea0] sm:$0xff]  ;;  %v1104_v53 = vld [vmem:[#allocation5 + $0x1e50] sm:$0xff] }
 0x214   :  { %v5651_v37 = vadd.f32 %v5650_v35, %v5649_v12  ;;  %7418 = vmatpush3.bf16.msra.mxu1 %v7417_v11  ;;  %v3318_v38 = vadd.f32 %v5616_v29, %v8176_v55  ;;  %v1094_v55 = vld [vmem:[#allocation5 + $0x1e00] sm:$0xff]  ;;  %v1129_v11 = vld [vmem:[#allocation5 + $0x1f18] sm:$0xff]  ;;  %v7435_v27 = vpack.c.bf16 %v1115_v14, %v1114_v18  ;;  %v7467_v12 = vpack.c.bf16 %v1147_v60, %v1146_v7  ;;  %v1148_v29 = vld [vmem:[#allocation5 + $0x1fb0] sm:$0xff] }
 0x215   :  { %7420 = vmatprep.subr.bf16.mxu1 %v7419_v30  ;;  %v7429_v59 = vpack.c.bf16 %v1095_v56, %v1094_v55  ;;  %v7465_v30 = vpack.c.bf16 %v1129_v11, %v1128_v2  ;;  %v1149_v35 = vld [vmem:[#allocation5 + $0x1fb8] sm:$0xff]  ;;  %v1152_v56 = vld [vmem:[#allocation5 + $0x1fd0] sm:$0xff]  ;;  %v1106_v2 = vld [vmem:[#allocation5 + $0x1e60] sm:$0xff] }
 0x216   :  { %v8199_v49 = vadd.f32 %v5651_v37, %v3318_v38  ;;  %7390 = vmatpush3.bf16.msra.mxu0 %v7389_v36  ;;  %v7437_v36 = vpack.c.bf16 %v1099_v25, %v1098_v26  ;;  %v7469_v37 = vpack.c.bf16 %v1131_v9, %v1130_v19  ;;  %v7471_v34 = vpack.c.bf16 %v1149_v35, %v1148_v29  ;;  %v1133_v38 = vld [vmem:[#allocation5 + $0x1f38] sm:$0xff]  ;;  %v1136_v4 = vld [vmem:[#allocation5 + $0x1f50] sm:$0xff]  ;;  %v1138_v11 = vld [vmem:[#allocation5 + $0x1f60] sm:$0xff] }
 0x217   :  { %7392 = vmatprep.subr.bf16.mxu0 %v7391_v41  ;;  %v1100_v41 = vld [vmem:[#allocation5 + $0x1e30] sm:$0xff]  ;;  %v7473_v51 = vpack.c.bf16 %v1133_v38, %v1132_v33  ;;  %v1121_v55 = vld [vmem:[#allocation5 + $0x1ed8] sm:$0xff]  ;;  %v7479_v63 = vpack.c.bf16 %v1153_v57, %v1152_v56  ;;  %v70_v26 = vld [vmem:[#allocation2 + $0x80] sm:$0xff] }
 0x218   :  { %7422 = vmatpush3.bf16.msra.mxu1 %v7421_v40  ;;  %v7439_v40 = vpack.c.bf16 %v1117_v28, %v1116_v22  ;;  %v7441_v50 = vpack.c.bf16 %v1101_v42, %v1100_v41  ;;  %v1124_v7 = vld [vmem:[#allocation5 + $0x1ef0] sm:$0xff]  ;;  %v1125_v60 = vld [vmem:[#allocation5 + $0x1ef8] sm:$0xff]  ;;  %v110_v9 = vld [vmem:[#allocation2 + $0x1bc] sm:$0xff] }
 0x219   :  { %7424 = vmatprep.subr.bf16.mxu1 %v7423_v39  ;;  %v1118_v39 = vld [vmem:[#allocation5 + $0x1ec0] sm:$0xff]  ;;  %v1108_v41 = vld [vmem:[#allocation5 + $0x1e70] sm:$0xff]  ;;  %v1109_v42 = vld [vmem:[#allocation5 + $0x1e78] sm:$0xff] }
 0x21a   :  { %7394 = vmatpush3.bf16.msra.mxu0 %v7393_v54  ;;  %v7443_v52 = vpack.c.bf16 %v1119_v45, %v1118_v39  ;;  %v7475_v54 = vpack.c.bf16 %v1151_v47, %v1150_v46  ;;  %v130_v22 = vld [vmem:[#allocation2 + $0x25a] sm:$0xff]  ;;  %v1140_v33 = vld [vmem:[#allocation5 + $0x1f70] sm:$0xff]  ;;  %v1141_v39 = vld [vmem:[#allocation5 + $0x1f78] sm:$0xff] }
 0x21b   :  { %7428 = vmatprep.subr.bf16.mxu0 %v7427_v23  ;;  %v1120_v23 = vld [vmem:[#allocation5 + $0x1ed0] sm:$0xff]  ;;  %v1174_v45 = vld [vmem:[#allocation5 + $0x2080] sm:$0xff]  ;;  %v1175_v46 = vld [vmem:[#allocation5 + $0x2088] sm:$0xff] }
 0x21c   :  { %7426 = vmatpush3.bf16.msra.mxu1 %v7425_v16  ;;  %v1135_v16 = vld [vmem:[#allocation5 + $0x1f48] sm:$0xff]  ;;  %v7447_v62 = vpack.c.bf16 %v1121_v55, %v1120_v23  ;;  %v7491_v23 = vpack.c.bf16 %v1175_v46, %v1174_v45  ;;  %v1190_v56 = vld [vmem:[#allocation5 + $0x2100] sm:$0xff] }
 0x21d   :  { %7460 = vmatprep.subr.bf16.mxu1 %v7459_v58  ;;  %4296 = vmatmul.mubr.f32.vlgmr.msra.gmra.mrb[28].mxu0 %v2007_v17  ;;  %v7445_v58 = vpack.c.bf16 %v1103_v44, %v1102_v43  ;;  %v7477_v61 = vpack.c.bf16 %v1135_v16, %v1134_v48  ;;  %v1105_v17 = vld [vmem:[#allocation5 + $0x1e58] sm:$0xff]  ;;  %v2050_v44 = vcombine.high %v110_v9, %v130_v22  ;;  %v1159_v55 = vld [vmem:[#allocation5 + $0x2008] sm:$0xff]  ;;  %v1214_v45 = vld [vmem:[#allocation5 + $0x21c0] sm:$0xff] }
 0x21e   :  { %7430 = vmatpush3.bf16.msra.mxu0 %v7429_v59  ;;  %4435 = vmatprep.mubr.f32.mxu0 %v2044_v6  ;;  %v1137_v59 = vld [vmem:[#allocation5 + $0x1f58] sm:$0xff]  ;;  %v7449_v8 = vpack.c.bf16 %v1105_v17, %v1104_v53  ;;  %v1139_v6 = vld [vmem:[#allocation5 + $0x1f68] sm:$0xff]  ;;  %v7489_v16 = vpack.c.bf16 %v1141_v39, %v1140_v33 }
 0x21f   :  { %4366 = vmatmul.mubr.f32.vlgmr.msra.gmra.mrb[28].mxu1 %v2009_v15  ;;  %7432 = vmatprep.subr.bf16.mxu0 %v7431_v3  ;;  %v1122_v15 = vld [vmem:[#allocation5 + $0x1ee0] sm:$0xff]  ;;  %v7481_v18 = vpack.c.bf16 %v1137_v59, %v1136_v4  ;;  %v2043_v4 = vcombine.low %v8202_v1, %v8205_v24  ;;  %v1209_v59 = vld [vmem:[#allocation5 + $0x2198] sm:$0xff]  ;;  %v1192_v1 = vld [vmem:[#allocation5 + $0x2110] sm:$0xff] }
 0x220   :  { %7462 = vmatpush3.bf16.msra.mxu1 %v7461_v21  ;;  %4505 = vmatprep.mubr.f32.mxu1 %v2046_v0  ;;  %v1123_v21 = vld [vmem:[#allocation5 + $0x1ee8] sm:$0xff]  ;;  %v1154_v3 = vld [vmem:[#allocation5 + $0x1fe0] sm:$0xff] }
 0x221   :  { %7464 = vmatprep.subr.bf16.mxu1 %v7463_v5  ;;  %v1107_v5 = vld [vmem:[#allocation5 + $0x1e68] sm:$0xff]  ;;  %v7451_v14 = vpack.c.bf16 %v1123_v21, %v1122_v15  ;;  %v8236_v21 = vrot.slane %v2050_v44, %v7896_v20  ;;  %v1198_v44 = vld [vmem:[#allocation5 + $0x2140] sm:$0xff] }
 0x222   :  { %7434 = vmatpush3.bf16.msra.mxu0 %v7433_v31  ;;  %v7483_v31 = vpack.c.bf16 %v1155_v13, %v1154_v3  ;;  %v7453_v35 = vpack.c.bf16 %v1107_v5, %v1106_v2  ;;  %v2045_v13 = vcombine.low %v8210_v10, %v8213_v32  ;;  %v1160_v5 = vld [vmem:[#allocation5 + $0x2010] sm:$0xff]  ;;  %v1183_v39 = vld [vmem:[#allocation5 + $0x20c8] sm:$0xff] }
 0x223   :  { %7436 = vmatprep.subr.bf16.mxu0 %v7435_v27  ;;  %v1157_v27 = vld [vmem:[#allocation5 + $0x1ff8] sm:$0xff]  ;;  %v1215_v46 = vld [vmem:[#allocation5 + $0x21c8] sm:$0xff] }
 0x224   :  { %7466 = vmatpush3.bf16.msra.mxu1 %v7465_v30  ;;  %v1156_v30 = vld [vmem:[#allocation5 + $0x1ff0] sm:$0xff] }
 0x225   :  { %7468 = vmatprep.subr.bf16.mxu1 %v7467_v12  ;;  %v90_v12 = vld [vmem:[#allocation2 + $0x11e] sm:$0xff]  ;;  %v7487_v38 = vpack.c.bf16 %v1157_v27, %v1156_v30 }
 0x226   :  { %7438 = vmatpush3.bf16.msra.mxu0 %v7437_v36  ;;  %v2047_v47 = vcombine.low %v70_v26, %v90_v12  ;;  %v2048_v43 = vcombine.high %v70_v26, %v90_v12  ;;  %v1162_v27 = vld [vmem:[#allocation5 + $0x2020] sm:$0xff]  ;;  %v1163_v26 = vld [vmem:[#allocation5 + $0x2028] sm:$0xff] }
 0x227   :  { %7440 = vmatprep.subr.bf16.mxu0 %v7439_v40  ;;  %v7455_v40 = vpack.c.bf16 %v1125_v60, %v1124_v7  ;;  %v1210_v60 = vld [vmem:[#allocation5 + $0x21a0] sm:$0xff]  ;;  %v1195_v12 = vld [vmem:[#allocation5 + $0x2128] sm:$0xff] }
 0x228   :  { %7470 = vmatpush3.bf16.msra.mxu1 %v7469_v37  ;;  %v7485_v37 = vpack.c.bf16 %v1139_v6, %v1138_v11  ;;  %v8225_v53 = vrot.slane %v2047_v47, %v7896_v20  ;;  %v8233_v15 = vrot.slane %v2048_v43, %v7896_v20  ;;  %v1161_v11 = vld [vmem:[#allocation5 + $0x2018] sm:$0xff]  ;;  %v1179_v6 = vld [vmem:[#allocation5 + $0x20a8] sm:$0xff] }
 0x229   :  { %7472 = vmatprep.subr.bf16.mxu1 %v7471_v34  ;;  %v7497_v32 = vpack.c.bf16 %v1161_v11, %v1160_v5  ;;  %v1167_v43 = vld [vmem:[#allocation5 + $0x2048] sm:$0xff] }
 0x22a   :  { %7442 = vmatpush3.bf16.msra.mxu0 %v7441_v50  ;;  %v2049_v50 = vcombine.low %v110_v9, %v130_v22  ;;  %v2082_v10 = vcombine.high %v8233_v15, %v8236_v21  ;;  %v1180_v9 = vld [vmem:[#allocation5 + $0x20b0] sm:$0xff]  ;;  %v1181_v22 = vld [vmem:[#allocation5 + $0x20b8] sm:$0xff]  ;;  %v1219_v5 = vld [vmem:[#allocation5 + $0x21e8] sm:$0xff] }
 0x22b   :  { %7444 = vmatprep.subr.bf16.mxu0 %v7443_v52  ;;  %v1207_v52 = vld [vmem:[#allocation5 + $0x2188] sm:$0xff] }
 0x22c   :  { %7474 = vmatpush3.bf16.msra.mxu1 %v7473_v51  ;;  %v1206_v51 = vld [vmem:[#allocation5 + $0x2180] sm:$0xff]  ;;  %v8228_v17 = vrot.slane %v2049_v50, %v7896_v20 }
 0x22d   :  { %7476 = vmatprep.subr.bf16.mxu1 %v7475_v54  ;;  %v7457_v54 = vpack.c.bf16 %v1109_v42, %v1108_v41  ;;  %v7523_v57 = vpack.c.bf16 %v1207_v52, %v1206_v51  ;;  %v1165_v41 = vld [vmem:[#allocation5 + $0x2038] sm:$0xff]  ;;  %v1196_v42 = vld [vmem:[#allocation5 + $0x2130] sm:$0xff]  ;;  %v1166_v52 = vld [vmem:[#allocation5 + $0x2040] sm:$0xff] }
 0x22e   :  { %7446 = vmatpush3.bf16.msra.mxu0 %v7445_v58  ;;  %v1191_v58 = vld [vmem:[#allocation5 + $0x2108] sm:$0xff]  ;;  %v2080_v7 = vcombine.high %v8225_v53, %v8228_v17 }
 0x22f   :  { %7448 = vmatprep.subr.bf16.mxu0 %v7447_v62  ;;  %v1177_v62 = vld [vmem:[#allocation5 + $0x2098] sm:$0xff] }
 0x230   :  { %7478 = vmatpush3.bf16.msra.mxu1 %v7477_v61  ;;  %v5684_v0 = vpop.f32.mrb[16].mxu0  ;;  %v1176_v61 = vld [vmem:[#allocation5 + $0x2090] sm:$0xff] }
 0x231   :  { %7480 = vmatprep.subr.bf16.mxu1 %v7479_v63  ;;  %v5685_v25 = vpop.f32.mrb[17].mxu0  ;;  %v1208_v63 = vld [vmem:[#allocation5 + $0x2190] sm:$0xff]  ;;  %v7495_v2 = vpack.c.bf16 %v1177_v62, %v1176_v61 }
 0x232   :  { %v5719_v19 = vpop.f32.mrb[16].mxu1  ;;  %v5686_v28 = vadd.f32 %v5685_v25, %v5684_v0  ;;  %7450 = vmatpush3.bf16.msra.mxu0 %v7449_v8  ;;  %v7525_v8 = vpack.c.bf16 %v1191_v58, %v1190_v56  ;;  %v7527_v24 = vpack.c.bf16 %v1209_v59, %v1208_v63  ;;  %v1211_v0 = vld [vmem:[#allocation5 + $0x21a8] sm:$0xff]  ;;  %v1194_v25 = vld [vmem:[#allocation5 + $0x2120] sm:$0xff]  ;;  %v1217_v56 = vld [vmem:[#allocation5 + $0x21d8] sm:$0xff] }
 0x233   :  { %v5720_v29 = vpop.f32.mrb[17].mxu1  ;;  %7452 = vmatprep.subr.bf16.mxu0 %v7451_v14  ;;  %v1178_v14 = vld [vmem:[#allocation5 + $0x20a0] sm:$0xff]  ;;  %v1168_v62 = vld [vmem:[#allocation5 + $0x2050] sm:$0xff] }
 0x234   :  { %v5721_v36 = vadd.f32 %v5720_v29, %v5719_v19  ;;  %7482 = vmatpush3.bf16.msra.mxu1 %v7481_v18  ;;  %v3458_v34 = vadd.f32 %v5686_v28, %v8199_v49  ;;  %v1158_v49 = vld [vmem:[#allocation5 + $0x2000] sm:$0xff]  ;;  %v1193_v18 = vld [vmem:[#allocation5 + $0x2118] sm:$0xff]  ;;  %v7499_v30 = vpack.c.bf16 %v1179_v6, %v1178_v14  ;;  %v7531_v19 = vpack.c.bf16 %v1211_v0, %v1210_v60  ;;  %v1212_v28 = vld [vmem:[#allocation5 + $0x21b0] sm:$0xff] }
 0x235   :  { %7484 = vmatprep.subr.bf16.mxu1 %v7483_v31  ;;  %v7493_v3 = vpack.c.bf16 %v1159_v55, %v1158_v49  ;;  %v7529_v31 = vpack.c.bf16 %v1193_v18, %v1192_v1  ;;  %v1213_v29 = vld [vmem:[#allocation5 + $0x21b8] sm:$0xff]  ;;  %v1216_v55 = vld [vmem:[#allocation5 + $0x21d0] sm:$0xff]  ;;  %v1170_v1 = vld [vmem:[#allocation5 + $0x2060] sm:$0xff] }
 0x236   :  { %v8222_v48 = vadd.f32 %v5721_v36, %v3458_v34  ;;  %7454 = vmatpush3.bf16.msra.mxu0 %v7453_v35  ;;  %v7501_v35 = vpack.c.bf16 %v1163_v26, %v1162_v27  ;;  %v7533_v36 = vpack.c.bf16 %v1195_v12, %v1194_v25  ;;  %v7535_v33 = vpack.c.bf16 %v1213_v29, %v1212_v28  ;;  %v1197_v34 = vld [vmem:[#allocation5 + $0x2138] sm:$0xff]  ;;  %v1200_v63 = vld [vmem:[#allocation5 + $0x2150] sm:$0xff]  ;;  %v1202_v18 = vld [vmem:[#allocation5 + $0x2160] sm:$0xff] }
 0x237   :  { %7456 = vmatprep.subr.bf16.mxu0 %v7455_v40  ;;  %v1164_v40 = vld [vmem:[#allocation5 + $0x2030] sm:$0xff]  ;;  %v7537_v50 = vpack.c.bf16 %v1197_v34, %v1196_v42  ;;  %v1185_v49 = vld [vmem:[#allocation5 + $0x20d8] sm:$0xff]  ;;  %v7543_v59 = vpack.c.bf16 %v1217_v56, %v1216_v55  ;;  %v1254_v55 = vld [vmem:[#allocation5 + $0x2300] sm:$0xff] }
 0x238   :  { %7486 = vmatpush3.bf16.msra.mxu1 %v7485_v37  ;;  %v7503_v37 = vpack.c.bf16 %v1181_v22, %v1180_v9  ;;  %v7505_v47 = vpack.c.bf16 %v1165_v41, %v1164_v40  ;;  %v1188_v60 = vld [vmem:[#allocation5 + $0x20f0] sm:$0xff]  ;;  %v1189_v0 = vld [vmem:[#allocation5 + $0x20f8] sm:$0xff] }
 0x239   :  { %7488 = vmatprep.subr.bf16.mxu1 %v7487_v38  ;;  %v1182_v38 = vld [vmem:[#allocation5 + $0x20c0] sm:$0xff]  ;;  %v71_v27 = vld [vmem:[#allocation2 + $0x88] sm:$0xff]  ;;  %v1173_v41 = vld [vmem:[#allocation5 + $0x2078] sm:$0xff] }
 0x23a   :  { %7458 = vmatpush3.bf16.msra.mxu0 %v7457_v54  ;;  %v7507_v51 = vpack.c.bf16 %v1183_v39, %v1182_v38  ;;  %v7539_v54 = vpack.c.bf16 %v1215_v46, %v1214_v45  ;;  %v111_v12 = vld [vmem:[#allocation2 + $0x1c4] sm:$0xff]  ;;  %v1205_v38 = vld [vmem:[#allocation5 + $0x2178] sm:$0xff]  ;;  %v1238_v39 = vld [vmem:[#allocation5 + $0x2280] sm:$0xff] }
 0x23b   :  { %7492 = vmatprep.subr.bf16.mxu0 %v7491_v23  ;;  %v1184_v23 = vld [vmem:[#allocation5 + $0x20d0] sm:$0xff]  ;;  %v1239_v45 = vld [vmem:[#allocation5 + $0x2288] sm:$0xff] }
 0x23c   :  { %7490 = vmatpush3.bf16.msra.mxu1 %v7489_v16  ;;  %v1199_v16 = vld [vmem:[#allocation5 + $0x2148] sm:$0xff]  ;;  %v7511_v61 = vpack.c.bf16 %v1185_v49, %v1184_v23  ;;  %v1172_v40 = vld [vmem:[#allocation5 + $0x2070] sm:$0xff]  ;;  %v7555_v23 = vpack.c.bf16 %v1239_v45, %v1238_v39  ;;  %v1278_v39 = vld [vmem:[#allocation5 + $0x23c0] sm:$0xff] }
 0x23d   :  { %7524 = vmatprep.subr.bf16.mxu1 %v7523_v57  ;;  %4436 = vmatmul.mubr.f32.vlgmr.msra.gmra.mrb[30].mxu0 %v2043_v4  ;;  %v7509_v57 = vpack.c.bf16 %v1167_v43, %v1166_v52  ;;  %v7541_v58 = vpack.c.bf16 %v1199_v16, %v1198_v44  ;;  %v1169_v4 = vld [vmem:[#allocation5 + $0x2058] sm:$0xff]  ;;  %v131_v9 = vld [vmem:[#allocation2 + $0x262] sm:$0xff] }
 0x23e   :  { %7494 = vmatpush3.bf16.msra.mxu0 %v7493_v3  ;;  %4575 = vmatprep.mubr.f32.mxu0 %v2080_v7  ;;  %v1201_v3 = vld [vmem:[#allocation5 + $0x2158] sm:$0xff]  ;;  %v7513_v11 = vpack.c.bf16 %v1169_v4, %v1168_v62  ;;  %v1203_v7 = vld [vmem:[#allocation5 + $0x2168] sm:$0xff]  ;;  %v1204_v42 = vld [vmem:[#allocation5 + $0x2170] sm:$0xff]  ;;  %v2086_v43 = vcombine.high %v111_v12, %v131_v9 }
 0x23f   :  { %4506 = vmatmul.mubr.f32.vlgmr.msra.gmra.mrb[30].mxu1 %v2045_v13  ;;  %7496 = vmatprep.subr.bf16.mxu0 %v7495_v2  ;;  %v1186_v13 = vld [vmem:[#allocation5 + $0x20e0] sm:$0xff]  ;;  %v7545_v14 = vpack.c.bf16 %v1201_v3, %v1200_v63  ;;  %v7553_v16 = vpack.c.bf16 %v1205_v38, %v1204_v42  ;;  %v1223_v49 = vld [vmem:[#allocation5 + $0x2208] sm:$0xff]  ;;  %v2079_v63 = vcombine.low %v8225_v53, %v8228_v17  ;;  %v1273_v3 = vld [vmem:[#allocation5 + $0x2398] sm:$0xff] }
 0x240   :  { %7526 = vmatpush3.bf16.msra.mxu1 %v7525_v8  ;;  %4645 = vmatprep.mubr.f32.mxu1 %v2082_v10  ;;  %v1187_v8 = vld [vmem:[#allocation5 + $0x20e8] sm:$0xff]  ;;  %v1218_v2 = vld [vmem:[#allocation5 + $0x21e0] sm:$0xff]  ;;  %v1256_v53 = vld [vmem:[#allocation5 + $0x2310] sm:$0xff] }
 0x241   :  { %7528 = vmatprep.subr.bf16.mxu1 %v7527_v24  ;;  %v1171_v24 = vld [vmem:[#allocation5 + $0x2068] sm:$0xff]  ;;  %v7515_v6 = vpack.c.bf16 %v1187_v8, %v1186_v13  ;;  %v8259_v8 = vrot.slane %v2086_v43, %v7896_v20  ;;  %v1262_v43 = vld [vmem:[#allocation5 + $0x2340] sm:$0xff] }
 0x242   :  { %7498 = vmatpush3.bf16.msra.mxu0 %v7497_v32  ;;  %v7547_v32 = vpack.c.bf16 %v1219_v5, %v1218_v2  ;;  %v7517_v29 = vpack.c.bf16 %v1171_v24, %v1170_v1  ;;  %v2081_v5 = vcombine.low %v8233_v15, %v8236_v21  ;;  %v1224_v24 = vld [vmem:[#allocation5 + $0x2210] sm:$0xff]  ;;  %v1247_v38 = vld [vmem:[#allocation5 + $0x22c8] sm:$0xff] }
 0x243   :  { %7500 = vmatprep.subr.bf16.mxu0 %v7499_v30  ;;  %v1221_v30 = vld [vmem:[#allocation5 + $0x21f8] sm:$0xff]  ;;  %v1279_v45 = vld [vmem:[#allocation5 + $0x23c8] sm:$0xff] }
 0x244   :  { %7530 = vmatpush3.bf16.msra.mxu1 %v7529_v31  ;;  %v1220_v31 = vld [vmem:[#allocation5 + $0x21f0] sm:$0xff] }
 0x245   :  { %7532 = vmatprep.subr.bf16.mxu1 %v7531_v19  ;;  %v91_v19 = vld [vmem:[#allocation2 + $0x126] sm:$0xff]  ;;  %v7551_v34 = vpack.c.bf16 %v1221_v30, %v1220_v31  ;;  %v1226_v30 = vld [vmem:[#allocation5 + $0x2220] sm:$0xff] }
 0x246   :  { %7502 = vmatpush3.bf16.msra.mxu0 %v7501_v35  ;;  %v2083_v46 = vcombine.low %v71_v27, %v91_v19  ;;  %v2084_v52 = vcombine.high %v71_v27, %v91_v19  ;;  %v1227_v27 = vld [vmem:[#allocation5 + $0x2228] sm:$0xff] }
 0x247   :  { %7504 = vmatprep.subr.bf16.mxu0 %v7503_v37  ;;  %v7519_v37 = vpack.c.bf16 %v1189_v0, %v1188_v60  ;;  %v1274_v0 = vld [vmem:[#allocation5 + $0x23a0] sm:$0xff]  ;;  %v1259_v19 = vld [vmem:[#allocation5 + $0x2328] sm:$0xff] }
 0x248   :  { %7534 = vmatpush3.bf16.msra.mxu1 %v7533_v36  ;;  %v7549_v36 = vpack.c.bf16 %v1203_v7, %v1202_v18  ;;  %v8248_v62 = vrot.slane %v2083_v46, %v7896_v20  ;;  %v8256_v13 = vrot.slane %v2084_v52, %v7896_v20  ;;  %v1225_v18 = vld [vmem:[#allocation5 + $0x2218] sm:$0xff]  ;;  %v1243_v7 = vld [vmem:[#allocation5 + $0x22a8] sm:$0xff] }
 0x249   :  { %7536 = vmatprep.subr.bf16.mxu1 %v7535_v33  ;;  %v7561_v21 = vpack.c.bf16 %v1225_v18, %v1224_v24  ;;  %v1231_v52 = vld [vmem:[#allocation5 + $0x2248] sm:$0xff] }
 0x24a   :  { %7506 = vmatpush3.bf16.msra.mxu0 %v7505_v47  ;;  %v2085_v47 = vcombine.low %v111_v12, %v131_v9  ;;  %v2118_v15 = vcombine.high %v8256_v13, %v8259_v8  ;;  %v1244_v12 = vld [vmem:[#allocation5 + $0x22b0] sm:$0xff]  ;;  %v1245_v9 = vld [vmem:[#allocation5 + $0x22b8] sm:$0xff]  ;;  %v1283_v24 = vld [vmem:[#allocation5 + $0x23e8] sm:$0xff] }
 0x24b   :  { %7508 = vmatprep.subr.bf16.mxu0 %v7507_v51  ;;  %v1271_v51 = vld [vmem:[#allocation5 + $0x2388] sm:$0xff] }
 0x24c   :  { %7538 = vmatpush3.bf16.msra.mxu1 %v7537_v50  ;;  %v1270_v50 = vld [vmem:[#allocation5 + $0x2380] sm:$0xff]  ;;  %v8251_v4 = vrot.slane %v2085_v47, %v7896_v20 }
 0x24d   :  { %7540 = vmatprep.subr.bf16.mxu1 %v7539_v54  ;;  %v7521_v54 = vpack.c.bf16 %v1173_v41, %v1172_v40  ;;  %v7587_v56 = vpack.c.bf16 %v1271_v51, %v1270_v50  ;;  %v1229_v40 = vld [vmem:[#allocation5 + $0x2238] sm:$0xff]  ;;  %v1260_v41 = vld [vmem:[#allocation5 + $0x2330] sm:$0xff]  ;;  %v1230_v51 = vld [vmem:[#allocation5 + $0x2240] sm:$0xff] }
 0x24e   :  { %7510 = vmatpush3.bf16.msra.mxu0 %v7509_v57  ;;  %v1255_v57 = vld [vmem:[#allocation5 + $0x2308] sm:$0xff]  ;;  %v2116_v60 = vcombine.high %v8248_v62, %v8251_v4 }
 0x24f   :  { %7512 = vmatprep.subr.bf16.mxu0 %v7511_v61  ;;  %v1241_v61 = vld [vmem:[#allocation5 + $0x2298] sm:$0xff] }
 0x250   :  { %7542 = vmatpush3.bf16.msra.mxu1 %v7541_v58  ;;  %v5754_v10 = vpop.f32.mrb[18].mxu0  ;;  %v1240_v58 = vld [vmem:[#allocation5 + $0x2290] sm:$0xff] }
 0x251   :  { %7544 = vmatprep.subr.bf16.mxu1 %v7543_v59  ;;  %v5755_v26 = vpop.f32.mrb[19].mxu0  ;;  %v1272_v59 = vld [vmem:[#allocation5 + $0x2390] sm:$0xff]  ;;  %v7559_v1 = vpack.c.bf16 %v1241_v61, %v1240_v58 }
 0x252   :  { %v5789_v25 = vpop.f32.mrb[18].mxu1  ;;  %v5756_v22 = vadd.f32 %v5755_v26, %v5754_v10  ;;  %7514 = vmatpush3.bf16.msra.mxu0 %v7513_v11  ;;  %v7589_v11 = vpack.c.bf16 %v1255_v57, %v1254_v55  ;;  %v7591_v17 = vpack.c.bf16 %v1273_v3, %v1272_v59  ;;  %v1275_v10 = vld [vmem:[#allocation5 + $0x23a8] sm:$0xff]  ;;  %v1258_v26 = vld [vmem:[#allocation5 + $0x2320] sm:$0xff]  ;;  %v1281_v55 = vld [vmem:[#allocation5 + $0x23d8] sm:$0xff] }
 0x253   :  { %v5790_v28 = vpop.f32.mrb[19].mxu1  ;;  %7516 = vmatprep.subr.bf16.mxu0 %v7515_v6  ;;  %v1242_v6 = vld [vmem:[#allocation5 + $0x22a0] sm:$0xff]  ;;  %v1232_v61 = vld [vmem:[#allocation5 + $0x2250] sm:$0xff] }
 0x254   :  { %v5791_v35 = vadd.f32 %v5790_v28, %v5789_v25  ;;  %7546 = vmatpush3.bf16.msra.mxu1 %v7545_v14  ;;  %v3598_v33 = vadd.f32 %v5756_v22, %v8222_v48  ;;  %v1222_v48 = vld [vmem:[#allocation5 + $0x2200] sm:$0xff]  ;;  %v1257_v14 = vld [vmem:[#allocation5 + $0x2318] sm:$0xff]  ;;  %v7563_v31 = vpack.c.bf16 %v1243_v7, %v1242_v6  ;;  %v7595_v25 = vpack.c.bf16 %v1275_v10, %v1274_v0  ;;  %v1276_v22 = vld [vmem:[#allocation5 + $0x23b0] sm:$0xff] }
 0x255   :  { %7548 = vmatprep.subr.bf16.mxu1 %v7547_v32  ;;  %v7557_v2 = vpack.c.bf16 %v1223_v49, %v1222_v48  ;;  %v7593_v32 = vpack.c.bf16 %v1257_v14, %v1256_v53  ;;  %v1277_v28 = vld [vmem:[#allocation5 + $0x23b8] sm:$0xff]  ;;  %v1280_v49 = vld [vmem:[#allocation5 + $0x23d0] sm:$0xff]  ;;  %v1234_v53 = vld [vmem:[#allocation5 + $0x2260] sm:$0xff] }
 0x256   :  { %v8245_v44 = vadd.f32 %v5791_v35, %v3598_v33  ;;  %7518 = vmatpush3.bf16.msra.mxu0 %v7517_v29  ;;  %v7565_v29 = vpack.c.bf16 %v1227_v27, %v1226_v30  ;;  %v7597_v35 = vpack.c.bf16 %v1259_v19, %v1258_v26  ;;  %v7599_v42 = vpack.c.bf16 %v1277_v28, %v1276_v22  ;;  %v1261_v33 = vld [vmem:[#allocation5 + $0x2338] sm:$0xff]  ;;  %v1264_v59 = vld [vmem:[#allocation5 + $0x2350] sm:$0xff]  ;;  %v1266_v14 = vld [vmem:[#allocation5 + $0x2360] sm:$0xff] }
 0x257   :  { %7520 = vmatprep.subr.bf16.mxu0 %v7519_v37  ;;  %v1228_v37 = vld [vmem:[#allocation5 + $0x2230] sm:$0xff]  ;;  %v7601_v47 = vpack.c.bf16 %v1261_v33, %v1260_v41  ;;  %v1249_v48 = vld [vmem:[#allocation5 + $0x22d8] sm:$0xff]  ;;  %v7607_v3 = vpack.c.bf16 %v1281_v55, %v1280_v49  ;;  %v1318_v49 = vld [vmem:[#allocation5 + $0x2500] sm:$0xff] }
 0x258   :  { %7550 = vmatpush3.bf16.msra.mxu1 %v7549_v36  ;;  %v7567_v36 = vpack.c.bf16 %v1245_v9, %v1244_v12  ;;  %v7569_v46 = vpack.c.bf16 %v1229_v40, %v1228_v37  ;;  %v1252_v0 = vld [vmem:[#allocation5 + $0x22f0] sm:$0xff]  ;;  %v1253_v10 = vld [vmem:[#allocation5 + $0x22f8] sm:$0xff] }
 0x259   :  { %7552 = vmatprep.subr.bf16.mxu1 %v7551_v34  ;;  %v1246_v34 = vld [vmem:[#allocation5 + $0x22c0] sm:$0xff]  ;;  %v72_v30 = vld [vmem:[#allocation2 + $0x90] sm:$0xff]  ;;  %v1236_v37 = vld [vmem:[#allocation5 + $0x2270] sm:$0xff] }
 0x25a   :  { %7522 = vmatpush3.bf16.msra.mxu0 %v7521_v54  ;;  %v7571_v50 = vpack.c.bf16 %v1247_v38, %v1246_v34  ;;  %v7603_v54 = vpack.c.bf16 %v1279_v45, %v1278_v39  ;;  %v112_v19 = vld [vmem:[#allocation2 + $0x1cc] sm:$0xff]  ;;  %v1302_v38 = vld [vmem:[#allocation5 + $0x2480] sm:$0xff]  ;;  %v1303_v39 = vld [vmem:[#allocation5 + $0x2488] sm:$0xff] }
 0x25b   :  { %7556 = vmatprep.subr.bf16.mxu0 %v7555_v23  ;;  %v1248_v23 = vld [vmem:[#allocation5 + $0x22d0] sm:$0xff]  ;;  %v1237_v40 = vld [vmem:[#allocation5 + $0x2278] sm:$0xff] }
 0x25c   :  { %7554 = vmatpush3.bf16.msra.mxu1 %v7553_v16  ;;  %v1263_v16 = vld [vmem:[#allocation5 + $0x2348] sm:$0xff]  ;;  %v7575_v58 = vpack.c.bf16 %v1249_v48, %v1248_v23  ;;  %v132_v12 = vld [vmem:[#allocation2 + $0x26a] sm:$0xff]  ;;  %v7619_v23 = vpack.c.bf16 %v1303_v39, %v1302_v38  ;;  %v1342_v38 = vld [vmem:[#allocation5 + $0x25c0] sm:$0xff] }
 0x25d   :  { %7588 = vmatprep.subr.bf16.mxu1 %v7587_v56  ;;  %4576 = vmatmul.mubr.f32.vlgmr.msra.gmra.mrb[32].mxu0 %v2079_v63  ;;  %v7573_v56 = vpack.c.bf16 %v1231_v52, %v1230_v51  ;;  %v7605_v57 = vpack.c.bf16 %v1263_v16, %v1262_v43  ;;  %v1233_v63 = vld [vmem:[#allocation5 + $0x2258] sm:$0xff]  ;;  %v1268_v41 = vld [vmem:[#allocation5 + $0x2370] sm:$0xff]  ;;  %v2122_v52 = vcombine.high %v112_v19, %v132_v12  ;;  %v1287_v48 = vld [vmem:[#allocation5 + $0x2408] sm:$0xff] }
 0x25e   :  { %7558 = vmatpush3.bf16.msra.mxu0 %v7557_v2  ;;  %4715 = vmatprep.mubr.f32.mxu0 %v2116_v60  ;;  %v1265_v2 = vld [vmem:[#allocation5 + $0x2358] sm:$0xff]  ;;  %v7577_v18 = vpack.c.bf16 %v1233_v63, %v1232_v61  ;;  %v1267_v60 = vld [vmem:[#allocation5 + $0x2368] sm:$0xff] }
 0x25f   :  { %4646 = vmatmul.mubr.f32.vlgmr.msra.gmra.mrb[32].mxu1 %v2081_v5  ;;  %7560 = vmatprep.subr.bf16.mxu0 %v7559_v1  ;;  %v1250_v5 = vld [vmem:[#allocation5 + $0x22e0] sm:$0xff]  ;;  %v7609_v6 = vpack.c.bf16 %v1265_v2, %v1264_v59  ;;  %v1269_v34 = vld [vmem:[#allocation5 + $0x2378] sm:$0xff]  ;;  %v2115_v59 = vcombine.low %v8248_v62, %v8251_v4  ;;  %v1320_v62 = vld [vmem:[#allocation5 + $0x2510] sm:$0xff] }
 0x260   :  { %7590 = vmatpush3.bf16.msra.mxu1 %v7589_v11  ;;  %4785 = vmatprep.mubr.f32.mxu1 %v2118_v15  ;;  %v1251_v11 = vld [vmem:[#allocation5 + $0x22e8] sm:$0xff]  ;;  %v1282_v1 = vld [vmem:[#allocation5 + $0x23e0] sm:$0xff]  ;;  %v7617_v16 = vpack.c.bf16 %v1269_v34, %v1268_v41  ;;  %v1337_v2 = vld [vmem:[#allocation5 + $0x2598] sm:$0xff] }
 0x261   :  { %7592 = vmatprep.subr.bf16.mxu1 %v7591_v17  ;;  %v1235_v17 = vld [vmem:[#allocation5 + $0x2268] sm:$0xff]  ;;  %v7579_v7 = vpack.c.bf16 %v1251_v11, %v1250_v5  ;;  %v8282_v11 = vrot.slane %v2122_v52, %v7896_v20  ;;  %v1326_v52 = vld [vmem:[#allocation5 + $0x2540] sm:$0xff] }
 0x262   :  { %7562 = vmatpush3.bf16.msra.mxu0 %v7561_v21  ;;  %v7611_v21 = vpack.c.bf16 %v1283_v24, %v1282_v1  ;;  %v7581_v28 = vpack.c.bf16 %v1235_v17, %v1234_v53  ;;  %v2117_v24 = vcombine.low %v8256_v13, %v8259_v8  ;;  %v1288_v17 = vld [vmem:[#allocation5 + $0x2410] sm:$0xff]  ;;  %v1311_v34 = vld [vmem:[#allocation5 + $0x24c8] sm:$0xff] }
 0x263   :  { %7564 = vmatprep.subr.bf16.mxu0 %v7563_v31  ;;  %v1285_v31 = vld [vmem:[#allocation5 + $0x23f8] sm:$0xff]  ;;  %v1343_v39 = vld [vmem:[#allocation5 + $0x25c8] sm:$0xff] }
 0x264   :  { %7594 = vmatpush3.bf16.msra.mxu1 %v7593_v32  ;;  %v1284_v32 = vld [vmem:[#allocation5 + $0x23f0] sm:$0xff] }
 0x265   :  { %7596 = vmatprep.subr.bf16.mxu1 %v7595_v25  ;;  %v92_v25 = vld [vmem:[#allocation2 + $0x12e] sm:$0xff]  ;;  %v7615_v33 = vpack.c.bf16 %v1285_v31, %v1284_v32  ;;  %v1290_v31 = vld [vmem:[#allocation5 + $0x2420] sm:$0xff] }
 0x266   :  { %7566 = vmatpush3.bf16.msra.mxu0 %v7565_v29  ;;  %v2119_v45 = vcombine.low %v72_v30, %v92_v25  ;;  %v2120_v51 = vcombine.high %v72_v30, %v92_v25  ;;  %v1291_v30 = vld [vmem:[#allocation5 + $0x2428] sm:$0xff] }
 0x267   :  { %7568 = vmatprep.subr.bf16.mxu0 %v7567_v36  ;;  %v7583_v36 = vpack.c.bf16 %v1253_v10, %v1252_v0  ;;  %v1338_v10 = vld [vmem:[#allocation5 + $0x25a0] sm:$0xff]  ;;  %v1323_v25 = vld [vmem:[#allocation5 + $0x2528] sm:$0xff] }
 0x268   :  { %7598 = vmatpush3.bf16.msra.mxu1 %v7597_v35  ;;  %v7613_v35 = vpack.c.bf16 %v1267_v60, %v1266_v14  ;;  %v8271_v61 = vrot.slane %v2119_v45, %v7896_v20  ;;  %v8279_v5 = vrot.slane %v2120_v51, %v7896_v20  ;;  %v1289_v14 = vld [vmem:[#allocation5 + $0x2418] sm:$0xff]  ;;  %v1307_v60 = vld [vmem:[#allocation5 + $0x24a8] sm:$0xff] }
 0x269   :  { %7600 = vmatprep.subr.bf16.mxu1 %v7599_v42  ;;  %v7625_v8 = vpack.c.bf16 %v1289_v14, %v1288_v17  ;;  %v1295_v51 = vld [vmem:[#allocation5 + $0x2448] sm:$0xff]  ;;  %v1346_v17 = vld [vmem:[#allocation5 + $0x25e0] sm:$0xff] }
 0x26a   :  { %7570 = vmatpush3.bf16.msra.mxu0 %v7569_v46  ;;  %v2121_v46 = vcombine.low %v112_v19, %v132_v12  ;;  %v2154_v13 = vcombine.high %v8279_v5, %v8282_v11  ;;  %v1308_v19 = vld [vmem:[#allocation5 + $0x24b0] sm:$0xff]  ;;  %v1309_v12 = vld [vmem:[#allocation5 + $0x24b8] sm:$0xff]  ;;  %v1347_v14 = vld [vmem:[#allocation5 + $0x25e8] sm:$0xff] }
 0x26b   :  { %7572 = vmatprep.subr.bf16.mxu0 %v7571_v50  ;;  %v1335_v50 = vld [vmem:[#allocation5 + $0x2588] sm:$0xff] }
 0x26c   :  { %7602 = vmatpush3.bf16.msra.mxu1 %v7601_v47  ;;  %v1334_v47 = vld [vmem:[#allocation5 + $0x2580] sm:$0xff]  ;;  %v8274_v63 = vrot.slane %v2121_v46, %v7896_v20 }
 0x26d   :  { %7604 = vmatprep.subr.bf16.mxu1 %v7603_v54  ;;  %v7585_v54 = vpack.c.bf16 %v1237_v40, %v1236_v37  ;;  %v7651_v55 = vpack.c.bf16 %v1335_v50, %v1334_v47  ;;  %v1293_v37 = vld [vmem:[#allocation5 + $0x2438] sm:$0xff]  ;;  %v1324_v40 = vld [vmem:[#allocation5 + $0x2530] sm:$0xff]  ;;  %v1294_v50 = vld [vmem:[#allocation5 + $0x2440] sm:$0xff] }
 0x26e   :  { %7574 = vmatpush3.bf16.msra.mxu0 %v7573_v56  ;;  %v1319_v56 = vld [vmem:[#allocation5 + $0x2508] sm:$0xff]  ;;  %v2152_v0 = vcombine.high %v8271_v61, %v8274_v63 }
 0x26f   :  { %7576 = vmatprep.subr.bf16.mxu0 %v7575_v58  ;;  %v1305_v58 = vld [vmem:[#allocation5 + $0x2498] sm:$0xff] }
 0x270   :  { %7606 = vmatpush3.bf16.msra.mxu1 %v7605_v57  ;;  %v5824_v15 = vpop.f32.mrb[20].mxu0  ;;  %v1304_v57 = vld [vmem:[#allocation5 + $0x2490] sm:$0xff] }
 0x271   :  { %7608 = vmatprep.subr.bf16.mxu1 %v7607_v3  ;;  %v5825_v27 = vpop.f32.mrb[21].mxu0  ;;  %v1336_v3 = vld [vmem:[#allocation5 + $0x2590] sm:$0xff]  ;;  %v7623_v53 = vpack.c.bf16 %v1305_v58, %v1304_v57 }
 0x272   :  { %v5859_v26 = vpop.f32.mrb[20].mxu1  ;;  %v5826_v9 = vadd.f32 %v5825_v27, %v5824_v15  ;;  %7578 = vmatpush3.bf16.msra.mxu0 %v7577_v18  ;;  %v7653_v18 = vpack.c.bf16 %v1319_v56, %v1318_v49  ;;  %v7655_v4 = vpack.c.bf16 %v1337_v2, %v1336_v3  ;;  %v1339_v15 = vld [vmem:[#allocation5 + $0x25a8] sm:$0xff]  ;;  %v1322_v27 = vld [vmem:[#allocation5 + $0x2520] sm:$0xff]  ;;  %v1345_v49 = vld [vmem:[#allocation5 + $0x25d8] sm:$0xff] }
 0x273   :  { %v5860_v22 = vpop.f32.mrb[21].mxu1  ;;  %7580 = vmatprep.subr.bf16.mxu0 %v7579_v7  ;;  %v1306_v7 = vld [vmem:[#allocation5 + $0x24a0] sm:$0xff]  ;;  %v1296_v58 = vld [vmem:[#allocation5 + $0x2450] sm:$0xff] }
 0x274   :  { %v5861_v29 = vadd.f32 %v5860_v22, %v5859_v26  ;;  %7610 = vmatpush3.bf16.msra.mxu1 %v7609_v6  ;;  %v3738_v42 = vadd.f32 %v5826_v9, %v8245_v44  ;;  %v1286_v44 = vld [vmem:[#allocation5 + $0x2400] sm:$0xff]  ;;  %v1321_v6 = vld [vmem:[#allocation5 + $0x2518] sm:$0xff]  ;;  %v7627_v32 = vpack.c.bf16 %v1307_v60, %v1306_v7  ;;  %v7659_v26 = vpack.c.bf16 %v1339_v15, %v1338_v10  ;;  %v1340_v9 = vld [vmem:[#allocation5 + $0x25b0] sm:$0xff] }
 0x275   :  { %7612 = vmatprep.subr.bf16.mxu1 %v7611_v21  ;;  %v7621_v1 = vpack.c.bf16 %v1287_v48, %v1286_v44  ;;  %v7657_v21 = vpack.c.bf16 %v1321_v6, %v1320_v62  ;;  %v1341_v22 = vld [vmem:[#allocation5 + $0x25b8] sm:$0xff]  ;;  %v1344_v48 = vld [vmem:[#allocation5 + $0x25d0] sm:$0xff]  ;;  %v1330_v6 = vld [vmem:[#allocation5 + $0x2560] sm:$0xff] }
 0x276   :  { %v8268_v43 = vadd.f32 %v5861_v29, %v3738_v42  ;;  %7582 = vmatpush3.bf16.msra.mxu0 %v7581_v28  ;;  %v7629_v28 = vpack.c.bf16 %v1291_v30, %v1290_v31  ;;  %v7661_v29 = vpack.c.bf16 %v1323_v25, %v1322_v27  ;;  %v7663_v41 = vpack.c.bf16 %v1341_v22, %v1340_v9  ;;  %v1325_v42 = vld [vmem:[#allocation5 + $0x2538] sm:$0xff]  ;;  %v1328_v3 = vld [vmem:[#allocation5 + $0x2550] sm:$0xff]  ;;  %v1331_v7 = vld [vmem:[#allocation5 + $0x2568] sm:$0xff] }
 0x277   :  { %7584 = vmatprep.subr.bf16.mxu0 %v7583_v36  ;;  %v1292_v36 = vld [vmem:[#allocation5 + $0x2430] sm:$0xff]  ;;  %v7665_v46 = vpack.c.bf16 %v1325_v42, %v1324_v40  ;;  %v1313_v44 = vld [vmem:[#allocation5 + $0x24d8] sm:$0xff]  ;;  %v7671_v2 = vpack.c.bf16 %v1345_v49, %v1344_v48  ;;  %v73_v15 = vld [vmem:[#allocation2 + $0x98] sm:$0x3f] }
 0x278   :  { %7614 = vmatpush3.bf16.msra.mxu1 %v7613_v35  ;;  %v7631_v35 = vpack.c.bf16 %v1309_v12, %v1308_v19  ;;  %v7633_v45 = vpack.c.bf16 %v1293_v37, %v1292_v36  ;;  %v1316_v10 = vld [vmem:[#allocation5 + $0x24f0] sm:$0xff]  ;;  %v113_v31 = vld [vmem:[#allocation2 + $0x1d4] sm:$0x3f] }
 0x279   :  { %7616 = vmatprep.subr.bf16.mxu1 %v7615_v33  ;;  %v1310_v33 = vld [vmem:[#allocation5 + $0x24c0] sm:$0xff]  ;;  %v133_v30 = vld [vmem:[#allocation2 + $0x272] sm:$0x3f]  ;;  %v1348_v25 = vld [vmem:[#allocation5 + $0x25f0] sm:$0xff] }
 0x27a   :  { %7586 = vmatpush3.bf16.msra.mxu0 %v7585_v54  ;;  %v7635_v47 = vpack.c.bf16 %v1311_v34, %v1310_v33  ;;  %v7667_v54 = vpack.c.bf16 %v1343_v39, %v1342_v38  ;;  %v1349_v19 = vld [vmem:[#allocation5 + $0x25f8] sm:$0xff]  ;;  %v1332_v36 = vld [vmem:[#allocation5 + $0x2570] sm:$0xff]  ;;  %v1366_v33 = vld [vmem:[#allocation5 + $0x2680] sm:$0xff]  ;;  %v2157_v38 = vcombine.low %v113_v31, %v133_v30  ;;  %v2158_v49 = vcombine.high %v113_v31, %v133_v30 }
 0x27b   :  { %7620 = vmatprep.subr.bf16.mxu0 %v7619_v23  ;;  %v1312_v23 = vld [vmem:[#allocation5 + $0x24d0] sm:$0xff]  ;;  %v1333_v42 = vld [vmem:[#allocation5 + $0x2578] sm:$0xff]  ;;  %v1367_v34 = vld [vmem:[#allocation5 + $0x2688] sm:$0xff] }
 0x27c   :  { %7618 = vmatpush3.bf16.msra.mxu1 %v7617_v16  ;;  %v1327_v16 = vld [vmem:[#allocation5 + $0x2548] sm:$0xff]  ;;  %v7639_v57 = vpack.c.bf16 %v1313_v44, %v1312_v23  ;;  %v1368_v23 = vld [vmem:[#allocation5 + $0x2690] sm:$0xff]  ;;  %v1369_v44 = vld [vmem:[#allocation5 + $0x2698] sm:$0xff] }
 0x27d   :  { %7652 = vmatprep.subr.bf16.mxu1 %v7651_v55  ;;  %4716 = vmatmul.mubr.f32.vlgmr.msra.gmra.mrb[34].mxu0 %v2115_v59  ;;  %v7637_v55 = vpack.c.bf16 %v1295_v51, %v1294_v50  ;;  %v7669_v56 = vpack.c.bf16 %v1327_v16, %v1326_v52  ;;  %v1297_v59 = vld [vmem:[#allocation5 + $0x2458] sm:$0xff]  ;;  %v7681_v50 = vpack.c.bf16 %v1333_v42, %v1332_v36  ;;  %v1350_v52 = vld [vmem:[#allocation5 + $0x2600] sm:$0xff]  ;;  %v1351_v16 = vld [vmem:[#allocation5 + $0x2608] sm:$0xff] }
 0x27e   :  { %7622 = vmatpush3.bf16.msra.mxu0 %v7621_v1  ;;  %4855 = vmatprep.mubr.f32.mxu0 %v2152_v0  ;;  %v1329_v1 = vld [vmem:[#allocation5 + $0x2558] sm:$0xff]  ;;  %v7641_v62 = vpack.c.bf16 %v1297_v59, %v1296_v58  ;;  %v7683_v51 = vpack.c.bf16 %v1367_v34, %v1366_v33  ;;  %v7685_v58 = vpack.c.bf16 %v1351_v16, %v1350_v52  ;;  %v1358_v30 = vld [vmem:[#allocation5 + $0x2640] sm:$0xff]  ;;  %v1380_v42 = vld [vmem:[#allocation5 + $0x26f0] sm:$0xff] }
 0x27f   :  { %4786 = vmatmul.mubr.f32.vlgmr.msra.gmra.mrb[34].mxu1 %v2117_v24  ;;  %7624 = vmatprep.subr.bf16.mxu0 %v7623_v53  ;;  %v1314_v24 = vld [vmem:[#allocation5 + $0x24e0] sm:$0xff]  ;;  %v7673_v60 = vpack.c.bf16 %v1329_v1, %v1328_v3  ;;  %v2153_v59 = vcombine.low %v8279_v5, %v8282_v11  ;;  %v7687_v3 = vpack.c.bf16 %v1369_v44, %v1368_v23  ;;  %v1353_v1 = vld [vmem:[#allocation5 + $0x2618] sm:$0xff]  ;;  %v1364_v52 = vld [vmem:[#allocation5 + $0x2670] sm:$0xff] }
 0x280   :  { %7654 = vmatpush3.bf16.msra.mxu1 %v7653_v18  ;;  %4925 = vmatprep.mubr.f32.mxu1 %v2154_v13  ;;  %v1315_v18 = vld [vmem:[#allocation5 + $0x24e8] sm:$0xff]  ;;  %v1298_v53 = vld [vmem:[#allocation5 + $0x2460] sm:$0xff]  ;;  %v1381_v33 = vld [vmem:[#allocation5 + $0x26f8] sm:$0xff] }
 0x281   :  { %7656 = vmatprep.subr.bf16.mxu1 %v7655_v4  ;;  %v1299_v4 = vld [vmem:[#allocation5 + $0x2468] sm:$0xff]  ;;  %v7643_v0 = vpack.c.bf16 %v1315_v18, %v1314_v24  ;;  %v93_v13 = vld [vmem:[#allocation2 + $0x136] sm:$0x3f]  ;;  %v2186_v18 = vrot.slane %v2158_v49, %v7896_v20 }
 0x282   :  { %7626 = vmatpush3.bf16.msra.mxu0 %v7625_v8  ;;  %v7645_v22 = vpack.c.bf16 %v1299_v4, %v1298_v53  ;;  %v2155_v37 = vcombine.low %v73_v15, %v93_v13  ;;  %v2156_v48 = vcombine.high %v73_v15, %v93_v13  ;;  %v1355_v4 = vld [vmem:[#allocation5 + $0x2628] sm:$0xff]  ;;  %v1356_v15 = vld [vmem:[#allocation5 + $0x2630] sm:$0xff]  ;;  %v1357_v13 = vld [vmem:[#allocation5 + $0x2638] sm:$0xff] }
 0x283   :  { %7628 = vmatprep.subr.bf16.mxu0 %v7627_v32  ;;  %v1317_v32 = vld [vmem:[#allocation5 + $0x24f8] sm:$0xff] }
 0x284   :  { %7658 = vmatpush3.bf16.msra.mxu1 %v7657_v21  ;;  %v7675_v21 = vpack.c.bf16 %v1347_v14, %v1346_v17  ;;  %v2172_v24 = vrot.slane %v2156_v48, %v7896_v20  ;;  %v7834_v17 = vmov 0.0|0.0   ;;  %v1365_v16 = vld [vmem:[#allocation5 + $0x2678] sm:$0xff] }
 0x285   :  { %7660 = vmatprep.subr.bf16.mxu1 %v7659_v26  ;;  %v7713_v48 = vpack.c.bf16 %v1365_v16, %v1364_v52 }
 0x286   :  { %7630 = vmatpush3.bf16.msra.mxu0 %v7629_v28  ;;  %v7677_v28 = vpack.c.bf16 %v1331_v7, %v1330_v6  ;;  %v2189_v6 = vcombine.low %v2172_v24, %v2186_v18  ;;  %v1372_v7 = vld [vmem:[#allocation5 + $0x26b0] sm:$0xff] }
 0x287   :  { %7632 = vmatprep.subr.bf16.mxu0 %v7631_v35  ;;  %v1301_v35 = vld [vmem:[#allocation5 + $0x2478] sm:$0xff] }
 0x288   :  { %7662 = vmatpush3.bf16.msra.mxu1 %v7661_v29  ;;  %v1300_v29 = vld [vmem:[#allocation5 + $0x2470] sm:$0xff] }
 0x289   :  { %7664 = vmatprep.subr.bf16.mxu1 %v7663_v41  ;;  %v7647_v41 = vpack.c.bf16 %v1317_v32, %v1316_v10  ;;  %v7697_v32 = vpack.c.bf16 %v1357_v13, %v1356_v15 }
 0x28a   :  { %7634 = vmatpush3.bf16.msra.mxu0 %v7633_v45  ;;  %v7679_v45 = vpack.c.bf16 %v1349_v19, %v1348_v25  ;;  %v1377_v25 = vld [vmem:[#allocation5 + $0x26d8] sm:$0xff] }
 0x28b   :  { %7636 = vmatprep.subr.bf16.mxu0 %v7635_v47 }
 0x28c   :  { %7666 = vmatpush3.bf16.msra.mxu1 %v7665_v46  ;;  %v7649_v46 = vpack.c.bf16 %v1301_v35, %v1300_v29  ;;  %v1379_v29 = vld [vmem:[#allocation5 + $0x26e8] sm:$0xff] }
 0x28d   :  { %7668 = vmatprep.subr.bf16.mxu1 %v7667_v54  ;;  %v8294_v54 = vrot.slane %v2155_v37, %v7896_v20  ;;  %v1362_v37 = vld [vmem:[#allocation5 + $0x2660] sm:$0xff] }
 0x28e   :  { %7638 = vmatpush3.bf16.msra.mxu0 %v7637_v55  ;;  %v2151_v55 = vcombine.low %v8271_v61, %v8274_v63  ;;  %v1370_v61 = vld [vmem:[#allocation5 + $0x26a0] sm:$0xff]  ;;  %v1371_v63 = vld [vmem:[#allocation5 + $0x26a8] sm:$0xff] }
 0x28f   :  { %7640 = vmatprep.subr.bf16.mxu0 %v7639_v57  ;;  %v1383_v57 = vld [vmem:[#allocation5 + $0x2708] sm:$0xff]  ;;  %v7691_v11 = vpack.c.bf16 %v1371_v63, %v1370_v61 }
 0x290   :  { %7670 = vmatpush3.bf16.msra.mxu1 %v7669_v56  ;;  %v5894_v8 = vpop.f32.mrb[22].mxu0  ;;  %v1382_v56 = vld [vmem:[#allocation5 + $0x2700] sm:$0xff] }
 0x291   :  { %7672 = vmatprep.subr.bf16.mxu1 %v7671_v2  ;;  %v5895_v27 = vpop.f32.mrb[23].mxu0  ;;  %v1352_v2 = vld [vmem:[#allocation5 + $0x2610] sm:$0xff]  ;;  %v7716_v14 = vpack.c.bf16 %v1383_v57, %v1382_v56 }
 0x292   :  { %v5929_v26 = vpop.f32.mrb[22].mxu1  ;;  %v5896_v12 = vadd.f32 %v5895_v27, %v5894_v8  ;;  %7642 = vmatpush3.bf16.msra.mxu0 %v7641_v62  ;;  %v7689_v5 = vpack.c.bf16 %v1353_v1, %v1352_v2  ;;  %v1354_v62 = vld [vmem:[#allocation5 + $0x2620] sm:$0xff]  ;;  %v1359_v27 = vld [vmem:[#allocation5 + $0x2648] sm:$0xff] }
 0x293   :  { %v5930_v9 = vpop.f32.mrb[23].mxu1  ;;  %7644 = vmatprep.subr.bf16.mxu0 %v7643_v0  ;;  %v7693_v0 = vpack.c.bf16 %v1355_v4, %v1354_v62  ;;  %v1374_v8 = vld [vmem:[#allocation5 + $0x26c0] sm:$0xff]  ;;  %v7701_v19 = vpack.c.bf16 %v1359_v27, %v1358_v30 }
 0x294   :  { %v5931_v40 = vadd.f32 %v5930_v9, %v5929_v26  ;;  %7674 = vmatpush3.bf16.msra.mxu1 %v7673_v60  ;;  %v3878_v39 = vadd.f32 %v5896_v12, %v8268_v43  ;;  %v8297_v43 = vrot.slane %v2157_v38, %v7896_v20  ;;  %v1373_v20 = vld [vmem:[#allocation5 + $0x26b8] sm:$0xff]  ;;  %v7836_v60 = vmov 0.0   ;;  %v1376_v26 = vld [vmem:[#allocation5 + $0x26d0] sm:$0xff] }
 0x295   :  { %7676 = vmatprep.subr.bf16.mxu1 %v7675_v21  ;;  %v7695_v10 = vpack.c.bf16 %v1373_v20, %v1372_v7  ;;  %v1375_v21 = vld [vmem:[#allocation5 + $0x26c8] sm:$0xff]  ;;  %v7703_v12 = vpack.c.bf16 %v1377_v25, %v1376_v26  ;;  %v1360_v9 = vld [vmem:[#allocation5 + $0x2650] sm:$0xff] }
 0x296   :  { %v8291_v47 = vadd.f32 %v5931_v40, %v3878_v39  ;;  %7646 = vmatpush3.bf16.msra.mxu0 %v7645_v22  ;;  %v2188_v53 = vcombine.high %v8294_v54, %v8297_v43  ;;  %v7699_v31 = vpack.c.bf16 %v1375_v21, %v1374_v8  ;;  %v1361_v22 = vld [vmem:[#allocation5 + $0x2658] sm:$0xff]  ;;  %v1363_v40 = vld [vmem:[#allocation5 + $0x2668] sm:$0xff]  ;;  %v2187_v49 = vcombine.low %v8294_v54, %v8297_v43 }
 0x297   :  { %7648 = vmatprep.subr.bf16.mxu0 %v7647_v41  ;;  %v7705_v35 = vpack.c.bf16 %v1361_v22, %v1360_v9 }
 0x298   :  { %7678 = vmatpush3.bf16.msra.mxu1 %v7677_v28  ;;  %v1378_v28 = vld [vmem:[#allocation5 + $0x26e0] sm:$0xff] }
 0x299   :  { %7680 = vmatprep.subr.bf16.mxu1 %v7679_v45  ;;  %v7707_v36 = vpack.c.bf16 %v1379_v29, %v1378_v28 }
 0x29a   :  { %7650 = vmatpush3.bf16.msra.mxu0 %v7649_v46  ;;  %v7709_v46 = vpack.c.bf16 %v1363_v40, %v1362_v37 }
 0x29b   :  { %7684 = vmatprep.subr.bf16.mxu0 %v7683_v51  ;;  %v7711_v51 = vpack.c.bf16 %v1381_v33, %v1380_v42 }
 0x29c   :  { %7682 = vmatpush3.bf16.msra.mxu1 %v7681_v50 }
 0x29d   :  { %7715 = vmatprep.subr.bf16.mxu1 %v7834_v17  ;;  %4856 = vmatmul.mubr.f32.vlgmr.msra.gmra.mrb[36].mxu0 %v2151_v55 }
 0x29e   :  { %7686 = vmatpush3.bf16.msra.mxu0 %v7685_v58  ;;  %4995 = vmatprep.mubr.f32.mxu0 %v2188_v53 }
 0x29f   :  { %4926 = vmatmul.mubr.f32.vlgmr.msra.gmra.mrb[36].mxu1 %v2153_v59  ;;  %7688 = vmatprep.subr.bf16.mxu0 %v7687_v3 }
 0x2a0   :  { %7717 = vmatpush3.bf16.msra.mxu1 %v7716_v14  ;;  %6464 = vmatprep.mubr.msk.f32.mxu1 %vm7835_vm0, %v7836_v60 }
 0x2a2   :  { %7690 = vmatpush3.bf16.msra.mxu0 %v7689_v5 }
 0x2a3   :  { %7692 = vmatprep.subr.bf16.mxu0 %v7691_v11  ;;  %6465 = vmatmul.mubr.msk.f32.vlgmr.msra.gmra.mrb[38].mxu1 %vm2268_vm1, %v2189_v6 }
 0x2a6   :  { %7694 = vmatpush3.bf16.msra.mxu0 %v7693_v0 }
 0x2a7   :  { %7696 = vmatprep.subr.bf16.mxu0 %v7695_v10 }
 0x2aa   :  { %7698 = vmatpush3.bf16.msra.mxu0 %v7697_v32 }
 0x2ab   :  { %7700 = vmatprep.subr.bf16.mxu0 %v7699_v31 }
 0x2ae   :  { %7702 = vmatpush3.bf16.msra.mxu0 %v7701_v19 }
 0x2af   :  { %7704 = vmatprep.subr.bf16.mxu0 %v7703_v12 }
 0x2b0   :  { %v5964_v41 = vpop.f32.mrb[24].mxu0 }
 0x2b1   :  { %v5965_v34 = vpop.f32.mrb[25].mxu0 }
 0x2b2   :  { %v5999_v38 = vpop.f32.mrb[24].mxu1  ;;  %v5966_v39 = vadd.f32 %v5965_v34, %v5964_v41  ;;  %7706 = vmatpush3.bf16.msra.mxu0 %v7705_v35 }
 0x2b3   :  { %v6000_v45 = vpop.f32.mrb[25].mxu1  ;;  %7708 = vmatprep.subr.bf16.mxu0 %v7707_v36 }
 0x2b4   :  { %v6001_v50 = vadd.f32 %v6000_v45, %v5999_v38  ;;  %v4018_v23 = vadd.f32 %v5966_v39, %v8291_v47 }
 0x2b6   :  { %v4088_v44 = vadd.f32 %v6001_v50, %v4018_v23  ;;  %7710 = vmatpush3.bf16.msra.mxu0 %v7709_v46 }
 0x2b7   :  { %7712 = vmatprep.subr.bf16.mxu0 %v7711_v51 }
 0x2ba   :  { %7714 = vmatpush3.bf16.msra.mxu0 %v7713_v48 }
 0x2bd   :  { %4996 = vmatmul.mubr.f32.vlgmr.msra.gmra.mrb[38].mxu0 %v2187_v49 }
 0x2d0   :  { %v6034_v55 = vpop.f32.mrb[26].mxu0 }
 0x2d1   :  { %v6035_v56 = vpop.f32.mrb[27].mxu0 }
 0x2d2   :  { %v6069_v57 = vpop.f32.mrb[26].mxu1  ;;  %v6036_v58 = vadd.f32 %v6035_v56, %v6034_v55 }
 0x2d3   :  { %v6070_v59 = vpop.f32.mrb[27].mxu1 }
 0x2d4   :  { %v6071_v3 = vadd.f32 %v6070_v59, %v6069_v57  ;;  %v4158_v2 = vadd.f32 %v6036_v58, %v4088_v44 }
 0x2d6   :  { %v4228_v1 = vadd.f32 %v6071_v3, %v4158_v2 }
 0x2f0   :  { %v6104_v24 = vpop.f32.mrb[28].mxu0 }
 0x2f1   :  { %v6105_v18 = vpop.f32.mrb[29].mxu0 }
 0x2f2   :  { %v6139_v47 = vpop.f32.mrb[28].mxu1  ;;  %v6106_v53 = vadd.f32 %v6105_v18, %v6104_v24 }
 0x2f3   :  { %v6140_v61 = vpop.f32.mrb[29].mxu1 }
 0x2f4   :  { %v6141_v63 = vadd.f32 %v6140_v61, %v6139_v47  ;;  %v4298_v17 = vadd.f32 %v6106_v53, %v4228_v1 }
 0x2f6   :  { %v4368_v14 = vadd.f32 %v6141_v63, %v4298_v17 }
 0x310   :  { %v6174_v5 = vpop.f32.mrb[30].mxu0 }
 0x311   :  { %v6175_v54 = vpop.f32.mrb[31].mxu0 }
 0x312   :  { %v6209_v43 = vpop.f32.mrb[30].mxu1  ;;  %v6176_v11 = vadd.f32 %v6175_v54, %v6174_v5 }
 0x313   :  { %v6210_v62 = vpop.f32.mrb[31].mxu1 }
 0x314   :  { %v6211_v4 = vadd.f32 %v6210_v62, %v6209_v43  ;;  %v4438_v6 = vadd.f32 %v6176_v11, %v4368_v14 }
 0x316   :  { %v4508_v7 = vadd.f32 %v6211_v4, %v4438_v6 }
 0x330   :  { %v6244_v20 = vpop.f32.mrb[32].mxu0 }
 0x331   :  { %v6245_v60 = vpop.f32.mrb[33].mxu0 }
 0x332   :  { %v6279_v0 = vpop.f32.mrb[32].mxu1  ;;  %v6246_v10 = vadd.f32 %v6245_v60, %v6244_v20 }
 0x333   :  { %v6280_v15 = vpop.f32.mrb[33].mxu1 }
 0x334   :  { %v6281_v13 = vadd.f32 %v6280_v15, %v6279_v0  ;;  %v4578_v8 = vadd.f32 %v6246_v10, %v4508_v7 }
 0x336   :  { %v4648_v21 = vadd.f32 %v6281_v13, %v4578_v8 }
 0x350   :  { %v6314_v32 = vpop.f32.mrb[34].mxu0 }
 0x351   :  { %v6315_v31 = vpop.f32.mrb[35].mxu0 }
 0x352   :  { %v6349_v30 = vpop.f32.mrb[34].mxu1  ;;  %v6316_v27 = vadd.f32 %v6315_v31, %v6314_v32 }
 0x353   :  { %v6350_v26 = vpop.f32.mrb[35].mxu1 }
 0x354   :  { %v6351_v25 = vadd.f32 %v6350_v26, %v6349_v30  ;;  %v4718_v19 = vadd.f32 %v6316_v27, %v4648_v21 }
 0x356   :  { %v4788_v12 = vadd.f32 %v6351_v25, %v4718_v19 }
 0x370   :  { %v6384_v9 = vpop.f32.mrb[36].mxu0 }
 0x371   :  { %v6385_v22 = vpop.f32.mrb[37].mxu0 }
 0x372   :  { %v6419_v28 = vpop.f32.mrb[36].mxu1  ;;  %v6386_v29 = vadd.f32 %v6385_v22, %v6384_v9 }
 0x373   :  { %v6420_v35 = vpop.f32.mrb[37].mxu1 }
 0x374   :  { %v6421_v36 = vadd.f32 %v6420_v35, %v6419_v28  ;;  %v4858_v37 = vadd.f32 %v6386_v29, %v4788_v12 }
 0x376   :  { %v4928_v40 = vadd.f32 %v6421_v36, %v4858_v37  ;;  %v5067_v41 = vpop.f32.mrb[38].mxu1 }
 0x377   :  { %v6466_v42 = vpop.f32.mrb[39].mxu1 }
 0x390   :  { %v6454_v33 = vpop.f32.mrb[38].mxu0 }
 0x391   :  { %v6455_v34 = vpop.f32.mrb[39].mxu0 }
 0x392   :  { %v6456_v38 = vadd.f32 %v6455_v34, %v6454_v33 }
 0x394   :  { %v4998_v39 = vadd.f32 %v6456_v38, %v4928_v40 }
 0x396   :  { %v5068_v45 = vadd.f32 %v5067_v41, %v4998_v39 }
 0x398   :  { %5071 = vst [vmem:[#allocation8] sm:$0xff] %v5068_v45 }
 0x399   :  { %5076 = vsyncadd [#allocation4], 96  ;;  %s7837_s2 = smov [#allocation8]  }
 0x39a   :  { %s5077_s25 = sshll.u32 %s7837_s2, 4  ;;  %s5078_s25 = int_to_ptr.vmem [resolvable:$true] %s5077_s25 }
 0x39b   :  { %s7798_s26 = scalar_lea.vmem %s5078_s25, 32  ;;  %s7802_s27 = scalar_lea.vmem %s5078_s25, 128 }
 0x39c   :  { %p7799_p10 = scmp.ne.s32.totalorder %s5078_s25, %s7798_s26  ;;  %p7803_p11 = scmp.lt.s32.totalorder %s5078_s25, %s5078_s25 }
 0x39d   :  { %p7804_p12 = scmp.lt.s32.totalorder %s7802_s27, %s7798_s26 }
 0x39f   :  { %p7805_p13 = por %p7804_p12, %p7803_p11 }
 0x3a1   :  { %p7806_p0 = pnand %p7805_p13, %p7799_p10 }
 0x3a3   :  { %7809 = shalt.err (!%p7806_p0)
}
 0x3a4   :  { %s7810_s30 = scalar_lea.hbm %s8325_s3, 32 }
 0x3a5   :  { %p7811_p1 = scmp.ne.s32.totalorder %s8325_s3, %s7810_s30  ;;  %p7814_p2 = scmp.lt.u32.totalorder %s7810_s30, %s8325_s3 }
 0x3a7   :  { %p7816_p3 = pnand %p7814_p2, %p7811_p1 }
 0x3a9   :  { %7819 = shalt.err (!%p7816_p3)
}
 0x3aa   :  { %s7838_s8 = smov 32   ;;  %s7839_s1 = smov 2  }
 0x3ab   :  { %5083 = dma.vmem_to_hbm [thread:$0]  %s5078_s25, 32, %s8325_s3, [#allocation4], %s7838_s8, %s7838_s8, %s7839_s1  }
 0x3ac   :  { %7824 = dma.done.wait [#allocation4], 128  }
 0x3ad   :  { %7825 = vsyncadd [#allocation4], 4294967168 }
 0x3ae   :  { %5087 = vsyncpa [#allocation3], 1 }
 0x3af   :  { %5088 = vsyncpa [#allocation6], 1 }
 0x3b0   :  { %5089 = vsyncpa [#allocation4], 1 }

// kernel: tpu_custom_call.1
= control target key start
LH: loop header
LB: loop body
LE: loop exit
PB: predicated region body
PF: predicated region fallthrough
CT: control target
= control target key end

     0   :  { %8 = vsyncpa [#allocation3], 0  ;;  %s8322_s0 = inlined_call_operand.hbm [shape: f32[2,10000], index: 0, kind: input, shape index: {}]   ;;  %s8323_s1 = inlined_call_operand.hbm [shape: f32[10000,128], index: 1, kind: input, shape index: {}]   ;;  %s8324_s2 = inlined_call_operand.hbm [shape: f32[1,128], index: 2, kind: input, shape index: {}]   ;;  %s8325_s3 = inlined_call_operand.hbm [shape: f32[2,128], index: 3, kind: output, shape index: {}]  }
   0x1   :  { %9 = vsyncpa [#allocation6], 0 }
   0x2   :  { %10 = vsyncpa [#allocation4], 0 }
   0x3   :  { %15 = vsyncadd [#allocation3], 7584  ;;  %s7826_s12 = smov [#allocation5]   ;;  %s7732_s16 = scalar_lea.hbm %s8323_s1, 160000 }
   0x4   :  { %s28_s13 = sshll.u32 %s7826_s12, 4  ;;  %p7733_p0 = scmp.ne.s32.totalorder %s8323_s1, %s7732_s16  ;;  %s29_s13 = int_to_ptr.vmem [resolvable:$true] %s28_s13 }
   0x5   :  { %p7736_p1 = scmp.lt.u32.totalorder %s7732_s16, %s8323_s1 }
   0x7   :  { %p7738_p2 = pnand %p7736_p1, %p7733_p0 }
   0x9   :  { %7741 = shalt.err (!%p7738_p2)
}
   0xa   :  { %s7742_s21 = scalar_lea.vmem %s29_s13, 160000  ;;  %p7747_p4 = scmp.lt.s32.totalorder %s29_s13, %s29_s13 }
   0xb   :  { %p7743_p3 = scmp.ne.s32.totalorder %s29_s13, %s7742_s21  ;;  %p7748_p5 = scmp.lt.s32.totalorder %s7742_s21, %s7742_s21 }
   0xd   :  { %p7749_p6 = por %p7748_p5, %p7747_p4 }
   0xf   :  { %p7750_p7 = pnand %p7749_p6, %p7743_p3 }
  0x11   :  { %7753 = shalt.err (!%p7750_p7)
}
  0x12   :  { %s7827_s22 = smov 128   ;;  %s7828_s23 = smov 8  }
  0x13   :  { %34 = dma.hbm_to_vmem [thread:$0]  %s8323_s1, 160000, %s29_s13, [#allocation6], %s7827_s22, %s7827_s22, %s7828_s23  }
  0x14   :  { %s7829_s26 = smov [#allocation2]   ;;  %s7754_s30 = scalar_lea.hbm %s8322_s0, 2528 }
  0x15   :  { %s16_s27 = sshll.u32 %s7829_s26, 4  ;;  %p7755_p8 = scmp.ne.s32.totalorder %s8322_s0, %s7754_s30  ;;  %s17_s27 = int_to_ptr.vmem [resolvable:$true] %s16_s27 }
  0x16   :  { %p7758_p9 = scmp.lt.u32.totalorder %s7754_s30, %s8322_s0 }
  0x18   :  { %p7760_p10 = pnand %p7758_p9, %p7755_p8 }
  0x1a   :  { %7763 = shalt.err (!%p7760_p10)
}
  0x1b   :  { %s7764_s8 = scalar_lea.vmem %s17_s27, 2528  ;;  %s7768_s1 = scalar_lea.vmem %s17_s27, 10112 }
  0x1c   :  { %p7765_p11 = scmp.ne.s32.totalorder %s17_s27, %s7764_s8  ;;  %p7769_p12 = scmp.lt.s32.totalorder %s17_s27, %s17_s27 }
  0x1d   :  { %p7770_p13 = scmp.lt.s32.totalorder %s7768_s1, %s7764_s8 }
  0x1f   :  { %p7771_p0 = por %p7770_p13, %p7769_p12 }
  0x21   :  { %p7772_p1 = pnand %p7771_p0, %p7765_p11 }
  0x23   :  { %7775 = shalt.err (!%p7772_p1)
}
  0x24   :  { %s7830_s9 = smov 2528   ;;  %s7831_s10 = smov 158  }
  0x25   :  { %22 = dma.hbm_to_vmem [thread:$0]  %s8322_s0, 2528, %s17_s27, [#allocation3], %s7830_s9, %s7830_s9, %s7831_s10  }
  0x26   :  { %s7832_s13 = smov [#allocation7]   ;;  %s7776_s17 = scalar_lea.hbm %s8324_s2, 16 }
  0x27   :  { %s41_s14 = sshll.u32 %s7832_s13, 4  ;;  %p7777_p2 = scmp.ne.s32.totalorder %s8324_s2, %s7776_s17  ;;  %s42_s14 = int_to_ptr.vmem [resolvable:$true] %s41_s14 }
  0x28   :  { %p7780_p3 = scmp.lt.u32.totalorder %s7776_s17, %s8324_s2 }
  0x2a   :  { %p7782_p4 = pnand %p7780_p3, %p7777_p2 }
  0x2c   :  { %7785 = shalt.err (!%p7782_p4)
}
  0x2d   :  { %s7786_s22 = scalar_lea.vmem %s42_s14, 16  ;;  %s7790_s0 = scalar_lea.vmem %s42_s14, 32 }
  0x2e   :  { %p7787_p5 = scmp.ne.s32.totalorder %s42_s14, %s7786_s22  ;;  %p7791_p6 = scmp.lt.s32.totalorder %s42_s14, %s42_s14 }
  0x2f   :  { %p7792_p7 = scmp.lt.s32.totalorder %s7790_s0, %s7786_s22 }
  0x31   :  { %p7793_p8 = por %p7792_p7, %p7791_p6 }
  0x33   :  { %p7794_p9 = pnand %p7793_p8, %p7787_p5 }
  0x35   :  { %7797 = shalt.err (!%p7794_p9)
}
  0x36   :  { %44 = dma.hbm_to_vmem [thread:$0]  %s8324_s2, 16, %s42_s14, [#allocation6]  }
  0x37   :  { %7820 = dma.done.wait [#allocation3], 10112  }
  0x38   :  { %7821 = vsyncadd [#allocation3], 4294957184 }
  0x39   :  { %7822 = dma.done.wait [#allocation6], 160016  }
  0x3a   :  { %7823 = vsyncadd [#allocation6], 4294807280  ;;  %v150_v0 = vld [vmem:[#allocation5 + $0x80] sm:$0xff]  ;;  %v151_v1 = vld [vmem:[#allocation5 + $0x88] sm:$0xff]  ;;  %v7833_v51 = vmov 1983009808   ;;  %v1478_v53 = vlaneseq }
  0x3b   :  { %v134_v2 = vld [vmem:[#allocation5] sm:$0xff]  ;;  %v6467_v3 = vpack.c.bf16 %v151_v1, %v150_v0  ;;  %v135_v4 = vld [vmem:[#allocation5 + $0x8] sm:$0xff]  ;;  %v152_v11 = vld [vmem:[#allocation5 + $0x90] sm:$0xff]  ;;  %v1476_v52 = vunpack.c.l.s4 %v7833_v51  ;;  %vm7835_vm0 = vmmov 0   ;;  %vm2268_vm1 = vcmask 130048  }
  0x3c   :  { %v182_v5 = vld [vmem:[#allocation5 + $0x180] sm:$0xff]  ;;  %v183_v6 = vld [vmem:[#allocation5 + $0x188] sm:$0xff]  ;;  %v6469_v7 = vpack.c.bf16 %v135_v4, %v134_v2  ;;  %v153_v13 = vld [vmem:[#allocation5 + $0x98] sm:$0xff] }
  0x3d   :  { %v6499_v8 = vpack.c.bf16 %v183_v6, %v182_v5  ;;  %v166_v9 = vld [vmem:[#allocation5 + $0x100] sm:$0xff]  ;;  %v167_v10 = vld [vmem:[#allocation5 + $0x108] sm:$0xff]  ;;  %6468 = vmatprep.subr.bf16.mxu0 %v6467_v3  ;;  %v136_v14 = vld [vmem:[#allocation5 + $0x10] sm:$0xff]  ;;  %v6471_v16 = vpack.c.bf16 %v153_v13, %v152_v11  ;;  %v1477_v4 = vunpack.c.0.s8 %v1476_v52  ;;  %v1479_v5 = vshrl.u32 %v1478_v53, 7 }
  0x3e   :  { %v6501_v12 = vpack.c.bf16 %v167_v10, %v166_v9  ;;  %v137_v15 = vld [vmem:[#allocation5 + $0x18] sm:$0xff]  ;;  %6470 = vmatpush3.bf16.msra.mxu0 %v6469_v7  ;;  %v184_v18 = vld [vmem:[#allocation5 + $0x190] sm:$0xff]  ;;  %v154_v23 = vld [vmem:[#allocation5 + $0xa0] sm:$0xff] }
  0x3f   :  { %6500 = vmatprep.subr.bf16.mxu1 %v6499_v8  ;;  %v6473_v17 = vpack.c.bf16 %v137_v15, %v136_v14  ;;  %v185_v19 = vld [vmem:[#allocation5 + $0x198] sm:$0xff]  ;;  %v168_v20 = vld [vmem:[#allocation5 + $0x110] sm:$0xff]  ;;  %v155_v24 = vld [vmem:[#allocation5 + $0xa8] sm:$0xff]  ;;  %6472 = vmatprep.subr.bf16.mxu0 %v6471_v16 }
  0x40   :  { %6502 = vmatpush3.bf16.msra.mxu1 %v6501_v12  ;;  %v6503_v21 = vpack.c.bf16 %v185_v19, %v184_v18  ;;  %v169_v22 = vld [vmem:[#allocation5 + $0x118] sm:$0xff]  ;;  %v6475_v26 = vpack.c.bf16 %v155_v24, %v154_v23  ;;  %v138_v27 = vld [vmem:[#allocation5 + $0x20] sm:$0xff]  ;;  %v139_v28 = vld [vmem:[#allocation5 + $0x28] sm:$0xff] }
  0x41   :  { %v6505_v25 = vpack.c.bf16 %v169_v22, %v168_v20  ;;  %v186_v29 = vld [vmem:[#allocation5 + $0x1a0] sm:$0xff]  ;;  %v187_v30 = vld [vmem:[#allocation5 + $0x1a8] sm:$0xff]  ;;  %v6477_v33 = vpack.c.bf16 %v139_v28, %v138_v27  ;;  %v156_v35 = vld [vmem:[#allocation5 + $0xb0] sm:$0xff]  ;;  %v7896_v20 = vsub.s32 %v1477_v4, %v1479_v5 }
  0x42   :  { %6504 = vmatprep.subr.bf16.mxu1 %v6503_v21  ;;  %v170_v31 = vld [vmem:[#allocation5 + $0x120] sm:$0xff]  ;;  %v171_v32 = vld [vmem:[#allocation5 + $0x128] sm:$0xff]  ;;  %6474 = vmatpush3.bf16.msra.mxu0 %v6473_v17  ;;  %v6507_v34 = vpack.c.bf16 %v187_v30, %v186_v29  ;;  %v157_v36 = vld [vmem:[#allocation5 + $0xb8] sm:$0xff] }
  0x43   :  { %v140_v37 = vld [vmem:[#allocation5 + $0x30] sm:$0xff]  ;;  %6476 = vmatprep.subr.bf16.mxu0 %v6475_v26  ;;  %v6509_v38 = vpack.c.bf16 %v171_v32, %v170_v31  ;;  %v6479_v39 = vpack.c.bf16 %v157_v36, %v156_v35  ;;  %v141_v40 = vld [vmem:[#allocation5 + $0x38] sm:$0xff]  ;;  %v158_v46 = vld [vmem:[#allocation5 + $0xc0] sm:$0xff] }
  0x44   :  { %6506 = vmatpush3.bf16.msra.mxu1 %v6505_v25  ;;  %v188_v41 = vld [vmem:[#allocation5 + $0x1b0] sm:$0xff]  ;;  %v189_v42 = vld [vmem:[#allocation5 + $0x1b8] sm:$0xff]  ;;  %v159_v47 = vld [vmem:[#allocation5 + $0xc8] sm:$0xff]  ;;  %v6481_v48 = vpack.c.bf16 %v141_v40, %v140_v37 }
  0x45   :  { %6508 = vmatprep.subr.bf16.mxu1 %v6507_v34  ;;  %v6511_v43 = vpack.c.bf16 %v189_v42, %v188_v41  ;;  %v172_v44 = vld [vmem:[#allocation5 + $0x130] sm:$0xff]  ;;  %v173_v45 = vld [vmem:[#allocation5 + $0x138] sm:$0xff]  ;;  %v190_v49 = vld [vmem:[#allocation5 + $0x1c0] sm:$0xff]  ;;  %v6483_v55 = vpack.c.bf16 %v159_v47, %v158_v46 }
  0x46   :  { %6478 = vmatpush3.bf16.msra.mxu0 %v6477_v33  ;;  %v191_v50 = vld [vmem:[#allocation5 + $0x1c8] sm:$0xff]  ;;  %v6513_v54 = vpack.c.bf16 %v173_v45, %v172_v44  ;;  %v142_v56 = vld [vmem:[#allocation5 + $0x40] sm:$0xff]  ;;  %v160_v61 = vld [vmem:[#allocation5 + $0xd0] sm:$0xff] }
  0x47   :  { %6480 = vmatprep.subr.bf16.mxu0 %v6479_v39  ;;  %v143_v57 = vld [vmem:[#allocation5 + $0x48] sm:$0xff]  ;;  %v174_v58 = vld [vmem:[#allocation5 + $0x140] sm:$0xff]  ;;  %v6515_v59 = vpack.c.bf16 %v191_v50, %v190_v49  ;;  %v161_v62 = vld [vmem:[#allocation5 + $0xd8] sm:$0xff] }
  0x48   :  { %6510 = vmatpush3.bf16.msra.mxu1 %v6509_v38  ;;  %v175_v60 = vld [vmem:[#allocation5 + $0x148] sm:$0xff]  ;;  %v192_v63 = vld [vmem:[#allocation5 + $0x1d0] sm:$0xff]  ;;  %v193_v0 = vld [vmem:[#allocation5 + $0x1d8] sm:$0xff]  ;;  %v6485_v1 = vpack.c.bf16 %v143_v57, %v142_v56  ;;  %v6487_v7 = vpack.c.bf16 %v161_v62, %v160_v61 }
  0x49   :  { %6512 = vmatprep.subr.bf16.mxu1 %v6511_v43  ;;  %v144_v2 = vld [vmem:[#allocation5 + $0x50] sm:$0xff]  ;;  %v145_v3 = vld [vmem:[#allocation5 + $0x58] sm:$0xff]  ;;  %v6517_v6 = vpack.c.bf16 %v175_v60, %v174_v58  ;;  %v162_v10 = vld [vmem:[#allocation5 + $0xe0] sm:$0xff]  ;;  %v6519_v11 = vpack.c.bf16 %v193_v0, %v192_v63 }
  0x4a   :  { %6482 = vmatpush3.bf16.msra.mxu0 %v6481_v48  ;;  %v176_v8 = vld [vmem:[#allocation5 + $0x150] sm:$0xff]  ;;  %v177_v9 = vld [vmem:[#allocation5 + $0x158] sm:$0xff]  ;;  %v163_v12 = vld [vmem:[#allocation5 + $0xe8] sm:$0xff]  ;;  %v6489_v16 = vpack.c.bf16 %v145_v3, %v144_v2 }
  0x4b   :  { %6484 = vmatprep.subr.bf16.mxu0 %v6483_v55  ;;  %v194_v13 = vld [vmem:[#allocation5 + $0x1e0] sm:$0xff]  ;;  %v195_v14 = vld [vmem:[#allocation5 + $0x1e8] sm:$0xff]  ;;  %v6521_v21 = vpack.c.bf16 %v177_v9, %v176_v8  ;;  %v6491_v22 = vpack.c.bf16 %v163_v12, %v162_v10  ;;  %v164_v28 = vld [vmem:[#allocation5 + $0xf0] sm:$0xff] }
  0x4c   :  { %6514 = vmatpush3.bf16.msra.mxu1 %v6513_v54  ;;  %v146_v15 = vld [vmem:[#allocation5 + $0x60] sm:$0xff]  ;;  %v147_v17 = vld [vmem:[#allocation5 + $0x68] sm:$0xff]  ;;  %v6523_v23 = vpack.c.bf16 %v195_v14, %v194_v13  ;;  %v165_v29 = vld [vmem:[#allocation5 + $0xf8] sm:$0xff] }
  0x4d   :  { %6516 = vmatprep.subr.bf16.mxu1 %v6515_v59  ;;  %v178_v18 = vld [vmem:[#allocation5 + $0x160] sm:$0xff]  ;;  %v54_v19 = vld [vmem:[#allocation2] sm:$0xff]  ;;  %v196_v34 = vld [vmem:[#allocation5 + $0x1f0] sm:$0xff]  ;;  %v6493_v36 = vpack.c.bf16 %v147_v17, %v146_v15  ;;  %v6495_v41 = vpack.c.bf16 %v165_v29, %v164_v28 }
  0x4e   :  { %6486 = vmatpush3.bf16.msra.mxu0 %v6485_v1  ;;  %v74_v24 = vld [vmem:[#allocation2 + $0x9e] sm:$0xff]  ;;  %v197_v35 = vld [vmem:[#allocation5 + $0x1f8] sm:$0xff]  ;;  %v148_v42 = vld [vmem:[#allocation5 + $0x70] sm:$0xff] }
  0x4f   :  { %6488 = vmatprep.subr.bf16.mxu0 %v6487_v7  ;;  %v94_v25 = vld [vmem:[#allocation2 + $0x13c] sm:$0xff]  ;;  %v1471_v30 = vcombine.low %v54_v19, %v74_v24  ;;  %v1472_v32 = vcombine.high %v54_v19, %v74_v24  ;;  %v149_v43 = vld [vmem:[#allocation5 + $0x78] sm:$0xff]  ;;  %v180_v44 = vld [vmem:[#allocation5 + $0x170] sm:$0xff]  ;;  %v6527_v46 = vpack.c.bf16 %v197_v35, %v196_v34 }
  0x50   :  { %6518 = vmatpush3.bf16.msra.mxu1 %v6517_v6  ;;  %v114_v26 = vld [vmem:[#allocation2 + $0x1da] sm:$0xff]  ;;  %v181_v48 = vld [vmem:[#allocation5 + $0x178] sm:$0xff]  ;;  %v6497_v54 = vpack.c.bf16 %v149_v43, %v148_v42  ;;  %v216_v62 = vld [vmem:[#allocation5 + $0x290] sm:$0xff] }
  0x51   :  { %6520 = vmatprep.subr.bf16.mxu1 %v6519_v11  ;;  %v179_v27 = vld [vmem:[#allocation5 + $0x168] sm:$0xff]  ;;  %v1473_v31 = vcombine.low %v94_v25, %v114_v26  ;;  %v1474_v33 = vcombine.high %v94_v25, %v114_v26  ;;  %v1481_v37 = vrot.slane %v1471_v30, %v7896_v20  ;;  %v1488_v39 = vrot.slane %v1472_v32, %v7896_v20  ;;  %v214_v49 = vld [vmem:[#allocation5 + $0x280] sm:$0xff]  ;;  %v217_v63 = vld [vmem:[#allocation5 + $0x298] sm:$0xff] }
  0x52   :  { %6490 = vmatpush3.bf16.msra.mxu0 %v6489_v16  ;;  %v6525_v40 = vpack.c.bf16 %v179_v27, %v178_v18  ;;  %v215_v50 = vld [vmem:[#allocation5 + $0x288] sm:$0xff]  ;;  %v246_v52 = vld [vmem:[#allocation5 + $0x380] sm:$0xff]  ;;  %v6529_v55 = vpack.c.bf16 %v181_v48, %v180_v44  ;;  %v248_v1 = vld [vmem:[#allocation5 + $0x390] sm:$0xff]  ;;  %v6535_v6 = vpack.c.bf16 %v217_v63, %v216_v62 }
  0x53   :  { %v1495_v38 = vrot.slane %v1473_v31, %v7896_v20  ;;  %6492 = vmatprep.subr.bf16.mxu0 %v6491_v22  ;;  %v1502_v45 = vrot.slane %v1474_v33, %v7896_v20  ;;  %v247_v53 = vld [vmem:[#allocation5 + $0x388] sm:$0xff]  ;;  %v6531_v56 = vpack.c.bf16 %v215_v50, %v214_v49  ;;  %v198_v57 = vld [vmem:[#allocation5 + $0x200] sm:$0xff]  ;;  %v249_v2 = vld [vmem:[#allocation5 + $0x398] sm:$0xff] }
  0x54   :  { %6522 = vmatpush3.bf16.msra.mxu1 %v6521_v21  ;;  %v199_v58 = vld [vmem:[#allocation5 + $0x208] sm:$0xff]  ;;  %v230_v59 = vld [vmem:[#allocation5 + $0x300] sm:$0xff]  ;;  %v6563_v60 = vpack.c.bf16 %v247_v53, %v246_v52  ;;  %v200_v7 = vld [vmem:[#allocation5 + $0x210] sm:$0xff]  ;;  %v6567_v10 = vpack.c.bf16 %v249_v2, %v248_v1 }
  0x55   :  { %6524 = vmatprep.subr.bf16.mxu1 %v6523_v23  ;;  %v1504_v47 = vcombine.high %v1481_v37, %v1495_v38  ;;  %v1506_v51 = vcombine.high %v1488_v39, %v1502_v45  ;;  %v231_v61 = vld [vmem:[#allocation5 + $0x308] sm:$0xff]  ;;  %v1503_v0 = vcombine.low %v1481_v37, %v1495_v38  ;;  %v6533_v3 = vpack.c.bf16 %v199_v58, %v198_v57  ;;  %v201_v8 = vld [vmem:[#allocation5 + $0x218] sm:$0xff]  ;;  %v232_v9 = vld [vmem:[#allocation5 + $0x310] sm:$0xff] }
  0x56   :  { %6494 = vmatpush3.bf16.msra.mxu0 %v6493_v36  ;;  %v1505_v4 = vcombine.low %v1488_v39, %v1502_v45  ;;  %v6565_v5 = vpack.c.bf16 %v231_v61, %v230_v59  ;;  %v233_v11 = vld [vmem:[#allocation5 + $0x318] sm:$0xff]  ;;  %v218_v12 = vld [vmem:[#allocation5 + $0x2a0] sm:$0xff]  ;;  %v219_v13 = vld [vmem:[#allocation5 + $0x2a8] sm:$0xff]  ;;  %v6537_v16 = vpack.c.bf16 %v201_v8, %v200_v7 }
  0x57   :  { %2335 = vmatprep.mubr.f32.mxu0 %v1504_v47  ;;  %6496 = vmatprep.subr.bf16.mxu0 %v6495_v41  ;;  %v250_v14 = vld [vmem:[#allocation5 + $0x3a0] sm:$0xff]  ;;  %v251_v15 = vld [vmem:[#allocation5 + $0x3a8] sm:$0xff]  ;;  %v6569_v17 = vpack.c.bf16 %v233_v11, %v232_v9  ;;  %v6539_v18 = vpack.c.bf16 %v219_v13, %v218_v12  ;;  %v220_v25 = vld [vmem:[#allocation5 + $0x2b0] sm:$0xff] }
  0x58   :  { %6526 = vmatpush3.bf16.msra.mxu1 %v6525_v40  ;;  %2405 = vmatprep.mubr.f32.mxu1 %v1506_v51  ;;  %v202_v19 = vld [vmem:[#allocation5 + $0x220] sm:$0xff]  ;;  %v203_v21 = vld [vmem:[#allocation5 + $0x228] sm:$0xff]  ;;  %v6571_v23 = vpack.c.bf16 %v251_v15, %v250_v14  ;;  %v221_v26 = vld [vmem:[#allocation5 + $0x2b8] sm:$0xff] }
  0x59   :  { %6528 = vmatprep.subr.bf16.mxu1 %v6527_v46  ;;  %v234_v22 = vld [vmem:[#allocation5 + $0x320] sm:$0xff]  ;;  %v235_v24 = vld [vmem:[#allocation5 + $0x328] sm:$0xff]  ;;  %v252_v27 = vld [vmem:[#allocation5 + $0x3b0] sm:$0xff]  ;;  %v6541_v29 = vpack.c.bf16 %v203_v21, %v202_v19  ;;  %v6543_v32 = vpack.c.bf16 %v221_v26, %v220_v25 }
  0x5a   :  { %6498 = vmatpush3.bf16.msra.mxu0 %v6497_v54  ;;  %v253_v28 = vld [vmem:[#allocation5 + $0x3b8] sm:$0xff]  ;;  %v204_v30 = vld [vmem:[#allocation5 + $0x230] sm:$0xff]  ;;  %v6573_v31 = vpack.c.bf16 %v235_v24, %v234_v22  ;;  %v222_v37 = vld [vmem:[#allocation5 + $0x2c0] sm:$0xff] }
  0x5b   :  { %6532 = vmatprep.subr.bf16.mxu0 %v6531_v56  ;;  %v205_v33 = vld [vmem:[#allocation5 + $0x238] sm:$0xff]  ;;  %v236_v34 = vld [vmem:[#allocation5 + $0x330] sm:$0xff]  ;;  %v6575_v36 = vpack.c.bf16 %v253_v28, %v252_v27  ;;  %v223_v38 = vld [vmem:[#allocation5 + $0x2c8] sm:$0xff] }
  0x5c   :  { %6530 = vmatpush3.bf16.msra.mxu1 %v6529_v55  ;;  %v237_v35 = vld [vmem:[#allocation5 + $0x338] sm:$0xff]  ;;  %v254_v39 = vld [vmem:[#allocation5 + $0x3c0] sm:$0xff]  ;;  %v255_v40 = vld [vmem:[#allocation5 + $0x3c8] sm:$0xff]  ;;  %v6545_v43 = vpack.c.bf16 %v205_v33, %v204_v30  ;;  %v6547_v50 = vpack.c.bf16 %v223_v38, %v222_v37 }
  0x5d   :  { %6564 = vmatprep.subr.bf16.mxu1 %v6563_v60  ;;  %2336 = vmatmul.mubr.f32.vlgmr.msra.gmra.mrb[0].mxu0 %v1503_v0  ;;  %v55_v41 = vld [vmem:[#allocation2 + $0x8] sm:$0xff]  ;;  %v6577_v44 = vpack.c.bf16 %v237_v35, %v236_v34  ;;  %v206_v45 = vld [vmem:[#allocation5 + $0x240] sm:$0xff]  ;;  %v207_v51 = vld [vmem:[#allocation5 + $0x248] sm:$0xff]  ;;  %v6579_v56 = vpack.c.bf16 %v255_v40, %v254_v39 }
  0x5e   :  { %6534 = vmatpush3.bf16.msra.mxu0 %v6533_v3  ;;  %v75_v42 = vld [vmem:[#allocation2 + $0xa6] sm:$0xff]  ;;  %v238_v52 = vld [vmem:[#allocation5 + $0x340] sm:$0xff]  ;;  %v225_v58 = vld [vmem:[#allocation5 + $0x2d8] sm:$0xff]  ;;  %v6549_v1 = vpack.c.bf16 %v207_v51, %v206_v45 }
  0x5f   :  { %2406 = vmatmul.mubr.f32.vlgmr.msra.gmra.mrb[0].mxu1 %v1505_v4  ;;  %6536 = vmatprep.subr.bf16.mxu0 %v6535_v6  ;;  %v95_v46 = vld [vmem:[#allocation2 + $0x144] sm:$0xff]  ;;  %v1507_v48 = vcombine.low %v55_v41, %v75_v42  ;;  %v1508_v49 = vcombine.high %v55_v41, %v75_v42  ;;  %v257_v62 = vld [vmem:[#allocation5 + $0x3d8] sm:$0xff]  ;;  %v226_v11 = vld [vmem:[#allocation5 + $0x2e0] sm:$0xff] }
  0x60   :  { %6566 = vmatpush3.bf16.msra.mxu1 %v6565_v5  ;;  %v115_v47 = vld [vmem:[#allocation2 + $0x1e2] sm:$0xff]  ;;  %v209_v5 = vld [vmem:[#allocation5 + $0x258] sm:$0xff]  ;;  %v258_v13 = vld [vmem:[#allocation5 + $0x3e0] sm:$0xff] }
  0x61   :  { %6568 = vmatprep.subr.bf16.mxu1 %v6567_v10  ;;  %v239_v53 = vld [vmem:[#allocation5 + $0x348] sm:$0xff]  ;;  %v1509_v54 = vcombine.low %v95_v46, %v115_v47  ;;  %v1510_v55 = vcombine.high %v95_v46, %v115_v47  ;;  %v224_v57 = vld [vmem:[#allocation5 + $0x2d0] sm:$0xff]  ;;  %v7903_v59 = vrot.slane %v1507_v48, %v7896_v20  ;;  %v7906_v60 = vrot.slane %v1508_v49, %v7896_v20  ;;  %v241_v10 = vld [vmem:[#allocation5 + $0x358] sm:$0xff] }
  0x62   :  { %6538 = vmatpush3.bf16.msra.mxu0 %v6537_v16  ;;  %v256_v61 = vld [vmem:[#allocation5 + $0x3d0] sm:$0xff]  ;;  %v6581_v2 = vpack.c.bf16 %v239_v53, %v238_v52  ;;  %v6551_v3 = vpack.c.bf16 %v225_v58, %v224_v57  ;;  %v227_v12 = vld [vmem:[#allocation5 + $0x2e8] sm:$0xff]  ;;  %v242_v21 = vld [vmem:[#allocation5 + $0x360] sm:$0xff] }
  0x63   :  { %6540 = vmatprep.subr.bf16.mxu0 %v6539_v18  ;;  %v7909_v63 = vrot.slane %v1509_v54, %v7896_v20  ;;  %v7912_v0 = vrot.slane %v1510_v55, %v7896_v20  ;;  %v208_v4 = vld [vmem:[#allocation5 + $0x250] sm:$0xff]  ;;  %v6583_v9 = vpack.c.bf16 %v257_v62, %v256_v61  ;;  %v259_v14 = vld [vmem:[#allocation5 + $0x3e8] sm:$0xff]  ;;  %v210_v18 = vld [vmem:[#allocation5 + $0x260] sm:$0xff] }
  0x64   :  { %6570 = vmatpush3.bf16.msra.mxu1 %v6569_v17  ;;  %v240_v6 = vld [vmem:[#allocation5 + $0x350] sm:$0xff]  ;;  %v6553_v15 = vpack.c.bf16 %v209_v5, %v208_v4  ;;  %v6555_v17 = vpack.c.bf16 %v227_v12, %v226_v11  ;;  %v211_v19 = vld [vmem:[#allocation5 + $0x268] sm:$0xff]  ;;  %v6587_v22 = vpack.c.bf16 %v259_v14, %v258_v13  ;;  %v229_v25 = vld [vmem:[#allocation5 + $0x2f8] sm:$0xff] }
  0x65   :  { %6572 = vmatprep.subr.bf16.mxu1 %v6571_v23  ;;  %v1540_v7 = vcombine.high %v7903_v59, %v7909_v63  ;;  %v1542_v8 = vcombine.high %v7906_v60, %v7912_v0  ;;  %v6585_v16 = vpack.c.bf16 %v241_v10, %v240_v6  ;;  %v243_v23 = vld [vmem:[#allocation5 + $0x368] sm:$0xff]  ;;  %v228_v24 = vld [vmem:[#allocation5 + $0x2f0] sm:$0xff]  ;;  %v261_v27 = vld [vmem:[#allocation5 + $0x3f8] sm:$0xff]  ;;  %v6557_v28 = vpack.c.bf16 %v211_v19, %v210_v18 }
  0x66   :  { %6542 = vmatpush3.bf16.msra.mxu0 %v6541_v29  ;;  %v260_v26 = vld [vmem:[#allocation5 + $0x3f0] sm:$0xff]  ;;  %v6589_v29 = vpack.c.bf16 %v243_v23, %v242_v21  ;;  %v6559_v30 = vpack.c.bf16 %v229_v25, %v228_v24  ;;  %v245_v35 = vld [vmem:[#allocation5 + $0x378] sm:$0xff]  ;;  %v279_v37 = vld [vmem:[#allocation5 + $0x488] sm:$0xff]  ;;  %v1541_v54 = vcombine.low %v7906_v60, %v7912_v0 }
  0x67   :  { %6544 = vmatprep.subr.bf16.mxu0 %v6543_v32  ;;  %2475 = vmatprep.mubr.f32.mxu0 %v1540_v7  ;;  %v213_v32 = vld [vmem:[#allocation5 + $0x278] sm:$0xff]  ;;  %v244_v33 = vld [vmem:[#allocation5 + $0x370] sm:$0xff]  ;;  %v6591_v34 = vpack.c.bf16 %v261_v27, %v260_v26  ;;  %v310_v38 = vld [vmem:[#allocation5 + $0x580] sm:$0xff] }
  0x68   :  { %6574 = vmatpush3.bf16.msra.mxu1 %v6573_v31  ;;  %2545 = vmatprep.mubr.f32.mxu1 %v1542_v8  ;;  %v212_v31 = vld [vmem:[#allocation5 + $0x270] sm:$0xff]  ;;  %v311_v39 = vld [vmem:[#allocation5 + $0x588] sm:$0xff]  ;;  %v6593_v41 = vpack.c.bf16 %v245_v35, %v244_v33  ;;  %v294_v45 = vld [vmem:[#allocation5 + $0x500] sm:$0xff] }
  0x69   :  { %6576 = vmatprep.subr.bf16.mxu1 %v6575_v36  ;;  %v278_v36 = vld [vmem:[#allocation5 + $0x480] sm:$0xff]  ;;  %v6561_v40 = vpack.c.bf16 %v213_v32, %v212_v31  ;;  %v6627_v46 = vpack.c.bf16 %v311_v39, %v310_v38  ;;  %v295_v47 = vld [vmem:[#allocation5 + $0x508] sm:$0xff]  ;;  %v280_v48 = vld [vmem:[#allocation5 + $0x490] sm:$0xff] }
  0x6a   :  { %6546 = vmatpush3.bf16.msra.mxu0 %v6545_v43  ;;  %v6595_v42 = vpack.c.bf16 %v279_v37, %v278_v36  ;;  %v262_v43 = vld [vmem:[#allocation5 + $0x400] sm:$0xff]  ;;  %v281_v49 = vld [vmem:[#allocation5 + $0x498] sm:$0xff]  ;;  %v312_v51 = vld [vmem:[#allocation5 + $0x590] sm:$0xff]  ;;  %v6629_v58 = vpack.c.bf16 %v295_v47, %v294_v45 }
  0x6b   :  { %6548 = vmatprep.subr.bf16.mxu0 %v6547_v50  ;;  %v1539_v50 = vcombine.low %v7903_v59, %v7909_v63  ;;  %v313_v52 = vld [vmem:[#allocation5 + $0x598] sm:$0xff]  ;;  %v264_v55 = vld [vmem:[#allocation5 + $0x410] sm:$0xff]  ;;  %v6599_v61 = vpack.c.bf16 %v281_v49, %v280_v48  ;;  %v314_v6 = vld [vmem:[#allocation5 + $0x5a0] sm:$0xff] }
  0x6c   :  { %6578 = vmatpush3.bf16.msra.mxu1 %v6577_v44  ;;  %v263_v44 = vld [vmem:[#allocation5 + $0x408] sm:$0xff]  ;;  %v296_v57 = vld [vmem:[#allocation5 + $0x510] sm:$0xff]  ;;  %v297_v62 = vld [vmem:[#allocation5 + $0x518] sm:$0xff] }
  0x6d   :  { %6580 = vmatprep.subr.bf16.mxu1 %v6579_v56  ;;  %v6597_v53 = vpack.c.bf16 %v263_v44, %v262_v43  ;;  %v265_v56 = vld [vmem:[#allocation5 + $0x418] sm:$0xff]  ;;  %v315_v7 = vld [vmem:[#allocation5 + $0x5a8] sm:$0xff]  ;;  %v266_v13 = vld [vmem:[#allocation5 + $0x420] sm:$0xff] }
  0x6e   :  { %6550 = vmatpush3.bf16.msra.mxu0 %v6549_v1  ;;  %v282_v1 = vld [vmem:[#allocation5 + $0x4a0] sm:$0xff]  ;;  %v56_v59 = vld [vmem:[#allocation2 + $0x10] sm:$0xff]  ;;  %v6601_v5 = vpack.c.bf16 %v265_v56, %v264_v55  ;;  %v267_v14 = vld [vmem:[#allocation5 + $0x428] sm:$0xff]  ;;  %v6635_v18 = vpack.c.bf16 %v315_v7, %v314_v6 }
  0x6f   :  { %6552 = vmatprep.subr.bf16.mxu0 %v6551_v3  ;;  %v6631_v3 = vpack.c.bf16 %v313_v52, %v312_v51  ;;  %v76_v63 = vld [vmem:[#allocation2 + $0xae] sm:$0xff]  ;;  %v299_v19 = vld [vmem:[#allocation5 + $0x528] sm:$0xff]  ;;  %v6605_v27 = vpack.c.bf16 %v267_v14, %v266_v13  ;;  %v286_v37 = vld [vmem:[#allocation5 + $0x4c0] sm:$0xff] }
  0x70   :  { %6582 = vmatpush3.bf16.msra.mxu1 %v6581_v2  ;;  %v283_v2 = vld [vmem:[#allocation5 + $0x4a8] sm:$0xff]  ;;  %v96_v4 = vld [vmem:[#allocation2 + $0x14c] sm:$0xff]  ;;  %v1543_v0 = vcombine.low %v56_v59, %v76_v63  ;;  %v1544_v8 = vcombine.high %v56_v59, %v76_v63  ;;  %v318_v39 = vld [vmem:[#allocation5 + $0x5c0] sm:$0xff] }
  0x71   :  { %6584 = vmatprep.subr.bf16.mxu1 %v6583_v9  ;;  %v116_v60 = vld [vmem:[#allocation2 + $0x1ea] sm:$0xff]  ;;  %v6633_v9 = vpack.c.bf16 %v297_v62, %v296_v57  ;;  %v6603_v12 = vpack.c.bf16 %v283_v2, %v282_v1  ;;  %v287_v38 = vld [vmem:[#allocation5 + $0x4c8] sm:$0xff]  ;;  %v270_v44 = vld [vmem:[#allocation5 + $0x440] sm:$0xff] }
  0x72   :  { %6554 = vmatpush3.bf16.msra.mxu0 %v6553_v15  ;;  %v1545_v10 = vcombine.low %v96_v4, %v116_v60  ;;  %v1546_v11 = vcombine.high %v96_v4, %v116_v60  ;;  %v298_v15 = vld [vmem:[#allocation5 + $0x520] sm:$0xff]  ;;  %v284_v21 = vld [vmem:[#allocation5 + $0x4b0] sm:$0xff]  ;;  %v317_v26 = vld [vmem:[#allocation5 + $0x5b8] sm:$0xff]  ;;  %v6611_v43 = vpack.c.bf16 %v287_v38, %v286_v37 }
  0x73   :  { %6556 = vmatprep.subr.bf16.mxu0 %v6555_v17  ;;  %v7926_v17 = vrot.slane %v1544_v8, %v7896_v20  ;;  %v316_v25 = vld [vmem:[#allocation5 + $0x5b0] sm:$0xff]  ;;  %v269_v33 = vld [vmem:[#allocation5 + $0x438] sm:$0xff]  ;;  %v271_v45 = vld [vmem:[#allocation5 + $0x448] sm:$0xff] }
  0x74   :  { %6586 = vmatpush3.bf16.msra.mxu1 %v6585_v16  ;;  %v7923_v16 = vrot.slane %v1543_v0, %v7896_v20  ;;  %v7929_v23 = vrot.slane %v1545_v10, %v7896_v20  ;;  %v7932_v24 = vrot.slane %v1546_v11, %v7896_v20  ;;  %v268_v32 = vld [vmem:[#allocation5 + $0x430] sm:$0xff]  ;;  %v6639_v35 = vpack.c.bf16 %v317_v26, %v316_v25  ;;  %v301_v36 = vld [vmem:[#allocation5 + $0x538] sm:$0xff]  ;;  %v303_v48 = vld [vmem:[#allocation5 + $0x548] sm:$0xff] }
  0x75   :  { %6588 = vmatprep.subr.bf16.mxu1 %v6587_v22  ;;  %v285_v22 = vld [vmem:[#allocation5 + $0x4b8] sm:$0xff]  ;;  %v288_v49 = vld [vmem:[#allocation5 + $0x4d0] sm:$0xff]  ;;  %v290_v1 = vld [vmem:[#allocation5 + $0x4e0] sm:$0xff] }
  0x76   :  { %6558 = vmatpush3.bf16.msra.mxu0 %v6557_v28  ;;  %v1576_v28 = vcombine.high %v7923_v16, %v7929_v23  ;;  %v6607_v31 = vpack.c.bf16 %v285_v22, %v284_v21  ;;  %v320_v51 = vld [vmem:[#allocation5 + $0x5d0] sm:$0xff]  ;;  %v321_v52 = vld [vmem:[#allocation5 + $0x5d8] sm:$0xff]  ;;  %v291_v2 = vld [vmem:[#allocation5 + $0x4e8] sm:$0xff] }
  0x77   :  { %6560 = vmatprep.subr.bf16.mxu0 %v6559_v30  ;;  %v6637_v30 = vpack.c.bf16 %v299_v19, %v298_v15  ;;  %v272_v56 = vld [vmem:[#allocation5 + $0x450] sm:$0xff]  ;;  %v273_v57 = vld [vmem:[#allocation5 + $0x458] sm:$0xff]  ;;  %v323_v59 = vld [vmem:[#allocation5 + $0x5e8] sm:$0xff] }
  0x78   :  { %6590 = vmatpush3.bf16.msra.mxu1 %v6589_v29  ;;  %v1578_v29 = vcombine.high %v7926_v17, %v7932_v24  ;;  %v305_v62 = vld [vmem:[#allocation5 + $0x558] sm:$0xff]  ;;  %v6617_v63 = vpack.c.bf16 %v273_v57, %v272_v56  ;;  %v274_v6 = vld [vmem:[#allocation5 + $0x460] sm:$0xff]  ;;  %v275_v7 = vld [vmem:[#allocation5 + $0x468] sm:$0xff]  ;;  %v1577_v56 = vcombine.low %v7926_v17, %v7932_v24 }
  0x79   :  { %6592 = vmatprep.subr.bf16.mxu1 %v6591_v34  ;;  %v300_v34 = vld [vmem:[#allocation5 + $0x530] sm:$0xff]  ;;  %v306_v60 = vld [vmem:[#allocation5 + $0x560] sm:$0xff]  ;;  %v307_v8 = vld [vmem:[#allocation5 + $0x568] sm:$0xff]  ;;  %v6621_v14 = vpack.c.bf16 %v275_v7, %v274_v6 }
  0x7a   :  { %6562 = vmatpush3.bf16.msra.mxu0 %v6561_v40  ;;  %v319_v40 = vld [vmem:[#allocation5 + $0x5c8] sm:$0xff]  ;;  %v293_v10 = vld [vmem:[#allocation5 + $0x4f8] sm:$0xff]  ;;  %v276_v11 = vld [vmem:[#allocation5 + $0x470] sm:$0xff]  ;;  %v6653_v21 = vpack.c.bf16 %v307_v8, %v306_v60 }
  0x7b   :  { %6596 = vmatprep.subr.bf16.mxu0 %v6595_v42  ;;  %v6641_v42 = vpack.c.bf16 %v301_v36, %v300_v34  ;;  %v6643_v47 = vpack.c.bf16 %v319_v40, %v318_v39  ;;  %v325_v13 = vld [vmem:[#allocation5 + $0x5f8] sm:$0xff]  ;;  %v57_v19 = vld [vmem:[#allocation2 + $0x18] sm:$0xff]  ;;  %v331_v60 = vld [vmem:[#allocation5 + $0x628] sm:$0xff] }
  0x7c   :  { %6594 = vmatpush3.bf16.msra.mxu1 %v6593_v41  ;;  %v6609_v41 = vpack.c.bf16 %v269_v33, %v268_v32  ;;  %v277_v15 = vld [vmem:[#allocation5 + $0x478] sm:$0xff]  ;;  %v374_v34 = vld [vmem:[#allocation5 + $0x780] sm:$0xff] }
  0x7d   :  { %6628 = vmatprep.subr.bf16.mxu1 %v6627_v46  ;;  %2476 = vmatmul.mubr.f32.vlgmr.msra.gmra.mrb[2].mxu0 %v1539_v50  ;;  %v302_v46 = vld [vmem:[#allocation5 + $0x540] sm:$0xff]  ;;  %v289_v50 = vld [vmem:[#allocation5 + $0x4d8] sm:$0xff]  ;;  %v6625_v38 = vpack.c.bf16 %v277_v15, %v276_v11 }
  0x7e   :  { %6598 = vmatpush3.bf16.msra.mxu0 %v6597_v53  ;;  %2615 = vmatprep.mubr.f32.mxu0 %v1576_v28  ;;  %v6613_v53 = vpack.c.bf16 %v271_v45, %v270_v44  ;;  %v6615_v55 = vpack.c.bf16 %v289_v50, %v288_v49  ;;  %v77_v25 = vld [vmem:[#allocation2 + $0xb6] sm:$0xff]  ;;  %v359_v45 = vld [vmem:[#allocation5 + $0x708] sm:$0xff]  ;;  %v1575_v50 = vcombine.low %v7923_v16, %v7929_v23  ;;  %v360_v16 = vld [vmem:[#allocation5 + $0x710] sm:$0xff] }
  0x7f   :  { %2546 = vmatmul.mubr.f32.vlgmr.msra.gmra.mrb[2].mxu1 %v1541_v54  ;;  %6600 = vmatprep.subr.bf16.mxu0 %v6599_v61  ;;  %v6645_v54 = vpack.c.bf16 %v303_v48, %v302_v46  ;;  %v6647_v61 = vpack.c.bf16 %v321_v52, %v320_v51  ;;  %v97_v26 = vld [vmem:[#allocation2 + $0x154] sm:$0xff]  ;;  %v1579_v32 = vcombine.low %v57_v19, %v77_v25  ;;  %v344_v46 = vld [vmem:[#allocation5 + $0x690] sm:$0xff] }
  0x80   :  { %6630 = vmatpush3.bf16.msra.mxu1 %v6629_v58  ;;  %2685 = vmatprep.mubr.f32.mxu1 %v1578_v29  ;;  %v304_v58 = vld [vmem:[#allocation5 + $0x550] sm:$0xff]  ;;  %v309_v29 = vld [vmem:[#allocation5 + $0x578] sm:$0xff]  ;;  %v1580_v36 = vcombine.high %v57_v19, %v77_v25  ;;  %v330_v7 = vld [vmem:[#allocation5 + $0x620] sm:$0xff] }
  0x81   :  { %6632 = vmatprep.subr.bf16.mxu1 %v6631_v3  ;;  %v322_v3 = vld [vmem:[#allocation5 + $0x5e0] sm:$0xff]  ;;  %v6649_v4 = vpack.c.bf16 %v305_v62, %v304_v58  ;;  %v7939_v48 = vrot.slane %v1579_v32, %v7896_v20  ;;  %v376_v51 = vld [vmem:[#allocation5 + $0x790] sm:$0xff]  ;;  %v377_v52 = vld [vmem:[#allocation5 + $0x798] sm:$0xff] }
  0x82   :  { %6602 = vmatpush3.bf16.msra.mxu0 %v6601_v5  ;;  %v6619_v5 = vpack.c.bf16 %v291_v2, %v290_v1  ;;  %v6651_v0 = vpack.c.bf16 %v323_v59, %v322_v3  ;;  %v329_v62 = vld [vmem:[#allocation5 + $0x618] sm:$0xff]  ;;  %v6695_v23 = vpack.c.bf16 %v377_v52, %v376_v51  ;;  %v346_v2 = vld [vmem:[#allocation5 + $0x6a0] sm:$0xff]  ;;  %v347_v3 = vld [vmem:[#allocation5 + $0x6a8] sm:$0xff] }
  0x83   :  { %6604 = vmatprep.subr.bf16.mxu0 %v6603_v12  ;;  %v324_v12 = vld [vmem:[#allocation5 + $0x5f0] sm:$0xff]  ;;  %v361_v1 = vld [vmem:[#allocation5 + $0x718] sm:$0xff]  ;;  %v6667_v6 = vpack.c.bf16 %v347_v3, %v346_v2  ;;  %v371_v3 = vld [vmem:[#allocation5 + $0x768] sm:$0xff] }
  0x84   :  { %6634 = vmatpush3.bf16.msra.mxu1 %v6633_v9  ;;  %v292_v9 = vld [vmem:[#allocation5 + $0x4f0] sm:$0xff]  ;;  %v6655_v28 = vpack.c.bf16 %v325_v13, %v324_v12  ;;  %v349_v11 = vld [vmem:[#allocation5 + $0x6b8] sm:$0xff] }
  0x85   :  { %6636 = vmatprep.subr.bf16.mxu1 %v6635_v18  ;;  %v308_v18 = vld [vmem:[#allocation5 + $0x570] sm:$0xff]  ;;  %v6623_v22 = vpack.c.bf16 %v293_v10, %v292_v9  ;;  %v363_v9 = vld [vmem:[#allocation5 + $0x728] sm:$0xff]  ;;  %v381_v13 = vld [vmem:[#allocation5 + $0x7b8] sm:$0xff] }
  0x86   :  { %6606 = vmatpush3.bf16.msra.mxu0 %v6605_v27  ;;  %v117_v27 = vld [vmem:[#allocation2 + $0x1f2] sm:$0xff]  ;;  %v6657_v39 = vpack.c.bf16 %v309_v29, %v308_v18  ;;  %v348_v10 = vld [vmem:[#allocation5 + $0x6b0] sm:$0xff] }
  0x87   :  { %6608 = vmatprep.subr.bf16.mxu0 %v6607_v31  ;;  %v343_v31 = vld [vmem:[#allocation5 + $0x688] sm:$0xff]  ;;  %v1581_v33 = vcombine.low %v97_v26, %v117_v27  ;;  %v1582_v37 = vcombine.high %v97_v26, %v117_v27  ;;  %v380_v12 = vld [vmem:[#allocation5 + $0x7b0] sm:$0xff]  ;;  %v6671_v18 = vpack.c.bf16 %v349_v11, %v348_v10  ;;  %v365_v26 = vld [vmem:[#allocation5 + $0x738] sm:$0xff] }
  0x88   :  { %6638 = vmatpush3.bf16.msra.mxu1 %v6637_v30  ;;  %v342_v30 = vld [vmem:[#allocation5 + $0x680] sm:$0xff]  ;;  %v332_v19 = vld [vmem:[#allocation5 + $0x630] sm:$0xff]  ;;  %v6703_v25 = vpack.c.bf16 %v381_v13, %v380_v12  ;;  %v369_v52 = vld [vmem:[#allocation5 + $0x758] sm:$0xff] }
  0x89   :  { %6640 = vmatprep.subr.bf16.mxu1 %v6639_v35  ;;  %v375_v35 = vld [vmem:[#allocation5 + $0x788] sm:$0xff]  ;;  %v6659_v40 = vpack.c.bf16 %v343_v31, %v342_v30  ;;  %v7942_v49 = vrot.slane %v1581_v33, %v7896_v20  ;;  %v350_v27 = vld [vmem:[#allocation5 + $0x6c0] sm:$0xff]  ;;  %v340_v10 = vld [vmem:[#allocation5 + $0x670] sm:$0xff] }
  0x8a   :  { %6610 = vmatpush3.bf16.msra.mxu0 %v6609_v41  ;;  %v326_v41 = vld [vmem:[#allocation5 + $0x600] sm:$0xff]  ;;  %v6691_v44 = vpack.c.bf16 %v375_v35, %v374_v34  ;;  %v383_v30 = vld [vmem:[#allocation5 + $0x7c8] sm:$0xff]  ;;  %v341_v11 = vld [vmem:[#allocation5 + $0x678] sm:$0xff] }
  0x8b   :  { %6612 = vmatprep.subr.bf16.mxu0 %v6611_v43  ;;  %v358_v43 = vld [vmem:[#allocation5 + $0x700] sm:$0xff]  ;;  %v1612_v59 = vcombine.high %v7939_v48, %v7942_v49  ;;  %v335_v35 = vld [vmem:[#allocation5 + $0x648] sm:$0xff]  ;;  %v372_v12 = vld [vmem:[#allocation5 + $0x770] sm:$0xff] }
  0x8c   :  { %6642 = vmatpush3.bf16.msra.mxu1 %v6641_v42  ;;  %v327_v42 = vld [vmem:[#allocation5 + $0x608] sm:$0xff]  ;;  %v6693_v57 = vpack.c.bf16 %v359_v45, %v358_v43  ;;  %v382_v29 = vld [vmem:[#allocation5 + $0x7c0] sm:$0xff] }
  0x8d   :  { %6644 = vmatprep.subr.bf16.mxu1 %v6643_v47  ;;  %v345_v47 = vld [vmem:[#allocation5 + $0x698] sm:$0xff]  ;;  %v334_v34 = vld [vmem:[#allocation5 + $0x640] sm:$0xff] }
  0x8e   :  { %6614 = vmatpush3.bf16.msra.mxu0 %v6613_v53  ;;  %v7947_v53 = vrot.slane %v1580_v36, %v7896_v20  ;;  %v6663_v58 = vpack.c.bf16 %v345_v47, %v344_v46  ;;  %v366_v36 = vld [vmem:[#allocation5 + $0x740] sm:$0xff]  ;;  %v6677_v43 = vpack.c.bf16 %v335_v35, %v334_v34  ;;  %v336_v46 = vld [vmem:[#allocation5 + $0x650] sm:$0xff]  ;;  %v337_v47 = vld [vmem:[#allocation5 + $0x658] sm:$0xff] }
  0x8f   :  { %6616 = vmatprep.subr.bf16.mxu0 %v6615_v55  ;;  %v6661_v55 = vpack.c.bf16 %v327_v42, %v326_v41  ;;  %v384_v41 = vld [vmem:[#allocation5 + $0x7d0] sm:$0xff]  ;;  %v385_v42 = vld [vmem:[#allocation5 + $0x7d8] sm:$0xff]  ;;  %v423_v35 = vld [vmem:[#allocation5 + $0x908] sm:$0xff] }
  0x90   :  { %6646 = vmatpush3.bf16.msra.mxu1 %v6645_v54  ;;  %v7950_v54 = vrot.slane %v1582_v37, %v7896_v20  ;;  %v6707_v37 = vpack.c.bf16 %v383_v30, %v382_v29  ;;  %v6711_v51 = vpack.c.bf16 %v385_v42, %v384_v41  ;;  %v440_v41 = vld [vmem:[#allocation5 + $0x990] sm:$0xff]  ;;  %v441_v42 = vld [vmem:[#allocation5 + $0x998] sm:$0xff] }
  0x91   :  { %6648 = vmatprep.subr.bf16.mxu1 %v6647_v61  ;;  %v328_v61 = vld [vmem:[#allocation5 + $0x610] sm:$0xff] }
  0x92   :  { %6618 = vmatpush3.bf16.msra.mxu0 %v6617_v63  ;;  %v378_v63 = vld [vmem:[#allocation5 + $0x7a0] sm:$0xff]  ;;  %v1614_v17 = vcombine.high %v7947_v53, %v7950_v54  ;;  %v6665_v24 = vpack.c.bf16 %v329_v62, %v328_v61  ;;  %v6681_v61 = vpack.c.bf16 %v337_v47, %v336_v46  ;;  %v1613_v46 = vcombine.low %v7947_v53, %v7950_v54 }
  0x93   :  { %6620 = vmatprep.subr.bf16.mxu0 %v6619_v5  ;;  %v6697_v5 = vpack.c.bf16 %v361_v1, %v360_v16  ;;  %v338_v62 = vld [vmem:[#allocation5 + $0x660] sm:$0xff]  ;;  %v339_v16 = vld [vmem:[#allocation5 + $0x668] sm:$0xff] }
  0x94   :  { %6650 = vmatpush3.bf16.msra.mxu1 %v6649_v4  ;;  %v379_v4 = vld [vmem:[#allocation5 + $0x7a8] sm:$0xff] }
  0x95   :  { %6652 = vmatprep.subr.bf16.mxu1 %v6651_v0  ;;  %v362_v0 = vld [vmem:[#allocation5 + $0x720] sm:$0xff]  ;;  %v6699_v8 = vpack.c.bf16 %v379_v4, %v378_v63  ;;  %v357_v63 = vld [vmem:[#allocation5 + $0x6f8] sm:$0xff] }
  0x96   :  { %6622 = vmatpush3.bf16.msra.mxu0 %v6621_v14  ;;  %v6669_v14 = vpack.c.bf16 %v331_v60, %v330_v7  ;;  %v6701_v15 = vpack.c.bf16 %v363_v9, %v362_v0  ;;  %v98_v7 = vld [vmem:[#allocation2 + $0x15c] sm:$0xff]  ;;  %v6685_v0 = vpack.c.bf16 %v339_v16, %v338_v62 }
  0x97   :  { %6624 = vmatprep.subr.bf16.mxu0 %v6623_v22  ;;  %v364_v22 = vld [vmem:[#allocation5 + $0x730] sm:$0xff]  ;;  %v118_v60 = vld [vmem:[#allocation2 + $0x1fa] sm:$0xff] }
  0x98   :  { %6654 = vmatpush3.bf16.msra.mxu1 %v6653_v21  ;;  %v333_v21 = vld [vmem:[#allocation5 + $0x638] sm:$0xff]  ;;  %v6705_v32 = vpack.c.bf16 %v365_v26, %v364_v22  ;;  %v438_v22 = vld [vmem:[#allocation5 + $0x980] sm:$0xff]  ;;  %v443_v62 = vld [vmem:[#allocation5 + $0x9a8] sm:$0xff] }
  0x99   :  { %6656 = vmatprep.subr.bf16.mxu1 %v6655_v28  ;;  %v351_v28 = vld [vmem:[#allocation5 + $0x6c8] sm:$0xff]  ;;  %v6673_v31 = vpack.c.bf16 %v333_v21, %v332_v19  ;;  %v1617_v21 = vcombine.low %v98_v7, %v118_v60 }
  0x9a   :  { %6626 = vmatpush3.bf16.msra.mxu0 %v6625_v38  ;;  %v6675_v33 = vpack.c.bf16 %v351_v28, %v350_v27  ;;  %v367_v38 = vld [vmem:[#allocation5 + $0x748] sm:$0xff]  ;;  %v1618_v27 = vcombine.high %v98_v7, %v118_v60  ;;  %v6689_v28 = vpack.c.bf16 %v341_v11, %v340_v10  ;;  %v429_v11 = vld [vmem:[#allocation5 + $0x938] sm:$0xff] }
  0x9b   :  { %6660 = vmatprep.subr.bf16.mxu0 %v6659_v40  ;;  %v353_v40 = vld [vmem:[#allocation5 + $0x6d8] sm:$0xff] }
  0x9c   :  { %6658 = vmatpush3.bf16.msra.mxu1 %v6657_v39  ;;  %v352_v39 = vld [vmem:[#allocation5 + $0x6d0] sm:$0xff] }
  0x9d   :  { %6692 = vmatprep.subr.bf16.mxu1 %v6691_v44  ;;  %2616 = vmatmul.mubr.f32.vlgmr.msra.gmra.mrb[4].mxu0 %v1575_v50  ;;  %v6709_v44 = vpack.c.bf16 %v367_v38, %v366_v36  ;;  %v6679_v45 = vpack.c.bf16 %v353_v40, %v352_v39  ;;  %v368_v50 = vld [vmem:[#allocation5 + $0x750] sm:$0xff]  ;;  %v7962_v39 = vrot.slane %v1617_v21, %v7896_v20 }
  0x9e   :  { %6662 = vmatpush3.bf16.msra.mxu0 %v6661_v55  ;;  %2755 = vmatprep.mubr.f32.mxu0 %v1612_v59  ;;  %v354_v55 = vld [vmem:[#allocation5 + $0x6e0] sm:$0xff]  ;;  %v6713_v1 = vpack.c.bf16 %v369_v52, %v368_v50  ;;  %v356_v59 = vld [vmem:[#allocation5 + $0x6f0] sm:$0xff]  ;;  %v1611_v40 = vcombine.low %v7939_v48, %v7942_v49  ;;  %v393_v52 = vld [vmem:[#allocation5 + $0x818] sm:$0xff]  ;;  %v6759_v49 = vpack.c.bf16 %v441_v42, %v440_v41 }
  0x9f   :  { %2686 = vmatmul.mubr.f32.vlgmr.msra.gmra.mrb[4].mxu1 %v1577_v56  ;;  %6664 = vmatprep.subr.bf16.mxu0 %v6663_v58  ;;  %v355_v56 = vld [vmem:[#allocation5 + $0x6e8] sm:$0xff]  ;;  %v6687_v9 = vpack.c.bf16 %v357_v63, %v356_v59  ;;  %v408_v36 = vld [vmem:[#allocation5 + $0x890] sm:$0xff]  ;;  %v433_v42 = vld [vmem:[#allocation5 + $0x958] sm:$0xff] }
  0xa0   :  { %6694 = vmatpush3.bf16.msra.mxu1 %v6693_v57  ;;  %2825 = vmatprep.mubr.f32.mxu1 %v1614_v17  ;;  %v386_v57 = vld [vmem:[#allocation5 + $0x7e0] sm:$0xff]  ;;  %v387_v58 = vld [vmem:[#allocation5 + $0x7e8] sm:$0xff]  ;;  %v6683_v2 = vpack.c.bf16 %v355_v56, %v354_v55  ;;  %v388_v17 = vld [vmem:[#allocation5 + $0x7f0] sm:$0xff] }
  0xa1   :  { %6696 = vmatprep.subr.bf16.mxu1 %v6695_v23  ;;  %v370_v23 = vld [vmem:[#allocation5 + $0x760] sm:$0xff]  ;;  %v6715_v4 = vpack.c.bf16 %v387_v58, %v386_v57  ;;  %v424_v48 = vld [vmem:[#allocation5 + $0x910] sm:$0xff]  ;;  %v425_v55 = vld [vmem:[#allocation5 + $0x918] sm:$0xff] }
  0xa2   :  { %6666 = vmatpush3.bf16.msra.mxu0 %v6665_v24  ;;  %v389_v24 = vld [vmem:[#allocation5 + $0x7f8] sm:$0xff]  ;;  %v410_v56 = vld [vmem:[#allocation5 + $0x8a0] sm:$0xff]  ;;  %v411_v57 = vld [vmem:[#allocation5 + $0x8a8] sm:$0xff]  ;;  %v6761_v16 = vpack.c.bf16 %v425_v55, %v424_v48 }
  0xa3   :  { %6668 = vmatprep.subr.bf16.mxu0 %v6667_v6  ;;  %v78_v6 = vld [vmem:[#allocation2 + $0xbe] sm:$0xff]  ;;  %v6719_v13 = vpack.c.bf16 %v389_v24, %v388_v17  ;;  %v413_v17 = vld [vmem:[#allocation5 + $0x8b8] sm:$0xff]  ;;  %v444_v24 = vld [vmem:[#allocation5 + $0x9b0] sm:$0xff] }
  0xa4   :  { %6698 = vmatpush3.bf16.msra.mxu1 %v6697_v5  ;;  %v58_v5 = vld [vmem:[#allocation2 + $0x20] sm:$0xff] }
  0xa5   :  { %6700 = vmatprep.subr.bf16.mxu1 %v6699_v8  ;;  %v6717_v8 = vpack.c.bf16 %v371_v3, %v370_v23  ;;  %v1615_v19 = vcombine.low %v58_v5, %v78_v6  ;;  %v1616_v26 = vcombine.high %v58_v5, %v78_v6  ;;  %v6731_v23 = vpack.c.bf16 %v411_v57, %v410_v56  ;;  %v426_v3 = vld [vmem:[#allocation5 + $0x920] sm:$0xff]  ;;  %v427_v63 = vld [vmem:[#allocation5 + $0x928] sm:$0xff]  ;;  %v445_v5 = vld [vmem:[#allocation5 + $0x9b8] sm:$0xff] }
  0xa6   :  { %6670 = vmatpush3.bf16.msra.mxu0 %v6669_v14  ;;  %v373_v14 = vld [vmem:[#allocation5 + $0x778] sm:$0xff]  ;;  %v6765_v7 = vpack.c.bf16 %v427_v63, %v426_v3  ;;  %v6767_v10 = vpack.c.bf16 %v445_v5, %v444_v24  ;;  %v403_v48 = vld [vmem:[#allocation5 + $0x868] sm:$0xff]  ;;  %v436_v24 = vld [vmem:[#allocation5 + $0x970] sm:$0xff] }
  0xa7   :  { %6672 = vmatprep.subr.bf16.mxu0 %v6671_v18  ;;  %v407_v18 = vld [vmem:[#allocation5 + $0x888] sm:$0xff]  ;;  %v6721_v29 = vpack.c.bf16 %v373_v14, %v372_v12  ;;  %v7959_v38 = vrot.slane %v1615_v19, %v7896_v20  ;;  %v414_v12 = vld [vmem:[#allocation5 + $0x8c0] sm:$0xff] }
  0xa8   :  { %6702 = vmatpush3.bf16.msra.mxu1 %v6701_v15  ;;  %v406_v15 = vld [vmem:[#allocation5 + $0x880] sm:$0xff]  ;;  %v435_v57 = vld [vmem:[#allocation5 + $0x968] sm:$0xff] }
  0xa9   :  { %6704 = vmatprep.subr.bf16.mxu1 %v6703_v25  ;;  %v439_v25 = vld [vmem:[#allocation5 + $0x988] sm:$0xff]  ;;  %v6723_v30 = vpack.c.bf16 %v407_v18, %v406_v15  ;;  %v1648_v58 = vcombine.high %v7959_v38, %v7962_v39  ;;  %v446_v14 = vld [vmem:[#allocation5 + $0x9c0] sm:$0xff] }
  0xaa   :  { %6674 = vmatpush3.bf16.msra.mxu0 %v6673_v31  ;;  %v390_v31 = vld [vmem:[#allocation5 + $0x800] sm:$0xff]  ;;  %v6755_v34 = vpack.c.bf16 %v439_v25, %v438_v22  ;;  %v447_v15 = vld [vmem:[#allocation5 + $0x9c8] sm:$0xff] }
  0xab   :  { %6676 = vmatprep.subr.bf16.mxu0 %v6675_v33  ;;  %v422_v33 = vld [vmem:[#allocation5 + $0x900] sm:$0xff]  ;;  %v399_v25 = vld [vmem:[#allocation5 + $0x848] sm:$0xff] }
  0xac   :  { %6706 = vmatpush3.bf16.msra.mxu1 %v6705_v32  ;;  %v391_v32 = vld [vmem:[#allocation5 + $0x808] sm:$0xff]  ;;  %v6757_v47 = vpack.c.bf16 %v423_v35, %v422_v33  ;;  %v398_v22 = vld [vmem:[#allocation5 + $0x840] sm:$0xff] }
  0xad   :  { %6708 = vmatprep.subr.bf16.mxu1 %v6707_v37  ;;  %v409_v37 = vld [vmem:[#allocation5 + $0x898] sm:$0xff]  ;;  %v6741_v33 = vpack.c.bf16 %v399_v25, %v398_v22  ;;  %v487_v25 = vld [vmem:[#allocation5 + $0xb08] sm:$0xff] }
  0xae   :  { %6678 = vmatpush3.bf16.msra.mxu0 %v6677_v43  ;;  %v7967_v43 = vrot.slane %v1616_v26, %v7896_v20  ;;  %v6727_v50 = vpack.c.bf16 %v409_v37, %v408_v36  ;;  %v430_v26 = vld [vmem:[#allocation5 + $0x940] sm:$0xff]  ;;  %v400_v36 = vld [vmem:[#allocation5 + $0x850] sm:$0xff]  ;;  %v401_v37 = vld [vmem:[#allocation5 + $0x858] sm:$0xff] }
  0xaf   :  { %6680 = vmatprep.subr.bf16.mxu0 %v6679_v45  ;;  %v6725_v45 = vpack.c.bf16 %v391_v32, %v390_v31  ;;  %v448_v31 = vld [vmem:[#allocation5 + $0x9d0] sm:$0xff]  ;;  %v449_v32 = vld [vmem:[#allocation5 + $0x9d8] sm:$0xff] }
  0xb0   :  { %6710 = vmatpush3.bf16.msra.mxu1 %v6709_v44  ;;  %v7970_v44 = vrot.slane %v1618_v27, %v7896_v20  ;;  %v6771_v27 = vpack.c.bf16 %v447_v15, %v446_v14  ;;  %v6775_v41 = vpack.c.bf16 %v449_v32, %v448_v31  ;;  %v504_v31 = vld [vmem:[#allocation5 + $0xb90] sm:$0xff]  ;;  %v505_v32 = vld [vmem:[#allocation5 + $0xb98] sm:$0xff] }
  0xb1   :  { %6712 = vmatprep.subr.bf16.mxu1 %v6711_v51  ;;  %v392_v51 = vld [vmem:[#allocation5 + $0x810] sm:$0xff] }
  0xb2   :  { %6682 = vmatpush3.bf16.msra.mxu0 %v6681_v61  ;;  %v442_v61 = vld [vmem:[#allocation5 + $0x9a0] sm:$0xff]  ;;  %v1650_v53 = vcombine.high %v7967_v43, %v7970_v44  ;;  %v6729_v54 = vpack.c.bf16 %v393_v52, %v392_v51  ;;  %v6745_v51 = vpack.c.bf16 %v401_v37, %v400_v36  ;;  %v1649_v36 = vcombine.low %v7967_v43, %v7970_v44 }
  0xb3   :  { %6684 = vmatprep.subr.bf16.mxu0 %v6683_v2  ;;  %v395_v2 = vld [vmem:[#allocation5 + $0x828] sm:$0xff]  ;;  %v6763_v59 = vpack.c.bf16 %v443_v62, %v442_v61  ;;  %v402_v52 = vld [vmem:[#allocation5 + $0x860] sm:$0xff]  ;;  %v421_v61 = vld [vmem:[#allocation5 + $0x8f8] sm:$0xff] }
  0xb4   :  { %6714 = vmatpush3.bf16.msra.mxu1 %v6713_v1  ;;  %v394_v1 = vld [vmem:[#allocation5 + $0x820] sm:$0xff]  ;;  %v6749_v3 = vpack.c.bf16 %v403_v48, %v402_v52  ;;  %v507_v52 = vld [vmem:[#allocation5 + $0xba8] sm:$0xff] }
  0xb5   :  { %6716 = vmatprep.subr.bf16.mxu1 %v6715_v4  ;;  %v412_v4 = vld [vmem:[#allocation5 + $0x8b0] sm:$0xff]  ;;  %v6733_v6 = vpack.c.bf16 %v395_v2, %v394_v1 }
  0xb6   :  { %6686 = vmatpush3.bf16.msra.mxu0 %v6685_v0  ;;  %v6735_v60 = vpack.c.bf16 %v413_v17, %v412_v4  ;;  %v396_v0 = vld [vmem:[#allocation5 + $0x830] sm:$0xff]  ;;  %v405_v17 = vld [vmem:[#allocation5 + $0x878] sm:$0xff] }
  0xb7   :  { %6688 = vmatprep.subr.bf16.mxu0 %v6687_v9  ;;  %v428_v9 = vld [vmem:[#allocation5 + $0x930] sm:$0xff] }
  0xb8   :  { %6718 = vmatpush3.bf16.msra.mxu1 %v6717_v8  ;;  %v397_v8 = vld [vmem:[#allocation5 + $0x838] sm:$0xff]  ;;  %v6769_v19 = vpack.c.bf16 %v429_v11, %v428_v9  ;;  %v99_v1 = vld [vmem:[#allocation2 + $0x164] sm:$0xff]  ;;  %v502_v9 = vld [vmem:[#allocation5 + $0xb80] sm:$0xff] }
  0xb9   :  { %6720 = vmatprep.subr.bf16.mxu1 %v6719_v13  ;;  %v415_v13 = vld [vmem:[#allocation5 + $0x8c8] sm:$0xff]  ;;  %v6737_v18 = vpack.c.bf16 %v397_v8, %v396_v0  ;;  %v404_v4 = vld [vmem:[#allocation5 + $0x870] sm:$0xff] }
  0xba   :  { %6690 = vmatpush3.bf16.msra.mxu0 %v6689_v28  ;;  %v6739_v21 = vpack.c.bf16 %v415_v13, %v414_v12  ;;  %v431_v28 = vld [vmem:[#allocation5 + $0x948] sm:$0xff]  ;;  %v6753_v13 = vpack.c.bf16 %v405_v17, %v404_v4  ;;  %v493_v17 = vld [vmem:[#allocation5 + $0xb38] sm:$0xff] }
  0xbb   :  { %6724 = vmatprep.subr.bf16.mxu0 %v6723_v30  ;;  %v417_v30 = vld [vmem:[#allocation5 + $0x8d8] sm:$0xff]  ;;  %v119_v2 = vld [vmem:[#allocation2 + $0x202] sm:$0xff] }
  0xbc   :  { %6722 = vmatpush3.bf16.msra.mxu1 %v6721_v29  ;;  %v416_v29 = vld [vmem:[#allocation5 + $0x8d0] sm:$0xff]  ;;  %v1653_v8 = vcombine.low %v99_v1, %v119_v2  ;;  %v1654_v12 = vcombine.high %v99_v1, %v119_v2 }
  0xbd   :  { %6756 = vmatprep.subr.bf16.mxu1 %v6755_v34  ;;  %2756 = vmatmul.mubr.f32.vlgmr.msra.gmra.mrb[6].mxu0 %v1611_v40  ;;  %v6773_v34 = vpack.c.bf16 %v431_v28, %v430_v26  ;;  %v6743_v35 = vpack.c.bf16 %v417_v30, %v416_v29  ;;  %v432_v40 = vld [vmem:[#allocation5 + $0x950] sm:$0xff]  ;;  %v1647_v30 = vcombine.low %v7959_v38, %v7962_v39 }
  0xbe   :  { %6726 = vmatpush3.bf16.msra.mxu0 %v6725_v45  ;;  %2895 = vmatprep.mubr.f32.mxu0 %v1648_v58  ;;  %v418_v45 = vld [vmem:[#allocation5 + $0x8e0] sm:$0xff]  ;;  %v6777_v55 = vpack.c.bf16 %v433_v42, %v432_v40  ;;  %v420_v58 = vld [vmem:[#allocation5 + $0x8f0] sm:$0xff]  ;;  %v7982_v29 = vrot.slane %v1653_v8, %v7896_v20  ;;  %v457_v42 = vld [vmem:[#allocation5 + $0xa18] sm:$0xff]  ;;  %v6823_v39 = vpack.c.bf16 %v505_v32, %v504_v31 }
  0xbf   :  { %2826 = vmatmul.mubr.f32.vlgmr.msra.gmra.mrb[6].mxu1 %v1613_v46  ;;  %6728 = vmatprep.subr.bf16.mxu0 %v6727_v50  ;;  %v419_v46 = vld [vmem:[#allocation5 + $0x8e8] sm:$0xff]  ;;  %v6751_v63 = vpack.c.bf16 %v421_v61, %v420_v58  ;;  %v472_v26 = vld [vmem:[#allocation5 + $0xa90] sm:$0xff]  ;;  %v497_v32 = vld [vmem:[#allocation5 + $0xb58] sm:$0xff] }
  0xc0   :  { %6758 = vmatpush3.bf16.msra.mxu1 %v6757_v47  ;;  %2965 = vmatprep.mubr.f32.mxu1 %v1650_v53  ;;  %v450_v47 = vld [vmem:[#allocation5 + $0x9e0] sm:$0xff]  ;;  %v451_v50 = vld [vmem:[#allocation5 + $0x9e8] sm:$0xff]  ;;  %v6747_v56 = vpack.c.bf16 %v419_v46, %v418_v45  ;;  %v452_v53 = vld [vmem:[#allocation5 + $0x9f0] sm:$0xff] }
  0xc1   :  { %6760 = vmatprep.subr.bf16.mxu1 %v6759_v49  ;;  %v434_v49 = vld [vmem:[#allocation5 + $0x960] sm:$0xff]  ;;  %v6779_v62 = vpack.c.bf16 %v451_v50, %v450_v47  ;;  %v488_v38 = vld [vmem:[#allocation5 + $0xb10] sm:$0xff]  ;;  %v489_v45 = vld [vmem:[#allocation5 + $0xb18] sm:$0xff] }
  0xc2   :  { %6730 = vmatpush3.bf16.msra.mxu0 %v6729_v54  ;;  %v453_v54 = vld [vmem:[#allocation5 + $0x9f8] sm:$0xff]  ;;  %v474_v46 = vld [vmem:[#allocation5 + $0xaa0] sm:$0xff]  ;;  %v475_v47 = vld [vmem:[#allocation5 + $0xaa8] sm:$0xff]  ;;  %v6825_v48 = vpack.c.bf16 %v489_v45, %v488_v38 }
  0xc3   :  { %6732 = vmatprep.subr.bf16.mxu0 %v6731_v23  ;;  %v79_v23 = vld [vmem:[#allocation2 + $0xc6] sm:$0xff]  ;;  %v6783_v5 = vpack.c.bf16 %v453_v54, %v452_v53  ;;  %v477_v53 = vld [vmem:[#allocation5 + $0xab8] sm:$0xff] }
  0xc4   :  { %6762 = vmatpush3.bf16.msra.mxu1 %v6761_v16  ;;  %v59_v16 = vld [vmem:[#allocation2 + $0x28] sm:$0xff]  ;;  %v491_v61 = vld [vmem:[#allocation5 + $0xb28] sm:$0xff] }
  0xc5   :  { %6764 = vmatprep.subr.bf16.mxu1 %v6763_v59  ;;  %v6781_v59 = vpack.c.bf16 %v435_v57, %v434_v49  ;;  %v1651_v0 = vcombine.low %v59_v16, %v79_v23  ;;  %v1652_v11 = vcombine.high %v59_v16, %v79_v23  ;;  %v6795_v49 = vpack.c.bf16 %v475_v47, %v474_v46  ;;  %v490_v57 = vld [vmem:[#allocation5 + $0xb20] sm:$0xff]  ;;  %v508_v54 = vld [vmem:[#allocation5 + $0xbb0] sm:$0xff]  ;;  %v509_v16 = vld [vmem:[#allocation5 + $0xbb8] sm:$0xff] }
  0xc6   :  { %6734 = vmatpush3.bf16.msra.mxu0 %v6733_v6  ;;  %v437_v6 = vld [vmem:[#allocation5 + $0x978] sm:$0xff]  ;;  %v6829_v1 = vpack.c.bf16 %v491_v61, %v490_v57  ;;  %v6831_v4 = vpack.c.bf16 %v509_v16, %v508_v54  ;;  %v467_v38 = vld [vmem:[#allocation5 + $0xa68] sm:$0xff]  ;;  %v500_v54 = vld [vmem:[#allocation5 + $0xb70] sm:$0xff] }
  0xc7   :  { %6736 = vmatprep.subr.bf16.mxu0 %v6735_v60  ;;  %v471_v60 = vld [vmem:[#allocation5 + $0xa88] sm:$0xff]  ;;  %v6785_v14 = vpack.c.bf16 %v437_v6, %v436_v24  ;;  %v7979_v28 = vrot.slane %v1651_v0, %v7896_v20  ;;  %v478_v24 = vld [vmem:[#allocation5 + $0xac0] sm:$0xff] }
  0xc8   :  { %6766 = vmatpush3.bf16.msra.mxu1 %v6765_v7  ;;  %v470_v7 = vld [vmem:[#allocation5 + $0xa80] sm:$0xff]  ;;  %v499_v47 = vld [vmem:[#allocation5 + $0xb68] sm:$0xff] }
  0xc9   :  { %6768 = vmatprep.subr.bf16.mxu1 %v6767_v10  ;;  %v503_v10 = vld [vmem:[#allocation5 + $0xb88] sm:$0xff]  ;;  %v6787_v15 = vpack.c.bf16 %v471_v60, %v470_v7  ;;  %v1684_v50 = vcombine.high %v7979_v28, %v7982_v29  ;;  %v510_v6 = vld [vmem:[#allocation5 + $0xbc0] sm:$0xff] }
  0xca   :  { %6738 = vmatpush3.bf16.msra.mxu0 %v6737_v18  ;;  %v454_v18 = vld [vmem:[#allocation5 + $0xa00] sm:$0xff]  ;;  %v6819_v22 = vpack.c.bf16 %v503_v10, %v502_v9  ;;  %v511_v7 = vld [vmem:[#allocation5 + $0xbc8] sm:$0xff] }
  0xcb   :  { %6740 = vmatprep.subr.bf16.mxu0 %v6739_v21  ;;  %v486_v21 = vld [vmem:[#allocation5 + $0xb00] sm:$0xff]  ;;  %v463_v10 = vld [vmem:[#allocation5 + $0xa48] sm:$0xff] }
  0xcc   :  { %6770 = vmatpush3.bf16.msra.mxu1 %v6769_v19  ;;  %v455_v19 = vld [vmem:[#allocation5 + $0xa08] sm:$0xff]  ;;  %v6821_v37 = vpack.c.bf16 %v487_v25, %v486_v21  ;;  %v462_v9 = vld [vmem:[#allocation5 + $0xa40] sm:$0xff] }
  0xcd   :  { %6772 = vmatprep.subr.bf16.mxu1 %v6771_v27  ;;  %v473_v27 = vld [vmem:[#allocation5 + $0xa98] sm:$0xff]  ;;  %v6805_v21 = vpack.c.bf16 %v463_v10, %v462_v9  ;;  %v551_v10 = vld [vmem:[#allocation5 + $0xd08] sm:$0xff] }
  0xce   :  { %6742 = vmatpush3.bf16.msra.mxu0 %v6741_v33  ;;  %v7987_v33 = vrot.slane %v1652_v11, %v7896_v20  ;;  %v6791_v40 = vpack.c.bf16 %v473_v27, %v472_v26  ;;  %v494_v11 = vld [vmem:[#allocation5 + $0xb40] sm:$0xff]  ;;  %v464_v26 = vld [vmem:[#allocation5 + $0xa50] sm:$0xff]  ;;  %v465_v27 = vld [vmem:[#allocation5 + $0xa58] sm:$0xff] }
  0xcf   :  { %6744 = vmatprep.subr.bf16.mxu0 %v6743_v35  ;;  %v6789_v35 = vpack.c.bf16 %v455_v19, %v454_v18  ;;  %v512_v18 = vld [vmem:[#allocation5 + $0xbd0] sm:$0xff]  ;;  %v513_v19 = vld [vmem:[#allocation5 + $0xbd8] sm:$0xff] }
  0xd0   :  { %6774 = vmatpush3.bf16.msra.mxu1 %v6773_v34  ;;  %v7990_v34 = vrot.slane %v1654_v12, %v7896_v20  ;;  %v6835_v12 = vpack.c.bf16 %v511_v7, %v510_v6  ;;  %v6839_v31 = vpack.c.bf16 %v513_v19, %v512_v18  ;;  %v568_v18 = vld [vmem:[#allocation5 + $0xd90] sm:$0xff]  ;;  %v569_v19 = vld [vmem:[#allocation5 + $0xd98] sm:$0xff] }
  0xd1   :  { %6776 = vmatprep.subr.bf16.mxu1 %v6775_v41  ;;  %v456_v41 = vld [vmem:[#allocation5 + $0xa10] sm:$0xff] }
  0xd2   :  { %6746 = vmatpush3.bf16.msra.mxu0 %v6745_v51  ;;  %v506_v51 = vld [vmem:[#allocation5 + $0xba0] sm:$0xff]  ;;  %v1686_v43 = vcombine.high %v7987_v33, %v7990_v34  ;;  %v6793_v44 = vpack.c.bf16 %v457_v42, %v456_v41  ;;  %v6809_v41 = vpack.c.bf16 %v465_v27, %v464_v26  ;;  %v1685_v26 = vcombine.low %v7987_v33, %v7990_v34 }
  0xd3   :  { %6748 = vmatprep.subr.bf16.mxu0 %v6747_v56  ;;  %v459_v56 = vld [vmem:[#allocation5 + $0xa28] sm:$0xff]  ;;  %v6827_v58 = vpack.c.bf16 %v507_v52, %v506_v51  ;;  %v466_v42 = vld [vmem:[#allocation5 + $0xa60] sm:$0xff]  ;;  %v485_v51 = vld [vmem:[#allocation5 + $0xaf8] sm:$0xff] }
  0xd4   :  { %6778 = vmatpush3.bf16.msra.mxu1 %v6777_v55  ;;  %v458_v55 = vld [vmem:[#allocation5 + $0xa20] sm:$0xff]  ;;  %v6813_v57 = vpack.c.bf16 %v467_v38, %v466_v42  ;;  %v571_v42 = vld [vmem:[#allocation5 + $0xda8] sm:$0xff] }
  0xd5   :  { %6780 = vmatprep.subr.bf16.mxu1 %v6779_v62  ;;  %v476_v62 = vld [vmem:[#allocation5 + $0xab0] sm:$0xff]  ;;  %v6797_v23 = vpack.c.bf16 %v459_v56, %v458_v55 }
  0xd6   :  { %6750 = vmatpush3.bf16.msra.mxu0 %v6749_v3  ;;  %v6799_v2 = vpack.c.bf16 %v477_v53, %v476_v62  ;;  %v460_v3 = vld [vmem:[#allocation5 + $0xa30] sm:$0xff]  ;;  %v469_v53 = vld [vmem:[#allocation5 + $0xa78] sm:$0xff] }
  0xd7   :  { %6752 = vmatprep.subr.bf16.mxu0 %v6751_v63  ;;  %v492_v63 = vld [vmem:[#allocation5 + $0xb30] sm:$0xff] }
  0xd8   :  { %6782 = vmatpush3.bf16.msra.mxu1 %v6781_v59  ;;  %v461_v59 = vld [vmem:[#allocation5 + $0xa38] sm:$0xff]  ;;  %v6833_v0 = vpack.c.bf16 %v493_v17, %v492_v63  ;;  %v468_v62 = vld [vmem:[#allocation5 + $0xa70] sm:$0xff]  ;;  %v566_v63 = vld [vmem:[#allocation5 + $0xd80] sm:$0xff] }
  0xd9   :  { %6784 = vmatprep.subr.bf16.mxu1 %v6783_v5  ;;  %v479_v5 = vld [vmem:[#allocation5 + $0xac8] sm:$0xff]  ;;  %v6801_v60 = vpack.c.bf16 %v461_v59, %v460_v3  ;;  %v100_v55 = vld [vmem:[#allocation2 + $0x16c] sm:$0xff] }
  0xda   :  { %6754 = vmatpush3.bf16.msra.mxu0 %v6753_v13  ;;  %v6803_v8 = vpack.c.bf16 %v479_v5, %v478_v24  ;;  %v495_v13 = vld [vmem:[#allocation5 + $0xb48] sm:$0xff]  ;;  %v120_v56 = vld [vmem:[#allocation2 + $0x20a] sm:$0xff]  ;;  %v6817_v5 = vpack.c.bf16 %v469_v53, %v468_v62 }
  0xdb   :  { %6788 = vmatprep.subr.bf16.mxu0 %v6787_v15  ;;  %v481_v15 = vld [vmem:[#allocation5 + $0xad8] sm:$0xff]  ;;  %v1689_v59 = vcombine.low %v100_v55, %v120_v56  ;;  %v1690_v24 = vcombine.high %v100_v55, %v120_v56 }
  0xdc   :  { %6786 = vmatpush3.bf16.msra.mxu1 %v6785_v14  ;;  %v480_v14 = vld [vmem:[#allocation5 + $0xad0] sm:$0xff]  ;;  %v557_v53 = vld [vmem:[#allocation5 + $0xd38] sm:$0xff] }
  0xdd   :  { %6820 = vmatprep.subr.bf16.mxu1 %v6819_v22  ;;  %2896 = vmatmul.mubr.f32.vlgmr.msra.gmra.mrb[8].mxu0 %v1647_v30  ;;  %v6837_v22 = vpack.c.bf16 %v495_v13, %v494_v11  ;;  %v6807_v25 = vpack.c.bf16 %v481_v15, %v480_v14  ;;  %v496_v30 = vld [vmem:[#allocation5 + $0xb50] sm:$0xff]  ;;  %v8002_v14 = vrot.slane %v1689_v59, %v7896_v20 }
  0xde   :  { %6790 = vmatpush3.bf16.msra.mxu0 %v6789_v35  ;;  %3035 = vmatprep.mubr.f32.mxu0 %v1684_v50  ;;  %v482_v35 = vld [vmem:[#allocation5 + $0xae0] sm:$0xff]  ;;  %v6841_v45 = vpack.c.bf16 %v497_v32, %v496_v30  ;;  %v484_v50 = vld [vmem:[#allocation5 + $0xaf0] sm:$0xff]  ;;  %v1683_v15 = vcombine.low %v7979_v28, %v7982_v29  ;;  %v521_v32 = vld [vmem:[#allocation5 + $0xc18] sm:$0xff]  ;;  %v6887_v29 = vpack.c.bf16 %v569_v19, %v568_v18 }
  0xdf   :  { %2966 = vmatmul.mubr.f32.vlgmr.msra.gmra.mrb[8].mxu1 %v1649_v36  ;;  %6792 = vmatprep.subr.bf16.mxu0 %v6791_v40  ;;  %v483_v36 = vld [vmem:[#allocation5 + $0xae8] sm:$0xff]  ;;  %v6815_v61 = vpack.c.bf16 %v485_v51, %v484_v50  ;;  %v536_v11 = vld [vmem:[#allocation5 + $0xc90] sm:$0xff]  ;;  %v561_v19 = vld [vmem:[#allocation5 + $0xd58] sm:$0xff] }
  0xe0   :  { %6822 = vmatpush3.bf16.msra.mxu1 %v6821_v37  ;;  %3105 = vmatprep.mubr.f32.mxu1 %v1686_v43  ;;  %v514_v37 = vld [vmem:[#allocation5 + $0xbe0] sm:$0xff]  ;;  %v515_v40 = vld [vmem:[#allocation5 + $0xbe8] sm:$0xff]  ;;  %v6811_v46 = vpack.c.bf16 %v483_v36, %v482_v35  ;;  %v516_v43 = vld [vmem:[#allocation5 + $0xbf0] sm:$0xff] }
  0xe1   :  { %6824 = vmatprep.subr.bf16.mxu1 %v6823_v39  ;;  %v498_v39 = vld [vmem:[#allocation5 + $0xb60] sm:$0xff]  ;;  %v6843_v52 = vpack.c.bf16 %v515_v40, %v514_v37  ;;  %v552_v28 = vld [vmem:[#allocation5 + $0xd10] sm:$0xff]  ;;  %v553_v35 = vld [vmem:[#allocation5 + $0xd18] sm:$0xff] }
  0xe2   :  { %6794 = vmatpush3.bf16.msra.mxu0 %v6793_v44  ;;  %v517_v44 = vld [vmem:[#allocation5 + $0xbf8] sm:$0xff]  ;;  %v538_v36 = vld [vmem:[#allocation5 + $0xca0] sm:$0xff]  ;;  %v539_v37 = vld [vmem:[#allocation5 + $0xca8] sm:$0xff]  ;;  %v6889_v38 = vpack.c.bf16 %v553_v35, %v552_v28 }
  0xe3   :  { %6796 = vmatprep.subr.bf16.mxu0 %v6795_v49  ;;  %v80_v49 = vld [vmem:[#allocation2 + $0xce] sm:$0xff]  ;;  %v6847_v16 = vpack.c.bf16 %v517_v44, %v516_v43  ;;  %v555_v51 = vld [vmem:[#allocation5 + $0xd28] sm:$0xff] }
  0xe4   :  { %6826 = vmatpush3.bf16.msra.mxu1 %v6825_v48  ;;  %v60_v48 = vld [vmem:[#allocation2 + $0x30] sm:$0xff]  ;;  %v572_v44 = vld [vmem:[#allocation5 + $0xdb0] sm:$0xff]  ;;  %v531_v28 = vld [vmem:[#allocation5 + $0xc68] sm:$0xff] }
  0xe5   :  { %6828 = vmatprep.subr.bf16.mxu1 %v6827_v58  ;;  %v6845_v58 = vpack.c.bf16 %v499_v47, %v498_v39  ;;  %v1687_v3 = vcombine.low %v60_v48, %v80_v49  ;;  %v1688_v17 = vcombine.high %v60_v48, %v80_v49  ;;  %v6859_v39 = vpack.c.bf16 %v539_v37, %v538_v36  ;;  %v554_v47 = vld [vmem:[#allocation5 + $0xd20] sm:$0xff]  ;;  %v541_v43 = vld [vmem:[#allocation5 + $0xcb8] sm:$0xff]  ;;  %v563_v37 = vld [vmem:[#allocation5 + $0xd68] sm:$0xff] }
  0xe6   :  { %6798 = vmatpush3.bf16.msra.mxu0 %v6797_v23  ;;  %v501_v23 = vld [vmem:[#allocation5 + $0xb78] sm:$0xff]  ;;  %v6893_v55 = vpack.c.bf16 %v555_v51, %v554_v47 }
  0xe7   :  { %6800 = vmatprep.subr.bf16.mxu0 %v6799_v2  ;;  %v535_v2 = vld [vmem:[#allocation5 + $0xc88] sm:$0xff]  ;;  %v6849_v6 = vpack.c.bf16 %v501_v23, %v500_v54  ;;  %v7999_v13 = vrot.slane %v1687_v3, %v7896_v20  ;;  %v573_v48 = vld [vmem:[#allocation5 + $0xdb8] sm:$0xff]  ;;  %v542_v54 = vld [vmem:[#allocation5 + $0xcc0] sm:$0xff] }
  0xe8   :  { %6830 = vmatpush3.bf16.msra.mxu1 %v6829_v1  ;;  %v534_v1 = vld [vmem:[#allocation5 + $0xc80] sm:$0xff]  ;;  %v6895_v62 = vpack.c.bf16 %v573_v48, %v572_v44  ;;  %v564_v44 = vld [vmem:[#allocation5 + $0xd70] sm:$0xff] }
  0xe9   :  { %6832 = vmatprep.subr.bf16.mxu1 %v6831_v4  ;;  %v567_v4 = vld [vmem:[#allocation5 + $0xd88] sm:$0xff]  ;;  %v6851_v7 = vpack.c.bf16 %v535_v2, %v534_v1  ;;  %v1720_v40 = vcombine.high %v7999_v13, %v8002_v14  ;;  %v574_v23 = vld [vmem:[#allocation5 + $0xdc0] sm:$0xff] }
  0xea   :  { %6802 = vmatpush3.bf16.msra.mxu0 %v6801_v60  ;;  %v518_v60 = vld [vmem:[#allocation5 + $0xc00] sm:$0xff]  ;;  %v6883_v9 = vpack.c.bf16 %v567_v4, %v566_v63  ;;  %v575_v1 = vld [vmem:[#allocation5 + $0xdc8] sm:$0xff] }
  0xeb   :  { %6804 = vmatprep.subr.bf16.mxu0 %v6803_v8  ;;  %v550_v8 = vld [vmem:[#allocation5 + $0xd00] sm:$0xff]  ;;  %v527_v4 = vld [vmem:[#allocation5 + $0xc48] sm:$0xff] }
  0xec   :  { %6834 = vmatpush3.bf16.msra.mxu1 %v6833_v0  ;;  %v519_v0 = vld [vmem:[#allocation5 + $0xc08] sm:$0xff]  ;;  %v6885_v27 = vpack.c.bf16 %v551_v10, %v550_v8  ;;  %v526_v63 = vld [vmem:[#allocation5 + $0xc40] sm:$0xff] }
  0xed   :  { %6836 = vmatprep.subr.bf16.mxu1 %v6835_v12  ;;  %v537_v12 = vld [vmem:[#allocation5 + $0xc98] sm:$0xff]  ;;  %v6869_v8 = vpack.c.bf16 %v527_v4, %v526_v63  ;;  %v615_v4 = vld [vmem:[#allocation5 + $0xf08] sm:$0xff] }
  0xee   :  { %6806 = vmatpush3.bf16.msra.mxu0 %v6805_v21  ;;  %v8007_v21 = vrot.slane %v1688_v17, %v7896_v20  ;;  %v6855_v30 = vpack.c.bf16 %v537_v12, %v536_v11  ;;  %v558_v17 = vld [vmem:[#allocation5 + $0xd40] sm:$0xff]  ;;  %v528_v11 = vld [vmem:[#allocation5 + $0xc50] sm:$0xff]  ;;  %v529_v12 = vld [vmem:[#allocation5 + $0xc58] sm:$0xff] }
  0xef   :  { %6808 = vmatprep.subr.bf16.mxu0 %v6807_v25  ;;  %v6853_v25 = vpack.c.bf16 %v519_v0, %v518_v60  ;;  %v576_v60 = vld [vmem:[#allocation5 + $0xdd0] sm:$0xff]  ;;  %v577_v0 = vld [vmem:[#allocation5 + $0xdd8] sm:$0xff] }
  0xf0   :  { %6838 = vmatpush3.bf16.msra.mxu1 %v6837_v22  ;;  %v8010_v22 = vrot.slane %v1690_v24, %v7896_v20  ;;  %v6899_v24 = vpack.c.bf16 %v575_v1, %v574_v23  ;;  %v6903_v18 = vpack.c.bf16 %v577_v0, %v576_v60  ;;  %v632_v60 = vld [vmem:[#allocation5 + $0xf90] sm:$0xff]  ;;  %v633_v0 = vld [vmem:[#allocation5 + $0xf98] sm:$0xff] }
  0xf1   :  { %6840 = vmatprep.subr.bf16.mxu1 %v6839_v31  ;;  %v520_v31 = vld [vmem:[#allocation5 + $0xc10] sm:$0xff] }
  0xf2   :  { %6810 = vmatpush3.bf16.msra.mxu0 %v6809_v41  ;;  %v570_v41 = vld [vmem:[#allocation5 + $0xda0] sm:$0xff]  ;;  %v1722_v33 = vcombine.high %v8007_v21, %v8010_v22  ;;  %v6857_v34 = vpack.c.bf16 %v521_v32, %v520_v31  ;;  %v6873_v31 = vpack.c.bf16 %v529_v12, %v528_v11  ;;  %v1721_v11 = vcombine.low %v8007_v21, %v8010_v22 }
  0xf3   :  { %6812 = vmatprep.subr.bf16.mxu0 %v6811_v46  ;;  %v523_v46 = vld [vmem:[#allocation5 + $0xc28] sm:$0xff]  ;;  %v6891_v50 = vpack.c.bf16 %v571_v42, %v570_v41  ;;  %v530_v32 = vld [vmem:[#allocation5 + $0xc60] sm:$0xff]  ;;  %v549_v41 = vld [vmem:[#allocation5 + $0xcf8] sm:$0xff] }
  0xf4   :  { %6842 = vmatpush3.bf16.msra.mxu1 %v6841_v45  ;;  %v522_v45 = vld [vmem:[#allocation5 + $0xc20] sm:$0xff]  ;;  %v6877_v47 = vpack.c.bf16 %v531_v28, %v530_v32  ;;  %v635_v32 = vld [vmem:[#allocation5 + $0xfa8] sm:$0xff] }
  0xf5   :  { %6844 = vmatprep.subr.bf16.mxu1 %v6843_v52  ;;  %v540_v52 = vld [vmem:[#allocation5 + $0xcb0] sm:$0xff]  ;;  %v6861_v49 = vpack.c.bf16 %v523_v46, %v522_v45  ;;  %v101_v45 = vld [vmem:[#allocation2 + $0x174] sm:$0xff] }
  0xf6   :  { %6814 = vmatpush3.bf16.msra.mxu0 %v6813_v57  ;;  %v6863_v56 = vpack.c.bf16 %v541_v43, %v540_v52  ;;  %v524_v57 = vld [vmem:[#allocation5 + $0xc30] sm:$0xff]  ;;  %v121_v46 = vld [vmem:[#allocation2 + $0x212] sm:$0xff] }
  0xf7   :  { %6816 = vmatprep.subr.bf16.mxu0 %v6815_v61  ;;  %v556_v61 = vld [vmem:[#allocation5 + $0xd30] sm:$0xff]  ;;  %v533_v43 = vld [vmem:[#allocation5 + $0xc78] sm:$0xff] }
  0xf8   :  { %6846 = vmatpush3.bf16.msra.mxu1 %v6845_v58  ;;  %v525_v58 = vld [vmem:[#allocation5 + $0xc38] sm:$0xff]  ;;  %v6897_v3 = vpack.c.bf16 %v557_v53, %v556_v61  ;;  %v532_v52 = vld [vmem:[#allocation5 + $0xc70] sm:$0xff]  ;;  %v630_v61 = vld [vmem:[#allocation5 + $0xf80] sm:$0xff] }
  0xf9   :  { %6848 = vmatprep.subr.bf16.mxu1 %v6847_v16  ;;  %v543_v16 = vld [vmem:[#allocation5 + $0xcc8] sm:$0xff]  ;;  %v6865_v2 = vpack.c.bf16 %v525_v58, %v524_v57  ;;  %v1725_v58 = vcombine.low %v101_v45, %v121_v46 }
  0xfa   :  { %6818 = vmatpush3.bf16.msra.mxu0 %v6817_v5  ;;  %v6867_v59 = vpack.c.bf16 %v543_v16, %v542_v54  ;;  %v559_v5 = vld [vmem:[#allocation5 + $0xd48] sm:$0xff]  ;;  %v1726_v54 = vcombine.high %v101_v45, %v121_v46  ;;  %v6881_v16 = vpack.c.bf16 %v533_v43, %v532_v52  ;;  %v621_v43 = vld [vmem:[#allocation5 + $0xf38] sm:$0xff] }
  0xfb   :  { %6852 = vmatprep.subr.bf16.mxu0 %v6851_v7  ;;  %v545_v7 = vld [vmem:[#allocation5 + $0xcd8] sm:$0xff] }
  0xfc   :  { %6850 = vmatpush3.bf16.msra.mxu1 %v6849_v6  ;;  %v544_v6 = vld [vmem:[#allocation5 + $0xcd0] sm:$0xff] }
  0xfd   :  { %6884 = vmatprep.subr.bf16.mxu1 %v6883_v9  ;;  %3036 = vmatmul.mubr.f32.vlgmr.msra.gmra.mrb[10].mxu0 %v1683_v15  ;;  %v6901_v9 = vpack.c.bf16 %v559_v5, %v558_v17  ;;  %v6871_v10 = vpack.c.bf16 %v545_v7, %v544_v6  ;;  %v560_v15 = vld [vmem:[#allocation5 + $0xd50] sm:$0xff]  ;;  %v8022_v6 = vrot.slane %v1725_v58, %v7896_v20 }
  0xfe   :  { %6854 = vmatpush3.bf16.msra.mxu0 %v6853_v25  ;;  %3175 = vmatprep.mubr.f32.mxu0 %v1720_v40  ;;  %v546_v25 = vld [vmem:[#allocation5 + $0xce0] sm:$0xff]  ;;  %v6905_v35 = vpack.c.bf16 %v561_v19, %v560_v15  ;;  %v548_v40 = vld [vmem:[#allocation5 + $0xcf0] sm:$0xff]  ;;  %v1719_v7 = vcombine.low %v7999_v13, %v8002_v14  ;;  %v585_v19 = vld [vmem:[#allocation5 + $0xe18] sm:$0xff]  ;;  %v6951_v14 = vpack.c.bf16 %v633_v0, %v632_v60 }
  0xff   :  { %3106 = vmatmul.mubr.f32.vlgmr.msra.gmra.mrb[10].mxu1 %v1685_v26  ;;  %6856 = vmatprep.subr.bf16.mxu0 %v6855_v30  ;;  %v547_v26 = vld [vmem:[#allocation5 + $0xce8] sm:$0xff]  ;;  %v6879_v51 = vpack.c.bf16 %v549_v41, %v548_v40  ;;  %v600_v17 = vld [vmem:[#allocation5 + $0xe90] sm:$0xff]  ;;  %v625_v0 = vld [vmem:[#allocation5 + $0xf58] sm:$0xff] }
 0x100   :  { %6886 = vmatpush3.bf16.msra.mxu1 %v6885_v27  ;;  %3245 = vmatprep.mubr.f32.mxu1 %v1722_v33  ;;  %v578_v27 = vld [vmem:[#allocation5 + $0xde0] sm:$0xff]  ;;  %v579_v30 = vld [vmem:[#allocation5 + $0xde8] sm:$0xff]  ;;  %v6875_v36 = vpack.c.bf16 %v547_v26, %v546_v25  ;;  %v580_v33 = vld [vmem:[#allocation5 + $0xdf0] sm:$0xff] }
 0x101   :  { %6888 = vmatprep.subr.bf16.mxu1 %v6887_v29  ;;  %v562_v29 = vld [vmem:[#allocation5 + $0xd60] sm:$0xff]  ;;  %v6907_v42 = vpack.c.bf16 %v579_v30, %v578_v27  ;;  %v616_v13 = vld [vmem:[#allocation5 + $0xf10] sm:$0xff]  ;;  %v617_v25 = vld [vmem:[#allocation5 + $0xf18] sm:$0xff] }
 0x102   :  { %6858 = vmatpush3.bf16.msra.mxu0 %v6857_v34  ;;  %v581_v34 = vld [vmem:[#allocation5 + $0xdf8] sm:$0xff]  ;;  %v602_v26 = vld [vmem:[#allocation5 + $0xea0] sm:$0xff]  ;;  %v603_v27 = vld [vmem:[#allocation5 + $0xea8] sm:$0xff]  ;;  %v6953_v28 = vpack.c.bf16 %v617_v25, %v616_v13 }
 0x103   :  { %6860 = vmatprep.subr.bf16.mxu0 %v6859_v39  ;;  %v81_v39 = vld [vmem:[#allocation2 + $0xd6] sm:$0xff]  ;;  %v6911_v48 = vpack.c.bf16 %v581_v34, %v580_v33  ;;  %v619_v41 = vld [vmem:[#allocation5 + $0xf28] sm:$0xff]  ;;  %v636_v34 = vld [vmem:[#allocation5 + $0xfb0] sm:$0xff] }
 0x104   :  { %6890 = vmatpush3.bf16.msra.mxu1 %v6889_v38  ;;  %v61_v38 = vld [vmem:[#allocation2 + $0x38] sm:$0xff]  ;;  %v605_v33 = vld [vmem:[#allocation5 + $0xeb8] sm:$0xff]  ;;  %v595_v13 = vld [vmem:[#allocation5 + $0xe68] sm:$0xff] }
 0x105   :  { %6892 = vmatprep.subr.bf16.mxu1 %v6891_v50  ;;  %v6909_v50 = vpack.c.bf16 %v563_v37, %v562_v29  ;;  %v1723_v57 = vcombine.low %v61_v38, %v81_v39  ;;  %v1724_v53 = vcombine.high %v61_v38, %v81_v39  ;;  %v6923_v29 = vpack.c.bf16 %v603_v27, %v602_v26  ;;  %v618_v37 = vld [vmem:[#allocation5 + $0xf20] sm:$0xff]  ;;  %v637_v38 = vld [vmem:[#allocation5 + $0xfb8] sm:$0xff]  ;;  %v5090_v25 = vld [vmem:[#allocation7] ss:$0 sm:$0xff] }
 0x106   :  { %6862 = vmatpush3.bf16.msra.mxu0 %v6861_v49  ;;  %v565_v49 = vld [vmem:[#allocation5 + $0xd78] sm:$0xff]  ;;  %v6957_v45 = vpack.c.bf16 %v619_v41, %v618_v37  ;;  %v6959_v52 = vpack.c.bf16 %v637_v38, %v636_v34  ;;  %v102_v41 = vld [vmem:[#allocation2 + $0x17c] sm:$0xff] }
 0x107   :  { %6864 = vmatprep.subr.bf16.mxu0 %v6863_v56  ;;  %v599_v56 = vld [vmem:[#allocation5 + $0xe88] sm:$0xff]  ;;  %v6913_v23 = vpack.c.bf16 %v565_v49, %v564_v44  ;;  %v8019_v5 = vrot.slane %v1723_v57, %v7896_v20  ;;  %v606_v44 = vld [vmem:[#allocation5 + $0xec0] sm:$0xff] }
 0x108   :  { %6894 = vmatpush3.bf16.msra.mxu1 %v6893_v55  ;;  %v598_v55 = vld [vmem:[#allocation5 + $0xe80] sm:$0xff] }
 0x109   :  { %6896 = vmatprep.subr.bf16.mxu1 %v6895_v62  ;;  %v631_v62 = vld [vmem:[#allocation5 + $0xf88] sm:$0xff]  ;;  %v6915_v1 = vpack.c.bf16 %v599_v56, %v598_v55  ;;  %v1756_v30 = vcombine.high %v8019_v5, %v8022_v6  ;;  %v638_v49 = vld [vmem:[#allocation5 + $0xfc0] sm:$0xff] }
 0x10a   :  { %6866 = vmatpush3.bf16.msra.mxu0 %v6865_v2  ;;  %v582_v2 = vld [vmem:[#allocation5 + $0xe00] sm:$0xff]  ;;  %v6947_v63 = vpack.c.bf16 %v631_v62, %v630_v61  ;;  %v639_v55 = vld [vmem:[#allocation5 + $0xfc8] sm:$0xff] }
 0x10b   :  { %6868 = vmatprep.subr.bf16.mxu0 %v6867_v59  ;;  %v614_v59 = vld [vmem:[#allocation5 + $0xf00] sm:$0xff]  ;;  %v591_v62 = vld [vmem:[#allocation5 + $0xe48] sm:$0xff] }
 0x10c   :  { %6898 = vmatpush3.bf16.msra.mxu1 %v6897_v3  ;;  %v583_v3 = vld [vmem:[#allocation5 + $0xe08] sm:$0xff]  ;;  %v6949_v12 = vpack.c.bf16 %v615_v4, %v614_v59  ;;  %v590_v61 = vld [vmem:[#allocation5 + $0xe40] sm:$0xff] }
 0x10d   :  { %6900 = vmatprep.subr.bf16.mxu1 %v6899_v24  ;;  %v601_v24 = vld [vmem:[#allocation5 + $0xe98] sm:$0xff]  ;;  %v6933_v59 = vpack.c.bf16 %v591_v62, %v590_v61 }
 0x10e   :  { %6870 = vmatpush3.bf16.msra.mxu0 %v6869_v8  ;;  %v8027_v8 = vrot.slane %v1724_v53, %v7896_v20  ;;  %v6919_v15 = vpack.c.bf16 %v601_v24, %v600_v17  ;;  %v622_v53 = vld [vmem:[#allocation5 + $0xf40] sm:$0xff]  ;;  %v592_v17 = vld [vmem:[#allocation5 + $0xe50] sm:$0xff]  ;;  %v593_v24 = vld [vmem:[#allocation5 + $0xe58] sm:$0xff] }
 0x10f   :  { %6872 = vmatprep.subr.bf16.mxu0 %v6871_v10  ;;  %v6917_v10 = vpack.c.bf16 %v583_v3, %v582_v2  ;;  %v640_v2 = vld [vmem:[#allocation5 + $0xfd0] sm:$0xff]  ;;  %v641_v3 = vld [vmem:[#allocation5 + $0xfd8] sm:$0xff] }
 0x110   :  { %6902 = vmatpush3.bf16.msra.mxu1 %v6901_v9  ;;  %v8030_v9 = vrot.slane %v1726_v54, %v7896_v20  ;;  %v6963_v54 = vpack.c.bf16 %v639_v55, %v638_v49  ;;  %v6967_v60 = vpack.c.bf16 %v641_v3, %v640_v2  ;;  %v663_v49 = vld [vmem:[#allocation5 + $0x1088] sm:$0xff]  ;;  %v678_v3 = vld [vmem:[#allocation5 + $0x1100] sm:$0xff] }
 0x111   :  { %6904 = vmatprep.subr.bf16.mxu1 %v6903_v18  ;;  %v584_v18 = vld [vmem:[#allocation5 + $0xe10] sm:$0xff]  ;;  %v647_v2 = vld [vmem:[#allocation5 + $0x1008] sm:$0xff] }
 0x112   :  { %6874 = vmatpush3.bf16.msra.mxu0 %v6873_v31  ;;  %v634_v31 = vld [vmem:[#allocation5 + $0xfa0] sm:$0xff]  ;;  %v1758_v21 = vcombine.high %v8027_v8, %v8030_v9  ;;  %v6921_v22 = vpack.c.bf16 %v585_v19, %v584_v18  ;;  %v6937_v18 = vpack.c.bf16 %v593_v24, %v592_v17  ;;  %v665_v17 = vld [vmem:[#allocation5 + $0x1098] sm:$0xff] }
 0x113   :  { %6876 = vmatprep.subr.bf16.mxu0 %v6875_v36  ;;  %v587_v36 = vld [vmem:[#allocation5 + $0xe28] sm:$0xff]  ;;  %v6955_v40 = vpack.c.bf16 %v635_v32, %v634_v31  ;;  %v594_v19 = vld [vmem:[#allocation5 + $0xe60] sm:$0xff]  ;;  %v612_v31 = vld [vmem:[#allocation5 + $0xef0] sm:$0xff] }
 0x114   :  { %6906 = vmatpush3.bf16.msra.mxu1 %v6905_v35  ;;  %v586_v35 = vld [vmem:[#allocation5 + $0xe20] sm:$0xff]  ;;  %v613_v32 = vld [vmem:[#allocation5 + $0xef8] sm:$0xff]  ;;  %v6941_v38 = vpack.c.bf16 %v595_v13, %v594_v19 }
 0x115   :  { %6908 = vmatprep.subr.bf16.mxu1 %v6907_v42  ;;  %v604_v42 = vld [vmem:[#allocation5 + $0xeb0] sm:$0xff]  ;;  %v6925_v39 = vpack.c.bf16 %v587_v36, %v586_v35  ;;  %v62_v35 = vld [vmem:[#allocation2 + $0x40] sm:$0xff] }
 0x116   :  { %6878 = vmatpush3.bf16.msra.mxu0 %v6877_v47  ;;  %v6927_v46 = vpack.c.bf16 %v605_v33, %v604_v42  ;;  %v588_v47 = vld [vmem:[#allocation5 + $0xe30] sm:$0xff]  ;;  %v122_v42 = vld [vmem:[#allocation2 + $0x21a] sm:$0xff] }
 0x117   :  { %6880 = vmatprep.subr.bf16.mxu0 %v6879_v51  ;;  %v620_v51 = vld [vmem:[#allocation5 + $0xf30] sm:$0xff]  ;;  %v1762_v62 = vcombine.high %v102_v41, %v122_v42 }
 0x118   :  { %6910 = vmatpush3.bf16.msra.mxu1 %v6909_v50  ;;  %v589_v50 = vld [vmem:[#allocation5 + $0xe38] sm:$0xff]  ;;  %v6961_v57 = vpack.c.bf16 %v621_v43, %v620_v51  ;;  %v628_v51 = vld [vmem:[#allocation5 + $0xf70] sm:$0xff] }
 0x119   :  { %6912 = vmatprep.subr.bf16.mxu1 %v6911_v48  ;;  %v607_v48 = vld [vmem:[#allocation5 + $0xec8] sm:$0xff]  ;;  %v6929_v56 = vpack.c.bf16 %v589_v50, %v588_v47  ;;  %v596_v47 = vld [vmem:[#allocation5 + $0xe70] sm:$0xff]  ;;  %v597_v50 = vld [vmem:[#allocation5 + $0xe78] sm:$0xff] }
 0x11a   :  { %6882 = vmatpush3.bf16.msra.mxu0 %v6881_v16  ;;  %v6931_v58 = vpack.c.bf16 %v607_v48, %v606_v44  ;;  %v623_v16 = vld [vmem:[#allocation5 + $0xf48] sm:$0xff]  ;;  %v629_v44 = vld [vmem:[#allocation5 + $0xf78] sm:$0xff]  ;;  %v662_v48 = vld [vmem:[#allocation5 + $0x1080] sm:$0xff] }
 0x11b   :  { %6916 = vmatprep.subr.bf16.mxu0 %v6915_v1  ;;  %v609_v1 = vld [vmem:[#allocation5 + $0xed8] sm:$0xff] }
 0x11c   :  { %6914 = vmatpush3.bf16.msra.mxu1 %v6913_v23  ;;  %v608_v23 = vld [vmem:[#allocation5 + $0xed0] sm:$0xff] }
 0x11d   :  { %6948 = vmatprep.subr.bf16.mxu1 %v6947_v63  ;;  %3176 = vmatmul.mubr.f32.vlgmr.msra.gmra.mrb[12].mxu0 %v1719_v7  ;;  %v6965_v63 = vpack.c.bf16 %v623_v16, %v622_v53  ;;  %v6935_v4 = vpack.c.bf16 %v609_v1, %v608_v23  ;;  %v624_v7 = vld [vmem:[#allocation5 + $0xf50] sm:$0xff]  ;;  %v6977_v16 = vpack.c.bf16 %v629_v44, %v628_v51  ;;  %v646_v1 = vld [vmem:[#allocation5 + $0x1000] sm:$0xff]  ;;  %v671_v44 = vld [vmem:[#allocation5 + $0x10c8] sm:$0xff] }
 0x11e   :  { %6918 = vmatpush3.bf16.msra.mxu0 %v6917_v10  ;;  %3315 = vmatprep.mubr.f32.mxu0 %v1756_v30  ;;  %v610_v10 = vld [vmem:[#allocation5 + $0xee0] sm:$0xff]  ;;  %v6969_v26 = vpack.c.bf16 %v625_v0, %v624_v7  ;;  %v627_v30 = vld [vmem:[#allocation5 + $0xf68] sm:$0xff]  ;;  %v6979_v23 = vpack.c.bf16 %v663_v49, %v662_v48  ;;  %v696_v0 = vld [vmem:[#allocation5 + $0x1190] sm:$0xff] }
 0x11f   :  { %3246 = vmatmul.mubr.f32.vlgmr.msra.gmra.mrb[12].mxu1 %v1721_v11  ;;  %6920 = vmatprep.subr.bf16.mxu0 %v6919_v15  ;;  %v611_v11 = vld [vmem:[#allocation5 + $0xee8] sm:$0xff]  ;;  %v702_v48 = vld [vmem:[#allocation5 + $0x11c0] sm:$0xff] }
 0x120   :  { %6950 = vmatpush3.bf16.msra.mxu1 %v6949_v12  ;;  %3385 = vmatprep.mubr.f32.mxu1 %v1758_v21  ;;  %v642_v12 = vld [vmem:[#allocation5 + $0xfe0] sm:$0xff]  ;;  %v643_v15 = vld [vmem:[#allocation5 + $0xfe8] sm:$0xff]  ;;  %v6939_v27 = vpack.c.bf16 %v611_v11, %v610_v10  ;;  %v697_v10 = vld [vmem:[#allocation5 + $0x1198] sm:$0xff] }
 0x121   :  { %6952 = vmatprep.subr.bf16.mxu1 %v6951_v14  ;;  %v626_v14 = vld [vmem:[#allocation5 + $0xf60] sm:$0xff]  ;;  %v703_v49 = vld [vmem:[#allocation5 + $0x11c8] sm:$0xff] }
 0x122   :  { %6922 = vmatpush3.bf16.msra.mxu0 %v6921_v22  ;;  %v6971_v22 = vpack.c.bf16 %v643_v15, %v642_v12  ;;  %v8052_v12 = vrot.slane %v1762_v62, %v7896_v20  ;;  %v6981_v15 = vpack.c.bf16 %v647_v2, %v646_v1  ;;  %v686_v62 = vld [vmem:[#allocation5 + $0x1140] sm:$0xff]  ;;  %v673_v1 = vld [vmem:[#allocation5 + $0x10d8] sm:$0xff]  ;;  %v704_v2 = vld [vmem:[#allocation5 + $0x11d0] sm:$0xff] }
 0x123   :  { %6924 = vmatprep.subr.bf16.mxu0 %v6923_v29  ;;  %v645_v29 = vld [vmem:[#allocation5 + $0xff8] sm:$0xff] }
 0x124   :  { %6954 = vmatpush3.bf16.msra.mxu1 %v6953_v28  ;;  %v644_v28 = vld [vmem:[#allocation5 + $0xff0] sm:$0xff] }
 0x125   :  { %6956 = vmatprep.subr.bf16.mxu1 %v6955_v40  ;;  %v82_v40 = vld [vmem:[#allocation2 + $0xde] sm:$0xff]  ;;  %v6975_v43 = vpack.c.bf16 %v645_v29, %v644_v28 }
 0x126   :  { %6926 = vmatpush3.bf16.msra.mxu0 %v6925_v39  ;;  %v1759_v55 = vcombine.low %v62_v35, %v82_v40  ;;  %v1760_v61 = vcombine.high %v62_v35, %v82_v40  ;;  %v650_v29 = vld [vmem:[#allocation5 + $0x1020] sm:$0xff]  ;;  %v651_v35 = vld [vmem:[#allocation5 + $0x1028] sm:$0xff] }
 0x127   :  { %6928 = vmatprep.subr.bf16.mxu0 %v6927_v46  ;;  %v6943_v46 = vpack.c.bf16 %v613_v32, %v612_v31  ;;  %v698_v32 = vld [vmem:[#allocation5 + $0x11a0] sm:$0xff]  ;;  %v683_v40 = vld [vmem:[#allocation5 + $0x1128] sm:$0xff] }
 0x128   :  { %6958 = vmatpush3.bf16.msra.mxu1 %v6957_v45  ;;  %v6973_v45 = vpack.c.bf16 %v627_v30, %v626_v14  ;;  %v8041_v24 = vrot.slane %v1759_v55, %v7896_v20  ;;  %v8049_v11 = vrot.slane %v1760_v61, %v7896_v20  ;;  %v648_v14 = vld [vmem:[#allocation5 + $0x1010] sm:$0xff]  ;;  %v667_v30 = vld [vmem:[#allocation5 + $0x10a8] sm:$0xff] }
 0x129   :  { %6960 = vmatprep.subr.bf16.mxu1 %v6959_v52  ;;  %v655_v61 = vld [vmem:[#allocation5 + $0x1048] sm:$0xff] }
 0x12a   :  { %6930 = vmatpush3.bf16.msra.mxu0 %v6929_v56  ;;  %v1761_v56 = vcombine.low %v102_v41, %v122_v42  ;;  %v668_v41 = vld [vmem:[#allocation5 + $0x10b0] sm:$0xff]  ;;  %v669_v42 = vld [vmem:[#allocation5 + $0x10b8] sm:$0xff] }
 0x12b   :  { %6932 = vmatprep.subr.bf16.mxu0 %v6931_v58  ;;  %v695_v58 = vld [vmem:[#allocation5 + $0x1188] sm:$0xff] }
 0x12c   :  { %6962 = vmatpush3.bf16.msra.mxu1 %v6961_v57  ;;  %v694_v57 = vld [vmem:[#allocation5 + $0x1180] sm:$0xff]  ;;  %v8044_v7 = vrot.slane %v1761_v56, %v7896_v20 }
 0x12d   :  { %6964 = vmatprep.subr.bf16.mxu1 %v6963_v54  ;;  %v6945_v54 = vpack.c.bf16 %v597_v50, %v596_v47  ;;  %v653_v47 = vld [vmem:[#allocation5 + $0x1038] sm:$0xff]  ;;  %v684_v50 = vld [vmem:[#allocation5 + $0x1130] sm:$0xff] }
 0x12e   :  { %6934 = vmatpush3.bf16.msra.mxu0 %v6933_v59  ;;  %v7011_v59 = vpack.c.bf16 %v695_v58, %v694_v57  ;;  %v1792_v31 = vcombine.high %v8041_v24, %v8044_v7  ;;  %v654_v58 = vld [vmem:[#allocation5 + $0x1040] sm:$0xff] }
 0x12f   :  { %6936 = vmatprep.subr.bf16.mxu0 %v6935_v4  ;;  %v664_v4 = vld [vmem:[#allocation5 + $0x1090] sm:$0xff] }
 0x130   :  { %6966 = vmatpush3.bf16.msra.mxu1 %v6965_v63  ;;  %v5124_v21 = vpop.f32.mrb[0].mxu0  ;;  %v679_v63 = vld [vmem:[#allocation5 + $0x1108] sm:$0xff]  ;;  %v6983_v13 = vpack.c.bf16 %v665_v17, %v664_v4  ;;  %v656_v17 = vld [vmem:[#allocation5 + $0x1050] sm:$0xff] }
 0x131   :  { %6968 = vmatprep.subr.bf16.mxu1 %v6967_v60  ;;  %v5125_v36 = vpop.f32.mrb[1].mxu0  ;;  %v1755_v60 = vcombine.low %v8019_v5, %v8022_v6  ;;  %v7013_v19 = vpack.c.bf16 %v679_v63, %v678_v3  ;;  %v680_v5 = vld [vmem:[#allocation5 + $0x1110] sm:$0xff]  ;;  %v7015_v6 = vpack.c.bf16 %v697_v10, %v696_v0  ;;  %v705_v3 = vld [vmem:[#allocation5 + $0x11d8] sm:$0xff] }
 0x132   :  { %v5159_v37 = vpop.f32.mrb[0].mxu1  ;;  %v5126_v33 = vadd.f32 %v5125_v36, %v5124_v21  ;;  %6938 = vmatpush3.bf16.msra.mxu0 %v6937_v18  ;;  %v1757_v18 = vcombine.low %v8027_v8, %v8030_v9  ;;  %v699_v21 = vld [vmem:[#allocation5 + $0x11a8] sm:$0xff]  ;;  %v1794_v8 = vcombine.high %v8049_v11, %v8052_v12  ;;  %v682_v36 = vld [vmem:[#allocation5 + $0x1120] sm:$0xff]  ;;  %v688_v0 = vld [vmem:[#allocation5 + $0x1150] sm:$0xff]  ;;  %v7031_v10 = vpack.c.bf16 %v705_v3, %v704_v2 }
 0x133   :  { %v5160_v34 = vpop.f32.mrb[1].mxu1  ;;  %6940 = vmatprep.subr.bf16.mxu0 %v6939_v27  ;;  %v666_v27 = vld [vmem:[#allocation5 + $0x10a0] sm:$0xff] }
 0x134   :  { %v5161_v39 = vadd.f32 %v5160_v34, %v5159_v37  ;;  %6970 = vmatpush3.bf16.msra.mxu1 %v6969_v26  ;;  %v2338_v52 = vadd.f32 %v5126_v33, %v5090_v25  ;;  %v649_v25 = vld [vmem:[#allocation5 + $0x1018] sm:$0xff]  ;;  %v6987_v28 = vpack.c.bf16 %v667_v30, %v666_v27  ;;  %v7019_v37 = vpack.c.bf16 %v699_v21, %v698_v32  ;;  %v700_v33 = vld [vmem:[#allocation5 + $0x11b0] sm:$0xff]  ;;  %v742_v2 = vld [vmem:[#allocation5 + $0x1300] sm:$0xff] }
 0x135   :  { %6972 = vmatprep.subr.bf16.mxu1 %v6971_v22  ;;  %v681_v26 = vld [vmem:[#allocation5 + $0x1118] sm:$0xff]  ;;  %v6985_v9 = vpack.c.bf16 %v649_v25, %v648_v14  ;;  %v707_v14 = vld [vmem:[#allocation5 + $0x11e8] sm:$0xff]  ;;  %v676_v32 = vld [vmem:[#allocation5 + $0x10f0] sm:$0xff] }
 0x136   :  { %v8038_v53 = vadd.f32 %v5161_v39, %v2338_v52  ;;  %6942 = vmatpush3.bf16.msra.mxu0 %v6941_v38  ;;  %v7017_v22 = vpack.c.bf16 %v681_v26, %v680_v5  ;;  %v701_v34 = vld [vmem:[#allocation5 + $0x11b8] sm:$0xff]  ;;  %v6989_v38 = vpack.c.bf16 %v651_v35, %v650_v29  ;;  %v7021_v39 = vpack.c.bf16 %v683_v40, %v682_v36  ;;  %v658_v5 = vld [vmem:[#allocation5 + $0x1060] sm:$0xff]  ;;  %v63_v29 = vld [vmem:[#allocation2 + $0x48] sm:$0xff] }
 0x137   :  { %6944 = vmatprep.subr.bf16.mxu0 %v6943_v46  ;;  %v652_v46 = vld [vmem:[#allocation5 + $0x1030] sm:$0xff]  ;;  %v7023_v51 = vpack.c.bf16 %v701_v34, %v700_v33  ;;  %v685_v52 = vld [vmem:[#allocation5 + $0x1138] sm:$0xff]  ;;  %v690_v26 = vld [vmem:[#allocation5 + $0x1160] sm:$0xff] }
 0x138   :  { %6974 = vmatpush3.bf16.msra.mxu1 %v6973_v45  ;;  %v6991_v45 = vpack.c.bf16 %v669_v42, %v668_v41  ;;  %v6993_v55 = vpack.c.bf16 %v653_v47, %v652_v46  ;;  %v7025_v56 = vpack.c.bf16 %v685_v52, %v684_v50  ;;  %v677_v21 = vld [vmem:[#allocation5 + $0x10f8] sm:$0xff]  ;;  %v103_v40 = vld [vmem:[#allocation2 + $0x184] sm:$0xff] }
 0x139   :  { %6976 = vmatprep.subr.bf16.mxu1 %v6975_v43  ;;  %v670_v43 = vld [vmem:[#allocation5 + $0x10c0] sm:$0xff]  ;;  %v123_v41 = vld [vmem:[#allocation2 + $0x222] sm:$0xff]  ;;  %v661_v47 = vld [vmem:[#allocation5 + $0x1078] sm:$0xff] }
 0x13a   :  { %6946 = vmatpush3.bf16.msra.mxu0 %v6945_v54  ;;  %v6995_v57 = vpack.c.bf16 %v671_v44, %v670_v43  ;;  %v7027_v54 = vpack.c.bf16 %v703_v49, %v702_v48  ;;  %v660_v46 = vld [vmem:[#allocation5 + $0x1070] sm:$0xff]  ;;  %v693_v43 = vld [vmem:[#allocation5 + $0x1178] sm:$0xff]  ;;  %v726_v44 = vld [vmem:[#allocation5 + $0x1280] sm:$0xff] }
 0x13b   :  { %6980 = vmatprep.subr.bf16.mxu0 %v6979_v23  ;;  %v672_v23 = vld [vmem:[#allocation5 + $0x10d0] sm:$0xff]  ;;  %v727_v48 = vld [vmem:[#allocation5 + $0x1288] sm:$0xff] }
 0x13c   :  { %6978 = vmatpush3.bf16.msra.mxu1 %v6977_v16  ;;  %v687_v16 = vld [vmem:[#allocation5 + $0x1148] sm:$0xff]  ;;  %v6999_v4 = vpack.c.bf16 %v673_v1, %v672_v23  ;;  %v692_v50 = vld [vmem:[#allocation5 + $0x1170] sm:$0xff]  ;;  %v7043_v23 = vpack.c.bf16 %v727_v48, %v726_v44  ;;  %v766_v44 = vld [vmem:[#allocation5 + $0x13c0] sm:$0xff] }
 0x13d   :  { %7012 = vmatprep.subr.bf16.mxu1 %v7011_v59  ;;  %3316 = vmatmul.mubr.f32.vlgmr.msra.gmra.mrb[14].mxu0 %v1755_v60  ;;  %v6997_v59 = vpack.c.bf16 %v655_v61, %v654_v58  ;;  %v7029_v63 = vpack.c.bf16 %v687_v16, %v686_v62  ;;  %v657_v60 = vld [vmem:[#allocation5 + $0x1058] sm:$0xff]  ;;  %v1798_v61 = vcombine.high %v103_v40, %v123_v41  ;;  %v711_v1 = vld [vmem:[#allocation5 + $0x1208] sm:$0xff] }
 0x13e   :  { %6982 = vmatpush3.bf16.msra.mxu0 %v6981_v15  ;;  %3455 = vmatprep.mubr.f32.mxu0 %v1792_v31  ;;  %v689_v15 = vld [vmem:[#allocation5 + $0x1158] sm:$0xff]  ;;  %v7001_v25 = vpack.c.bf16 %v657_v60, %v656_v17  ;;  %v691_v31 = vld [vmem:[#allocation5 + $0x1168] sm:$0xff]  ;;  %v7041_v16 = vpack.c.bf16 %v693_v43, %v692_v50 }
 0x13f   :  { %3386 = vmatmul.mubr.f32.vlgmr.msra.gmra.mrb[14].mxu1 %v1757_v18  ;;  %6984 = vmatprep.subr.bf16.mxu0 %v6983_v13  ;;  %v674_v18 = vld [vmem:[#allocation5 + $0x10e0] sm:$0xff]  ;;  %v7033_v27 = vpack.c.bf16 %v689_v15, %v688_v0  ;;  %v1791_v0 = vcombine.low %v8041_v24, %v8044_v7  ;;  %v761_v15 = vld [vmem:[#allocation5 + $0x1398] sm:$0xff]  ;;  %v744_v24 = vld [vmem:[#allocation5 + $0x1310] sm:$0xff] }
 0x140   :  { %7014 = vmatpush3.bf16.msra.mxu1 %v7013_v19  ;;  %3525 = vmatprep.mubr.f32.mxu1 %v1794_v8  ;;  %v675_v19 = vld [vmem:[#allocation5 + $0x10e8] sm:$0xff]  ;;  %v706_v13 = vld [vmem:[#allocation5 + $0x11e0] sm:$0xff] }
 0x141   :  { %7016 = vmatprep.subr.bf16.mxu1 %v7015_v6  ;;  %v659_v6 = vld [vmem:[#allocation5 + $0x1068] sm:$0xff]  ;;  %v7003_v30 = vpack.c.bf16 %v675_v19, %v674_v18  ;;  %v8075_v19 = vrot.slane %v1798_v61, %v7896_v20  ;;  %v750_v61 = vld [vmem:[#allocation5 + $0x1340] sm:$0xff] }
 0x142   :  { %6986 = vmatpush3.bf16.msra.mxu0 %v6985_v9  ;;  %v7035_v9 = vpack.c.bf16 %v707_v14, %v706_v13  ;;  %v7005_v34 = vpack.c.bf16 %v659_v6, %v658_v5  ;;  %v1793_v14 = vcombine.low %v8049_v11, %v8052_v12  ;;  %v712_v6 = vld [vmem:[#allocation5 + $0x1210] sm:$0xff]  ;;  %v735_v43 = vld [vmem:[#allocation5 + $0x12c8] sm:$0xff] }
 0x143   :  { %6988 = vmatprep.subr.bf16.mxu0 %v6987_v28  ;;  %v709_v28 = vld [vmem:[#allocation5 + $0x11f8] sm:$0xff]  ;;  %v767_v48 = vld [vmem:[#allocation5 + $0x13c8] sm:$0xff] }
 0x144   :  { %7018 = vmatpush3.bf16.msra.mxu1 %v7017_v22  ;;  %v708_v22 = vld [vmem:[#allocation5 + $0x11f0] sm:$0xff] }
 0x145   :  { %7020 = vmatprep.subr.bf16.mxu1 %v7019_v37  ;;  %v83_v37 = vld [vmem:[#allocation2 + $0xe6] sm:$0xff]  ;;  %v7039_v52 = vpack.c.bf16 %v709_v28, %v708_v22  ;;  %v714_v28 = vld [vmem:[#allocation5 + $0x1220] sm:$0xff] }
 0x146   :  { %6990 = vmatpush3.bf16.msra.mxu0 %v6989_v38  ;;  %v1795_v49 = vcombine.low %v63_v29, %v83_v37  ;;  %v1796_v58 = vcombine.high %v63_v29, %v83_v37  ;;  %v715_v29 = vld [vmem:[#allocation5 + $0x1228] sm:$0xff] }
 0x147   :  { %6992 = vmatprep.subr.bf16.mxu0 %v6991_v45  ;;  %v7007_v45 = vpack.c.bf16 %v677_v21, %v676_v32  ;;  %v762_v21 = vld [vmem:[#allocation5 + $0x13a0] sm:$0xff]  ;;  %v747_v37 = vld [vmem:[#allocation5 + $0x1328] sm:$0xff] }
 0x148   :  { %7022 = vmatpush3.bf16.msra.mxu1 %v7021_v39  ;;  %v7037_v39 = vpack.c.bf16 %v691_v31, %v690_v26  ;;  %v8064_v17 = vrot.slane %v1795_v49, %v7896_v20  ;;  %v8072_v18 = vrot.slane %v1796_v58, %v7896_v20  ;;  %v713_v26 = vld [vmem:[#allocation5 + $0x1218] sm:$0xff]  ;;  %v731_v31 = vld [vmem:[#allocation5 + $0x12a8] sm:$0xff] }
 0x149   :  { %7024 = vmatprep.subr.bf16.mxu1 %v7023_v51  ;;  %v7049_v12 = vpack.c.bf16 %v713_v26, %v712_v6  ;;  %v719_v58 = vld [vmem:[#allocation5 + $0x1248] sm:$0xff] }
 0x14a   :  { %6994 = vmatpush3.bf16.msra.mxu0 %v6993_v55  ;;  %v1797_v55 = vcombine.low %v103_v40, %v123_v41  ;;  %v1830_v11 = vcombine.high %v8072_v18, %v8075_v19  ;;  %v732_v40 = vld [vmem:[#allocation5 + $0x12b0] sm:$0xff]  ;;  %v733_v41 = vld [vmem:[#allocation5 + $0x12b8] sm:$0xff]  ;;  %v771_v6 = vld [vmem:[#allocation5 + $0x13e8] sm:$0xff] }
 0x14b   :  { %6996 = vmatprep.subr.bf16.mxu0 %v6995_v57  ;;  %v759_v57 = vld [vmem:[#allocation5 + $0x1388] sm:$0xff] }
 0x14c   :  { %7026 = vmatpush3.bf16.msra.mxu1 %v7025_v56  ;;  %v758_v56 = vld [vmem:[#allocation5 + $0x1380] sm:$0xff]  ;;  %v8067_v60 = vrot.slane %v1797_v55, %v7896_v20 }
 0x14d   :  { %7028 = vmatprep.subr.bf16.mxu1 %v7027_v54  ;;  %v7009_v54 = vpack.c.bf16 %v661_v47, %v660_v46  ;;  %v7075_v3 = vpack.c.bf16 %v759_v57, %v758_v56  ;;  %v717_v46 = vld [vmem:[#allocation5 + $0x1238] sm:$0xff]  ;;  %v748_v47 = vld [vmem:[#allocation5 + $0x1330] sm:$0xff]  ;;  %v718_v57 = vld [vmem:[#allocation5 + $0x1240] sm:$0xff] }
 0x14e   :  { %6998 = vmatpush3.bf16.msra.mxu0 %v6997_v59  ;;  %v743_v59 = vld [vmem:[#allocation5 + $0x1308] sm:$0xff]  ;;  %v1828_v32 = vcombine.high %v8064_v17, %v8067_v60 }
 0x14f   :  { %7000 = vmatprep.subr.bf16.mxu0 %v6999_v4  ;;  %v729_v4 = vld [vmem:[#allocation5 + $0x1298] sm:$0xff] }
 0x150   :  { %7030 = vmatpush3.bf16.msra.mxu1 %v7029_v63  ;;  %v5194_v8 = vpop.f32.mrb[2].mxu0  ;;  %v728_v63 = vld [vmem:[#allocation5 + $0x1290] sm:$0xff] }
 0x151   :  { %7032 = vmatprep.subr.bf16.mxu1 %v7031_v10  ;;  %v5195_v35 = vpop.f32.mrb[3].mxu0  ;;  %v760_v10 = vld [vmem:[#allocation5 + $0x1390] sm:$0xff]  ;;  %v7047_v5 = vpack.c.bf16 %v729_v4, %v728_v63 }
 0x152   :  { %v5229_v36 = vpop.f32.mrb[2].mxu1  ;;  %v5196_v42 = vadd.f32 %v5195_v35, %v5194_v8  ;;  %7002 = vmatpush3.bf16.msra.mxu0 %v7001_v25  ;;  %v7077_v25 = vpack.c.bf16 %v743_v59, %v742_v2  ;;  %v7079_v7 = vpack.c.bf16 %v761_v15, %v760_v10  ;;  %v763_v8 = vld [vmem:[#allocation5 + $0x13a8] sm:$0xff]  ;;  %v746_v35 = vld [vmem:[#allocation5 + $0x1320] sm:$0xff]  ;;  %v769_v2 = vld [vmem:[#allocation5 + $0x13d8] sm:$0xff] }
 0x153   :  { %v5230_v33 = vpop.f32.mrb[3].mxu1  ;;  %7004 = vmatprep.subr.bf16.mxu0 %v7003_v30  ;;  %v730_v30 = vld [vmem:[#allocation5 + $0x12a0] sm:$0xff]  ;;  %v720_v4 = vld [vmem:[#allocation5 + $0x1250] sm:$0xff] }
 0x154   :  { %v5231_v38 = vadd.f32 %v5230_v33, %v5229_v36  ;;  %7034 = vmatpush3.bf16.msra.mxu1 %v7033_v27  ;;  %v2478_v51 = vadd.f32 %v5196_v42, %v8038_v53  ;;  %v710_v53 = vld [vmem:[#allocation5 + $0x1200] sm:$0xff]  ;;  %v745_v27 = vld [vmem:[#allocation5 + $0x1318] sm:$0xff]  ;;  %v7051_v22 = vpack.c.bf16 %v731_v31, %v730_v30  ;;  %v7083_v36 = vpack.c.bf16 %v763_v8, %v762_v21  ;;  %v764_v42 = vld [vmem:[#allocation5 + $0x13b0] sm:$0xff] }
 0x155   :  { %7036 = vmatprep.subr.bf16.mxu1 %v7035_v9  ;;  %v7045_v13 = vpack.c.bf16 %v711_v1, %v710_v53  ;;  %v7081_v9 = vpack.c.bf16 %v745_v27, %v744_v24  ;;  %v765_v33 = vld [vmem:[#allocation5 + $0x13b8] sm:$0xff]  ;;  %v768_v1 = vld [vmem:[#allocation5 + $0x13d0] sm:$0xff]  ;;  %v722_v24 = vld [vmem:[#allocation5 + $0x1260] sm:$0xff] }
 0x156   :  { %v8061_v62 = vadd.f32 %v5231_v38, %v2478_v51  ;;  %7006 = vmatpush3.bf16.msra.mxu0 %v7005_v34  ;;  %v7053_v34 = vpack.c.bf16 %v715_v29, %v714_v28  ;;  %v7085_v38 = vpack.c.bf16 %v747_v37, %v746_v35  ;;  %v7087_v50 = vpack.c.bf16 %v765_v33, %v764_v42  ;;  %v749_v51 = vld [vmem:[#allocation5 + $0x1338] sm:$0xff]  ;;  %v752_v10 = vld [vmem:[#allocation5 + $0x1350] sm:$0xff]  ;;  %v754_v27 = vld [vmem:[#allocation5 + $0x1360] sm:$0xff] }
 0x157   :  { %7008 = vmatprep.subr.bf16.mxu0 %v7007_v45  ;;  %v716_v45 = vld [vmem:[#allocation5 + $0x1230] sm:$0xff]  ;;  %v7089_v55 = vpack.c.bf16 %v749_v51, %v748_v47  ;;  %v737_v53 = vld [vmem:[#allocation5 + $0x12d8] sm:$0xff]  ;;  %v7095_v15 = vpack.c.bf16 %v769_v2, %v768_v1  ;;  %v806_v1 = vld [vmem:[#allocation5 + $0x1500] sm:$0xff] }
 0x158   :  { %7038 = vmatpush3.bf16.msra.mxu1 %v7037_v39  ;;  %v7055_v39 = vpack.c.bf16 %v733_v41, %v732_v40  ;;  %v7057_v49 = vpack.c.bf16 %v717_v46, %v716_v45  ;;  %v740_v21 = vld [vmem:[#allocation5 + $0x12f0] sm:$0xff]  ;;  %v741_v8 = vld [vmem:[#allocation5 + $0x12f8] sm:$0xff] }
 0x159   :  { %7040 = vmatprep.subr.bf16.mxu1 %v7039_v52  ;;  %v734_v52 = vld [vmem:[#allocation5 + $0x12c0] sm:$0xff]  ;;  %v64_v28 = vld [vmem:[#allocation2 + $0x50] sm:$0xff]  ;;  %v724_v45 = vld [vmem:[#allocation5 + $0x1270] sm:$0xff] }
 0x15a   :  { %7010 = vmatpush3.bf16.msra.mxu0 %v7009_v54  ;;  %v7059_v56 = vpack.c.bf16 %v735_v43, %v734_v52  ;;  %v7091_v54 = vpack.c.bf16 %v767_v48, %v766_v44  ;;  %v104_v37 = vld [vmem:[#allocation2 + $0x18c] sm:$0xff]  ;;  %v790_v43 = vld [vmem:[#allocation5 + $0x1480] sm:$0xff]  ;;  %v791_v44 = vld [vmem:[#allocation5 + $0x1488] sm:$0xff] }
 0x15b   :  { %7044 = vmatprep.subr.bf16.mxu0 %v7043_v23  ;;  %v736_v23 = vld [vmem:[#allocation5 + $0x12d0] sm:$0xff]  ;;  %v725_v46 = vld [vmem:[#allocation5 + $0x1278] sm:$0xff] }
 0x15c   :  { %7042 = vmatpush3.bf16.msra.mxu1 %v7041_v16  ;;  %v751_v16 = vld [vmem:[#allocation5 + $0x1348] sm:$0xff]  ;;  %v7063_v63 = vpack.c.bf16 %v737_v53, %v736_v23  ;;  %v124_v40 = vld [vmem:[#allocation2 + $0x22a] sm:$0xff]  ;;  %v7107_v23 = vpack.c.bf16 %v791_v44, %v790_v43  ;;  %v830_v43 = vld [vmem:[#allocation5 + $0x15c0] sm:$0xff] }
 0x15d   :  { %7076 = vmatprep.subr.bf16.mxu1 %v7075_v3  ;;  %3456 = vmatmul.mubr.f32.vlgmr.msra.gmra.mrb[16].mxu0 %v1791_v0  ;;  %v7061_v3 = vpack.c.bf16 %v719_v58, %v718_v57  ;;  %v7093_v59 = vpack.c.bf16 %v751_v16, %v750_v61  ;;  %v721_v0 = vld [vmem:[#allocation5 + $0x1258] sm:$0xff]  ;;  %v756_v47 = vld [vmem:[#allocation5 + $0x1370] sm:$0xff]  ;;  %v1834_v58 = vcombine.high %v104_v37, %v124_v40  ;;  %v775_v53 = vld [vmem:[#allocation5 + $0x1408] sm:$0xff] }
 0x15e   :  { %7046 = vmatpush3.bf16.msra.mxu0 %v7045_v13  ;;  %3595 = vmatprep.mubr.f32.mxu0 %v1828_v32  ;;  %v753_v13 = vld [vmem:[#allocation5 + $0x1358] sm:$0xff]  ;;  %v7065_v26 = vpack.c.bf16 %v721_v0, %v720_v4  ;;  %v755_v32 = vld [vmem:[#allocation5 + $0x1368] sm:$0xff] }
 0x15f   :  { %3526 = vmatmul.mubr.f32.vlgmr.msra.gmra.mrb[16].mxu1 %v1793_v14  ;;  %7048 = vmatprep.subr.bf16.mxu0 %v7047_v5  ;;  %v738_v14 = vld [vmem:[#allocation5 + $0x12e0] sm:$0xff]  ;;  %v7097_v30 = vpack.c.bf16 %v753_v13, %v752_v10  ;;  %v757_v52 = vld [vmem:[#allocation5 + $0x1378] sm:$0xff]  ;;  %v1827_v10 = vcombine.low %v8064_v17, %v8067_v60  ;;  %v808_v17 = vld [vmem:[#allocation5 + $0x1510] sm:$0xff] }
 0x160   :  { %7078 = vmatpush3.bf16.msra.mxu1 %v7077_v25  ;;  %3665 = vmatprep.mubr.f32.mxu1 %v1830_v11  ;;  %v739_v25 = vld [vmem:[#allocation5 + $0x12e8] sm:$0xff]  ;;  %v770_v5 = vld [vmem:[#allocation5 + $0x13e0] sm:$0xff]  ;;  %v7105_v16 = vpack.c.bf16 %v757_v52, %v756_v47  ;;  %v825_v13 = vld [vmem:[#allocation5 + $0x1598] sm:$0xff] }
 0x161   :  { %7080 = vmatprep.subr.bf16.mxu1 %v7079_v7  ;;  %v723_v7 = vld [vmem:[#allocation5 + $0x1268] sm:$0xff]  ;;  %v7067_v31 = vpack.c.bf16 %v739_v25, %v738_v14  ;;  %v8098_v25 = vrot.slane %v1834_v58, %v7896_v20  ;;  %v814_v58 = vld [vmem:[#allocation5 + $0x1540] sm:$0xff] }
 0x162   :  { %7050 = vmatpush3.bf16.msra.mxu0 %v7049_v12  ;;  %v7099_v12 = vpack.c.bf16 %v771_v6, %v770_v5  ;;  %v7069_v33 = vpack.c.bf16 %v723_v7, %v722_v24  ;;  %v1829_v6 = vcombine.low %v8072_v18, %v8075_v19  ;;  %v776_v7 = vld [vmem:[#allocation5 + $0x1410] sm:$0xff]  ;;  %v799_v52 = vld [vmem:[#allocation5 + $0x14c8] sm:$0xff] }
 0x163   :  { %7052 = vmatprep.subr.bf16.mxu0 %v7051_v22  ;;  %v773_v22 = vld [vmem:[#allocation5 + $0x13f8] sm:$0xff]  ;;  %v831_v44 = vld [vmem:[#allocation5 + $0x15c8] sm:$0xff] }
 0x164   :  { %7082 = vmatpush3.bf16.msra.mxu1 %v7081_v9  ;;  %v772_v9 = vld [vmem:[#allocation5 + $0x13f0] sm:$0xff] }
 0x165   :  { %7084 = vmatprep.subr.bf16.mxu1 %v7083_v36  ;;  %v84_v36 = vld [vmem:[#allocation2 + $0xee] sm:$0xff]  ;;  %v7103_v51 = vpack.c.bf16 %v773_v22, %v772_v9  ;;  %v778_v22 = vld [vmem:[#allocation5 + $0x1420] sm:$0xff] }
 0x166   :  { %7054 = vmatpush3.bf16.msra.mxu0 %v7053_v34  ;;  %v1831_v48 = vcombine.low %v64_v28, %v84_v36  ;;  %v1832_v57 = vcombine.high %v64_v28, %v84_v36  ;;  %v779_v28 = vld [vmem:[#allocation5 + $0x1428] sm:$0xff] }
 0x167   :  { %7056 = vmatprep.subr.bf16.mxu0 %v7055_v39  ;;  %v7071_v39 = vpack.c.bf16 %v741_v8, %v740_v21  ;;  %v826_v8 = vld [vmem:[#allocation5 + $0x15a0] sm:$0xff]  ;;  %v811_v36 = vld [vmem:[#allocation5 + $0x1528] sm:$0xff] }
 0x168   :  { %7086 = vmatpush3.bf16.msra.mxu1 %v7085_v38  ;;  %v7101_v38 = vpack.c.bf16 %v755_v32, %v754_v27  ;;  %v8087_v4 = vrot.slane %v1831_v48, %v7896_v20  ;;  %v8095_v14 = vrot.slane %v1832_v57, %v7896_v20  ;;  %v777_v27 = vld [vmem:[#allocation5 + $0x1418] sm:$0xff]  ;;  %v795_v32 = vld [vmem:[#allocation5 + $0x14a8] sm:$0xff] }
 0x169   :  { %7088 = vmatprep.subr.bf16.mxu1 %v7087_v50  ;;  %v7113_v19 = vpack.c.bf16 %v777_v27, %v776_v7  ;;  %v783_v57 = vld [vmem:[#allocation5 + $0x1448] sm:$0xff] }
 0x16a   :  { %7058 = vmatpush3.bf16.msra.mxu0 %v7057_v49  ;;  %v1833_v49 = vcombine.low %v104_v37, %v124_v40  ;;  %v1866_v18 = vcombine.high %v8095_v14, %v8098_v25  ;;  %v796_v37 = vld [vmem:[#allocation5 + $0x14b0] sm:$0xff]  ;;  %v797_v40 = vld [vmem:[#allocation5 + $0x14b8] sm:$0xff]  ;;  %v835_v7 = vld [vmem:[#allocation5 + $0x15e8] sm:$0xff] }
 0x16b   :  { %7060 = vmatprep.subr.bf16.mxu0 %v7059_v56  ;;  %v823_v56 = vld [vmem:[#allocation5 + $0x1588] sm:$0xff] }
 0x16c   :  { %7090 = vmatpush3.bf16.msra.mxu1 %v7089_v55  ;;  %v822_v55 = vld [vmem:[#allocation5 + $0x1580] sm:$0xff]  ;;  %v8090_v0 = vrot.slane %v1833_v49, %v7896_v20 }
 0x16d   :  { %7092 = vmatprep.subr.bf16.mxu1 %v7091_v54  ;;  %v7073_v54 = vpack.c.bf16 %v725_v46, %v724_v45  ;;  %v7139_v2 = vpack.c.bf16 %v823_v56, %v822_v55  ;;  %v781_v45 = vld [vmem:[#allocation5 + $0x1438] sm:$0xff]  ;;  %v812_v46 = vld [vmem:[#allocation5 + $0x1530] sm:$0xff]  ;;  %v782_v56 = vld [vmem:[#allocation5 + $0x1440] sm:$0xff] }
 0x16e   :  { %7062 = vmatpush3.bf16.msra.mxu0 %v7061_v3  ;;  %v807_v3 = vld [vmem:[#allocation5 + $0x1508] sm:$0xff]  ;;  %v1864_v21 = vcombine.high %v8087_v4, %v8090_v0 }
 0x16f   :  { %7064 = vmatprep.subr.bf16.mxu0 %v7063_v63  ;;  %v793_v63 = vld [vmem:[#allocation5 + $0x1498] sm:$0xff] }
 0x170   :  { %7094 = vmatpush3.bf16.msra.mxu1 %v7093_v59  ;;  %v5264_v11 = vpop.f32.mrb[4].mxu0  ;;  %v792_v59 = vld [vmem:[#allocation5 + $0x1490] sm:$0xff] }
 0x171   :  { %7096 = vmatprep.subr.bf16.mxu1 %v7095_v15  ;;  %v5265_v29 = vpop.f32.mrb[5].mxu0  ;;  %v824_v15 = vld [vmem:[#allocation5 + $0x1590] sm:$0xff]  ;;  %v7111_v24 = vpack.c.bf16 %v793_v63, %v792_v59 }
 0x172   :  { %v5299_v35 = vpop.f32.mrb[4].mxu1  ;;  %v5266_v41 = vadd.f32 %v5265_v29, %v5264_v11  ;;  %7066 = vmatpush3.bf16.msra.mxu0 %v7065_v26  ;;  %v7141_v26 = vpack.c.bf16 %v807_v3, %v806_v1  ;;  %v7143_v60 = vpack.c.bf16 %v825_v13, %v824_v15  ;;  %v827_v11 = vld [vmem:[#allocation5 + $0x15a8] sm:$0xff]  ;;  %v810_v29 = vld [vmem:[#allocation5 + $0x1520] sm:$0xff]  ;;  %v833_v1 = vld [vmem:[#allocation5 + $0x15d8] sm:$0xff] }
 0x173   :  { %v5300_v42 = vpop.f32.mrb[5].mxu1  ;;  %7068 = vmatprep.subr.bf16.mxu0 %v7067_v31  ;;  %v794_v31 = vld [vmem:[#allocation5 + $0x14a0] sm:$0xff]  ;;  %v784_v63 = vld [vmem:[#allocation5 + $0x1450] sm:$0xff] }
 0x174   :  { %v5301_v34 = vadd.f32 %v5300_v42, %v5299_v35  ;;  %7098 = vmatpush3.bf16.msra.mxu1 %v7097_v30  ;;  %v2618_v50 = vadd.f32 %v5266_v41, %v8061_v62  ;;  %v774_v62 = vld [vmem:[#allocation5 + $0x1400] sm:$0xff]  ;;  %v809_v30 = vld [vmem:[#allocation5 + $0x1518] sm:$0xff]  ;;  %v7115_v9 = vpack.c.bf16 %v795_v32, %v794_v31  ;;  %v7147_v35 = vpack.c.bf16 %v827_v11, %v826_v8  ;;  %v828_v41 = vld [vmem:[#allocation5 + $0x15b0] sm:$0xff] }
 0x175   :  { %7100 = vmatprep.subr.bf16.mxu1 %v7099_v12  ;;  %v7109_v5 = vpack.c.bf16 %v775_v53, %v774_v62  ;;  %v7145_v12 = vpack.c.bf16 %v809_v30, %v808_v17  ;;  %v829_v42 = vld [vmem:[#allocation5 + $0x15b8] sm:$0xff]  ;;  %v832_v53 = vld [vmem:[#allocation5 + $0x15d0] sm:$0xff]  ;;  %v786_v17 = vld [vmem:[#allocation5 + $0x1460] sm:$0xff] }
 0x176   :  { %v8084_v61 = vadd.f32 %v5301_v34, %v2618_v50  ;;  %7070 = vmatpush3.bf16.msra.mxu0 %v7069_v33  ;;  %v7117_v33 = vpack.c.bf16 %v779_v28, %v778_v22  ;;  %v7149_v34 = vpack.c.bf16 %v811_v36, %v810_v29  ;;  %v7151_v47 = vpack.c.bf16 %v829_v42, %v828_v41  ;;  %v813_v50 = vld [vmem:[#allocation5 + $0x1538] sm:$0xff]  ;;  %v816_v15 = vld [vmem:[#allocation5 + $0x1550] sm:$0xff]  ;;  %v818_v30 = vld [vmem:[#allocation5 + $0x1560] sm:$0xff] }
 0x177   :  { %7072 = vmatprep.subr.bf16.mxu0 %v7071_v39  ;;  %v780_v39 = vld [vmem:[#allocation5 + $0x1430] sm:$0xff]  ;;  %v7153_v49 = vpack.c.bf16 %v813_v50, %v812_v46  ;;  %v801_v62 = vld [vmem:[#allocation5 + $0x14d8] sm:$0xff]  ;;  %v7159_v13 = vpack.c.bf16 %v833_v1, %v832_v53  ;;  %v65_v22 = vld [vmem:[#allocation2 + $0x58] sm:$0xff] }
 0x178   :  { %7102 = vmatpush3.bf16.msra.mxu1 %v7101_v38  ;;  %v7119_v38 = vpack.c.bf16 %v797_v40, %v796_v37  ;;  %v7121_v48 = vpack.c.bf16 %v781_v45, %v780_v39  ;;  %v804_v8 = vld [vmem:[#allocation5 + $0x14f0] sm:$0xff]  ;;  %v805_v11 = vld [vmem:[#allocation5 + $0x14f8] sm:$0xff]  ;;  %v870_v53 = vld [vmem:[#allocation5 + $0x1700] sm:$0xff] }
 0x179   :  { %7104 = vmatprep.subr.bf16.mxu1 %v7103_v51  ;;  %v798_v51 = vld [vmem:[#allocation5 + $0x14c0] sm:$0xff]  ;;  %v788_v39 = vld [vmem:[#allocation5 + $0x1470] sm:$0xff]  ;;  %v789_v45 = vld [vmem:[#allocation5 + $0x1478] sm:$0xff] }
 0x17a   :  { %7074 = vmatpush3.bf16.msra.mxu0 %v7073_v54  ;;  %v7123_v55 = vpack.c.bf16 %v799_v52, %v798_v51  ;;  %v7155_v54 = vpack.c.bf16 %v831_v44, %v830_v43  ;;  %v105_v36 = vld [vmem:[#allocation2 + $0x194] sm:$0xff]  ;;  %v820_v46 = vld [vmem:[#allocation5 + $0x1570] sm:$0xff]  ;;  %v855_v43 = vld [vmem:[#allocation5 + $0x1688] sm:$0xff] }
 0x17b   :  { %7108 = vmatprep.subr.bf16.mxu0 %v7107_v23  ;;  %v800_v23 = vld [vmem:[#allocation5 + $0x14d0] sm:$0xff]  ;;  %v125_v37 = vld [vmem:[#allocation2 + $0x232] sm:$0xff] }
 0x17c   :  { %7106 = vmatpush3.bf16.msra.mxu1 %v7105_v16  ;;  %v815_v16 = vld [vmem:[#allocation5 + $0x1548] sm:$0xff]  ;;  %v7127_v59 = vpack.c.bf16 %v801_v62, %v800_v23  ;;  %v821_v51 = vld [vmem:[#allocation5 + $0x1578] sm:$0xff]  ;;  %v854_v52 = vld [vmem:[#allocation5 + $0x1680] sm:$0xff] }
 0x17d   :  { %7140 = vmatprep.subr.bf16.mxu1 %v7139_v2  ;;  %3596 = vmatmul.mubr.f32.vlgmr.msra.gmra.mrb[18].mxu0 %v1827_v10  ;;  %v7125_v2 = vpack.c.bf16 %v783_v57, %v782_v56  ;;  %v7157_v3 = vpack.c.bf16 %v815_v16, %v814_v58  ;;  %v785_v10 = vld [vmem:[#allocation5 + $0x1458] sm:$0xff]  ;;  %v1870_v57 = vcombine.high %v105_v36, %v125_v37  ;;  %v839_v62 = vld [vmem:[#allocation5 + $0x1608] sm:$0xff] }
 0x17e   :  { %7110 = vmatpush3.bf16.msra.mxu0 %v7109_v5  ;;  %3735 = vmatprep.mubr.f32.mxu0 %v1864_v21  ;;  %v817_v5 = vld [vmem:[#allocation5 + $0x1558] sm:$0xff]  ;;  %v7129_v27 = vpack.c.bf16 %v785_v10, %v784_v63  ;;  %v819_v21 = vld [vmem:[#allocation5 + $0x1568] sm:$0xff]  ;;  %v7169_v16 = vpack.c.bf16 %v821_v51, %v820_v46  ;;  %v7171_v23 = vpack.c.bf16 %v855_v43, %v854_v52  ;;  %v894_v52 = vld [vmem:[#allocation5 + $0x17c0] sm:$0xff] }
 0x17f   :  { %3666 = vmatmul.mubr.f32.vlgmr.msra.gmra.mrb[18].mxu1 %v1829_v6  ;;  %7112 = vmatprep.subr.bf16.mxu0 %v7111_v24  ;;  %v802_v6 = vld [vmem:[#allocation5 + $0x14e0] sm:$0xff]  ;;  %v7161_v31 = vpack.c.bf16 %v817_v5, %v816_v15  ;;  %v1863_v15 = vcombine.low %v8087_v4, %v8090_v0  ;;  %v889_v5 = vld [vmem:[#allocation5 + $0x1798] sm:$0xff]  ;;  %v872_v4 = vld [vmem:[#allocation5 + $0x1710] sm:$0xff] }
 0x180   :  { %7142 = vmatpush3.bf16.msra.mxu1 %v7141_v26  ;;  %3805 = vmatprep.mubr.f32.mxu1 %v1866_v18  ;;  %v803_v26 = vld [vmem:[#allocation5 + $0x14e8] sm:$0xff]  ;;  %v834_v24 = vld [vmem:[#allocation5 + $0x15e0] sm:$0xff] }
 0x181   :  { %7144 = vmatprep.subr.bf16.mxu1 %v7143_v60  ;;  %v787_v60 = vld [vmem:[#allocation5 + $0x1468] sm:$0xff]  ;;  %v7131_v32 = vpack.c.bf16 %v803_v26, %v802_v6  ;;  %v8121_v26 = vrot.slane %v1870_v57, %v7896_v20  ;;  %v878_v57 = vld [vmem:[#allocation5 + $0x1740] sm:$0xff] }
 0x182   :  { %7114 = vmatpush3.bf16.msra.mxu0 %v7113_v19  ;;  %v7163_v19 = vpack.c.bf16 %v835_v7, %v834_v24  ;;  %v7133_v42 = vpack.c.bf16 %v787_v60, %v786_v17  ;;  %v1865_v7 = vcombine.low %v8095_v14, %v8098_v25  ;;  %v840_v60 = vld [vmem:[#allocation5 + $0x1610] sm:$0xff]  ;;  %v863_v51 = vld [vmem:[#allocation5 + $0x16c8] sm:$0xff] }
 0x183   :  { %7116 = vmatprep.subr.bf16.mxu0 %v7115_v9  ;;  %v837_v9 = vld [vmem:[#allocation5 + $0x15f8] sm:$0xff]  ;;  %v895_v43 = vld [vmem:[#allocation5 + $0x17c8] sm:$0xff] }
 0x184   :  { %7146 = vmatpush3.bf16.msra.mxu1 %v7145_v12  ;;  %v836_v12 = vld [vmem:[#allocation5 + $0x15f0] sm:$0xff] }
 0x185   :  { %7148 = vmatprep.subr.bf16.mxu1 %v7147_v35  ;;  %v85_v35 = vld [vmem:[#allocation2 + $0xf6] sm:$0xff]  ;;  %v7167_v50 = vpack.c.bf16 %v837_v9, %v836_v12 }
 0x186   :  { %7118 = vmatpush3.bf16.msra.mxu0 %v7117_v33  ;;  %v1867_v44 = vcombine.low %v65_v22, %v85_v35  ;;  %v1868_v56 = vcombine.high %v65_v22, %v85_v35  ;;  %v842_v9 = vld [vmem:[#allocation5 + $0x1620] sm:$0xff]  ;;  %v843_v22 = vld [vmem:[#allocation5 + $0x1628] sm:$0xff] }
 0x187   :  { %7120 = vmatprep.subr.bf16.mxu0 %v7119_v38  ;;  %v7135_v38 = vpack.c.bf16 %v805_v11, %v804_v8  ;;  %v890_v11 = vld [vmem:[#allocation5 + $0x17a0] sm:$0xff]  ;;  %v875_v35 = vld [vmem:[#allocation5 + $0x1728] sm:$0xff] }
 0x188   :  { %7150 = vmatpush3.bf16.msra.mxu1 %v7149_v34  ;;  %v7165_v34 = vpack.c.bf16 %v819_v21, %v818_v30  ;;  %v8110_v63 = vrot.slane %v1867_v44, %v7896_v20  ;;  %v8118_v6 = vrot.slane %v1868_v56, %v7896_v20  ;;  %v841_v30 = vld [vmem:[#allocation5 + $0x1618] sm:$0xff]  ;;  %v859_v21 = vld [vmem:[#allocation5 + $0x16a8] sm:$0xff] }
 0x189   :  { %7152 = vmatprep.subr.bf16.mxu1 %v7151_v47  ;;  %v7177_v25 = vpack.c.bf16 %v841_v30, %v840_v60  ;;  %v847_v56 = vld [vmem:[#allocation5 + $0x1648] sm:$0xff] }
 0x18a   :  { %7122 = vmatpush3.bf16.msra.mxu0 %v7121_v48  ;;  %v1869_v48 = vcombine.low %v105_v36, %v125_v37  ;;  %v1902_v14 = vcombine.high %v8118_v6, %v8121_v26  ;;  %v860_v36 = vld [vmem:[#allocation5 + $0x16b0] sm:$0xff]  ;;  %v861_v37 = vld [vmem:[#allocation5 + $0x16b8] sm:$0xff]  ;;  %v899_v60 = vld [vmem:[#allocation5 + $0x17e8] sm:$0xff] }
 0x18b   :  { %7124 = vmatprep.subr.bf16.mxu0 %v7123_v55  ;;  %v887_v55 = vld [vmem:[#allocation5 + $0x1788] sm:$0xff] }
 0x18c   :  { %7154 = vmatpush3.bf16.msra.mxu1 %v7153_v49  ;;  %v886_v49 = vld [vmem:[#allocation5 + $0x1780] sm:$0xff]  ;;  %v8113_v10 = vrot.slane %v1869_v48, %v7896_v20 }
 0x18d   :  { %7156 = vmatprep.subr.bf16.mxu1 %v7155_v54  ;;  %v7137_v54 = vpack.c.bf16 %v789_v45, %v788_v39  ;;  %v7203_v1 = vpack.c.bf16 %v887_v55, %v886_v49  ;;  %v845_v39 = vld [vmem:[#allocation5 + $0x1638] sm:$0xff]  ;;  %v876_v45 = vld [vmem:[#allocation5 + $0x1730] sm:$0xff]  ;;  %v846_v55 = vld [vmem:[#allocation5 + $0x1640] sm:$0xff] }
 0x18e   :  { %7126 = vmatpush3.bf16.msra.mxu0 %v7125_v2  ;;  %v871_v2 = vld [vmem:[#allocation5 + $0x1708] sm:$0xff]  ;;  %v1900_v8 = vcombine.high %v8110_v63, %v8113_v10 }
 0x18f   :  { %7128 = vmatprep.subr.bf16.mxu0 %v7127_v59  ;;  %v857_v59 = vld [vmem:[#allocation5 + $0x1698] sm:$0xff] }
 0x190   :  { %7158 = vmatpush3.bf16.msra.mxu1 %v7157_v3  ;;  %v5334_v18 = vpop.f32.mrb[6].mxu0  ;;  %v856_v3 = vld [vmem:[#allocation5 + $0x1690] sm:$0xff] }
 0x191   :  { %7160 = vmatprep.subr.bf16.mxu1 %v7159_v13  ;;  %v5335_v28 = vpop.f32.mrb[7].mxu0  ;;  %v888_v13 = vld [vmem:[#allocation5 + $0x1790] sm:$0xff]  ;;  %v7175_v17 = vpack.c.bf16 %v857_v59, %v856_v3 }
 0x192   :  { %v5369_v29 = vpop.f32.mrb[6].mxu1  ;;  %v5336_v40 = vadd.f32 %v5335_v28, %v5334_v18  ;;  %7130 = vmatpush3.bf16.msra.mxu0 %v7129_v27  ;;  %v7205_v27 = vpack.c.bf16 %v871_v2, %v870_v53  ;;  %v7207_v0 = vpack.c.bf16 %v889_v5, %v888_v13  ;;  %v891_v18 = vld [vmem:[#allocation5 + $0x17a8] sm:$0xff]  ;;  %v874_v28 = vld [vmem:[#allocation5 + $0x1720] sm:$0xff]  ;;  %v897_v53 = vld [vmem:[#allocation5 + $0x17d8] sm:$0xff] }
 0x193   :  { %v5370_v41 = vpop.f32.mrb[7].mxu1  ;;  %7132 = vmatprep.subr.bf16.mxu0 %v7131_v32  ;;  %v858_v32 = vld [vmem:[#allocation5 + $0x16a0] sm:$0xff]  ;;  %v848_v59 = vld [vmem:[#allocation5 + $0x1650] sm:$0xff] }
 0x194   :  { %v5371_v33 = vadd.f32 %v5370_v41, %v5369_v29  ;;  %7162 = vmatpush3.bf16.msra.mxu1 %v7161_v31  ;;  %v2758_v47 = vadd.f32 %v5336_v40, %v8084_v61  ;;  %v838_v61 = vld [vmem:[#allocation5 + $0x1600] sm:$0xff]  ;;  %v873_v31 = vld [vmem:[#allocation5 + $0x1718] sm:$0xff]  ;;  %v7179_v12 = vpack.c.bf16 %v859_v21, %v858_v32  ;;  %v7211_v29 = vpack.c.bf16 %v891_v18, %v890_v11  ;;  %v892_v40 = vld [vmem:[#allocation5 + $0x17b0] sm:$0xff] }
 0x195   :  { %7164 = vmatprep.subr.bf16.mxu1 %v7163_v19  ;;  %v7173_v24 = vpack.c.bf16 %v839_v62, %v838_v61  ;;  %v7209_v19 = vpack.c.bf16 %v873_v31, %v872_v4  ;;  %v893_v41 = vld [vmem:[#allocation5 + $0x17b8] sm:$0xff]  ;;  %v896_v62 = vld [vmem:[#allocation5 + $0x17d0] sm:$0xff]  ;;  %v850_v4 = vld [vmem:[#allocation5 + $0x1660] sm:$0xff] }
 0x196   :  { %v8107_v58 = vadd.f32 %v5371_v33, %v2758_v47  ;;  %7134 = vmatpush3.bf16.msra.mxu0 %v7133_v42  ;;  %v7181_v42 = vpack.c.bf16 %v843_v22, %v842_v9  ;;  %v7213_v33 = vpack.c.bf16 %v875_v35, %v874_v28  ;;  %v7215_v46 = vpack.c.bf16 %v893_v41, %v892_v40  ;;  %v877_v47 = vld [vmem:[#allocation5 + $0x1738] sm:$0xff]  ;;  %v880_v13 = vld [vmem:[#allocation5 + $0x1750] sm:$0xff]  ;;  %v882_v31 = vld [vmem:[#allocation5 + $0x1760] sm:$0xff] }
 0x197   :  { %7136 = vmatprep.subr.bf16.mxu0 %v7135_v38  ;;  %v844_v38 = vld [vmem:[#allocation5 + $0x1630] sm:$0xff]  ;;  %v7217_v48 = vpack.c.bf16 %v877_v47, %v876_v45  ;;  %v865_v61 = vld [vmem:[#allocation5 + $0x16d8] sm:$0xff]  ;;  %v7223_v5 = vpack.c.bf16 %v897_v53, %v896_v62  ;;  %v66_v9 = vld [vmem:[#allocation2 + $0x60] sm:$0xff] }
 0x198   :  { %7166 = vmatpush3.bf16.msra.mxu1 %v7165_v34  ;;  %v7183_v34 = vpack.c.bf16 %v861_v37, %v860_v36  ;;  %v7185_v44 = vpack.c.bf16 %v845_v39, %v844_v38  ;;  %v868_v11 = vld [vmem:[#allocation5 + $0x16f0] sm:$0xff]  ;;  %v869_v18 = vld [vmem:[#allocation5 + $0x16f8] sm:$0xff]  ;;  %v106_v35 = vld [vmem:[#allocation2 + $0x19c] sm:$0xff] }
 0x199   :  { %7168 = vmatprep.subr.bf16.mxu1 %v7167_v50  ;;  %v862_v50 = vld [vmem:[#allocation5 + $0x16c0] sm:$0xff]  ;;  %v852_v38 = vld [vmem:[#allocation5 + $0x1670] sm:$0xff]  ;;  %v853_v39 = vld [vmem:[#allocation5 + $0x1678] sm:$0xff] }
 0x19a   :  { %7138 = vmatpush3.bf16.msra.mxu0 %v7137_v54  ;;  %v7187_v49 = vpack.c.bf16 %v863_v51, %v862_v50  ;;  %v7219_v54 = vpack.c.bf16 %v895_v43, %v894_v52  ;;  %v126_v36 = vld [vmem:[#allocation2 + $0x23a] sm:$0xff]  ;;  %v884_v45 = vld [vmem:[#allocation5 + $0x1770] sm:$0xff]  ;;  %v885_v50 = vld [vmem:[#allocation5 + $0x1778] sm:$0xff] }
 0x19b   :  { %7172 = vmatprep.subr.bf16.mxu0 %v7171_v23  ;;  %v864_v23 = vld [vmem:[#allocation5 + $0x16d0] sm:$0xff]  ;;  %v918_v51 = vld [vmem:[#allocation5 + $0x1880] sm:$0xff]  ;;  %v919_v52 = vld [vmem:[#allocation5 + $0x1888] sm:$0xff] }
 0x19c   :  { %7170 = vmatpush3.bf16.msra.mxu1 %v7169_v16  ;;  %v879_v16 = vld [vmem:[#allocation5 + $0x1748] sm:$0xff]  ;;  %v7191_v3 = vpack.c.bf16 %v865_v61, %v864_v23  ;;  %v7235_v23 = vpack.c.bf16 %v919_v52, %v918_v51  ;;  %v934_v62 = vld [vmem:[#allocation5 + $0x1900] sm:$0xff] }
 0x19d   :  { %7204 = vmatprep.subr.bf16.mxu1 %v7203_v1  ;;  %3736 = vmatmul.mubr.f32.vlgmr.msra.gmra.mrb[20].mxu0 %v1863_v15  ;;  %v7189_v1 = vpack.c.bf16 %v847_v56, %v846_v55  ;;  %v7221_v2 = vpack.c.bf16 %v879_v16, %v878_v57  ;;  %v849_v15 = vld [vmem:[#allocation5 + $0x1658] sm:$0xff]  ;;  %v1906_v56 = vcombine.high %v106_v35, %v126_v36  ;;  %v903_v61 = vld [vmem:[#allocation5 + $0x1808] sm:$0xff]  ;;  %v958_v51 = vld [vmem:[#allocation5 + $0x19c0] sm:$0xff] }
 0x19e   :  { %7174 = vmatpush3.bf16.msra.mxu0 %v7173_v24  ;;  %3875 = vmatprep.mubr.f32.mxu0 %v1900_v8  ;;  %v881_v24 = vld [vmem:[#allocation5 + $0x1758] sm:$0xff]  ;;  %v7193_v30 = vpack.c.bf16 %v849_v15, %v848_v59  ;;  %v883_v8 = vld [vmem:[#allocation5 + $0x1768] sm:$0xff]  ;;  %v7233_v16 = vpack.c.bf16 %v885_v50, %v884_v45 }
 0x19f   :  { %3806 = vmatmul.mubr.f32.vlgmr.msra.gmra.mrb[20].mxu1 %v1865_v7  ;;  %7176 = vmatprep.subr.bf16.mxu0 %v7175_v17  ;;  %v866_v7 = vld [vmem:[#allocation5 + $0x16e0] sm:$0xff]  ;;  %v7225_v32 = vpack.c.bf16 %v881_v24, %v880_v13  ;;  %v1899_v13 = vcombine.low %v8110_v63, %v8113_v10  ;;  %v953_v24 = vld [vmem:[#allocation5 + $0x1998] sm:$0xff]  ;;  %v936_v63 = vld [vmem:[#allocation5 + $0x1910] sm:$0xff] }
 0x1a0   :  { %7206 = vmatpush3.bf16.msra.mxu1 %v7205_v27  ;;  %3945 = vmatprep.mubr.f32.mxu1 %v1902_v14  ;;  %v867_v27 = vld [vmem:[#allocation5 + $0x16e8] sm:$0xff]  ;;  %v898_v17 = vld [vmem:[#allocation5 + $0x17e0] sm:$0xff] }
 0x1a1   :  { %7208 = vmatprep.subr.bf16.mxu1 %v7207_v0  ;;  %v851_v0 = vld [vmem:[#allocation5 + $0x1668] sm:$0xff]  ;;  %v7195_v21 = vpack.c.bf16 %v867_v27, %v866_v7  ;;  %v8144_v27 = vrot.slane %v1906_v56, %v7896_v20  ;;  %v942_v56 = vld [vmem:[#allocation5 + $0x1940] sm:$0xff] }
 0x1a2   :  { %7178 = vmatpush3.bf16.msra.mxu0 %v7177_v25  ;;  %v7227_v25 = vpack.c.bf16 %v899_v60, %v898_v17  ;;  %v7197_v41 = vpack.c.bf16 %v851_v0, %v850_v4  ;;  %v1901_v60 = vcombine.low %v8118_v6, %v8121_v26  ;;  %v904_v0 = vld [vmem:[#allocation5 + $0x1810] sm:$0xff]  ;;  %v927_v50 = vld [vmem:[#allocation5 + $0x18c8] sm:$0xff] }
 0x1a3   :  { %7180 = vmatprep.subr.bf16.mxu0 %v7179_v12  ;;  %v901_v12 = vld [vmem:[#allocation5 + $0x17f8] sm:$0xff]  ;;  %v959_v52 = vld [vmem:[#allocation5 + $0x19c8] sm:$0xff] }
 0x1a4   :  { %7210 = vmatpush3.bf16.msra.mxu1 %v7209_v19  ;;  %v900_v19 = vld [vmem:[#allocation5 + $0x17f0] sm:$0xff] }
 0x1a5   :  { %7212 = vmatprep.subr.bf16.mxu1 %v7211_v29  ;;  %v86_v29 = vld [vmem:[#allocation2 + $0xfe] sm:$0xff]  ;;  %v7231_v47 = vpack.c.bf16 %v901_v12, %v900_v19 }
 0x1a6   :  { %7182 = vmatpush3.bf16.msra.mxu0 %v7181_v42  ;;  %v1903_v43 = vcombine.low %v66_v9, %v86_v29  ;;  %v1904_v55 = vcombine.high %v66_v9, %v86_v29  ;;  %v906_v12 = vld [vmem:[#allocation5 + $0x1820] sm:$0xff]  ;;  %v907_v9 = vld [vmem:[#allocation5 + $0x1828] sm:$0xff] }
 0x1a7   :  { %7184 = vmatprep.subr.bf16.mxu0 %v7183_v34  ;;  %v7199_v34 = vpack.c.bf16 %v869_v18, %v868_v11  ;;  %v954_v18 = vld [vmem:[#allocation5 + $0x19a0] sm:$0xff]  ;;  %v939_v29 = vld [vmem:[#allocation5 + $0x1928] sm:$0xff] }
 0x1a8   :  { %7214 = vmatpush3.bf16.msra.mxu1 %v7213_v33  ;;  %v7229_v33 = vpack.c.bf16 %v883_v8, %v882_v31  ;;  %v8133_v59 = vrot.slane %v1903_v43, %v7896_v20  ;;  %v8141_v7 = vrot.slane %v1904_v55, %v7896_v20  ;;  %v905_v31 = vld [vmem:[#allocation5 + $0x1818] sm:$0xff]  ;;  %v923_v8 = vld [vmem:[#allocation5 + $0x18a8] sm:$0xff] }
 0x1a9   :  { %7216 = vmatprep.subr.bf16.mxu1 %v7215_v46  ;;  %v7241_v26 = vpack.c.bf16 %v905_v31, %v904_v0  ;;  %v911_v55 = vld [vmem:[#allocation5 + $0x1848] sm:$0xff] }
 0x1aa   :  { %7186 = vmatpush3.bf16.msra.mxu0 %v7185_v44  ;;  %v1905_v44 = vcombine.low %v106_v35, %v126_v36  ;;  %v1938_v6 = vcombine.high %v8141_v7, %v8144_v27  ;;  %v924_v35 = vld [vmem:[#allocation5 + $0x18b0] sm:$0xff]  ;;  %v925_v36 = vld [vmem:[#allocation5 + $0x18b8] sm:$0xff]  ;;  %v963_v0 = vld [vmem:[#allocation5 + $0x19e8] sm:$0xff] }
 0x1ab   :  { %7188 = vmatprep.subr.bf16.mxu0 %v7187_v49  ;;  %v951_v49 = vld [vmem:[#allocation5 + $0x1988] sm:$0xff] }
 0x1ac   :  { %7218 = vmatpush3.bf16.msra.mxu1 %v7217_v48  ;;  %v950_v48 = vld [vmem:[#allocation5 + $0x1980] sm:$0xff]  ;;  %v8136_v15 = vrot.slane %v1905_v44, %v7896_v20 }
 0x1ad   :  { %7220 = vmatprep.subr.bf16.mxu1 %v7219_v54  ;;  %v7201_v54 = vpack.c.bf16 %v853_v39, %v852_v38  ;;  %v7267_v53 = vpack.c.bf16 %v951_v49, %v950_v48  ;;  %v909_v38 = vld [vmem:[#allocation5 + $0x1838] sm:$0xff]  ;;  %v940_v39 = vld [vmem:[#allocation5 + $0x1930] sm:$0xff]  ;;  %v910_v49 = vld [vmem:[#allocation5 + $0x1840] sm:$0xff] }
 0x1ae   :  { %7190 = vmatpush3.bf16.msra.mxu0 %v7189_v1  ;;  %v935_v1 = vld [vmem:[#allocation5 + $0x1908] sm:$0xff]  ;;  %v1936_v11 = vcombine.high %v8133_v59, %v8136_v15 }
 0x1af   :  { %7192 = vmatprep.subr.bf16.mxu0 %v7191_v3  ;;  %v921_v3 = vld [vmem:[#allocation5 + $0x1898] sm:$0xff] }
 0x1b0   :  { %7222 = vmatpush3.bf16.msra.mxu1 %v7221_v2  ;;  %v5404_v14 = vpop.f32.mrb[8].mxu0  ;;  %v920_v2 = vld [vmem:[#allocation5 + $0x1890] sm:$0xff] }
 0x1b1   :  { %7224 = vmatprep.subr.bf16.mxu1 %v7223_v5  ;;  %v5405_v22 = vpop.f32.mrb[9].mxu0  ;;  %v952_v5 = vld [vmem:[#allocation5 + $0x1990] sm:$0xff]  ;;  %v7239_v4 = vpack.c.bf16 %v921_v3, %v920_v2 }
 0x1b2   :  { %v5439_v28 = vpop.f32.mrb[8].mxu1  ;;  %v5406_v37 = vadd.f32 %v5405_v22, %v5404_v14  ;;  %7194 = vmatpush3.bf16.msra.mxu0 %v7193_v30  ;;  %v7269_v30 = vpack.c.bf16 %v935_v1, %v934_v62  ;;  %v7271_v10 = vpack.c.bf16 %v953_v24, %v952_v5  ;;  %v955_v14 = vld [vmem:[#allocation5 + $0x19a8] sm:$0xff]  ;;  %v938_v22 = vld [vmem:[#allocation5 + $0x1920] sm:$0xff]  ;;  %v961_v62 = vld [vmem:[#allocation5 + $0x19d8] sm:$0xff] }
 0x1b3   :  { %v5440_v40 = vpop.f32.mrb[9].mxu1  ;;  %7196 = vmatprep.subr.bf16.mxu0 %v7195_v21  ;;  %v922_v21 = vld [vmem:[#allocation5 + $0x18a0] sm:$0xff]  ;;  %v912_v3 = vld [vmem:[#allocation5 + $0x1850] sm:$0xff] }
 0x1b4   :  { %v5441_v42 = vadd.f32 %v5440_v40, %v5439_v28  ;;  %7226 = vmatpush3.bf16.msra.mxu1 %v7225_v32  ;;  %v2898_v46 = vadd.f32 %v5406_v37, %v8107_v58  ;;  %v902_v58 = vld [vmem:[#allocation5 + $0x1800] sm:$0xff]  ;;  %v937_v32 = vld [vmem:[#allocation5 + $0x1918] sm:$0xff]  ;;  %v7243_v19 = vpack.c.bf16 %v923_v8, %v922_v21  ;;  %v7275_v28 = vpack.c.bf16 %v955_v14, %v954_v18  ;;  %v956_v37 = vld [vmem:[#allocation5 + $0x19b0] sm:$0xff] }
 0x1b5   :  { %7228 = vmatprep.subr.bf16.mxu1 %v7227_v25  ;;  %v7237_v17 = vpack.c.bf16 %v903_v61, %v902_v58  ;;  %v7273_v25 = vpack.c.bf16 %v937_v32, %v936_v63  ;;  %v957_v40 = vld [vmem:[#allocation5 + $0x19b8] sm:$0xff]  ;;  %v960_v61 = vld [vmem:[#allocation5 + $0x19d0] sm:$0xff]  ;;  %v914_v63 = vld [vmem:[#allocation5 + $0x1860] sm:$0xff] }
 0x1b6   :  { %v8130_v57 = vadd.f32 %v5441_v42, %v2898_v46  ;;  %7198 = vmatpush3.bf16.msra.mxu0 %v7197_v41  ;;  %v7245_v41 = vpack.c.bf16 %v907_v9, %v906_v12  ;;  %v7277_v42 = vpack.c.bf16 %v939_v29, %v938_v22  ;;  %v7279_v45 = vpack.c.bf16 %v957_v40, %v956_v37  ;;  %v941_v46 = vld [vmem:[#allocation5 + $0x1938] sm:$0xff]  ;;  %v944_v5 = vld [vmem:[#allocation5 + $0x1950] sm:$0xff]  ;;  %v946_v32 = vld [vmem:[#allocation5 + $0x1960] sm:$0xff] }
 0x1b7   :  { %7200 = vmatprep.subr.bf16.mxu0 %v7199_v34  ;;  %v908_v34 = vld [vmem:[#allocation5 + $0x1830] sm:$0xff]  ;;  %v7281_v44 = vpack.c.bf16 %v941_v46, %v940_v39  ;;  %v929_v58 = vld [vmem:[#allocation5 + $0x18d8] sm:$0xff]  ;;  %v7287_v24 = vpack.c.bf16 %v961_v62, %v960_v61  ;;  %v998_v61 = vld [vmem:[#allocation5 + $0x1b00] sm:$0xff] }
 0x1b8   :  { %7230 = vmatpush3.bf16.msra.mxu1 %v7229_v33  ;;  %v7247_v33 = vpack.c.bf16 %v925_v36, %v924_v35  ;;  %v7249_v43 = vpack.c.bf16 %v909_v38, %v908_v34  ;;  %v932_v18 = vld [vmem:[#allocation5 + $0x18f0] sm:$0xff]  ;;  %v933_v14 = vld [vmem:[#allocation5 + $0x18f8] sm:$0xff] }
 0x1b9   :  { %7232 = vmatprep.subr.bf16.mxu1 %v7231_v47  ;;  %v926_v47 = vld [vmem:[#allocation5 + $0x18c0] sm:$0xff]  ;;  %v67_v12 = vld [vmem:[#allocation2 + $0x68] sm:$0xff]  ;;  %v917_v38 = vld [vmem:[#allocation5 + $0x1878] sm:$0xff] }
 0x1ba   :  { %7202 = vmatpush3.bf16.msra.mxu0 %v7201_v54  ;;  %v7251_v48 = vpack.c.bf16 %v927_v50, %v926_v47  ;;  %v7283_v54 = vpack.c.bf16 %v959_v52, %v958_v51  ;;  %v107_v29 = vld [vmem:[#allocation2 + $0x1a4] sm:$0xff]  ;;  %v949_v47 = vld [vmem:[#allocation5 + $0x1978] sm:$0xff]  ;;  %v982_v50 = vld [vmem:[#allocation5 + $0x1a80] sm:$0xff] }
 0x1bb   :  { %7236 = vmatprep.subr.bf16.mxu0 %v7235_v23  ;;  %v928_v23 = vld [vmem:[#allocation5 + $0x18d0] sm:$0xff]  ;;  %v983_v51 = vld [vmem:[#allocation5 + $0x1a88] sm:$0xff] }
 0x1bc   :  { %7234 = vmatpush3.bf16.msra.mxu1 %v7233_v16  ;;  %v943_v16 = vld [vmem:[#allocation5 + $0x1948] sm:$0xff]  ;;  %v7255_v2 = vpack.c.bf16 %v929_v58, %v928_v23  ;;  %v916_v34 = vld [vmem:[#allocation5 + $0x1870] sm:$0xff]  ;;  %v7299_v23 = vpack.c.bf16 %v983_v51, %v982_v50  ;;  %v1022_v50 = vld [vmem:[#allocation5 + $0x1bc0] sm:$0xff] }
 0x1bd   :  { %7268 = vmatprep.subr.bf16.mxu1 %v7267_v53  ;;  %3876 = vmatmul.mubr.f32.vlgmr.msra.gmra.mrb[22].mxu0 %v1899_v13  ;;  %v7253_v53 = vpack.c.bf16 %v911_v55, %v910_v49  ;;  %v7285_v1 = vpack.c.bf16 %v943_v16, %v942_v56  ;;  %v913_v13 = vld [vmem:[#allocation5 + $0x1858] sm:$0xff]  ;;  %v127_v35 = vld [vmem:[#allocation2 + $0x242] sm:$0xff] }
 0x1be   :  { %7238 = vmatpush3.bf16.msra.mxu0 %v7237_v17  ;;  %4015 = vmatprep.mubr.f32.mxu0 %v1936_v11  ;;  %v945_v17 = vld [vmem:[#allocation5 + $0x1958] sm:$0xff]  ;;  %v7257_v31 = vpack.c.bf16 %v913_v13, %v912_v3  ;;  %v947_v11 = vld [vmem:[#allocation5 + $0x1968] sm:$0xff]  ;;  %v948_v39 = vld [vmem:[#allocation5 + $0x1970] sm:$0xff]  ;;  %v1942_v55 = vcombine.high %v107_v29, %v127_v35 }
 0x1bf   :  { %3946 = vmatmul.mubr.f32.vlgmr.msra.gmra.mrb[22].mxu1 %v1901_v60  ;;  %7240 = vmatprep.subr.bf16.mxu0 %v7239_v4  ;;  %v930_v60 = vld [vmem:[#allocation5 + $0x18e0] sm:$0xff]  ;;  %v7289_v21 = vpack.c.bf16 %v945_v17, %v944_v5  ;;  %v7297_v16 = vpack.c.bf16 %v949_v47, %v948_v39  ;;  %v967_v58 = vld [vmem:[#allocation5 + $0x1a08] sm:$0xff]  ;;  %v1935_v5 = vcombine.low %v8133_v59, %v8136_v15  ;;  %v1017_v17 = vld [vmem:[#allocation5 + $0x1b98] sm:$0xff] }
 0x1c0   :  { %7270 = vmatpush3.bf16.msra.mxu1 %v7269_v30  ;;  %4085 = vmatprep.mubr.f32.mxu1 %v1938_v6  ;;  %v931_v30 = vld [vmem:[#allocation5 + $0x18e8] sm:$0xff]  ;;  %v962_v4 = vld [vmem:[#allocation5 + $0x19e0] sm:$0xff]  ;;  %v1000_v59 = vld [vmem:[#allocation5 + $0x1b10] sm:$0xff] }
 0x1c1   :  { %7272 = vmatprep.subr.bf16.mxu1 %v7271_v10  ;;  %v915_v10 = vld [vmem:[#allocation5 + $0x1868] sm:$0xff]  ;;  %v7259_v8 = vpack.c.bf16 %v931_v30, %v930_v60  ;;  %v8167_v30 = vrot.slane %v1942_v55, %v7896_v20  ;;  %v1006_v55 = vld [vmem:[#allocation5 + $0x1b40] sm:$0xff] }
 0x1c2   :  { %7242 = vmatpush3.bf16.msra.mxu0 %v7241_v26  ;;  %v7291_v26 = vpack.c.bf16 %v963_v0, %v962_v4  ;;  %v7261_v40 = vpack.c.bf16 %v915_v10, %v914_v63  ;;  %v1937_v0 = vcombine.low %v8141_v7, %v8144_v27  ;;  %v968_v10 = vld [vmem:[#allocation5 + $0x1a10] sm:$0xff]  ;;  %v991_v47 = vld [vmem:[#allocation5 + $0x1ac8] sm:$0xff] }
 0x1c3   :  { %7244 = vmatprep.subr.bf16.mxu0 %v7243_v19  ;;  %v965_v19 = vld [vmem:[#allocation5 + $0x19f8] sm:$0xff]  ;;  %v1023_v51 = vld [vmem:[#allocation5 + $0x1bc8] sm:$0xff] }
 0x1c4   :  { %7274 = vmatpush3.bf16.msra.mxu1 %v7273_v25  ;;  %v964_v25 = vld [vmem:[#allocation5 + $0x19f0] sm:$0xff] }
 0x1c5   :  { %7276 = vmatprep.subr.bf16.mxu1 %v7275_v28  ;;  %v87_v28 = vld [vmem:[#allocation2 + $0x106] sm:$0xff]  ;;  %v7295_v46 = vpack.c.bf16 %v965_v19, %v964_v25  ;;  %v970_v19 = vld [vmem:[#allocation5 + $0x1a20] sm:$0xff] }
 0x1c6   :  { %7246 = vmatpush3.bf16.msra.mxu0 %v7245_v41  ;;  %v1939_v52 = vcombine.low %v67_v12, %v87_v28  ;;  %v1940_v49 = vcombine.high %v67_v12, %v87_v28  ;;  %v971_v12 = vld [vmem:[#allocation5 + $0x1a28] sm:$0xff] }
 0x1c7   :  { %7248 = vmatprep.subr.bf16.mxu0 %v7247_v33  ;;  %v7263_v33 = vpack.c.bf16 %v933_v14, %v932_v18  ;;  %v1018_v14 = vld [vmem:[#allocation5 + $0x1ba0] sm:$0xff]  ;;  %v1003_v28 = vld [vmem:[#allocation5 + $0x1b28] sm:$0xff] }
 0x1c8   :  { %7278 = vmatpush3.bf16.msra.mxu1 %v7277_v42  ;;  %v7293_v42 = vpack.c.bf16 %v947_v11, %v946_v32  ;;  %v8156_v3 = vrot.slane %v1939_v52, %v7896_v20  ;;  %v8164_v60 = vrot.slane %v1940_v49, %v7896_v20  ;;  %v969_v32 = vld [vmem:[#allocation5 + $0x1a18] sm:$0xff]  ;;  %v987_v11 = vld [vmem:[#allocation5 + $0x1aa8] sm:$0xff] }
 0x1c9   :  { %7280 = vmatprep.subr.bf16.mxu1 %v7279_v45  ;;  %v7305_v27 = vpack.c.bf16 %v969_v32, %v968_v10  ;;  %v975_v49 = vld [vmem:[#allocation5 + $0x1a48] sm:$0xff] }
 0x1ca   :  { %7250 = vmatpush3.bf16.msra.mxu0 %v7249_v43  ;;  %v1941_v43 = vcombine.low %v107_v29, %v127_v35  ;;  %v1974_v7 = vcombine.high %v8164_v60, %v8167_v30  ;;  %v988_v29 = vld [vmem:[#allocation5 + $0x1ab0] sm:$0xff]  ;;  %v989_v35 = vld [vmem:[#allocation5 + $0x1ab8] sm:$0xff]  ;;  %v1027_v10 = vld [vmem:[#allocation5 + $0x1be8] sm:$0xff] }
 0x1cb   :  { %7252 = vmatprep.subr.bf16.mxu0 %v7251_v48  ;;  %v1015_v48 = vld [vmem:[#allocation5 + $0x1b88] sm:$0xff] }
 0x1cc   :  { %7282 = vmatpush3.bf16.msra.mxu1 %v7281_v44  ;;  %v1014_v44 = vld [vmem:[#allocation5 + $0x1b80] sm:$0xff]  ;;  %v8159_v13 = vrot.slane %v1941_v43, %v7896_v20 }
 0x1cd   :  { %7284 = vmatprep.subr.bf16.mxu1 %v7283_v54  ;;  %v7265_v54 = vpack.c.bf16 %v917_v38, %v916_v34  ;;  %v7331_v62 = vpack.c.bf16 %v1015_v48, %v1014_v44  ;;  %v973_v34 = vld [vmem:[#allocation5 + $0x1a38] sm:$0xff]  ;;  %v1004_v38 = vld [vmem:[#allocation5 + $0x1b30] sm:$0xff]  ;;  %v974_v48 = vld [vmem:[#allocation5 + $0x1a40] sm:$0xff] }
 0x1ce   :  { %7254 = vmatpush3.bf16.msra.mxu0 %v7253_v53  ;;  %v999_v53 = vld [vmem:[#allocation5 + $0x1b08] sm:$0xff]  ;;  %v1972_v18 = vcombine.high %v8156_v3, %v8159_v13 }
 0x1cf   :  { %7256 = vmatprep.subr.bf16.mxu0 %v7255_v2  ;;  %v985_v2 = vld [vmem:[#allocation5 + $0x1a98] sm:$0xff] }
 0x1d0   :  { %7286 = vmatpush3.bf16.msra.mxu1 %v7285_v1  ;;  %v5474_v6 = vpop.f32.mrb[10].mxu0  ;;  %v984_v1 = vld [vmem:[#allocation5 + $0x1a90] sm:$0xff] }
 0x1d1   :  { %7288 = vmatprep.subr.bf16.mxu1 %v7287_v24  ;;  %v5475_v9 = vpop.f32.mrb[11].mxu0  ;;  %v1016_v24 = vld [vmem:[#allocation5 + $0x1b90] sm:$0xff]  ;;  %v7303_v63 = vpack.c.bf16 %v985_v2, %v984_v1 }
 0x1d2   :  { %v5509_v22 = vpop.f32.mrb[10].mxu1  ;;  %v5476_v36 = vadd.f32 %v5475_v9, %v5474_v6  ;;  %7258 = vmatpush3.bf16.msra.mxu0 %v7257_v31  ;;  %v7333_v31 = vpack.c.bf16 %v999_v53, %v998_v61  ;;  %v7335_v15 = vpack.c.bf16 %v1017_v17, %v1016_v24  ;;  %v1019_v6 = vld [vmem:[#allocation5 + $0x1ba8] sm:$0xff]  ;;  %v1002_v9 = vld [vmem:[#allocation5 + $0x1b20] sm:$0xff]  ;;  %v1025_v61 = vld [vmem:[#allocation5 + $0x1bd8] sm:$0xff] }
 0x1d3   :  { %v5510_v37 = vpop.f32.mrb[11].mxu1  ;;  %7260 = vmatprep.subr.bf16.mxu0 %v7259_v8  ;;  %v986_v8 = vld [vmem:[#allocation5 + $0x1aa0] sm:$0xff]  ;;  %v976_v2 = vld [vmem:[#allocation5 + $0x1a50] sm:$0xff] }
 0x1d4   :  { %v5511_v41 = vadd.f32 %v5510_v37, %v5509_v22  ;;  %7290 = vmatpush3.bf16.msra.mxu1 %v7289_v21  ;;  %v3038_v45 = vadd.f32 %v5476_v36, %v8130_v57  ;;  %v966_v57 = vld [vmem:[#allocation5 + $0x1a00] sm:$0xff]  ;;  %v1001_v21 = vld [vmem:[#allocation5 + $0x1b18] sm:$0xff]  ;;  %v7307_v25 = vpack.c.bf16 %v987_v11, %v986_v8  ;;  %v7339_v22 = vpack.c.bf16 %v1019_v6, %v1018_v14  ;;  %v1020_v36 = vld [vmem:[#allocation5 + $0x1bb0] sm:$0xff] }
 0x1d5   :  { %7292 = vmatprep.subr.bf16.mxu1 %v7291_v26  ;;  %v7301_v4 = vpack.c.bf16 %v967_v58, %v966_v57  ;;  %v7337_v26 = vpack.c.bf16 %v1001_v21, %v1000_v59  ;;  %v1021_v37 = vld [vmem:[#allocation5 + $0x1bb8] sm:$0xff]  ;;  %v1024_v58 = vld [vmem:[#allocation5 + $0x1bd0] sm:$0xff]  ;;  %v978_v59 = vld [vmem:[#allocation5 + $0x1a60] sm:$0xff] }
 0x1d6   :  { %v8153_v56 = vadd.f32 %v5511_v41, %v3038_v45  ;;  %7262 = vmatpush3.bf16.msra.mxu0 %v7261_v40  ;;  %v7309_v40 = vpack.c.bf16 %v971_v12, %v970_v19  ;;  %v7341_v41 = vpack.c.bf16 %v1003_v28, %v1002_v9  ;;  %v7343_v39 = vpack.c.bf16 %v1021_v37, %v1020_v36  ;;  %v1005_v45 = vld [vmem:[#allocation5 + $0x1b38] sm:$0xff]  ;;  %v1008_v24 = vld [vmem:[#allocation5 + $0x1b50] sm:$0xff]  ;;  %v1010_v21 = vld [vmem:[#allocation5 + $0x1b60] sm:$0xff] }
 0x1d7   :  { %7264 = vmatprep.subr.bf16.mxu0 %v7263_v33  ;;  %v972_v33 = vld [vmem:[#allocation5 + $0x1a30] sm:$0xff]  ;;  %v7345_v43 = vpack.c.bf16 %v1005_v45, %v1004_v38  ;;  %v993_v57 = vld [vmem:[#allocation5 + $0x1ad8] sm:$0xff]  ;;  %v7351_v17 = vpack.c.bf16 %v1025_v61, %v1024_v58  ;;  %v1062_v58 = vld [vmem:[#allocation5 + $0x1d00] sm:$0xff] }
 0x1d8   :  { %7294 = vmatpush3.bf16.msra.mxu1 %v7293_v42  ;;  %v7311_v42 = vpack.c.bf16 %v989_v35, %v988_v29  ;;  %v7313_v52 = vpack.c.bf16 %v973_v34, %v972_v33  ;;  %v996_v14 = vld [vmem:[#allocation5 + $0x1af0] sm:$0xff]  ;;  %v997_v6 = vld [vmem:[#allocation5 + $0x1af8] sm:$0xff] }
 0x1d9   :  { %7296 = vmatprep.subr.bf16.mxu1 %v7295_v46  ;;  %v990_v46 = vld [vmem:[#allocation5 + $0x1ac0] sm:$0xff]  ;;  %v68_v19 = vld [vmem:[#allocation2 + $0x70] sm:$0xff]  ;;  %v980_v33 = vld [vmem:[#allocation5 + $0x1a70] sm:$0xff] }
 0x1da   :  { %7266 = vmatpush3.bf16.msra.mxu0 %v7265_v54  ;;  %v7315_v44 = vpack.c.bf16 %v991_v47, %v990_v46  ;;  %v7347_v54 = vpack.c.bf16 %v1023_v51, %v1022_v50  ;;  %v108_v28 = vld [vmem:[#allocation2 + $0x1ac] sm:$0xff]  ;;  %v1046_v47 = vld [vmem:[#allocation5 + $0x1c80] sm:$0xff]  ;;  %v1047_v50 = vld [vmem:[#allocation5 + $0x1c88] sm:$0xff] }
 0x1db   :  { %7300 = vmatprep.subr.bf16.mxu0 %v7299_v23  ;;  %v992_v23 = vld [vmem:[#allocation5 + $0x1ad0] sm:$0xff]  ;;  %v981_v34 = vld [vmem:[#allocation5 + $0x1a78] sm:$0xff] }
 0x1dc   :  { %7298 = vmatpush3.bf16.msra.mxu1 %v7297_v16  ;;  %v1007_v16 = vld [vmem:[#allocation5 + $0x1b48] sm:$0xff]  ;;  %v7319_v1 = vpack.c.bf16 %v993_v57, %v992_v23  ;;  %v128_v29 = vld [vmem:[#allocation2 + $0x24a] sm:$0xff]  ;;  %v7363_v23 = vpack.c.bf16 %v1047_v50, %v1046_v47  ;;  %v1086_v47 = vld [vmem:[#allocation5 + $0x1dc0] sm:$0xff] }
 0x1dd   :  { %7332 = vmatprep.subr.bf16.mxu1 %v7331_v62  ;;  %4016 = vmatmul.mubr.f32.vlgmr.msra.gmra.mrb[24].mxu0 %v1935_v5  ;;  %v7317_v62 = vpack.c.bf16 %v975_v49, %v974_v48  ;;  %v7349_v53 = vpack.c.bf16 %v1007_v16, %v1006_v55  ;;  %v977_v5 = vld [vmem:[#allocation5 + $0x1a58] sm:$0xff]  ;;  %v1012_v38 = vld [vmem:[#allocation5 + $0x1b70] sm:$0xff]  ;;  %v1978_v49 = vcombine.high %v108_v28, %v128_v29  ;;  %v1031_v57 = vld [vmem:[#allocation5 + $0x1c08] sm:$0xff] }
 0x1de   :  { %7302 = vmatpush3.bf16.msra.mxu0 %v7301_v4  ;;  %4155 = vmatprep.mubr.f32.mxu0 %v1972_v18  ;;  %v1009_v4 = vld [vmem:[#allocation5 + $0x1b58] sm:$0xff]  ;;  %v7321_v32 = vpack.c.bf16 %v977_v5, %v976_v2  ;;  %v1011_v18 = vld [vmem:[#allocation5 + $0x1b68] sm:$0xff] }
 0x1df   :  { %4086 = vmatmul.mubr.f32.vlgmr.msra.gmra.mrb[24].mxu1 %v1937_v0  ;;  %7304 = vmatprep.subr.bf16.mxu0 %v7303_v63  ;;  %v994_v0 = vld [vmem:[#allocation5 + $0x1ae0] sm:$0xff]  ;;  %v7353_v8 = vpack.c.bf16 %v1009_v4, %v1008_v24  ;;  %v1013_v46 = vld [vmem:[#allocation5 + $0x1b78] sm:$0xff]  ;;  %v1971_v24 = vcombine.low %v8156_v3, %v8159_v13  ;;  %v1064_v3 = vld [vmem:[#allocation5 + $0x1d10] sm:$0xff] }
 0x1e0   :  { %7334 = vmatpush3.bf16.msra.mxu1 %v7333_v31  ;;  %4225 = vmatprep.mubr.f32.mxu1 %v1974_v7  ;;  %v995_v31 = vld [vmem:[#allocation5 + $0x1ae8] sm:$0xff]  ;;  %v1026_v63 = vld [vmem:[#allocation5 + $0x1be0] sm:$0xff]  ;;  %v7361_v16 = vpack.c.bf16 %v1013_v46, %v1012_v38  ;;  %v1081_v4 = vld [vmem:[#allocation5 + $0x1d98] sm:$0xff] }
 0x1e1   :  { %7336 = vmatprep.subr.bf16.mxu1 %v7335_v15  ;;  %v979_v15 = vld [vmem:[#allocation5 + $0x1a68] sm:$0xff]  ;;  %v7323_v11 = vpack.c.bf16 %v995_v31, %v994_v0  ;;  %v8190_v31 = vrot.slane %v1978_v49, %v7896_v20  ;;  %v1070_v49 = vld [vmem:[#allocation5 + $0x1d40] sm:$0xff] }
 0x1e2   :  { %7306 = vmatpush3.bf16.msra.mxu0 %v7305_v27  ;;  %v7355_v27 = vpack.c.bf16 %v1027_v10, %v1026_v63  ;;  %v7325_v37 = vpack.c.bf16 %v979_v15, %v978_v59  ;;  %v1973_v10 = vcombine.low %v8164_v60, %v8167_v30  ;;  %v1032_v15 = vld [vmem:[#allocation5 + $0x1c10] sm:$0xff]  ;;  %v1055_v46 = vld [vmem:[#allocation5 + $0x1cc8] sm:$0xff] }
 0x1e3   :  { %7308 = vmatprep.subr.bf16.mxu0 %v7307_v25  ;;  %v1029_v25 = vld [vmem:[#allocation5 + $0x1bf8] sm:$0xff]  ;;  %v1087_v50 = vld [vmem:[#allocation5 + $0x1dc8] sm:$0xff] }
 0x1e4   :  { %7338 = vmatpush3.bf16.msra.mxu1 %v7337_v26  ;;  %v1028_v26 = vld [vmem:[#allocation5 + $0x1bf0] sm:$0xff] }
 0x1e5   :  { %7340 = vmatprep.subr.bf16.mxu1 %v7339_v22  ;;  %v88_v22 = vld [vmem:[#allocation2 + $0x10e] sm:$0xff]  ;;  %v7359_v45 = vpack.c.bf16 %v1029_v25, %v1028_v26  ;;  %v1034_v25 = vld [vmem:[#allocation5 + $0x1c20] sm:$0xff] }
 0x1e6   :  { %7310 = vmatpush3.bf16.msra.mxu0 %v7309_v40  ;;  %v1975_v51 = vcombine.low %v68_v19, %v88_v22  ;;  %v1976_v48 = vcombine.high %v68_v19, %v88_v22  ;;  %v1035_v19 = vld [vmem:[#allocation5 + $0x1c28] sm:$0xff] }
 0x1e7   :  { %7312 = vmatprep.subr.bf16.mxu0 %v7311_v42  ;;  %v7327_v42 = vpack.c.bf16 %v997_v6, %v996_v14  ;;  %v1082_v6 = vld [vmem:[#allocation5 + $0x1da0] sm:$0xff]  ;;  %v1067_v22 = vld [vmem:[#allocation5 + $0x1d28] sm:$0xff] }
 0x1e8   :  { %7342 = vmatpush3.bf16.msra.mxu1 %v7341_v41  ;;  %v7357_v41 = vpack.c.bf16 %v1011_v18, %v1010_v21  ;;  %v8179_v2 = vrot.slane %v1975_v51, %v7896_v20  ;;  %v8187_v0 = vrot.slane %v1976_v48, %v7896_v20  ;;  %v1033_v21 = vld [vmem:[#allocation5 + $0x1c18] sm:$0xff]  ;;  %v1051_v18 = vld [vmem:[#allocation5 + $0x1ca8] sm:$0xff] }
 0x1e9   :  { %7344 = vmatprep.subr.bf16.mxu1 %v7343_v39  ;;  %v7369_v30 = vpack.c.bf16 %v1033_v21, %v1032_v15  ;;  %v1039_v48 = vld [vmem:[#allocation5 + $0x1c48] sm:$0xff] }
 0x1ea   :  { %7314 = vmatpush3.bf16.msra.mxu0 %v7313_v52  ;;  %v1977_v52 = vcombine.low %v108_v28, %v128_v29  ;;  %v2010_v60 = vcombine.high %v8187_v0, %v8190_v31  ;;  %v1052_v28 = vld [vmem:[#allocation5 + $0x1cb0] sm:$0xff]  ;;  %v1053_v29 = vld [vmem:[#allocation5 + $0x1cb8] sm:$0xff]  ;;  %v1091_v15 = vld [vmem:[#allocation5 + $0x1de8] sm:$0xff] }
 0x1eb   :  { %7316 = vmatprep.subr.bf16.mxu0 %v7315_v44  ;;  %v1079_v44 = vld [vmem:[#allocation5 + $0x1d88] sm:$0xff] }
 0x1ec   :  { %7346 = vmatpush3.bf16.msra.mxu1 %v7345_v43  ;;  %v1078_v43 = vld [vmem:[#allocation5 + $0x1d80] sm:$0xff]  ;;  %v8182_v5 = vrot.slane %v1977_v52, %v7896_v20 }
 0x1ed   :  { %7348 = vmatprep.subr.bf16.mxu1 %v7347_v54  ;;  %v7329_v54 = vpack.c.bf16 %v981_v34, %v980_v33  ;;  %v7395_v61 = vpack.c.bf16 %v1079_v44, %v1078_v43  ;;  %v1037_v33 = vld [vmem:[#allocation5 + $0x1c38] sm:$0xff]  ;;  %v1068_v34 = vld [vmem:[#allocation5 + $0x1d30] sm:$0xff]  ;;  %v1038_v44 = vld [vmem:[#allocation5 + $0x1c40] sm:$0xff] }
 0x1ee   :  { %7318 = vmatpush3.bf16.msra.mxu0 %v7317_v62  ;;  %v1063_v62 = vld [vmem:[#allocation5 + $0x1d08] sm:$0xff]  ;;  %v2008_v14 = vcombine.high %v8179_v2, %v8182_v5 }
 0x1ef   :  { %7320 = vmatprep.subr.bf16.mxu0 %v7319_v1  ;;  %v1049_v1 = vld [vmem:[#allocation5 + $0x1c98] sm:$0xff] }
 0x1f0   :  { %7350 = vmatpush3.bf16.msra.mxu1 %v7349_v53  ;;  %v5544_v7 = vpop.f32.mrb[12].mxu0  ;;  %v1048_v53 = vld [vmem:[#allocation5 + $0x1c90] sm:$0xff] }
 0x1f1   :  { %7352 = vmatprep.subr.bf16.mxu1 %v7351_v17  ;;  %v5545_v12 = vpop.f32.mrb[13].mxu0  ;;  %v1080_v17 = vld [vmem:[#allocation5 + $0x1d90] sm:$0xff]  ;;  %v7367_v59 = vpack.c.bf16 %v1049_v1, %v1048_v53 }
 0x1f2   :  { %v5579_v9 = vpop.f32.mrb[12].mxu1  ;;  %v5546_v35 = vadd.f32 %v5545_v12, %v5544_v7  ;;  %7322 = vmatpush3.bf16.msra.mxu0 %v7321_v32  ;;  %v7397_v32 = vpack.c.bf16 %v1063_v62, %v1062_v58  ;;  %v7399_v13 = vpack.c.bf16 %v1081_v4, %v1080_v17  ;;  %v1083_v7 = vld [vmem:[#allocation5 + $0x1da8] sm:$0xff]  ;;  %v1066_v12 = vld [vmem:[#allocation5 + $0x1d20] sm:$0xff]  ;;  %v1089_v58 = vld [vmem:[#allocation5 + $0x1dd8] sm:$0xff] }
 0x1f3   :  { %v5580_v36 = vpop.f32.mrb[13].mxu1  ;;  %7324 = vmatprep.subr.bf16.mxu0 %v7323_v11  ;;  %v1050_v11 = vld [vmem:[#allocation5 + $0x1ca0] sm:$0xff]  ;;  %v1040_v1 = vld [vmem:[#allocation5 + $0x1c50] sm:$0xff] }
 0x1f4   :  { %v5581_v40 = vadd.f32 %v5580_v36, %v5579_v9  ;;  %7354 = vmatpush3.bf16.msra.mxu1 %v7353_v8  ;;  %v3178_v39 = vadd.f32 %v5546_v35, %v8153_v56  ;;  %v1030_v56 = vld [vmem:[#allocation5 + $0x1c00] sm:$0xff]  ;;  %v1065_v8 = vld [vmem:[#allocation5 + $0x1d18] sm:$0xff]  ;;  %v7371_v26 = vpack.c.bf16 %v1051_v18, %v1050_v11  ;;  %v7403_v9 = vpack.c.bf16 %v1083_v7, %v1082_v6  ;;  %v1084_v35 = vld [vmem:[#allocation5 + $0x1db0] sm:$0xff] }
 0x1f5   :  { %7356 = vmatprep.subr.bf16.mxu1 %v7355_v27  ;;  %v7365_v63 = vpack.c.bf16 %v1031_v57, %v1030_v56  ;;  %v7401_v27 = vpack.c.bf16 %v1065_v8, %v1064_v3  ;;  %v1085_v36 = vld [vmem:[#allocation5 + $0x1db8] sm:$0xff]  ;;  %v1088_v57 = vld [vmem:[#allocation5 + $0x1dd0] sm:$0xff]  ;;  %v1042_v3 = vld [vmem:[#allocation5 + $0x1c60] sm:$0xff] }
 0x1f6   :  { %v8176_v55 = vadd.f32 %v5581_v40, %v3178_v39  ;;  %7326 = vmatpush3.bf16.msra.mxu0 %v7325_v37  ;;  %v7373_v37 = vpack.c.bf16 %v1035_v19, %v1034_v25  ;;  %v7405_v40 = vpack.c.bf16 %v1067_v22, %v1066_v12  ;;  %v7407_v38 = vpack.c.bf16 %v1085_v36, %v1084_v35  ;;  %v1069_v39 = vld [vmem:[#allocation5 + $0x1d38] sm:$0xff]  ;;  %v1072_v17 = vld [vmem:[#allocation5 + $0x1d50] sm:$0xff]  ;;  %v1074_v8 = vld [vmem:[#allocation5 + $0x1d60] sm:$0xff] }
 0x1f7   :  { %7328 = vmatprep.subr.bf16.mxu0 %v7327_v42  ;;  %v1036_v42 = vld [vmem:[#allocation5 + $0x1c30] sm:$0xff]  ;;  %v7409_v52 = vpack.c.bf16 %v1069_v39, %v1068_v34  ;;  %v1057_v56 = vld [vmem:[#allocation5 + $0x1cd8] sm:$0xff]  ;;  %v7415_v4 = vpack.c.bf16 %v1089_v58, %v1088_v57  ;;  %v69_v25 = vld [vmem:[#allocation2 + $0x78] sm:$0xff] }
 0x1f8   :  { %7358 = vmatpush3.bf16.msra.mxu1 %v7357_v41  ;;  %v7375_v41 = vpack.c.bf16 %v1053_v29, %v1052_v28  ;;  %v7377_v51 = vpack.c.bf16 %v1037_v33, %v1036_v42  ;;  %v1060_v6 = vld [vmem:[#allocation5 + $0x1cf0] sm:$0xff]  ;;  %v1061_v7 = vld [vmem:[#allocation5 + $0x1cf8] sm:$0xff]  ;;  %v1126_v57 = vld [vmem:[#allocation5 + $0x1f00] sm:$0xff] }
 0x1f9   :  { %7360 = vmatprep.subr.bf16.mxu1 %v7359_v45  ;;  %v1054_v45 = vld [vmem:[#allocation5 + $0x1cc0] sm:$0xff]  ;;  %v1044_v42 = vld [vmem:[#allocation5 + $0x1c70] sm:$0xff]  ;;  %v1045_v33 = vld [vmem:[#allocation5 + $0x1c78] sm:$0xff] }
 0x1fa   :  { %7330 = vmatpush3.bf16.msra.mxu0 %v7329_v54  ;;  %v7379_v43 = vpack.c.bf16 %v1055_v46, %v1054_v45  ;;  %v7411_v54 = vpack.c.bf16 %v1087_v50, %v1086_v47  ;;  %v109_v22 = vld [vmem:[#allocation2 + $0x1b4] sm:$0xff]  ;;  %v1076_v34 = vld [vmem:[#allocation5 + $0x1d70] sm:$0xff]  ;;  %v1111_v47 = vld [vmem:[#allocation5 + $0x1e88] sm:$0xff] }
 0x1fb   :  { %7364 = vmatprep.subr.bf16.mxu0 %v7363_v23  ;;  %v1056_v23 = vld [vmem:[#allocation5 + $0x1cd0] sm:$0xff]  ;;  %v129_v28 = vld [vmem:[#allocation2 + $0x252] sm:$0xff] }
 0x1fc   :  { %7362 = vmatpush3.bf16.msra.mxu1 %v7361_v16  ;;  %v1071_v16 = vld [vmem:[#allocation5 + $0x1d48] sm:$0xff]  ;;  %v7383_v53 = vpack.c.bf16 %v1057_v56, %v1056_v23  ;;  %v1077_v45 = vld [vmem:[#allocation5 + $0x1d78] sm:$0xff]  ;;  %v1110_v46 = vld [vmem:[#allocation5 + $0x1e80] sm:$0xff] }
 0x1fd   :  { %7396 = vmatprep.subr.bf16.mxu1 %v7395_v61  ;;  %4156 = vmatmul.mubr.f32.vlgmr.msra.gmra.mrb[26].mxu0 %v1971_v24  ;;  %v7381_v61 = vpack.c.bf16 %v1039_v48, %v1038_v44  ;;  %v7413_v62 = vpack.c.bf16 %v1071_v16, %v1070_v49  ;;  %v1041_v24 = vld [vmem:[#allocation5 + $0x1c58] sm:$0xff]  ;;  %v2014_v48 = vcombine.high %v109_v22, %v129_v28  ;;  %v1095_v56 = vld [vmem:[#allocation5 + $0x1e08] sm:$0xff] }
 0x1fe   :  { %7366 = vmatpush3.bf16.msra.mxu0 %v7365_v63  ;;  %4295 = vmatprep.mubr.f32.mxu0 %v2008_v14  ;;  %v1073_v63 = vld [vmem:[#allocation5 + $0x1d58] sm:$0xff]  ;;  %v7385_v21 = vpack.c.bf16 %v1041_v24, %v1040_v1  ;;  %v1075_v14 = vld [vmem:[#allocation5 + $0x1d68] sm:$0xff]  ;;  %v7425_v16 = vpack.c.bf16 %v1077_v45, %v1076_v34  ;;  %v7427_v23 = vpack.c.bf16 %v1111_v47, %v1110_v46  ;;  %v1150_v46 = vld [vmem:[#allocation5 + $0x1fc0] sm:$0xff] }
 0x1ff   :  { %4226 = vmatmul.mubr.f32.vlgmr.msra.gmra.mrb[26].mxu1 %v1973_v10  ;;  %7368 = vmatprep.subr.bf16.mxu0 %v7367_v59  ;;  %v1058_v10 = vld [vmem:[#allocation5 + $0x1ce0] sm:$0xff]  ;;  %v7417_v11 = vpack.c.bf16 %v1073_v63, %v1072_v17  ;;  %v2007_v17 = vcombine.low %v8179_v2, %v8182_v5  ;;  %v1145_v63 = vld [vmem:[#allocation5 + $0x1f98] sm:$0xff]  ;;  %v1128_v2 = vld [vmem:[#allocation5 + $0x1f10] sm:$0xff] }
 0x200   :  { %7398 = vmatpush3.bf16.msra.mxu1 %v7397_v32  ;;  %4365 = vmatprep.mubr.f32.mxu1 %v2010_v60  ;;  %v1059_v32 = vld [vmem:[#allocation5 + $0x1ce8] sm:$0xff]  ;;  %v1090_v59 = vld [vmem:[#allocation5 + $0x1de0] sm:$0xff] }
 0x201   :  { %7400 = vmatprep.subr.bf16.mxu1 %v7399_v13  ;;  %v1043_v13 = vld [vmem:[#allocation5 + $0x1c68] sm:$0xff]  ;;  %v7387_v18 = vpack.c.bf16 %v1059_v32, %v1058_v10  ;;  %v8213_v32 = vrot.slane %v2014_v48, %v7896_v20  ;;  %v1134_v48 = vld [vmem:[#allocation5 + $0x1f40] sm:$0xff] }
 0x202   :  { %7370 = vmatpush3.bf16.msra.mxu0 %v7369_v30  ;;  %v7419_v30 = vpack.c.bf16 %v1091_v15, %v1090_v59  ;;  %v7389_v36 = vpack.c.bf16 %v1043_v13, %v1042_v3  ;;  %v2009_v15 = vcombine.low %v8187_v0, %v8190_v31  ;;  %v1096_v13 = vld [vmem:[#allocation5 + $0x1e10] sm:$0xff]  ;;  %v1119_v45 = vld [vmem:[#allocation5 + $0x1ec8] sm:$0xff] }
 0x203   :  { %7372 = vmatprep.subr.bf16.mxu0 %v7371_v26  ;;  %v1093_v26 = vld [vmem:[#allocation5 + $0x1df8] sm:$0xff]  ;;  %v1151_v47 = vld [vmem:[#allocation5 + $0x1fc8] sm:$0xff] }
 0x204   :  { %7402 = vmatpush3.bf16.msra.mxu1 %v7401_v27  ;;  %v1092_v27 = vld [vmem:[#allocation5 + $0x1df0] sm:$0xff] }
 0x205   :  { %7404 = vmatprep.subr.bf16.mxu1 %v7403_v9  ;;  %v89_v9 = vld [vmem:[#allocation2 + $0x116] sm:$0xff]  ;;  %v7423_v39 = vpack.c.bf16 %v1093_v26, %v1092_v27 }
 0x206   :  { %7374 = vmatpush3.bf16.msra.mxu0 %v7373_v37  ;;  %v2011_v50 = vcombine.low %v69_v25, %v89_v9  ;;  %v2012_v44 = vcombine.high %v69_v25, %v89_v9  ;;  %v1098_v26 = vld [vmem:[#allocation5 + $0x1e20] sm:$0xff]  ;;  %v1099_v25 = vld [vmem:[#allocation5 + $0x1e28] sm:$0xff] }
 0x207   :  { %7376 = vmatprep.subr.bf16.mxu0 %v7375_v41  ;;  %v7391_v41 = vpack.c.bf16 %v1061_v7, %v1060_v6  ;;  %v1146_v7 = vld [vmem:[#allocation5 + $0x1fa0] sm:$0xff]  ;;  %v1131_v9 = vld [vmem:[#allocation5 + $0x1f28] sm:$0xff] }
 0x208   :  { %7406 = vmatpush3.bf16.msra.mxu1 %v7405_v40  ;;  %v7421_v40 = vpack.c.bf16 %v1075_v14, %v1074_v8  ;;  %v8202_v1 = vrot.slane %v2011_v50, %v7896_v20  ;;  %v8210_v10 = vrot.slane %v2012_v44, %v7896_v20  ;;  %v1097_v8 = vld [vmem:[#allocation5 + $0x1e18] sm:$0xff]  ;;  %v1115_v14 = vld [vmem:[#allocation5 + $0x1ea8] sm:$0xff] }
 0x209   :  { %7408 = vmatprep.subr.bf16.mxu1 %v7407_v38  ;;  %v7433_v31 = vpack.c.bf16 %v1097_v8, %v1096_v13  ;;  %v1103_v44 = vld [vmem:[#allocation5 + $0x1e48] sm:$0xff] }
 0x20a   :  { %7378 = vmatpush3.bf16.msra.mxu0 %v7377_v51  ;;  %v2013_v51 = vcombine.low %v109_v22, %v129_v28  ;;  %v2046_v0 = vcombine.high %v8210_v10, %v8213_v32  ;;  %v1116_v22 = vld [vmem:[#allocation5 + $0x1eb0] sm:$0xff]  ;;  %v1117_v28 = vld [vmem:[#allocation5 + $0x1eb8] sm:$0xff]  ;;  %v1155_v13 = vld [vmem:[#allocation5 + $0x1fe8] sm:$0xff] }
 0x20b   :  { %7380 = vmatprep.subr.bf16.mxu0 %v7379_v43  ;;  %v1143_v43 = vld [vmem:[#allocation5 + $0x1f88] sm:$0xff] }
 0x20c   :  { %7410 = vmatpush3.bf16.msra.mxu1 %v7409_v52  ;;  %v1142_v52 = vld [vmem:[#allocation5 + $0x1f80] sm:$0xff]  ;;  %v8205_v24 = vrot.slane %v2013_v51, %v7896_v20 }
 0x20d   :  { %7412 = vmatprep.subr.bf16.mxu1 %v7411_v54  ;;  %v7393_v54 = vpack.c.bf16 %v1045_v33, %v1044_v42  ;;  %v7459_v58 = vpack.c.bf16 %v1143_v43, %v1142_v52  ;;  %v1101_v42 = vld [vmem:[#allocation5 + $0x1e38] sm:$0xff]  ;;  %v1132_v33 = vld [vmem:[#allocation5 + $0x1f30] sm:$0xff]  ;;  %v1102_v43 = vld [vmem:[#allocation5 + $0x1e40] sm:$0xff] }
 0x20e   :  { %7382 = vmatpush3.bf16.msra.mxu0 %v7381_v61  ;;  %v1127_v61 = vld [vmem:[#allocation5 + $0x1f08] sm:$0xff]  ;;  %v2044_v6 = vcombine.high %v8202_v1, %v8205_v24 }
 0x20f   :  { %7384 = vmatprep.subr.bf16.mxu0 %v7383_v53  ;;  %v1113_v53 = vld [vmem:[#allocation5 + $0x1e98] sm:$0xff] }
 0x210   :  { %7414 = vmatpush3.bf16.msra.mxu1 %v7413_v62  ;;  %v5614_v60 = vpop.f32.mrb[14].mxu0  ;;  %v1112_v62 = vld [vmem:[#allocation5 + $0x1e90] sm:$0xff] }
 0x211   :  { %7416 = vmatprep.subr.bf16.mxu1 %v7415_v4  ;;  %v5615_v19 = vpop.f32.mrb[15].mxu0  ;;  %v1144_v4 = vld [vmem:[#allocation5 + $0x1f90] sm:$0xff]  ;;  %v7431_v3 = vpack.c.bf16 %v1113_v53, %v1112_v62 }
 0x212   :  { %v5649_v12 = vpop.f32.mrb[14].mxu1  ;;  %v5616_v29 = vadd.f32 %v5615_v19, %v5614_v60  ;;  %7386 = vmatpush3.bf16.msra.mxu0 %v7385_v21  ;;  %v7461_v21 = vpack.c.bf16 %v1127_v61, %v1126_v57  ;;  %v7463_v5 = vpack.c.bf16 %v1145_v63, %v1144_v4  ;;  %v1147_v60 = vld [vmem:[#allocation5 + $0x1fa8] sm:$0xff]  ;;  %v1130_v19 = vld [vmem:[#allocation5 + $0x1f20] sm:$0xff]  ;;  %v1153_v57 = vld [vmem:[#allocation5 + $0x1fd8] sm:$0xff] }
 0x213   :  { %v5650_v35 = vpop.f32.mrb[15].mxu1  ;;  %7388 = vmatprep.subr.bf16.mxu0 %v7387_v18  ;;  %v1114_v18 = vld [vmem:[#allocation5 + $0x1ea0] sm:$0xff]  ;;  %v1104_v53 = vld [vmem:[#allocation5 + $0x1e50] sm:$0xff] }
 0x214   :  { %v5651_v37 = vadd.f32 %v5650_v35, %v5649_v12  ;;  %7418 = vmatpush3.bf16.msra.mxu1 %v7417_v11  ;;  %v3318_v38 = vadd.f32 %v5616_v29, %v8176_v55  ;;  %v1094_v55 = vld [vmem:[#allocation5 + $0x1e00] sm:$0xff]  ;;  %v1129_v11 = vld [vmem:[#allocation5 + $0x1f18] sm:$0xff]  ;;  %v7435_v27 = vpack.c.bf16 %v1115_v14, %v1114_v18  ;;  %v7467_v12 = vpack.c.bf16 %v1147_v60, %v1146_v7  ;;  %v1148_v29 = vld [vmem:[#allocation5 + $0x1fb0] sm:$0xff] }
 0x215   :  { %7420 = vmatprep.subr.bf16.mxu1 %v7419_v30  ;;  %v7429_v59 = vpack.c.bf16 %v1095_v56, %v1094_v55  ;;  %v7465_v30 = vpack.c.bf16 %v1129_v11, %v1128_v2  ;;  %v1149_v35 = vld [vmem:[#allocation5 + $0x1fb8] sm:$0xff]  ;;  %v1152_v56 = vld [vmem:[#allocation5 + $0x1fd0] sm:$0xff]  ;;  %v1106_v2 = vld [vmem:[#allocation5 + $0x1e60] sm:$0xff] }
 0x216   :  { %v8199_v49 = vadd.f32 %v5651_v37, %v3318_v38  ;;  %7390 = vmatpush3.bf16.msra.mxu0 %v7389_v36  ;;  %v7437_v36 = vpack.c.bf16 %v1099_v25, %v1098_v26  ;;  %v7469_v37 = vpack.c.bf16 %v1131_v9, %v1130_v19  ;;  %v7471_v34 = vpack.c.bf16 %v1149_v35, %v1148_v29  ;;  %v1133_v38 = vld [vmem:[#allocation5 + $0x1f38] sm:$0xff]  ;;  %v1136_v4 = vld [vmem:[#allocation5 + $0x1f50] sm:$0xff]  ;;  %v1138_v11 = vld [vmem:[#allocation5 + $0x1f60] sm:$0xff] }
 0x217   :  { %7392 = vmatprep.subr.bf16.mxu0 %v7391_v41  ;;  %v1100_v41 = vld [vmem:[#allocation5 + $0x1e30] sm:$0xff]  ;;  %v7473_v51 = vpack.c.bf16 %v1133_v38, %v1132_v33  ;;  %v1121_v55 = vld [vmem:[#allocation5 + $0x1ed8] sm:$0xff]  ;;  %v7479_v63 = vpack.c.bf16 %v1153_v57, %v1152_v56  ;;  %v70_v26 = vld [vmem:[#allocation2 + $0x80] sm:$0xff] }
 0x218   :  { %7422 = vmatpush3.bf16.msra.mxu1 %v7421_v40  ;;  %v7439_v40 = vpack.c.bf16 %v1117_v28, %v1116_v22  ;;  %v7441_v50 = vpack.c.bf16 %v1101_v42, %v1100_v41  ;;  %v1124_v7 = vld [vmem:[#allocation5 + $0x1ef0] sm:$0xff]  ;;  %v1125_v60 = vld [vmem:[#allocation5 + $0x1ef8] sm:$0xff]  ;;  %v110_v9 = vld [vmem:[#allocation2 + $0x1bc] sm:$0xff] }
 0x219   :  { %7424 = vmatprep.subr.bf16.mxu1 %v7423_v39  ;;  %v1118_v39 = vld [vmem:[#allocation5 + $0x1ec0] sm:$0xff]  ;;  %v1108_v41 = vld [vmem:[#allocation5 + $0x1e70] sm:$0xff]  ;;  %v1109_v42 = vld [vmem:[#allocation5 + $0x1e78] sm:$0xff] }
 0x21a   :  { %7394 = vmatpush3.bf16.msra.mxu0 %v7393_v54  ;;  %v7443_v52 = vpack.c.bf16 %v1119_v45, %v1118_v39  ;;  %v7475_v54 = vpack.c.bf16 %v1151_v47, %v1150_v46  ;;  %v130_v22 = vld [vmem:[#allocation2 + $0x25a] sm:$0xff]  ;;  %v1140_v33 = vld [vmem:[#allocation5 + $0x1f70] sm:$0xff]  ;;  %v1141_v39 = vld [vmem:[#allocation5 + $0x1f78] sm:$0xff] }
 0x21b   :  { %7428 = vmatprep.subr.bf16.mxu0 %v7427_v23  ;;  %v1120_v23 = vld [vmem:[#allocation5 + $0x1ed0] sm:$0xff]  ;;  %v1174_v45 = vld [vmem:[#allocation5 + $0x2080] sm:$0xff]  ;;  %v1175_v46 = vld [vmem:[#allocation5 + $0x2088] sm:$0xff] }
 0x21c   :  { %7426 = vmatpush3.bf16.msra.mxu1 %v7425_v16  ;;  %v1135_v16 = vld [vmem:[#allocation5 + $0x1f48] sm:$0xff]  ;;  %v7447_v62 = vpack.c.bf16 %v1121_v55, %v1120_v23  ;;  %v7491_v23 = vpack.c.bf16 %v1175_v46, %v1174_v45  ;;  %v1190_v56 = vld [vmem:[#allocation5 + $0x2100] sm:$0xff] }
 0x21d   :  { %7460 = vmatprep.subr.bf16.mxu1 %v7459_v58  ;;  %4296 = vmatmul.mubr.f32.vlgmr.msra.gmra.mrb[28].mxu0 %v2007_v17  ;;  %v7445_v58 = vpack.c.bf16 %v1103_v44, %v1102_v43  ;;  %v7477_v61 = vpack.c.bf16 %v1135_v16, %v1134_v48  ;;  %v1105_v17 = vld [vmem:[#allocation5 + $0x1e58] sm:$0xff]  ;;  %v2050_v44 = vcombine.high %v110_v9, %v130_v22  ;;  %v1159_v55 = vld [vmem:[#allocation5 + $0x2008] sm:$0xff]  ;;  %v1214_v45 = vld [vmem:[#allocation5 + $0x21c0] sm:$0xff] }
 0x21e   :  { %7430 = vmatpush3.bf16.msra.mxu0 %v7429_v59  ;;  %4435 = vmatprep.mubr.f32.mxu0 %v2044_v6  ;;  %v1137_v59 = vld [vmem:[#allocation5 + $0x1f58] sm:$0xff]  ;;  %v7449_v8 = vpack.c.bf16 %v1105_v17, %v1104_v53  ;;  %v1139_v6 = vld [vmem:[#allocation5 + $0x1f68] sm:$0xff]  ;;  %v7489_v16 = vpack.c.bf16 %v1141_v39, %v1140_v33 }
 0x21f   :  { %4366 = vmatmul.mubr.f32.vlgmr.msra.gmra.mrb[28].mxu1 %v2009_v15  ;;  %7432 = vmatprep.subr.bf16.mxu0 %v7431_v3  ;;  %v1122_v15 = vld [vmem:[#allocation5 + $0x1ee0] sm:$0xff]  ;;  %v7481_v18 = vpack.c.bf16 %v1137_v59, %v1136_v4  ;;  %v2043_v4 = vcombine.low %v8202_v1, %v8205_v24  ;;  %v1209_v59 = vld [vmem:[#allocation5 + $0x2198] sm:$0xff]  ;;  %v1192_v1 = vld [vmem:[#allocation5 + $0x2110] sm:$0xff] }
 0x220   :  { %7462 = vmatpush3.bf16.msra.mxu1 %v7461_v21  ;;  %4505 = vmatprep.mubr.f32.mxu1 %v2046_v0  ;;  %v1123_v21 = vld [vmem:[#allocation5 + $0x1ee8] sm:$0xff]  ;;  %v1154_v3 = vld [vmem:[#allocation5 + $0x1fe0] sm:$0xff] }
 0x221   :  { %7464 = vmatprep.subr.bf16.mxu1 %v7463_v5  ;;  %v1107_v5 = vld [vmem:[#allocation5 + $0x1e68] sm:$0xff]  ;;  %v7451_v14 = vpack.c.bf16 %v1123_v21, %v1122_v15  ;;  %v8236_v21 = vrot.slane %v2050_v44, %v7896_v20  ;;  %v1198_v44 = vld [vmem:[#allocation5 + $0x2140] sm:$0xff] }
 0x222   :  { %7434 = vmatpush3.bf16.msra.mxu0 %v7433_v31  ;;  %v7483_v31 = vpack.c.bf16 %v1155_v13, %v1154_v3  ;;  %v7453_v35 = vpack.c.bf16 %v1107_v5, %v1106_v2  ;;  %v2045_v13 = vcombine.low %v8210_v10, %v8213_v32  ;;  %v1160_v5 = vld [vmem:[#allocation5 + $0x2010] sm:$0xff]  ;;  %v1183_v39 = vld [vmem:[#allocation5 + $0x20c8] sm:$0xff] }
 0x223   :  { %7436 = vmatprep.subr.bf16.mxu0 %v7435_v27  ;;  %v1157_v27 = vld [vmem:[#allocation5 + $0x1ff8] sm:$0xff]  ;;  %v1215_v46 = vld [vmem:[#allocation5 + $0x21c8] sm:$0xff] }
 0x224   :  { %7466 = vmatpush3.bf16.msra.mxu1 %v7465_v30  ;;  %v1156_v30 = vld [vmem:[#allocation5 + $0x1ff0] sm:$0xff] }
 0x225   :  { %7468 = vmatprep.subr.bf16.mxu1 %v7467_v12  ;;  %v90_v12 = vld [vmem:[#allocation2 + $0x11e] sm:$0xff]  ;;  %v7487_v38 = vpack.c.bf16 %v1157_v27, %v1156_v30 }
 0x226   :  { %7438 = vmatpush3.bf16.msra.mxu0 %v7437_v36  ;;  %v2047_v47 = vcombine.low %v70_v26, %v90_v12  ;;  %v2048_v43 = vcombine.high %v70_v26, %v90_v12  ;;  %v1162_v27 = vld [vmem:[#allocation5 + $0x2020] sm:$0xff]  ;;  %v1163_v26 = vld [vmem:[#allocation5 + $0x2028] sm:$0xff] }
 0x227   :  { %7440 = vmatprep.subr.bf16.mxu0 %v7439_v40  ;;  %v7455_v40 = vpack.c.bf16 %v1125_v60, %v1124_v7  ;;  %v1210_v60 = vld [vmem:[#allocation5 + $0x21a0] sm:$0xff]  ;;  %v1195_v12 = vld [vmem:[#allocation5 + $0x2128] sm:$0xff] }
 0x228   :  { %7470 = vmatpush3.bf16.msra.mxu1 %v7469_v37  ;;  %v7485_v37 = vpack.c.bf16 %v1139_v6, %v1138_v11  ;;  %v8225_v53 = vrot.slane %v2047_v47, %v7896_v20  ;;  %v8233_v15 = vrot.slane %v2048_v43, %v7896_v20  ;;  %v1161_v11 = vld [vmem:[#allocation5 + $0x2018] sm:$0xff]  ;;  %v1179_v6 = vld [vmem:[#allocation5 + $0x20a8] sm:$0xff] }
 0x229   :  { %7472 = vmatprep.subr.bf16.mxu1 %v7471_v34  ;;  %v7497_v32 = vpack.c.bf16 %v1161_v11, %v1160_v5  ;;  %v1167_v43 = vld [vmem:[#allocation5 + $0x2048] sm:$0xff] }
 0x22a   :  { %7442 = vmatpush3.bf16.msra.mxu0 %v7441_v50  ;;  %v2049_v50 = vcombine.low %v110_v9, %v130_v22  ;;  %v2082_v10 = vcombine.high %v8233_v15, %v8236_v21  ;;  %v1180_v9 = vld [vmem:[#allocation5 + $0x20b0] sm:$0xff]  ;;  %v1181_v22 = vld [vmem:[#allocation5 + $0x20b8] sm:$0xff]  ;;  %v1219_v5 = vld [vmem:[#allocation5 + $0x21e8] sm:$0xff] }
 0x22b   :  { %7444 = vmatprep.subr.bf16.mxu0 %v7443_v52  ;;  %v1207_v52 = vld [vmem:[#allocation5 + $0x2188] sm:$0xff] }
 0x22c   :  { %7474 = vmatpush3.bf16.msra.mxu1 %v7473_v51  ;;  %v1206_v51 = vld [vmem:[#allocation5 + $0x2180] sm:$0xff]  ;;  %v8228_v17 = vrot.slane %v2049_v50, %v7896_v20 }
 0x22d   :  { %7476 = vmatprep.subr.bf16.mxu1 %v7475_v54  ;;  %v7457_v54 = vpack.c.bf16 %v1109_v42, %v1108_v41  ;;  %v7523_v57 = vpack.c.bf16 %v1207_v52, %v1206_v51  ;;  %v1165_v41 = vld [vmem:[#allocation5 + $0x2038] sm:$0xff]  ;;  %v1196_v42 = vld [vmem:[#allocation5 + $0x2130] sm:$0xff]  ;;  %v1166_v52 = vld [vmem:[#allocation5 + $0x2040] sm:$0xff] }
 0x22e   :  { %7446 = vmatpush3.bf16.msra.mxu0 %v7445_v58  ;;  %v1191_v58 = vld [vmem:[#allocation5 + $0x2108] sm:$0xff]  ;;  %v2080_v7 = vcombine.high %v8225_v53, %v8228_v17 }
 0x22f   :  { %7448 = vmatprep.subr.bf16.mxu0 %v7447_v62  ;;  %v1177_v62 = vld [vmem:[#allocation5 + $0x2098] sm:$0xff] }
 0x230   :  { %7478 = vmatpush3.bf16.msra.mxu1 %v7477_v61  ;;  %v5684_v0 = vpop.f32.mrb[16].mxu0  ;;  %v1176_v61 = vld [vmem:[#allocation5 + $0x2090] sm:$0xff] }
 0x231   :  { %7480 = vmatprep.subr.bf16.mxu1 %v7479_v63  ;;  %v5685_v25 = vpop.f32.mrb[17].mxu0  ;;  %v1208_v63 = vld [vmem:[#allocation5 + $0x2190] sm:$0xff]  ;;  %v7495_v2 = vpack.c.bf16 %v1177_v62, %v1176_v61 }
 0x232   :  { %v5719_v19 = vpop.f32.mrb[16].mxu1  ;;  %v5686_v28 = vadd.f32 %v5685_v25, %v5684_v0  ;;  %7450 = vmatpush3.bf16.msra.mxu0 %v7449_v8  ;;  %v7525_v8 = vpack.c.bf16 %v1191_v58, %v1190_v56  ;;  %v7527_v24 = vpack.c.bf16 %v1209_v59, %v1208_v63  ;;  %v1211_v0 = vld [vmem:[#allocation5 + $0x21a8] sm:$0xff]  ;;  %v1194_v25 = vld [vmem:[#allocation5 + $0x2120] sm:$0xff]  ;;  %v1217_v56 = vld [vmem:[#allocation5 + $0x21d8] sm:$0xff] }
 0x233   :  { %v5720_v29 = vpop.f32.mrb[17].mxu1  ;;  %7452 = vmatprep.subr.bf16.mxu0 %v7451_v14  ;;  %v1178_v14 = vld [vmem:[#allocation5 + $0x20a0] sm:$0xff]  ;;  %v1168_v62 = vld [vmem:[#allocation5 + $0x2050] sm:$0xff] }
 0x234   :  { %v5721_v36 = vadd.f32 %v5720_v29, %v5719_v19  ;;  %7482 = vmatpush3.bf16.msra.mxu1 %v7481_v18  ;;  %v3458_v34 = vadd.f32 %v5686_v28, %v8199_v49  ;;  %v1158_v49 = vld [vmem:[#allocation5 + $0x2000] sm:$0xff]  ;;  %v1193_v18 = vld [vmem:[#allocation5 + $0x2118] sm:$0xff]  ;;  %v7499_v30 = vpack.c.bf16 %v1179_v6, %v1178_v14  ;;  %v7531_v19 = vpack.c.bf16 %v1211_v0, %v1210_v60  ;;  %v1212_v28 = vld [vmem:[#allocation5 + $0x21b0] sm:$0xff] }
 0x235   :  { %7484 = vmatprep.subr.bf16.mxu1 %v7483_v31  ;;  %v7493_v3 = vpack.c.bf16 %v1159_v55, %v1158_v49  ;;  %v7529_v31 = vpack.c.bf16 %v1193_v18, %v1192_v1  ;;  %v1213_v29 = vld [vmem:[#allocation5 + $0x21b8] sm:$0xff]  ;;  %v1216_v55 = vld [vmem:[#allocation5 + $0x21d0] sm:$0xff]  ;;  %v1170_v1 = vld [vmem:[#allocation5 + $0x2060] sm:$0xff] }
 0x236   :  { %v8222_v48 = vadd.f32 %v5721_v36, %v3458_v34  ;;  %7454 = vmatpush3.bf16.msra.mxu0 %v7453_v35  ;;  %v7501_v35 = vpack.c.bf16 %v1163_v26, %v1162_v27  ;;  %v7533_v36 = vpack.c.bf16 %v1195_v12, %v1194_v25  ;;  %v7535_v33 = vpack.c.bf16 %v1213_v29, %v1212_v28  ;;  %v1197_v34 = vld [vmem:[#allocation5 + $0x2138] sm:$0xff]  ;;  %v1200_v63 = vld [vmem:[#allocation5 + $0x2150] sm:$0xff]  ;;  %v1202_v18 = vld [vmem:[#allocation5 + $0x2160] sm:$0xff] }
 0x237   :  { %7456 = vmatprep.subr.bf16.mxu0 %v7455_v40  ;;  %v1164_v40 = vld [vmem:[#allocation5 + $0x2030] sm:$0xff]  ;;  %v7537_v50 = vpack.c.bf16 %v1197_v34, %v1196_v42  ;;  %v1185_v49 = vld [vmem:[#allocation5 + $0x20d8] sm:$0xff]  ;;  %v7543_v59 = vpack.c.bf16 %v1217_v56, %v1216_v55  ;;  %v1254_v55 = vld [vmem:[#allocation5 + $0x2300] sm:$0xff] }
 0x238   :  { %7486 = vmatpush3.bf16.msra.mxu1 %v7485_v37  ;;  %v7503_v37 = vpack.c.bf16 %v1181_v22, %v1180_v9  ;;  %v7505_v47 = vpack.c.bf16 %v1165_v41, %v1164_v40  ;;  %v1188_v60 = vld [vmem:[#allocation5 + $0x20f0] sm:$0xff]  ;;  %v1189_v0 = vld [vmem:[#allocation5 + $0x20f8] sm:$0xff] }
 0x239   :  { %7488 = vmatprep.subr.bf16.mxu1 %v7487_v38  ;;  %v1182_v38 = vld [vmem:[#allocation5 + $0x20c0] sm:$0xff]  ;;  %v71_v27 = vld [vmem:[#allocation2 + $0x88] sm:$0xff]  ;;  %v1173_v41 = vld [vmem:[#allocation5 + $0x2078] sm:$0xff] }
 0x23a   :  { %7458 = vmatpush3.bf16.msra.mxu0 %v7457_v54  ;;  %v7507_v51 = vpack.c.bf16 %v1183_v39, %v1182_v38  ;;  %v7539_v54 = vpack.c.bf16 %v1215_v46, %v1214_v45  ;;  %v111_v12 = vld [vmem:[#allocation2 + $0x1c4] sm:$0xff]  ;;  %v1205_v38 = vld [vmem:[#allocation5 + $0x2178] sm:$0xff]  ;;  %v1238_v39 = vld [vmem:[#allocation5 + $0x2280] sm:$0xff] }
 0x23b   :  { %7492 = vmatprep.subr.bf16.mxu0 %v7491_v23  ;;  %v1184_v23 = vld [vmem:[#allocation5 + $0x20d0] sm:$0xff]  ;;  %v1239_v45 = vld [vmem:[#allocation5 + $0x2288] sm:$0xff] }
 0x23c   :  { %7490 = vmatpush3.bf16.msra.mxu1 %v7489_v16  ;;  %v1199_v16 = vld [vmem:[#allocation5 + $0x2148] sm:$0xff]  ;;  %v7511_v61 = vpack.c.bf16 %v1185_v49, %v1184_v23  ;;  %v1172_v40 = vld [vmem:[#allocation5 + $0x2070] sm:$0xff]  ;;  %v7555_v23 = vpack.c.bf16 %v1239_v45, %v1238_v39  ;;  %v1278_v39 = vld [vmem:[#allocation5 + $0x23c0] sm:$0xff] }
 0x23d   :  { %7524 = vmatprep.subr.bf16.mxu1 %v7523_v57  ;;  %4436 = vmatmul.mubr.f32.vlgmr.msra.gmra.mrb[30].mxu0 %v2043_v4  ;;  %v7509_v57 = vpack.c.bf16 %v1167_v43, %v1166_v52  ;;  %v7541_v58 = vpack.c.bf16 %v1199_v16, %v1198_v44  ;;  %v1169_v4 = vld [vmem:[#allocation5 + $0x2058] sm:$0xff]  ;;  %v131_v9 = vld [vmem:[#allocation2 + $0x262] sm:$0xff] }
 0x23e   :  { %7494 = vmatpush3.bf16.msra.mxu0 %v7493_v3  ;;  %4575 = vmatprep.mubr.f32.mxu0 %v2080_v7  ;;  %v1201_v3 = vld [vmem:[#allocation5 + $0x2158] sm:$0xff]  ;;  %v7513_v11 = vpack.c.bf16 %v1169_v4, %v1168_v62  ;;  %v1203_v7 = vld [vmem:[#allocation5 + $0x2168] sm:$0xff]  ;;  %v1204_v42 = vld [vmem:[#allocation5 + $0x2170] sm:$0xff]  ;;  %v2086_v43 = vcombine.high %v111_v12, %v131_v9 }
 0x23f   :  { %4506 = vmatmul.mubr.f32.vlgmr.msra.gmra.mrb[30].mxu1 %v2045_v13  ;;  %7496 = vmatprep.subr.bf16.mxu0 %v7495_v2  ;;  %v1186_v13 = vld [vmem:[#allocation5 + $0x20e0] sm:$0xff]  ;;  %v7545_v14 = vpack.c.bf16 %v1201_v3, %v1200_v63  ;;  %v7553_v16 = vpack.c.bf16 %v1205_v38, %v1204_v42  ;;  %v1223_v49 = vld [vmem:[#allocation5 + $0x2208] sm:$0xff]  ;;  %v2079_v63 = vcombine.low %v8225_v53, %v8228_v17  ;;  %v1273_v3 = vld [vmem:[#allocation5 + $0x2398] sm:$0xff] }
 0x240   :  { %7526 = vmatpush3.bf16.msra.mxu1 %v7525_v8  ;;  %4645 = vmatprep.mubr.f32.mxu1 %v2082_v10  ;;  %v1187_v8 = vld [vmem:[#allocation5 + $0x20e8] sm:$0xff]  ;;  %v1218_v2 = vld [vmem:[#allocation5 + $0x21e0] sm:$0xff]  ;;  %v1256_v53 = vld [vmem:[#allocation5 + $0x2310] sm:$0xff] }
 0x241   :  { %7528 = vmatprep.subr.bf16.mxu1 %v7527_v24  ;;  %v1171_v24 = vld [vmem:[#allocation5 + $0x2068] sm:$0xff]  ;;  %v7515_v6 = vpack.c.bf16 %v1187_v8, %v1186_v13  ;;  %v8259_v8 = vrot.slane %v2086_v43, %v7896_v20  ;;  %v1262_v43 = vld [vmem:[#allocation5 + $0x2340] sm:$0xff] }
 0x242   :  { %7498 = vmatpush3.bf16.msra.mxu0 %v7497_v32  ;;  %v7547_v32 = vpack.c.bf16 %v1219_v5, %v1218_v2  ;;  %v7517_v29 = vpack.c.bf16 %v1171_v24, %v1170_v1  ;;  %v2081_v5 = vcombine.low %v8233_v15, %v8236_v21  ;;  %v1224_v24 = vld [vmem:[#allocation5 + $0x2210] sm:$0xff]  ;;  %v1247_v38 = vld [vmem:[#allocation5 + $0x22c8] sm:$0xff] }
 0x243   :  { %7500 = vmatprep.subr.bf16.mxu0 %v7499_v30  ;;  %v1221_v30 = vld [vmem:[#allocation5 + $0x21f8] sm:$0xff]  ;;  %v1279_v45 = vld [vmem:[#allocation5 + $0x23c8] sm:$0xff] }
 0x244   :  { %7530 = vmatpush3.bf16.msra.mxu1 %v7529_v31  ;;  %v1220_v31 = vld [vmem:[#allocation5 + $0x21f0] sm:$0xff] }
 0x245   :  { %7532 = vmatprep.subr.bf16.mxu1 %v7531_v19  ;;  %v91_v19 = vld [vmem:[#allocation2 + $0x126] sm:$0xff]  ;;  %v7551_v34 = vpack.c.bf16 %v1221_v30, %v1220_v31  ;;  %v1226_v30 = vld [vmem:[#allocation5 + $0x2220] sm:$0xff] }
 0x246   :  { %7502 = vmatpush3.bf16.msra.mxu0 %v7501_v35  ;;  %v2083_v46 = vcombine.low %v71_v27, %v91_v19  ;;  %v2084_v52 = vcombine.high %v71_v27, %v91_v19  ;;  %v1227_v27 = vld [vmem:[#allocation5 + $0x2228] sm:$0xff] }
 0x247   :  { %7504 = vmatprep.subr.bf16.mxu0 %v7503_v37  ;;  %v7519_v37 = vpack.c.bf16 %v1189_v0, %v1188_v60  ;;  %v1274_v0 = vld [vmem:[#allocation5 + $0x23a0] sm:$0xff]  ;;  %v1259_v19 = vld [vmem:[#allocation5 + $0x2328] sm:$0xff] }
 0x248   :  { %7534 = vmatpush3.bf16.msra.mxu1 %v7533_v36  ;;  %v7549_v36 = vpack.c.bf16 %v1203_v7, %v1202_v18  ;;  %v8248_v62 = vrot.slane %v2083_v46, %v7896_v20  ;;  %v8256_v13 = vrot.slane %v2084_v52, %v7896_v20  ;;  %v1225_v18 = vld [vmem:[#allocation5 + $0x2218] sm:$0xff]  ;;  %v1243_v7 = vld [vmem:[#allocation5 + $0x22a8] sm:$0xff] }
 0x249   :  { %7536 = vmatprep.subr.bf16.mxu1 %v7535_v33  ;;  %v7561_v21 = vpack.c.bf16 %v1225_v18, %v1224_v24  ;;  %v1231_v52 = vld [vmem:[#allocation5 + $0x2248] sm:$0xff] }
 0x24a   :  { %7506 = vmatpush3.bf16.msra.mxu0 %v7505_v47  ;;  %v2085_v47 = vcombine.low %v111_v12, %v131_v9  ;;  %v2118_v15 = vcombine.high %v8256_v13, %v8259_v8  ;;  %v1244_v12 = vld [vmem:[#allocation5 + $0x22b0] sm:$0xff]  ;;  %v1245_v9 = vld [vmem:[#allocation5 + $0x22b8] sm:$0xff]  ;;  %v1283_v24 = vld [vmem:[#allocation5 + $0x23e8] sm:$0xff] }
 0x24b   :  { %7508 = vmatprep.subr.bf16.mxu0 %v7507_v51  ;;  %v1271_v51 = vld [vmem:[#allocation5 + $0x2388] sm:$0xff] }
 0x24c   :  { %7538 = vmatpush3.bf16.msra.mxu1 %v7537_v50  ;;  %v1270_v50 = vld [vmem:[#allocation5 + $0x2380] sm:$0xff]  ;;  %v8251_v4 = vrot.slane %v2085_v47, %v7896_v20 }
 0x24d   :  { %7540 = vmatprep.subr.bf16.mxu1 %v7539_v54  ;;  %v7521_v54 = vpack.c.bf16 %v1173_v41, %v1172_v40  ;;  %v7587_v56 = vpack.c.bf16 %v1271_v51, %v1270_v50  ;;  %v1229_v40 = vld [vmem:[#allocation5 + $0x2238] sm:$0xff]  ;;  %v1260_v41 = vld [vmem:[#allocation5 + $0x2330] sm:$0xff]  ;;  %v1230_v51 = vld [vmem:[#allocation5 + $0x2240] sm:$0xff] }
 0x24e   :  { %7510 = vmatpush3.bf16.msra.mxu0 %v7509_v57  ;;  %v1255_v57 = vld [vmem:[#allocation5 + $0x2308] sm:$0xff]  ;;  %v2116_v60 = vcombine.high %v8248_v62, %v8251_v4 }
 0x24f   :  { %7512 = vmatprep.subr.bf16.mxu0 %v7511_v61  ;;  %v1241_v61 = vld [vmem:[#allocation5 + $0x2298] sm:$0xff] }
 0x250   :  { %7542 = vmatpush3.bf16.msra.mxu1 %v7541_v58  ;;  %v5754_v10 = vpop.f32.mrb[18].mxu0  ;;  %v1240_v58 = vld [vmem:[#allocation5 + $0x2290] sm:$0xff] }
 0x251   :  { %7544 = vmatprep.subr.bf16.mxu1 %v7543_v59  ;;  %v5755_v26 = vpop.f32.mrb[19].mxu0  ;;  %v1272_v59 = vld [vmem:[#allocation5 + $0x2390] sm:$0xff]  ;;  %v7559_v1 = vpack.c.bf16 %v1241_v61, %v1240_v58 }
 0x252   :  { %v5789_v25 = vpop.f32.mrb[18].mxu1  ;;  %v5756_v22 = vadd.f32 %v5755_v26, %v5754_v10  ;;  %7514 = vmatpush3.bf16.msra.mxu0 %v7513_v11  ;;  %v7589_v11 = vpack.c.bf16 %v1255_v57, %v1254_v55  ;;  %v7591_v17 = vpack.c.bf16 %v1273_v3, %v1272_v59  ;;  %v1275_v10 = vld [vmem:[#allocation5 + $0x23a8] sm:$0xff]  ;;  %v1258_v26 = vld [vmem:[#allocation5 + $0x2320] sm:$0xff]  ;;  %v1281_v55 = vld [vmem:[#allocation5 + $0x23d8] sm:$0xff] }
 0x253   :  { %v5790_v28 = vpop.f32.mrb[19].mxu1  ;;  %7516 = vmatprep.subr.bf16.mxu0 %v7515_v6  ;;  %v1242_v6 = vld [vmem:[#allocation5 + $0x22a0] sm:$0xff]  ;;  %v1232_v61 = vld [vmem:[#allocation5 + $0x2250] sm:$0xff] }
 0x254   :  { %v5791_v35 = vadd.f32 %v5790_v28, %v5789_v25  ;;  %7546 = vmatpush3.bf16.msra.mxu1 %v7545_v14  ;;  %v3598_v33 = vadd.f32 %v5756_v22, %v8222_v48  ;;  %v1222_v48 = vld [vmem:[#allocation5 + $0x2200] sm:$0xff]  ;;  %v1257_v14 = vld [vmem:[#allocation5 + $0x2318] sm:$0xff]  ;;  %v7563_v31 = vpack.c.bf16 %v1243_v7, %v1242_v6  ;;  %v7595_v25 = vpack.c.bf16 %v1275_v10, %v1274_v0  ;;  %v1276_v22 = vld [vmem:[#allocation5 + $0x23b0] sm:$0xff] }
 0x255   :  { %7548 = vmatprep.subr.bf16.mxu1 %v7547_v32  ;;  %v7557_v2 = vpack.c.bf16 %v1223_v49, %v1222_v48  ;;  %v7593_v32 = vpack.c.bf16 %v1257_v14, %v1256_v53  ;;  %v1277_v28 = vld [vmem:[#allocation5 + $0x23b8] sm:$0xff]  ;;  %v1280_v49 = vld [vmem:[#allocation5 + $0x23d0] sm:$0xff]  ;;  %v1234_v53 = vld [vmem:[#allocation5 + $0x2260] sm:$0xff] }
 0x256   :  { %v8245_v44 = vadd.f32 %v5791_v35, %v3598_v33  ;;  %7518 = vmatpush3.bf16.msra.mxu0 %v7517_v29  ;;  %v7565_v29 = vpack.c.bf16 %v1227_v27, %v1226_v30  ;;  %v7597_v35 = vpack.c.bf16 %v1259_v19, %v1258_v26  ;;  %v7599_v42 = vpack.c.bf16 %v1277_v28, %v1276_v22  ;;  %v1261_v33 = vld [vmem:[#allocation5 + $0x2338] sm:$0xff]  ;;  %v1264_v59 = vld [vmem:[#allocation5 + $0x2350] sm:$0xff]  ;;  %v1266_v14 = vld [vmem:[#allocation5 + $0x2360] sm:$0xff] }
 0x257   :  { %7520 = vmatprep.subr.bf16.mxu0 %v7519_v37  ;;  %v1228_v37 = vld [vmem:[#allocation5 + $0x2230] sm:$0xff]  ;;  %v7601_v47 = vpack.c.bf16 %v1261_v33, %v1260_v41  ;;  %v1249_v48 = vld [vmem:[#allocation5 + $0x22d8] sm:$0xff]  ;;  %v7607_v3 = vpack.c.bf16 %v1281_v55, %v1280_v49  ;;  %v1318_v49 = vld [vmem:[#allocation5 + $0x2500] sm:$0xff] }
 0x258   :  { %7550 = vmatpush3.bf16.msra.mxu1 %v7549_v36  ;;  %v7567_v36 = vpack.c.bf16 %v1245_v9, %v1244_v12  ;;  %v7569_v46 = vpack.c.bf16 %v1229_v40, %v1228_v37  ;;  %v1252_v0 = vld [vmem:[#allocation5 + $0x22f0] sm:$0xff]  ;;  %v1253_v10 = vld [vmem:[#allocation5 + $0x22f8] sm:$0xff] }
 0x259   :  { %7552 = vmatprep.subr.bf16.mxu1 %v7551_v34  ;;  %v1246_v34 = vld [vmem:[#allocation5 + $0x22c0] sm:$0xff]  ;;  %v72_v30 = vld [vmem:[#allocation2 + $0x90] sm:$0xff]  ;;  %v1236_v37 = vld [vmem:[#allocation5 + $0x2270] sm:$0xff] }
 0x25a   :  { %7522 = vmatpush3.bf16.msra.mxu0 %v7521_v54  ;;  %v7571_v50 = vpack.c.bf16 %v1247_v38, %v1246_v34  ;;  %v7603_v54 = vpack.c.bf16 %v1279_v45, %v1278_v39  ;;  %v112_v19 = vld [vmem:[#allocation2 + $0x1cc] sm:$0xff]  ;;  %v1302_v38 = vld [vmem:[#allocation5 + $0x2480] sm:$0xff]  ;;  %v1303_v39 = vld [vmem:[#allocation5 + $0x2488] sm:$0xff] }
 0x25b   :  { %7556 = vmatprep.subr.bf16.mxu0 %v7555_v23  ;;  %v1248_v23 = vld [vmem:[#allocation5 + $0x22d0] sm:$0xff]  ;;  %v1237_v40 = vld [vmem:[#allocation5 + $0x2278] sm:$0xff] }
 0x25c   :  { %7554 = vmatpush3.bf16.msra.mxu1 %v7553_v16  ;;  %v1263_v16 = vld [vmem:[#allocation5 + $0x2348] sm:$0xff]  ;;  %v7575_v58 = vpack.c.bf16 %v1249_v48, %v1248_v23  ;;  %v132_v12 = vld [vmem:[#allocation2 + $0x26a] sm:$0xff]  ;;  %v7619_v23 = vpack.c.bf16 %v1303_v39, %v1302_v38  ;;  %v1342_v38 = vld [vmem:[#allocation5 + $0x25c0] sm:$0xff] }
 0x25d   :  { %7588 = vmatprep.subr.bf16.mxu1 %v7587_v56  ;;  %4576 = vmatmul.mubr.f32.vlgmr.msra.gmra.mrb[32].mxu0 %v2079_v63  ;;  %v7573_v56 = vpack.c.bf16 %v1231_v52, %v1230_v51  ;;  %v7605_v57 = vpack.c.bf16 %v1263_v16, %v1262_v43  ;;  %v1233_v63 = vld [vmem:[#allocation5 + $0x2258] sm:$0xff]  ;;  %v1268_v41 = vld [vmem:[#allocation5 + $0x2370] sm:$0xff]  ;;  %v2122_v52 = vcombine.high %v112_v19, %v132_v12  ;;  %v1287_v48 = vld [vmem:[#allocation5 + $0x2408] sm:$0xff] }
 0x25e   :  { %7558 = vmatpush3.bf16.msra.mxu0 %v7557_v2  ;;  %4715 = vmatprep.mubr.f32.mxu0 %v2116_v60  ;;  %v1265_v2 = vld [vmem:[#allocation5 + $0x2358] sm:$0xff]  ;;  %v7577_v18 = vpack.c.bf16 %v1233_v63, %v1232_v61  ;;  %v1267_v60 = vld [vmem:[#allocation5 + $0x2368] sm:$0xff] }
 0x25f   :  { %4646 = vmatmul.mubr.f32.vlgmr.msra.gmra.mrb[32].mxu1 %v2081_v5  ;;  %7560 = vmatprep.subr.bf16.mxu0 %v7559_v1  ;;  %v1250_v5 = vld [vmem:[#allocation5 + $0x22e0] sm:$0xff]  ;;  %v7609_v6 = vpack.c.bf16 %v1265_v2, %v1264_v59  ;;  %v1269_v34 = vld [vmem:[#allocation5 + $0x2378] sm:$0xff]  ;;  %v2115_v59 = vcombine.low %v8248_v62, %v8251_v4  ;;  %v1320_v62 = vld [vmem:[#allocation5 + $0x2510] sm:$0xff] }
 0x260   :  { %7590 = vmatpush3.bf16.msra.mxu1 %v7589_v11  ;;  %4785 = vmatprep.mubr.f32.mxu1 %v2118_v15  ;;  %v1251_v11 = vld [vmem:[#allocation5 + $0x22e8] sm:$0xff]  ;;  %v1282_v1 = vld [vmem:[#allocation5 + $0x23e0] sm:$0xff]  ;;  %v7617_v16 = vpack.c.bf16 %v1269_v34, %v1268_v41  ;;  %v1337_v2 = vld [vmem:[#allocation5 + $0x2598] sm:$0xff] }
 0x261   :  { %7592 = vmatprep.subr.bf16.mxu1 %v7591_v17  ;;  %v1235_v17 = vld [vmem:[#allocation5 + $0x2268] sm:$0xff]  ;;  %v7579_v7 = vpack.c.bf16 %v1251_v11, %v1250_v5  ;;  %v8282_v11 = vrot.slane %v2122_v52, %v7896_v20  ;;  %v1326_v52 = vld [vmem:[#allocation5 + $0x2540] sm:$0xff] }
 0x262   :  { %7562 = vmatpush3.bf16.msra.mxu0 %v7561_v21  ;;  %v7611_v21 = vpack.c.bf16 %v1283_v24, %v1282_v1  ;;  %v7581_v28 = vpack.c.bf16 %v1235_v17, %v1234_v53  ;;  %v2117_v24 = vcombine.low %v8256_v13, %v8259_v8  ;;  %v1288_v17 = vld [vmem:[#allocation5 + $0x2410] sm:$0xff]  ;;  %v1311_v34 = vld [vmem:[#allocation5 + $0x24c8] sm:$0xff] }
 0x263   :  { %7564 = vmatprep.subr.bf16.mxu0 %v7563_v31  ;;  %v1285_v31 = vld [vmem:[#allocation5 + $0x23f8] sm:$0xff]  ;;  %v1343_v39 = vld [vmem:[#allocation5 + $0x25c8] sm:$0xff] }
 0x264   :  { %7594 = vmatpush3.bf16.msra.mxu1 %v7593_v32  ;;  %v1284_v32 = vld [vmem:[#allocation5 + $0x23f0] sm:$0xff] }
 0x265   :  { %7596 = vmatprep.subr.bf16.mxu1 %v7595_v25  ;;  %v92_v25 = vld [vmem:[#allocation2 + $0x12e] sm:$0xff]  ;;  %v7615_v33 = vpack.c.bf16 %v1285_v31, %v1284_v32  ;;  %v1290_v31 = vld [vmem:[#allocation5 + $0x2420] sm:$0xff] }
 0x266   :  { %7566 = vmatpush3.bf16.msra.mxu0 %v7565_v29  ;;  %v2119_v45 = vcombine.low %v72_v30, %v92_v25  ;;  %v2120_v51 = vcombine.high %v72_v30, %v92_v25  ;;  %v1291_v30 = vld [vmem:[#allocation5 + $0x2428] sm:$0xff] }
 0x267   :  { %7568 = vmatprep.subr.bf16.mxu0 %v7567_v36  ;;  %v7583_v36 = vpack.c.bf16 %v1253_v10, %v1252_v0  ;;  %v1338_v10 = vld [vmem:[#allocation5 + $0x25a0] sm:$0xff]  ;;  %v1323_v25 = vld [vmem:[#allocation5 + $0x2528] sm:$0xff] }
 0x268   :  { %7598 = vmatpush3.bf16.msra.mxu1 %v7597_v35  ;;  %v7613_v35 = vpack.c.bf16 %v1267_v60, %v1266_v14  ;;  %v8271_v61 = vrot.slane %v2119_v45, %v7896_v20  ;;  %v8279_v5 = vrot.slane %v2120_v51, %v7896_v20  ;;  %v1289_v14 = vld [vmem:[#allocation5 + $0x2418] sm:$0xff]  ;;  %v1307_v60 = vld [vmem:[#allocation5 + $0x24a8] sm:$0xff] }
 0x269   :  { %7600 = vmatprep.subr.bf16.mxu1 %v7599_v42  ;;  %v7625_v8 = vpack.c.bf16 %v1289_v14, %v1288_v17  ;;  %v1295_v51 = vld [vmem:[#allocation5 + $0x2448] sm:$0xff]  ;;  %v1346_v17 = vld [vmem:[#allocation5 + $0x25e0] sm:$0xff] }
 0x26a   :  { %7570 = vmatpush3.bf16.msra.mxu0 %v7569_v46  ;;  %v2121_v46 = vcombine.low %v112_v19, %v132_v12  ;;  %v2154_v13 = vcombine.high %v8279_v5, %v8282_v11  ;;  %v1308_v19 = vld [vmem:[#allocation5 + $0x24b0] sm:$0xff]  ;;  %v1309_v12 = vld [vmem:[#allocation5 + $0x24b8] sm:$0xff]  ;;  %v1347_v14 = vld [vmem:[#allocation5 + $0x25e8] sm:$0xff] }
 0x26b   :  { %7572 = vmatprep.subr.bf16.mxu0 %v7571_v50  ;;  %v1335_v50 = vld [vmem:[#allocation5 + $0x2588] sm:$0xff] }
 0x26c   :  { %7602 = vmatpush3.bf16.msra.mxu1 %v7601_v47  ;;  %v1334_v47 = vld [vmem:[#allocation5 + $0x2580] sm:$0xff]  ;;  %v8274_v63 = vrot.slane %v2121_v46, %v7896_v20 }
 0x26d   :  { %7604 = vmatprep.subr.bf16.mxu1 %v7603_v54  ;;  %v7585_v54 = vpack.c.bf16 %v1237_v40, %v1236_v37  ;;  %v7651_v55 = vpack.c.bf16 %v1335_v50, %v1334_v47  ;;  %v1293_v37 = vld [vmem:[#allocation5 + $0x2438] sm:$0xff]  ;;  %v1324_v40 = vld [vmem:[#allocation5 + $0x2530] sm:$0xff]  ;;  %v1294_v50 = vld [vmem:[#allocation5 + $0x2440] sm:$0xff] }
 0x26e   :  { %7574 = vmatpush3.bf16.msra.mxu0 %v7573_v56  ;;  %v1319_v56 = vld [vmem:[#allocation5 + $0x2508] sm:$0xff]  ;;  %v2152_v0 = vcombine.high %v8271_v61, %v8274_v63 }
 0x26f   :  { %7576 = vmatprep.subr.bf16.mxu0 %v7575_v58  ;;  %v1305_v58 = vld [vmem:[#allocation5 + $0x2498] sm:$0xff] }
 0x270   :  { %7606 = vmatpush3.bf16.msra.mxu1 %v7605_v57  ;;  %v5824_v15 = vpop.f32.mrb[20].mxu0  ;;  %v1304_v57 = vld [vmem:[#allocation5 + $0x2490] sm:$0xff] }
 0x271   :  { %7608 = vmatprep.subr.bf16.mxu1 %v7607_v3  ;;  %v5825_v27 = vpop.f32.mrb[21].mxu0  ;;  %v1336_v3 = vld [vmem:[#allocation5 + $0x2590] sm:$0xff]  ;;  %v7623_v53 = vpack.c.bf16 %v1305_v58, %v1304_v57 }
 0x272   :  { %v5859_v26 = vpop.f32.mrb[20].mxu1  ;;  %v5826_v9 = vadd.f32 %v5825_v27, %v5824_v15  ;;  %7578 = vmatpush3.bf16.msra.mxu0 %v7577_v18  ;;  %v7653_v18 = vpack.c.bf16 %v1319_v56, %v1318_v49  ;;  %v7655_v4 = vpack.c.bf16 %v1337_v2, %v1336_v3  ;;  %v1339_v15 = vld [vmem:[#allocation5 + $0x25a8] sm:$0xff]  ;;  %v1322_v27 = vld [vmem:[#allocation5 + $0x2520] sm:$0xff]  ;;  %v1345_v49 = vld [vmem:[#allocation5 + $0x25d8] sm:$0xff] }
 0x273   :  { %v5860_v22 = vpop.f32.mrb[21].mxu1  ;;  %7580 = vmatprep.subr.bf16.mxu0 %v7579_v7  ;;  %v1306_v7 = vld [vmem:[#allocation5 + $0x24a0] sm:$0xff]  ;;  %v1296_v58 = vld [vmem:[#allocation5 + $0x2450] sm:$0xff] }
 0x274   :  { %v5861_v29 = vadd.f32 %v5860_v22, %v5859_v26  ;;  %7610 = vmatpush3.bf16.msra.mxu1 %v7609_v6  ;;  %v3738_v42 = vadd.f32 %v5826_v9, %v8245_v44  ;;  %v1286_v44 = vld [vmem:[#allocation5 + $0x2400] sm:$0xff]  ;;  %v1321_v6 = vld [vmem:[#allocation5 + $0x2518] sm:$0xff]  ;;  %v7627_v32 = vpack.c.bf16 %v1307_v60, %v1306_v7  ;;  %v7659_v26 = vpack.c.bf16 %v1339_v15, %v1338_v10  ;;  %v1340_v9 = vld [vmem:[#allocation5 + $0x25b0] sm:$0xff] }
 0x275   :  { %7612 = vmatprep.subr.bf16.mxu1 %v7611_v21  ;;  %v7621_v1 = vpack.c.bf16 %v1287_v48, %v1286_v44  ;;  %v7657_v21 = vpack.c.bf16 %v1321_v6, %v1320_v62  ;;  %v1341_v22 = vld [vmem:[#allocation5 + $0x25b8] sm:$0xff]  ;;  %v1344_v48 = vld [vmem:[#allocation5 + $0x25d0] sm:$0xff]  ;;  %v1330_v6 = vld [vmem:[#allocation5 + $0x2560] sm:$0xff] }
 0x276   :  { %v8268_v43 = vadd.f32 %v5861_v29, %v3738_v42  ;;  %7582 = vmatpush3.bf16.msra.mxu0 %v7581_v28  ;;  %v7629_v28 = vpack.c.bf16 %v1291_v30, %v1290_v31  ;;  %v7661_v29 = vpack.c.bf16 %v1323_v25, %v1322_v27  ;;  %v7663_v41 = vpack.c.bf16 %v1341_v22, %v1340_v9  ;;  %v1325_v42 = vld [vmem:[#allocation5 + $0x2538] sm:$0xff]  ;;  %v1328_v3 = vld [vmem:[#allocation5 + $0x2550] sm:$0xff]  ;;  %v1331_v7 = vld [vmem:[#allocation5 + $0x2568] sm:$0xff] }
 0x277   :  { %7584 = vmatprep.subr.bf16.mxu0 %v7583_v36  ;;  %v1292_v36 = vld [vmem:[#allocation5 + $0x2430] sm:$0xff]  ;;  %v7665_v46 = vpack.c.bf16 %v1325_v42, %v1324_v40  ;;  %v1313_v44 = vld [vmem:[#allocation5 + $0x24d8] sm:$0xff]  ;;  %v7671_v2 = vpack.c.bf16 %v1345_v49, %v1344_v48  ;;  %v73_v15 = vld [vmem:[#allocation2 + $0x98] sm:$0x3f] }
 0x278   :  { %7614 = vmatpush3.bf16.msra.mxu1 %v7613_v35  ;;  %v7631_v35 = vpack.c.bf16 %v1309_v12, %v1308_v19  ;;  %v7633_v45 = vpack.c.bf16 %v1293_v37, %v1292_v36  ;;  %v1316_v10 = vld [vmem:[#allocation5 + $0x24f0] sm:$0xff]  ;;  %v113_v31 = vld [vmem:[#allocation2 + $0x1d4] sm:$0x3f] }
 0x279   :  { %7616 = vmatprep.subr.bf16.mxu1 %v7615_v33  ;;  %v1310_v33 = vld [vmem:[#allocation5 + $0x24c0] sm:$0xff]  ;;  %v133_v30 = vld [vmem:[#allocation2 + $0x272] sm:$0x3f]  ;;  %v1348_v25 = vld [vmem:[#allocation5 + $0x25f0] sm:$0xff] }
 0x27a   :  { %7586 = vmatpush3.bf16.msra.mxu0 %v7585_v54  ;;  %v7635_v47 = vpack.c.bf16 %v1311_v34, %v1310_v33  ;;  %v7667_v54 = vpack.c.bf16 %v1343_v39, %v1342_v38  ;;  %v1349_v19 = vld [vmem:[#allocation5 + $0x25f8] sm:$0xff]  ;;  %v1332_v36 = vld [vmem:[#allocation5 + $0x2570] sm:$0xff]  ;;  %v1366_v33 = vld [vmem:[#allocation5 + $0x2680] sm:$0xff]  ;;  %v2157_v38 = vcombine.low %v113_v31, %v133_v30  ;;  %v2158_v49 = vcombine.high %v113_v31, %v133_v30 }
 0x27b   :  { %7620 = vmatprep.subr.bf16.mxu0 %v7619_v23  ;;  %v1312_v23 = vld [vmem:[#allocation5 + $0x24d0] sm:$0xff]  ;;  %v1333_v42 = vld [vmem:[#allocation5 + $0x2578] sm:$0xff]  ;;  %v1367_v34 = vld [vmem:[#allocation5 + $0x2688] sm:$0xff] }
 0x27c   :  { %7618 = vmatpush3.bf16.msra.mxu1 %v7617_v16  ;;  %v1327_v16 = vld [vmem:[#allocation5 + $0x2548] sm:$0xff]  ;;  %v7639_v57 = vpack.c.bf16 %v1313_v44, %v1312_v23  ;;  %v1368_v23 = vld [vmem:[#allocation5 + $0x2690] sm:$0xff]  ;;  %v1369_v44 = vld [vmem:[#allocation5 + $0x2698] sm:$0xff] }
 0x27d   :  { %7652 = vmatprep.subr.bf16.mxu1 %v7651_v55  ;;  %4716 = vmatmul.mubr.f32.vlgmr.msra.gmra.mrb[34].mxu0 %v2115_v59  ;;  %v7637_v55 = vpack.c.bf16 %v1295_v51, %v1294_v50  ;;  %v7669_v56 = vpack.c.bf16 %v1327_v16, %v1326_v52  ;;  %v1297_v59 = vld [vmem:[#allocation5 + $0x2458] sm:$0xff]  ;;  %v7681_v50 = vpack.c.bf16 %v1333_v42, %v1332_v36  ;;  %v1350_v52 = vld [vmem:[#allocation5 + $0x2600] sm:$0xff]  ;;  %v1351_v16 = vld [vmem:[#allocation5 + $0x2608] sm:$0xff] }
 0x27e   :  { %7622 = vmatpush3.bf16.msra.mxu0 %v7621_v1  ;;  %4855 = vmatprep.mubr.f32.mxu0 %v2152_v0  ;;  %v1329_v1 = vld [vmem:[#allocation5 + $0x2558] sm:$0xff]  ;;  %v7641_v62 = vpack.c.bf16 %v1297_v59, %v1296_v58  ;;  %v7683_v51 = vpack.c.bf16 %v1367_v34, %v1366_v33  ;;  %v7685_v58 = vpack.c.bf16 %v1351_v16, %v1350_v52  ;;  %v1358_v30 = vld [vmem:[#allocation5 + $0x2640] sm:$0xff]  ;;  %v1380_v42 = vld [vmem:[#allocation5 + $0x26f0] sm:$0xff] }
 0x27f   :  { %4786 = vmatmul.mubr.f32.vlgmr.msra.gmra.mrb[34].mxu1 %v2117_v24  ;;  %7624 = vmatprep.subr.bf16.mxu0 %v7623_v53  ;;  %v1314_v24 = vld [vmem:[#allocation5 + $0x24e0] sm:$0xff]  ;;  %v7673_v60 = vpack.c.bf16 %v1329_v1, %v1328_v3  ;;  %v2153_v59 = vcombine.low %v8279_v5, %v8282_v11  ;;  %v7687_v3 = vpack.c.bf16 %v1369_v44, %v1368_v23  ;;  %v1353_v1 = vld [vmem:[#allocation5 + $0x2618] sm:$0xff]  ;;  %v1364_v52 = vld [vmem:[#allocation5 + $0x2670] sm:$0xff] }
 0x280   :  { %7654 = vmatpush3.bf16.msra.mxu1 %v7653_v18  ;;  %4925 = vmatprep.mubr.f32.mxu1 %v2154_v13  ;;  %v1315_v18 = vld [vmem:[#allocation5 + $0x24e8] sm:$0xff]  ;;  %v1298_v53 = vld [vmem:[#allocation5 + $0x2460] sm:$0xff]  ;;  %v1381_v33 = vld [vmem:[#allocation5 + $0x26f8] sm:$0xff] }
 0x281   :  { %7656 = vmatprep.subr.bf16.mxu1 %v7655_v4  ;;  %v1299_v4 = vld [vmem:[#allocation5 + $0x2468] sm:$0xff]  ;;  %v7643_v0 = vpack.c.bf16 %v1315_v18, %v1314_v24  ;;  %v93_v13 = vld [vmem:[#allocation2 + $0x136] sm:$0x3f]  ;;  %v2186_v18 = vrot.slane %v2158_v49, %v7896_v20 }
 0x282   :  { %7626 = vmatpush3.bf16.msra.mxu0 %v7625_v8  ;;  %v7645_v22 = vpack.c.bf16 %v1299_v4, %v1298_v53  ;;  %v2155_v37 = vcombine.low %v73_v15, %v93_v13  ;;  %v2156_v48 = vcombine.high %v73_v15, %v93_v13  ;;  %v1355_v4 = vld [vmem:[#allocation5 + $0x2628] sm:$0xff]  ;;  %v1356_v15 = vld [vmem:[#allocation5 + $0x2630] sm:$0xff]  ;;  %v1357_v13 = vld [vmem:[#allocation5 + $0x2638] sm:$0xff] }
 0x283   :  { %7628 = vmatprep.subr.bf16.mxu0 %v7627_v32  ;;  %v1317_v32 = vld [vmem:[#allocation5 + $0x24f8] sm:$0xff] }
 0x284   :  { %7658 = vmatpush3.bf16.msra.mxu1 %v7657_v21  ;;  %v7675_v21 = vpack.c.bf16 %v1347_v14, %v1346_v17  ;;  %v2172_v24 = vrot.slane %v2156_v48, %v7896_v20  ;;  %v7834_v17 = vmov 0.0|0.0   ;;  %v1365_v16 = vld [vmem:[#allocation5 + $0x2678] sm:$0xff] }
 0x285   :  { %7660 = vmatprep.subr.bf16.mxu1 %v7659_v26  ;;  %v7713_v48 = vpack.c.bf16 %v1365_v16, %v1364_v52 }
 0x286   :  { %7630 = vmatpush3.bf16.msra.mxu0 %v7629_v28  ;;  %v7677_v28 = vpack.c.bf16 %v1331_v7, %v1330_v6  ;;  %v2189_v6 = vcombine.low %v2172_v24, %v2186_v18  ;;  %v1372_v7 = vld [vmem:[#allocation5 + $0x26b0] sm:$0xff] }
 0x287   :  { %7632 = vmatprep.subr.bf16.mxu0 %v7631_v35  ;;  %v1301_v35 = vld [vmem:[#allocation5 + $0x2478] sm:$0xff] }
 0x288   :  { %7662 = vmatpush3.bf16.msra.mxu1 %v7661_v29  ;;  %v1300_v29 = vld [vmem:[#allocation5 + $0x2470] sm:$0xff] }
 0x289   :  { %7664 = vmatprep.subr.bf16.mxu1 %v7663_v41  ;;  %v7647_v41 = vpack.c.bf16 %v1317_v32, %v1316_v10  ;;  %v7697_v32 = vpack.c.bf16 %v1357_v13, %v1356_v15 }
 0x28a   :  { %7634 = vmatpush3.bf16.msra.mxu0 %v7633_v45  ;;  %v7679_v45 = vpack.c.bf16 %v1349_v19, %v1348_v25  ;;  %v1377_v25 = vld [vmem:[#allocation5 + $0x26d8] sm:$0xff] }
 0x28b   :  { %7636 = vmatprep.subr.bf16.mxu0 %v7635_v47 }
 0x28c   :  { %7666 = vmatpush3.bf16.msra.mxu1 %v7665_v46  ;;  %v7649_v46 = vpack.c.bf16 %v1301_v35, %v1300_v29  ;;  %v1379_v29 = vld [vmem:[#allocation5 + $0x26e8] sm:$0xff] }
 0x28d   :  { %7668 = vmatprep.subr.bf16.mxu1 %v7667_v54  ;;  %v8294_v54 = vrot.slane %v2155_v37, %v7896_v20  ;;  %v1362_v37 = vld [vmem:[#allocation5 + $0x2660] sm:$0xff] }
 0x28e   :  { %7638 = vmatpush3.bf16.msra.mxu0 %v7637_v55  ;;  %v2151_v55 = vcombine.low %v8271_v61, %v8274_v63  ;;  %v1370_v61 = vld [vmem:[#allocation5 + $0x26a0] sm:$0xff]  ;;  %v1371_v63 = vld [vmem:[#allocation5 + $0x26a8] sm:$0xff] }
 0x28f   :  { %7640 = vmatprep.subr.bf16.mxu0 %v7639_v57  ;;  %v1383_v57 = vld [vmem:[#allocation5 + $0x2708] sm:$0xff]  ;;  %v7691_v11 = vpack.c.bf16 %v1371_v63, %v1370_v61 }
 0x290   :  { %7670 = vmatpush3.bf16.msra.mxu1 %v7669_v56  ;;  %v5894_v8 = vpop.f32.mrb[22].mxu0  ;;  %v1382_v56 = vld [vmem:[#allocation5 + $0x2700] sm:$0xff] }
 0x291   :  { %7672 = vmatprep.subr.bf16.mxu1 %v7671_v2  ;;  %v5895_v27 = vpop.f32.mrb[23].mxu0  ;;  %v1352_v2 = vld [vmem:[#allocation5 + $0x2610] sm:$0xff]  ;;  %v7716_v14 = vpack.c.bf16 %v1383_v57, %v1382_v56 }
 0x292   :  { %v5929_v26 = vpop.f32.mrb[22].mxu1  ;;  %v5896_v12 = vadd.f32 %v5895_v27, %v5894_v8  ;;  %7642 = vmatpush3.bf16.msra.mxu0 %v7641_v62  ;;  %v7689_v5 = vpack.c.bf16 %v1353_v1, %v1352_v2  ;;  %v1354_v62 = vld [vmem:[#allocation5 + $0x2620] sm:$0xff]  ;;  %v1359_v27 = vld [vmem:[#allocation5 + $0x2648] sm:$0xff] }
 0x293   :  { %v5930_v9 = vpop.f32.mrb[23].mxu1  ;;  %7644 = vmatprep.subr.bf16.mxu0 %v7643_v0  ;;  %v7693_v0 = vpack.c.bf16 %v1355_v4, %v1354_v62  ;;  %v1374_v8 = vld [vmem:[#allocation5 + $0x26c0] sm:$0xff]  ;;  %v7701_v19 = vpack.c.bf16 %v1359_v27, %v1358_v30 }
 0x294   :  { %v5931_v40 = vadd.f32 %v5930_v9, %v5929_v26  ;;  %7674 = vmatpush3.bf16.msra.mxu1 %v7673_v60  ;;  %v3878_v39 = vadd.f32 %v5896_v12, %v8268_v43  ;;  %v8297_v43 = vrot.slane %v2157_v38, %v7896_v20  ;;  %v1373_v20 = vld [vmem:[#allocation5 + $0x26b8] sm:$0xff]  ;;  %v7836_v60 = vmov 0.0   ;;  %v1376_v26 = vld [vmem:[#allocation5 + $0x26d0] sm:$0xff] }
 0x295   :  { %7676 = vmatprep.subr.bf16.mxu1 %v7675_v21  ;;  %v7695_v10 = vpack.c.bf16 %v1373_v20, %v1372_v7  ;;  %v1375_v21 = vld [vmem:[#allocation5 + $0x26c8] sm:$0xff]  ;;  %v7703_v12 = vpack.c.bf16 %v1377_v25, %v1376_v26  ;;  %v1360_v9 = vld [vmem:[#allocation5 + $0x2650] sm:$0xff] }
 0x296   :  { %v8291_v47 = vadd.f32 %v5931_v40, %v3878_v39  ;;  %7646 = vmatpush3.bf16.msra.mxu0 %v7645_v22  ;;  %v2188_v53 = vcombine.high %v8294_v54, %v8297_v43  ;;  %v7699_v31 = vpack.c.bf16 %v1375_v21, %v1374_v8  ;;  %v1361_v22 = vld [vmem:[#allocation5 + $0x2658] sm:$0xff]  ;;  %v1363_v40 = vld [vmem:[#allocation5 + $0x2668] sm:$0xff]  ;;  %v2187_v49 = vcombine.low %v8294_v54, %v8297_v43 }
 0x297   :  { %7648 = vmatprep.subr.bf16.mxu0 %v7647_v41  ;;  %v7705_v35 = vpack.c.bf16 %v1361_v22, %v1360_v9 }
 0x298   :  { %7678 = vmatpush3.bf16.msra.mxu1 %v7677_v28  ;;  %v1378_v28 = vld [vmem:[#allocation5 + $0x26e0] sm:$0xff] }
 0x299   :  { %7680 = vmatprep.subr.bf16.mxu1 %v7679_v45  ;;  %v7707_v36 = vpack.c.bf16 %v1379_v29, %v1378_v28 }
 0x29a   :  { %7650 = vmatpush3.bf16.msra.mxu0 %v7649_v46  ;;  %v7709_v46 = vpack.c.bf16 %v1363_v40, %v1362_v37 }
 0x29b   :  { %7684 = vmatprep.subr.bf16.mxu0 %v7683_v51  ;;  %v7711_v51 = vpack.c.bf16 %v1381_v33, %v1380_v42 }
 0x29c   :  { %7682 = vmatpush3.bf16.msra.mxu1 %v7681_v50 }
 0x29d   :  { %7715 = vmatprep.subr.bf16.mxu1 %v7834_v17  ;;  %4856 = vmatmul.mubr.f32.vlgmr.msra.gmra.mrb[36].mxu0 %v2151_v55 }
 0x29e   :  { %7686 = vmatpush3.bf16.msra.mxu0 %v7685_v58  ;;  %4995 = vmatprep.mubr.f32.mxu0 %v2188_v53 }
 0x29f   :  { %4926 = vmatmul.mubr.f32.vlgmr.msra.gmra.mrb[36].mxu1 %v2153_v59  ;;  %7688 = vmatprep.subr.bf16.mxu0 %v7687_v3 }
 0x2a0   :  { %7717 = vmatpush3.bf16.msra.mxu1 %v7716_v14  ;;  %6464 = vmatprep.mubr.msk.f32.mxu1 %vm7835_vm0, %v7836_v60 }
 0x2a2   :  { %7690 = vmatpush3.bf16.msra.mxu0 %v7689_v5 }
 0x2a3   :  { %7692 = vmatprep.subr.bf16.mxu0 %v7691_v11  ;;  %6465 = vmatmul.mubr.msk.f32.vlgmr.msra.gmra.mrb[38].mxu1 %vm2268_vm1, %v2189_v6 }
 0x2a6   :  { %7694 = vmatpush3.bf16.msra.mxu0 %v7693_v0 }
 0x2a7   :  { %7696 = vmatprep.subr.bf16.mxu0 %v7695_v10 }
 0x2aa   :  { %7698 = vmatpush3.bf16.msra.mxu0 %v7697_v32 }
 0x2ab   :  { %7700 = vmatprep.subr.bf16.mxu0 %v7699_v31 }
 0x2ae   :  { %7702 = vmatpush3.bf16.msra.mxu0 %v7701_v19 }
 0x2af   :  { %7704 = vmatprep.subr.bf16.mxu0 %v7703_v12 }
 0x2b0   :  { %v5964_v41 = vpop.f32.mrb[24].mxu0 }
 0x2b1   :  { %v5965_v34 = vpop.f32.mrb[25].mxu0 }
 0x2b2   :  { %v5999_v38 = vpop.f32.mrb[24].mxu1  ;;  %v5966_v39 = vadd.f32 %v5965_v34, %v5964_v41  ;;  %7706 = vmatpush3.bf16.msra.mxu0 %v7705_v35 }
 0x2b3   :  { %v6000_v45 = vpop.f32.mrb[25].mxu1  ;;  %7708 = vmatprep.subr.bf16.mxu0 %v7707_v36 }
 0x2b4   :  { %v6001_v50 = vadd.f32 %v6000_v45, %v5999_v38  ;;  %v4018_v23 = vadd.f32 %v5966_v39, %v8291_v47 }
 0x2b6   :  { %v4088_v44 = vadd.f32 %v6001_v50, %v4018_v23  ;;  %7710 = vmatpush3.bf16.msra.mxu0 %v7709_v46 }
 0x2b7   :  { %7712 = vmatprep.subr.bf16.mxu0 %v7711_v51 }
 0x2ba   :  { %7714 = vmatpush3.bf16.msra.mxu0 %v7713_v48 }
 0x2bd   :  { %4996 = vmatmul.mubr.f32.vlgmr.msra.gmra.mrb[38].mxu0 %v2187_v49 }
 0x2d0   :  { %v6034_v55 = vpop.f32.mrb[26].mxu0 }
 0x2d1   :  { %v6035_v56 = vpop.f32.mrb[27].mxu0 }
 0x2d2   :  { %v6069_v57 = vpop.f32.mrb[26].mxu1  ;;  %v6036_v58 = vadd.f32 %v6035_v56, %v6034_v55 }
 0x2d3   :  { %v6070_v59 = vpop.f32.mrb[27].mxu1 }
 0x2d4   :  { %v6071_v3 = vadd.f32 %v6070_v59, %v6069_v57  ;;  %v4158_v2 = vadd.f32 %v6036_v58, %v4088_v44 }
 0x2d6   :  { %v4228_v1 = vadd.f32 %v6071_v3, %v4158_v2 }
 0x2f0   :  { %v6104_v24 = vpop.f32.mrb[28].mxu0 }
 0x2f1   :  { %v6105_v18 = vpop.f32.mrb[29].mxu0 }
 0x2f2   :  { %v6139_v47 = vpop.f32.mrb[28].mxu1  ;;  %v6106_v53 = vadd.f32 %v6105_v18, %v6104_v24 }
 0x2f3   :  { %v6140_v61 = vpop.f32.mrb[29].mxu1 }
 0x2f4   :  { %v6141_v63 = vadd.f32 %v6140_v61, %v6139_v47  ;;  %v4298_v17 = vadd.f32 %v6106_v53, %v4228_v1 }
 0x2f6   :  { %v4368_v14 = vadd.f32 %v6141_v63, %v4298_v17 }
 0x310   :  { %v6174_v5 = vpop.f32.mrb[30].mxu0 }
 0x311   :  { %v6175_v54 = vpop.f32.mrb[31].mxu0 }
 0x312   :  { %v6209_v43 = vpop.f32.mrb[30].mxu1  ;;  %v6176_v11 = vadd.f32 %v6175_v54, %v6174_v5 }
 0x313   :  { %v6210_v62 = vpop.f32.mrb[31].mxu1 }
 0x314   :  { %v6211_v4 = vadd.f32 %v6210_v62, %v6209_v43  ;;  %v4438_v6 = vadd.f32 %v6176_v11, %v4368_v14 }
 0x316   :  { %v4508_v7 = vadd.f32 %v6211_v4, %v4438_v6 }
 0x330   :  { %v6244_v20 = vpop.f32.mrb[32].mxu0 }
 0x331   :  { %v6245_v60 = vpop.f32.mrb[33].mxu0 }
 0x332   :  { %v6279_v0 = vpop.f32.mrb[32].mxu1  ;;  %v6246_v10 = vadd.f32 %v6245_v60, %v6244_v20 }
 0x333   :  { %v6280_v15 = vpop.f32.mrb[33].mxu1 }
 0x334   :  { %v6281_v13 = vadd.f32 %v6280_v15, %v6279_v0  ;;  %v4578_v8 = vadd.f32 %v6246_v10, %v4508_v7 }
 0x336   :  { %v4648_v21 = vadd.f32 %v6281_v13, %v4578_v8 }
 0x350   :  { %v6314_v32 = vpop.f32.mrb[34].mxu0 }
 0x351   :  { %v6315_v31 = vpop.f32.mrb[35].mxu0 }
 0x352   :  { %v6349_v30 = vpop.f32.mrb[34].mxu1  ;;  %v6316_v27 = vadd.f32 %v6315_v31, %v6314_v32 }
 0x353   :  { %v6350_v26 = vpop.f32.mrb[35].mxu1 }
 0x354   :  { %v6351_v25 = vadd.f32 %v6350_v26, %v6349_v30  ;;  %v4718_v19 = vadd.f32 %v6316_v27, %v4648_v21 }
 0x356   :  { %v4788_v12 = vadd.f32 %v6351_v25, %v4718_v19 }
 0x370   :  { %v6384_v9 = vpop.f32.mrb[36].mxu0 }
 0x371   :  { %v6385_v22 = vpop.f32.mrb[37].mxu0 }
 0x372   :  { %v6419_v28 = vpop.f32.mrb[36].mxu1  ;;  %v6386_v29 = vadd.f32 %v6385_v22, %v6384_v9 }
 0x373   :  { %v6420_v35 = vpop.f32.mrb[37].mxu1 }
 0x374   :  { %v6421_v36 = vadd.f32 %v6420_v35, %v6419_v28  ;;  %v4858_v37 = vadd.f32 %v6386_v29, %v4788_v12 }
 0x376   :  { %v4928_v40 = vadd.f32 %v6421_v36, %v4858_v37  ;;  %v5067_v41 = vpop.f32.mrb[38].mxu1 }
 0x377   :  { %v6466_v42 = vpop.f32.mrb[39].mxu1 }
 0x390   :  { %v6454_v33 = vpop.f32.mrb[38].mxu0 }
 0x391   :  { %v6455_v34 = vpop.f32.mrb[39].mxu0 }
 0x392   :  { %v6456_v38 = vadd.f32 %v6455_v34, %v6454_v33 }
 0x394   :  { %v4998_v39 = vadd.f32 %v6456_v38, %v4928_v40 }
 0x396   :  { %v5068_v45 = vadd.f32 %v5067_v41, %v4998_v39 }
 0x398   :  { %5071 = vst [vmem:[#allocation8] sm:$0xff] %v5068_v45 }
 0x399   :  { %5076 = vsyncadd [#allocation4], 96  ;;  %s7837_s2 = smov [#allocation8]  }
 0x39a   :  { %s5077_s25 = sshll.u32 %s7837_s2, 4  ;;  %s5078_s25 = int_to_ptr.vmem [resolvable:$true] %s5077_s25 }
 0x39b   :  { %s7798_s26 = scalar_lea.vmem %s5078_s25, 32  ;;  %s7802_s27 = scalar_lea.vmem %s5078_s25, 128 }
 0x39c   :  { %p7799_p10 = scmp.ne.s32.totalorder %s5078_s25, %s7798_s26  ;;  %p7803_p11 = scmp.lt.s32.totalorder %s5078_s25, %s5078_s25 }
 0x39d   :  { %p7804_p12 = scmp.lt.s32.totalorder %s7802_s27, %s7798_s26 }
 0x39f   :  { %p7805_p13 = por %p7804_p12, %p7803_p11 }
 0x3a1   :  { %p7806_p0 = pnand %p7805_p13, %p7799_p10 }
 0x3a3   :  { %7809 = shalt.err (!%p7806_p0)
}
 0x3a4   :  { %s7810_s30 = scalar_lea.hbm %s8325_s3, 32 }
 0x3a5   :  { %p7811_p1 = scmp.ne.s32.totalorder %s8325_s3, %s7810_s30  ;;  %p7814_p2 = scmp.lt.u32.totalorder %s7810_s30, %s8325_s3 }
 0x3a7   :  { %p7816_p3 = pnand %p7814_p2, %p7811_p1 }
 0x3a9   :  { %7819 = shalt.err (!%p7816_p3)
}
 0x3aa   :  { %s7838_s8 = smov 32   ;;  %s7839_s1 = smov 2  }
 0x3ab   :  { %5083 = dma.vmem_to_hbm [thread:$0]  %s5078_s25, 32, %s8325_s3, [#allocation4], %s7838_s8, %s7838_s8, %s7839_s1  }
 0x3ac   :  { %7824 = dma.done.wait [#allocation4], 128  }
 0x3ad   :  { %7825 = vsyncadd [#allocation4], 4294967168 }
 0x3ae   :  { %5087 = vsyncpa [#allocation3], 1 }
 0x3af   :  { %5088 = vsyncpa [#allocation6], 1 }
 0x3b0   :  { %5089 = vsyncpa [#allocation4], 1 }

</bundles_post_ra>
